<compile_context>
chip_gen: v5e
topology: v5e:2x2
jax: 0.10.0
libtpu: 0.0.40
codegen_flags: <defaults>
</compile_context>

<pallas_src>
import jax
import jax.numpy as jnp
from jax import lax
from jax.experimental import pallas as pl
from jax.experimental.pallas import tpu as pltpu

EPS = 1e-5
_LANE = 128


def _cdiv(a, b):
    return -(-a // b)


def _round_up(x, m):
    return _cdiv(x, m) * m


def _vmem_limit_bytes():
    """Generation-aware scoped-VMEM limit (v7x has only 64 MiB physical)."""
    cap = 64 * 1024 * 1024                      # conservative fallback (v7x)
    try:
        info = pltpu.get_tpu_info()
        cap = int(getattr(info, "vmem_capacity_bytes", cap)) or cap
    except Exception:
        pass
    return int(min(cap * 3 // 4, 96 * 1024 * 1024))


def _tile_caps(vmem_limit):
    if vmem_limit >= 80 * 1024 * 1024:          # v5e / v6e (128 MiB physical)
        return 32768, 4096
    return 16384, 2048                          # v7x / unknown


def _pick_tile(m, cap, min_steps=4):
    """Largest 128-multiple tile <= cap, preferring >= min_steps grid steps."""
    m_pad = _round_up(max(m, 1), _LANE)
    tile = _round_up(_cdiv(m_pad, min_steps), _LANE)
    return max(_LANE, min(tile, cap, m_pad))


# ------------------------------ Pallas kernels ------------------------------

def _conv1_stats_kernel(w_ref, p_ref, s_ref, acc_ref):
    """BN1 statistics only: z = w1^T(C1,9) @ patches^T(9,T); accumulate
    per-channel [sum; sumsq] in a VMEM scratch, emit once at the last step."""
    @pl.when(pl.program_id(0) == 0)
    def _():
        acc_ref[...] = jnp.zeros_like(acc_ref)

    z = jnp.dot(w_ref[...], p_ref[...], preferred_element_type=jnp.float32)
    zz = jnp.concatenate([z, z * z], axis=0)                  # (2*C1, T)
    acc_ref[...] += jnp.sum(zz, axis=1, keepdims=True)        # one lane reduce

    @pl.when(pl.program_id(0) == pl.num_programs(0) - 1)
    def _():
        s_ref[...] = acc_ref[...]


def _fused_pool_conv2_kernel(w1_ref, sc_ref, sh_ref, w2_ref, p_ref, o_ref):
    """Recompute conv1 per tile, fuse BN1 affine + ReLU + 2x2 max-pool + conv2.

    p_ref : (36, 9, T) grouped conv1 patches; group g = (dh*2+dw)*9 + (ki*3+kj)
    w1_ref: (C1, 9)    conv1 weight^T
    sc/sh : (C1, 1)    BN1 scale / shift per conv1 channel
    w2_ref: (C2, 9*C1) conv2 weight^T, rows ordered (ki, kj, c)
    """
    w1t = w1_ref[...]
    sc = sc_ref[...]
    sh = sh_ref[...]

    pooled_parts = []
    for idx in range(9):                                      # (ki, kj)
        zmax = None
        zmin = None
        for s in range(4):                                    # (dh, dw) window
            zg = jnp.dot(w1t, p_ref[s * 9 + idx],
                         preferred_element_type=jnp.float32)  # (C1, T)
            zmax = zg if zmax is None else jnp.maximum(zmax, zg)
            zmin = zg if zmin is None else jnp.minimum(zmin, zg)
        # max over the window of relu(sc*z + sh) is attained at either the
        # window max or min of z (monotone affine) -> exact for any sign of sc.
        pooled_parts.append(
            jnp.maximum(jnp.maximum(zmax * sc + sh, zmin * sc + sh), 0.0))

    pooled = jnp.concatenate(pooled_parts, axis=0)            # (9*C1, T)
    o_ref[...] = jnp.dot(w2_ref[...], pooled,
                         preferred_element_type=jnp.float32)  # (C2, T)


# ----------------------------- kernel wrappers -------------------------------

def _conv1_stats(w1t, p1t, tile, vmem_limit):
    c1, k1 = w1t.shape
    m_pad = p1t.shape[1]
    grid = m_pad // tile
    return pl.pallas_call(
        _conv1_stats_kernel,
        grid=(grid,),
        in_specs=[
            pl.BlockSpec((c1, k1), lambda i: (0, 0)),
            pl.BlockSpec((k1, tile), lambda i: (0, i)),
        ],
        out_specs=pl.BlockSpec((2 * c1, 1), lambda i: (0, 0)),
        out_shape=jax.ShapeDtypeStruct((2 * c1, 1), jnp.float32),
        scratch_shapes=[pltpu.VMEM((2 * c1, 1), jnp.float32)],
        compiler_params=pltpu.CompilerParams(
            dimension_semantics=("arbitrary",),
            vmem_limit_bytes=vmem_limit),
    )(w1t, p1t)


def _fused_pool_conv2(w1t, sc, sh, w2t, p1g, tile, vmem_limit):
    c1, k1 = w1t.shape
    c2, k2 = w2t.shape
    m_pad = p1g.shape[-1]
    grid = m_pad // tile
    return pl.pallas_call(
        _fused_pool_conv2_kernel,
        grid=(grid,),
        in_specs=[
            pl.BlockSpec((c1, k1), lambda i: (0, 0)),
            pl.BlockSpec((c1, 1), lambda i: (0, 0)),
            pl.BlockSpec((c1, 1), lambda i: (0, 0)),
            pl.BlockSpec((c2, k2), lambda i: (0, 0)),
            pl.BlockSpec((36, k1, tile), lambda i: (0, 0, i)),
        ],
        out_specs=pl.BlockSpec((c2, tile), lambda i: (0, i)),
        out_shape=jax.ShapeDtypeStruct((c2, m_pad), jnp.float32),
        compiler_params=pltpu.CompilerParams(
            dimension_semantics=("parallel",),
            vmem_limit_bytes=vmem_limit),
    )(w1t, sc, sh, w2t, p1g)


def _bn_scale_shift(psum, psq, count, gamma, beta):
    """Fold training-mode BN (biased variance, eps inside rsqrt) into one FMA."""
    mean = psum / count
    var = jnp.maximum(psq / count - mean * mean, 0.0)
    scale = gamma * lax.rsqrt(var + EPS)
    shift = beta - mean * scale
    return scale, shift


# ------------------------------- full forward --------------------------------

def gaf_layers_forward(x, params):
    """x: (N, 1, H, W) float32 NCHW.  Returns (N, 12, H2, W2) NCHW."""
    # A conv bias followed by training-mode BatchNorm cancels exactly
    # ((y + b) - mean(y + b) == y - mean(y)), so b1/b2 never enter the kernels.
    w1, b1, g1, be1, w2, b2, g2, be2 = params
    del b1, b2
    N, cin, H, W = x.shape
    assert cin == 1
    C1 = w1.shape[-1]
    C2 = w2.shape[-1]

    H1, W1 = (H - 3) // 3 + 1, (W - 3) // 3 + 1       # conv1 output grid
    Hp, Wp = H1 // 2, W1 // 2                         # maxpool output grid
    H2, W2 = (Hp - 3) // 3 + 1, (Wp - 3) // 3 + 1     # conv2 output grid

    vmem_limit = _vmem_limit_bytes()
    cap1, cap2 = _tile_caps(vmem_limit)
    w1t = w1.reshape(9, C1).T                                         # (C1, 9)

    # ---- pass 1: BN1 statistics over ALL conv1 positions (flat im2col) -----
    M1 = N * H1 * W1
    tile1 = _pick_tile(M1, cap1)
    M1p = _round_up(M1, tile1)
    xs = x[:, 0, :3 * H1, :3 * W1]                                    # (N,3H1,3W1)
    p1t = (xs.reshape(N, H1, 3, W1, 3)
             .transpose(2, 4, 0, 1, 3)                                # (a,b,n,h1,w1)
             .reshape(9, M1))
    p1t = jnp.pad(p1t, ((0, 0), (0, M1p - M1)))

    st1 = _conv1_stats(w1t, p1t, tile1, vmem_limit)                   # (2*C1, 1)
    scale1, shift1 = _bn_scale_shift(st1[:C1, 0], st1[C1:, 0], M1, g1, be1)

    # ---- pass 2: fused conv1-recompute + BN1 + ReLU + pool + conv2 ----------
    # Grouped conv1 patches built directly from the tiny 1-channel input:
    # group g = (dh,dw,ki,kj); row q = (a,b); column m = (n,oi,oj).
    M2 = N * H2 * W2
    tile2 = _pick_tile(M2, cap2)
    M2p = _round_up(M2, tile2)
    xg = x[:, 0, :18 * H2, :18 * W2]                                  # (N,18H2,18W2)
    p1g = (xg.reshape(N, H2, 3, 2, 3, W2, 3, 2, 3)    # n oi ki dh a oj kj dw b
             .transpose(3, 7, 2, 6, 4, 8, 0, 1, 5)    # dh dw ki kj a b n oi oj
             .reshape(36, 9, M2))
    p1g = jnp.pad(p1g, ((0, 0), (0, 0), (0, M2p - M2)))
    w2t = w2.reshape(9 * C1, C2).T                    # (C2, 9*C1), rows (ki,kj,c)

    z2 = _fused_pool_conv2(w1t, scale1.reshape(C1, 1), shift1.reshape(C1, 1),
                           w2t, p1g, tile2, vmem_limit)               # (C2, M2p)
    z2 = z2[:, :M2]

    # ---- BN2 + affine + NCHW layout: z2 is tiny, let XLA fuse one pass ------
    mean2 = jnp.mean(z2, axis=1, keepdims=True)
    var2 = jnp.mean(jnp.square(z2 - mean2), axis=1, keepdims=True)
    scale2 = g2.reshape(C2, 1) * lax.rsqrt(var2 + EPS)
    shift2 = be2.reshape(C2, 1) - mean2 * scale2
    y2 = z2 * scale2 + shift2
    return y2.reshape(C2, N, H2, W2).transpose(1, 0, 2, 3)            # NCHW


# ------------------------------ pure-JAX reference ---------------------------

def reference_forward(x, params):
    w1, b1, g1, be1, w2, b2, g2, be2 = params
    dn = ('NCHW', 'OIHW', 'NCHW')

    def bn(y, g, be):
        mean = y.mean(axis=(0, 2, 3), keepdims=True)
        var = jnp.square(y - mean).mean(axis=(0, 2, 3), keepdims=True)
        return (y - mean) / jnp.sqrt(var + EPS) * g.reshape(1, -1, 1, 1) + be.reshape(1, -1, 1, 1)

    y = lax.conv_general_dilated(x, w1.transpose(3, 2, 0, 1), (3, 3), 'VALID',
                                 dimension_numbers=dn) + b1.reshape(1, -1, 1, 1)
    y = jnp.maximum(bn(y, g1, be1), 0.0)
    y = lax.reduce_window(y, -jnp.inf, lax.max, (1, 1, 2, 2), (1, 1, 2, 2), 'VALID')
    y = lax.conv_general_dilated(y, w2.transpose(3, 2, 0, 1), (3, 3), 'VALID',
                                 dimension_numbers=dn) + b2.reshape(1, -1, 1, 1)
    return bn(y, g2, be2)


# ----------------------------------- main ------------------------------------

if __name__ == "__main__":
    mid_ch, num_graphs = 32, 6
    out_ch = num_graphs * 2

    key = jax.random.PRNGKey(0)
    ks = jax.random.split(key, 9)

    # Deterministic synthetic parameters (HWIO conv weights).
    w1 = 0.1 * jax.random.normal(ks[0], (3, 3, 1, mid_ch), jnp.float32)
    b1 = 0.1 * jax.random.normal(ks[1], (mid_ch,), jnp.float32)
    g1 = 1.0 + 0.1 * jax.random.normal(ks[2], (mid_ch,), jnp.float32)
    be1 = 0.1 * jax.random.normal(ks[3], (mid_ch,), jnp.float32)
    w2 = 0.05 * jax.random.normal(ks[4], (3, 3, mid_ch, out_ch), jnp.float32)
    b2 = 0.1 * jax.random.normal(ks[5], (out_ch,), jnp.float32)
    g2 = 1.0 + 0.1 * jax.random.normal(ks[6], (out_ch,), jnp.float32)
    be2 = 0.1 * jax.random.normal(ks[7], (out_ch,), jnp.float32)
    params = (w1, b1, g1, be1, w2, b2, g2, be2)

    # Small input consistent with the architecture: 36 -> 12 -> 6 -> 2.
    x = jax.random.normal(ks[8], (2, 1, 36, 36), jnp.float32)

    out = jax.block_until_ready(jax.jit(gaf_layers_forward)(x, params))
    ref = jax.block_until_ready(reference_forward(x, params))

    assert out.shape == (2, out_ch, 2, 2), out.shape
    max_err = float(jnp.abs(out - ref).max())
    assert jnp.allclose(out, ref, atol=2e-4, rtol=2e-4), max_err

    print("KERNEL_OK")
</pallas_src>

<mosaic_0001>
module attributes {stable_mosaic.version = 11 : i64} {
  func.func @_conv1_stats_kernel(%arg0: i32, %arg1: memref<32x9xf32, #tpu.memory_space<vmem>>, %arg2: memref<9x128xf32, #tpu.memory_space<vmem>>, %arg3: memref<64x1xf32, #tpu.memory_space<vmem>>, %arg4: memref<64x1xf32, #tpu.memory_space<vmem>>) attributes {dimension_semantics = [#tpu.dimension_semantics<arbitrary>], iteration_bounds = array<i64: 3>, scalar_prefetch = 0 : i64, scratch_operands = 1 : i64, tpu.core_type = #tpu.core_type<tc>, window_params = [{pipeline_mode = #tpu.pipeline_mode<synchronous>, transform_indices = @transform_0, window_bounds = array<i64: 32, 9>}, {transform_indices = @transform_1, window_bounds = array<i64: 9, 128>}, {pipeline_mode = #tpu.pipeline_mode<synchronous>, transform_indices = @transform_2, window_bounds = array<i64: 64, 1>}]} {
    %c0_i32 = arith.constant 0 : i32
    %0 = arith.cmpi eq, %arg0, %c0_i32 : i32
    %1 = arith.extui %0 : i1 to i32
    %c0_i32_0 = arith.constant 0 : i32
    %2 = arith.cmpi ne, %1, %c0_i32_0 : i32
    scf.if %2 {
      %cst_10 = arith.constant 0.000000e+00 : f32
      %16 = vector.broadcast %cst_10 : f32 to vector<64x1xf32>
      %c0_11 = arith.constant 0 : index
      %c0_12 = arith.constant 0 : index
      %17 = vector.load %arg4[%c0_11, %c0_12] : memref<64x1xf32, #tpu.memory_space<vmem>>, vector<64x1xf32>
      tpu.vector_store %arg4[%c0_11, %c0_12], %16 {strides = array<i32>} : memref<64x1xf32, #tpu.memory_space<vmem>>, vector<64x1xf32>,
    } else {
    }
    %c0 = arith.constant 0 : index
    %c0_1 = arith.constant 0 : index
    %3 = vector.load %arg1[%c0, %c0_1] : memref<32x9xf32, #tpu.memory_space<vmem>>, vector<32x9xf32>
    %c0_2 = arith.constant 0 : index
    %c0_3 = arith.constant 0 : index
    %4 = vector.load %arg2[%c0_2, %c0_3] : memref<9x128xf32, #tpu.memory_space<vmem>>, vector<9x128xf32>
    %cst = arith.constant dense<0.000000e+00> : vector<32x128xf32>
    %5 = tpu.matmul %3, %4, %cst {dimension_numbers = #tpu.dot_dimension_numbers<[1], [0], [0], [1], [0, 0, 1, 1], [], []>} : vector<32x9xf32>, vector<9x128xf32>, vector<32x128xf32> -> vector<32x128xf32>
    %6 = arith.mulf %5, %5 : vector<32x128xf32>
    %7 = tpu.concatenate %5, %6 in 0 : vector<32x128xf32>, vector<32x128xf32> -> vector<64x128xf32>
    %c0_4 = arith.constant 0 : index
    %c0_5 = arith.constant 0 : index
    %8 = vector.load %arg4[%c0_4, %c0_5] : memref<64x1xf32, #tpu.memory_space<vmem>>, vector<64x1xf32>
    %cst_6 = arith.constant dense<0.000000e+00> : vector<64xf32>
    %9 = vector.multi_reduction <add>, %7, %cst_6 [1] : vector<64x128xf32> to vector<64xf32>
    %10 = vector.shape_cast %9 : vector<64xf32> to vector<64x1xf32>
    %11 = arith.addf %8, %10 : vector<64x1xf32>
    %c0_7 = arith.constant 0 : index
    %c0_8 = arith.constant 0 : index
    %12 = vector.load %arg4[%c0_7, %c0_8] : memref<64x1xf32, #tpu.memory_space<vmem>>, vector<64x1xf32>
    tpu.vector_store %arg4[%c0_7, %c0_8], %11 {strides = array<i32>} : memref<64x1xf32, #tpu.memory_space<vmem>>, vector<64x1xf32>,
    %c2_i32 = arith.constant 2 : i32
    %13 = arith.cmpi eq, %arg0, %c2_i32 : i32
    %14 = arith.extui %13 : i1 to i32
    %c0_i32_9 = arith.constant 0 : i32
    %15 = arith.cmpi ne, %14, %c0_i32_9 : i32
    scf.if %15 {
      %c0_10 = arith.constant 0 : index
      %c0_11 = arith.constant 0 : index
      %16 = vector.load %arg4[%c0_10, %c0_11] : memref<64x1xf32, #tpu.memory_space<vmem>>, vector<64x1xf32>
      %c0_12 = arith.constant 0 : index
      %c0_13 = arith.constant 0 : index
      %17 = vector.load %arg3[%c0_12, %c0_13] : memref<64x1xf32, #tpu.memory_space<vmem>>, vector<64x1xf32>
      tpu.vector_store %arg3[%c0_12, %c0_13], %16 {strides = array<i32>} : memref<64x1xf32, #tpu.memory_space<vmem>>, vector<64x1xf32>,
    } else {
    }
    return
  }
  func.func @transform_0(%arg0: i32) -> (i32, i32) {
    %c0_i32 = arith.constant 0 : i32
    %c0_i32_0 = arith.constant 0 : i32
    %c0_i32_1 = arith.constant 0 : i32
    return %c0_i32, %c0_i32_0 : i32, i32
  }
  func.func @transform_1(%arg0: i32) -> (i32, i32) {
    %c0_i32 = arith.constant 0 : i32
    %c0_i32_0 = arith.constant 0 : i32
    return %c0_i32, %arg0 : i32, i32
  }
  func.func @transform_2(%arg0: i32) -> (i32, i32) {
    %c0_i32 = arith.constant 0 : i32
    %c0_i32_0 = arith.constant 0 : i32
    %c0_i32_1 = arith.constant 0 : i32
    return %c0_i32, %c0_i32_0 : i32, i32
  }
}

module attributes {stable_mosaic.version = 11 : i64} {
  func.func @_fused_pool_conv2_kernel(%arg0: i32, %arg1: memref<32x9xf32, #tpu.memory_space<vmem>>, %arg2: memref<32x1xf32, #tpu.memory_space<vmem>>, %arg3: memref<32x1xf32, #tpu.memory_space<vmem>>, %arg4: memref<12x288xf32, #tpu.memory_space<vmem>>, %arg5: memref<36x9x128xf32, #tpu.memory_space<vmem>>, %arg6: memref<12x128xf32, #tpu.memory_space<vmem>>) attributes {dimension_semantics = [#tpu.dimension_semantics<parallel>], iteration_bounds = array<i64: 1>, scalar_prefetch = 0 : i64, scratch_operands = 0 : i64, tpu.core_type = #tpu.core_type<tc>, window_params = [{pipeline_mode = #tpu.pipeline_mode<synchronous>, transform_indices = @transform_0, window_bounds = array<i64: 32, 9>}, {pipeline_mode = #tpu.pipeline_mode<synchronous>, transform_indices = @transform_1, window_bounds = array<i64: 32, 1>}, {pipeline_mode = #tpu.pipeline_mode<synchronous>, transform_indices = @transform_2, window_bounds = array<i64: 32, 1>}, {pipeline_mode = #tpu.pipeline_mode<synchronous>, transform_indices = @transform_3, window_bounds = array<i64: 12, 288>}, {transform_indices = @transform_4, window_bounds = array<i64: 36, 9, 128>}, {transform_indices = @transform_5, window_bounds = array<i64: 12, 128>}]} {
    %c0 = arith.constant 0 : index
    %c0_0 = arith.constant 0 : index
    %0 = vector.load %arg1[%c0, %c0_0] : memref<32x9xf32, #tpu.memory_space<vmem>>, vector<32x9xf32>
    %c0_1 = arith.constant 0 : index
    %c0_2 = arith.constant 0 : index
    %1 = vector.load %arg2[%c0_1, %c0_2] : memref<32x1xf32, #tpu.memory_space<vmem>>, vector<32x1xf32>
    %c0_3 = arith.constant 0 : index
    %c0_4 = arith.constant 0 : index
    %2 = vector.load %arg3[%c0_3, %c0_4] : memref<32x1xf32, #tpu.memory_space<vmem>>, vector<32x1xf32>
    %c0_5 = arith.constant 0 : index
    %c0_6 = arith.constant 0 : index
    %c0_7 = arith.constant 0 : index
    %3 = vector.load %arg5[%c0_5, %c0_6, %c0_7] : memref<36x9x128xf32, #tpu.memory_space<vmem>>, vector<1x9x128xf32>
    %4 = vector.shape_cast %3 : vector<1x9x128xf32> to vector<9x128xf32>
    %cst = arith.constant dense<0.000000e+00> : vector<32x128xf32>
    %5 = tpu.matmul %0, %4, %cst {dimension_numbers = #tpu.dot_dimension_numbers<[1], [0], [0], [1], [0, 0, 1, 1], [], []>} : vector<32x9xf32>, vector<9x128xf32>, vector<32x128xf32> -> vector<32x128xf32>
    %c9 = arith.constant 9 : index
    %c0_8 = arith.constant 0 : index
    %c0_9 = arith.constant 0 : index
    %6 = vector.load %arg5[%c9, %c0_8, %c0_9] : memref<36x9x128xf32, #tpu.memory_space<vmem>>, vector<1x9x128xf32>
    %7 = vector.shape_cast %6 : vector<1x9x128xf32> to vector<9x128xf32>
    %cst_10 = arith.constant dense<0.000000e+00> : vector<32x128xf32>
    %8 = tpu.matmul %0, %7, %cst_10 {dimension_numbers = #tpu.dot_dimension_numbers<[1], [0], [0], [1], [0, 0, 1, 1], [], []>} : vector<32x9xf32>, vector<9x128xf32>, vector<32x128xf32> -> vector<32x128xf32>
    %9 = arith.maximumf %5, %8 : vector<32x128xf32>
    %10 = arith.minimumf %5, %8 : vector<32x128xf32>
    %c18 = arith.constant 18 : index
    %c0_11 = arith.constant 0 : index
    %c0_12 = arith.constant 0 : index
    %11 = vector.load %arg5[%c18, %c0_11, %c0_12] : memref<36x9x128xf32, #tpu.memory_space<vmem>>, vector<1x9x128xf32>
    %12 = vector.shape_cast %11 : vector<1x9x128xf32> to vector<9x128xf32>
    %cst_13 = arith.constant dense<0.000000e+00> : vector<32x128xf32>
    %13 = tpu.matmul %0, %12, %cst_13 {dimension_numbers = #tpu.dot_dimension_numbers<[1], [0], [0], [1], [0, 0, 1, 1], [], []>} : vector<32x9xf32>, vector<9x128xf32>, vector<32x128xf32> -> vector<32x128xf32>
    %14 = arith.maximumf %9, %13 : vector<32x128xf32>
    %15 = arith.minimumf %10, %13 : vector<32x128xf32>
    %c27 = arith.constant 27 : index
    %c0_14 = arith.constant 0 : index
    %c0_15 = arith.constant 0 : index
    %16 = vector.load %arg5[%c27, %c0_14, %c0_15] : memref<36x9x128xf32, #tpu.memory_space<vmem>>, vector<1x9x128xf32>
    %17 = vector.shape_cast %16 : vector<1x9x128xf32> to vector<9x128xf32>
    %cst_16 = arith.constant dense<0.000000e+00> : vector<32x128xf32>
    %18 = tpu.matmul %0, %17, %cst_16 {dimension_numbers = #tpu.dot_dimension_numbers<[1], [0], [0], [1], [0, 0, 1, 1], [], []>} : vector<32x9xf32>, vector<9x128xf32>, vector<32x128xf32> -> vector<32x128xf32>
    %19 = arith.maximumf %14, %18 : vector<32x128xf32>
    %20 = arith.minimumf %15, %18 : vector<32x128xf32>
    %21 = vector.broadcast %1 : vector<32x1xf32> to vector<32x128xf32>
    %22 = arith.mulf %19, %21 : vector<32x128xf32>
    %23 = vector.broadcast %2 : vector<32x1xf32> to vector<32x128xf32>
    %24 = arith.addf %22, %23 : vector<32x128xf32>
    %25 = vector.broadcast %1 : vector<32x1xf32> to vector<32x128xf32>
    %26 = arith.mulf %20, %25 : vector<32x128xf32>
    %27 = vector.broadcast %2 : vector<32x1xf32> to vector<32x128xf32>
    %28 = arith.addf %26, %27 : vector<32x128xf32>
    %29 = arith.maximumf %24, %28 : vector<32x128xf32>
    %cst_17 = arith.constant 0.000000e+00 : f32
    %30 = vector.broadcast %cst_17 : f32 to vector<32x128xf32>
    %31 = arith.maximumf %29, %30 : vector<32x128xf32>
    %c1 = arith.constant 1 : index
    %c0_18 = arith.constant 0 : index
    %c0_19 = arith.constant 0 : index
    %32 = vector.load %arg5[%c1, %c0_18, %c0_19] : memref<36x9x128xf32, #tpu.memory_space<vmem>>, vector<1x9x128xf32>
    %33 = vector.shape_cast %32 : vector<1x9x128xf32> to vector<9x128xf32>
    %cst_20 = arith.constant dense<0.000000e+00> : vector<32x128xf32>
    %34 = tpu.matmul %0, %33, %cst_20 {dimension_numbers = #tpu.dot_dimension_numbers<[1], [0], [0], [1], [0, 0, 1, 1], [], []>} : vector<32x9xf32>, vector<9x128xf32>, vector<32x128xf32> -> vector<32x128xf32>
    %c10 = arith.constant 10 : index
    %c0_21 = arith.constant 0 : index
    %c0_22 = arith.constant 0 : index
    %35 = vector.load %arg5[%c10, %c0_21, %c0_22] : memref<36x9x128xf32, #tpu.memory_space<vmem>>, vector<1x9x128xf32>
    %36 = vector.shape_cast %35 : vector<1x9x128xf32> to vector<9x128xf32>
    %cst_23 = arith.constant dense<0.000000e+00> : vector<32x128xf32>
    %37 = tpu.matmul %0, %36, %cst_23 {dimension_numbers = #tpu.dot_dimension_numbers<[1], [0], [0], [1], [0, 0, 1, 1], [], []>} : vector<32x9xf32>, vector<9x128xf32>, vector<32x128xf32> -> vector<32x128xf32>
    %38 = arith.maximumf %34, %37 : vector<32x128xf32>
    %39 = arith.minimumf %34, %37 : vector<32x128xf32>
    %c19 = arith.constant 19 : index
    %c0_24 = arith.constant 0 : index
    %c0_25 = arith.constant 0 : index
    %40 = vector.load %arg5[%c19, %c0_24, %c0_25] : memref<36x9x128xf32, #tpu.memory_space<vmem>>, vector<1x9x128xf32>
    %41 = vector.shape_cast %40 : vector<1x9x128xf32> to vector<9x128xf32>
    %cst_26 = arith.constant dense<0.000000e+00> : vector<32x128xf32>
    %42 = tpu.matmul %0, %41, %cst_26 {dimension_numbers = #tpu.dot_dimension_numbers<[1], [0], [0], [1], [0, 0, 1, 1], [], []>} : vector<32x9xf32>, vector<9x128xf32>, vector<32x128xf32> -> vector<32x128xf32>
    %43 = arith.maximumf %38, %42 : vector<32x128xf32>
    %44 = arith.minimumf %39, %42 : vector<32x128xf32>
    %c28 = arith.constant 28 : index
    %c0_27 = arith.constant 0 : index
    %c0_28 = arith.constant 0 : index
    %45 = vector.load %arg5[%c28, %c0_27, %c0_28] : memref<36x9x128xf32, #tpu.memory_space<vmem>>, vector<1x9x128xf32>
    %46 = vector.shape_cast %45 : vector<1x9x128xf32> to vector<9x128xf32>
    %cst_29 = arith.constant dense<0.000000e+00> : vector<32x128xf32>
    %47 = tpu.matmul %0, %46, %cst_29 {dimension_numbers = #tpu.dot_dimension_numbers<[1], [0], [0], [1], [0, 0, 1, 1], [], []>} : vector<32x9xf32>, vector<9x128xf32>, vector<32x128xf32> -> vector<32x128xf32>
    %48 = arith.maximumf %43, %47 : vector<32x128xf32>
    %49 = arith.minimumf %44, %47 : vector<32x128xf32>
    %50 = vector.broadcast %1 : vector<32x1xf32> to vector<32x128xf32>
    %51 = arith.mulf %48, %50 : vector<32x128xf32>
    %52 = vector.broadcast %2 : vector<32x1xf32> to vector<32x128xf32>
    %53 = arith.addf %51, %52 : vector<32x128xf32>
    %54 = vector.broadcast %1 : vector<32x1xf32> to vector<32x128xf32>
    %55 = arith.mulf %49, %54 : vector<32x128xf32>
    %56 = vector.broadcast %2 : vector<32x1xf32> to vector<32x128xf32>
    %57 = arith.addf %55, %56 : vector<32x128xf32>
    %58 = arith.maximumf %53, %57 : vector<32x128xf32>
    %cst_30 = arith.constant 0.000000e+00 : f32
    %59 = vector.broadcast %cst_30 : f32 to vector<32x128xf32>
    %60 = arith.maximumf %58, %59 : vector<32x128xf32>
    %c2 = arith.constant 2 : index
    %c0_31 = arith.constant 0 : index
    %c0_32 = arith.constant 0 : index
    %61 = vector.load %arg5[%c2, %c0_31, %c0_32] : memref<36x9x128xf32, #tpu.memory_space<vmem>>, vector<1x9x128xf32>
    %62 = vector.shape_cast %61 : vector<1x9x128xf32> to vector<9x128xf32>
    %cst_33 = arith.constant dense<0.000000e+00> : vector<32x128xf32>
    %63 = tpu.matmul %0, %62, %cst_33 {dimension_numbers = #tpu.dot_dimension_numbers<[1], [0], [0], [1], [0, 0, 1, 1], [], []>} : vector<32x9xf32>, vector<9x128xf32>, vector<32x128xf32> -> vector<32x128xf32>
    %c11 = arith.constant 11 : index
    %c0_34 = arith.constant 0 : index
    %c0_35 = arith.constant 0 : index
    %64 = vector.load %arg5[%c11, %c0_34, %c0_35] : memref<36x9x128xf32, #tpu.memory_space<vmem>>, vector<1x9x128xf32>
    %65 = vector.shape_cast %64 : vector<1x9x128xf32> to vector<9x128xf32>
    %cst_36 = arith.constant dense<0.000000e+00> : vector<32x128xf32>
    %66 = tpu.matmul %0, %65, %cst_36 {dimension_numbers = #tpu.dot_dimension_numbers<[1], [0], [0], [1], [0, 0, 1, 1], [], []>} : vector<32x9xf32>, vector<9x128xf32>, vector<32x128xf32> -> vector<32x128xf32>
    %67 = arith.maximumf %63, %66 : vector<32x128xf32>
    %68 = arith.minimumf %63, %66 : vector<32x128xf32>
    %c20 = arith.constant 20 : index
    %c0_37 = arith.constant 0 : index
    %c0_38 = arith.constant 0 : index
    %69 = vector.load %arg5[%c20, %c0_37, %c0_38] : memref<36x9x128xf32, #tpu.memory_space<vmem>>, vector<1x9x128xf32>
    %70 = vector.shape_cast %69 : vector<1x9x128xf32> to vector<9x128xf32>
    %cst_39 = arith.constant dense<0.000000e+00> : vector<32x128xf32>
    %71 = tpu.matmul %0, %70, %cst_39 {dimension_numbers = #tpu.dot_dimension_numbers<[1], [0], [0], [1], [0, 0, 1, 1], [], []>} : vector<32x9xf32>, vector<9x128xf32>, vector<32x128xf32> -> vector<32x128xf32>
    %72 = arith.maximumf %67, %71 : vector<32x128xf32>
    %73 = arith.minimumf %68, %71 : vector<32x128xf32>
    %c29 = arith.constant 29 : index
    %c0_40 = arith.constant 0 : index
    %c0_41 = arith.constant 0 : index
    %74 = vector.load %arg5[%c29, %c0_40, %c0_41] : memref<36x9x128xf32, #tpu.memory_space<vmem>>, vector<1x9x128xf32>
    %75 = vector.shape_cast %74 : vector<1x9x128xf32> to vector<9x128xf32>
    %cst_42 = arith.constant dense<0.000000e+00> : vector<32x128xf32>
    %76 = tpu.matmul %0, %75, %cst_42 {dimension_numbers = #tpu.dot_dimension_numbers<[1], [0], [0], [1], [0, 0, 1, 1], [], []>} : vector<32x9xf32>, vector<9x128xf32>, vector<32x128xf32> -> vector<32x128xf32>
    %77 = arith.maximumf %72, %76 : vector<32x128xf32>
    %78 = arith.minimumf %73, %76 : vector<32x128xf32>
    %79 = vector.broadcast %1 : vector<32x1xf32> to vector<32x128xf32>
    %80 = arith.mulf %77, %79 : vector<32x128xf32>
    %81 = vector.broadcast %2 : vector<32x1xf32> to vector<32x128xf32>
    %82 = arith.addf %80, %81 : vector<32x128xf32>
    %83 = vector.broadcast %1 : vector<32x1xf32> to vector<32x128xf32>
    %84 = arith.mulf %78, %83 : vector<32x128xf32>
    %85 = vector.broadcast %2 : vector<32x1xf32> to vector<32x128xf32>
    %86 = arith.addf %84, %85 : vector<32x128xf32>
    %87 = arith.maximumf %82, %86 : vector<32x128xf32>
    %cst_43 = arith.constant 0.000000e+00 : f32
    %88 = vector.broadcast %cst_43 : f32 to vector<32x128xf32>
    %89 = arith.maximumf %87, %88 : vector<32x128xf32>
    %c3 = arith.constant 3 : index
    %c0_44 = arith.constant 0 : index
    %c0_45 = arith.constant 0 : index
    %90 = vector.load %arg5[%c3, %c0_44, %c0_45] : memref<36x9x128xf32, #tpu.memory_space<vmem>>, vector<1x9x128xf32>
    %91 = vector.shape_cast %90 : vector<1x9x128xf32> to vector<9x128xf32>
    %cst_46 = arith.constant dense<0.000000e+00> : vector<32x128xf32>
    %92 = tpu.matmul %0, %91, %cst_46 {dimension_numbers = #tpu.dot_dimension_numbers<[1], [0], [0], [1], [0, 0, 1, 1], [], []>} : vector<32x9xf32>, vector<9x128xf32>, vector<32x128xf32> -> vector<32x128xf32>
    %c12 = arith.constant 12 : index
    %c0_47 = arith.constant 0 : index
    %c0_48 = arith.constant 0 : index
    %93 = vector.load %arg5[%c12, %c0_47, %c0_48] : memref<36x9x128xf32, #tpu.memory_space<vmem>>, vector<1x9x128xf32>
    %94 = vector.shape_cast %93 : vector<1x9x128xf32> to vector<9x128xf32>
    %cst_49 = arith.constant dense<0.000000e+00> : vector<32x128xf32>
    %95 = tpu.matmul %0, %94, %cst_49 {dimension_numbers = #tpu.dot_dimension_numbers<[1], [0], [0], [1], [0, 0, 1, 1], [], []>} : vector<32x9xf32>, vector<9x128xf32>, vector<32x128xf32> -> vector<32x128xf32>
    %96 = arith.maximumf %92, %95 : vector<32x128xf32>
    %97 = arith.minimumf %92, %95 : vector<32x128xf32>
    %c21 = arith.constant 21 : index
    %c0_50 = arith.constant 0 : index
    %c0_51 = arith.constant 0 : index
    %98 = vector.load %arg5[%c21, %c0_50, %c0_51] : memref<36x9x128xf32, #tpu.memory_space<vmem>>, vector<1x9x128xf32>
    %99 = vector.shape_cast %98 : vector<1x9x128xf32> to vector<9x128xf32>
    %cst_52 = arith.constant dense<0.000000e+00> : vector<32x128xf32>
    %100 = tpu.matmul %0, %99, %cst_52 {dimension_numbers = #tpu.dot_dimension_numbers<[1], [0], [0], [1], [0, 0, 1, 1], [], []>} : vector<32x9xf32>, vector<9x128xf32>, vector<32x128xf32> -> vector<32x128xf32>
    %101 = arith.maximumf %96, %100 : vector<32x128xf32>
    %102 = arith.minimumf %97, %100 : vector<32x128xf32>
    %c30 = arith.constant 30 : index
    %c0_53 = arith.constant 0 : index
    %c0_54 = arith.constant 0 : index
    %103 = vector.load %arg5[%c30, %c0_53, %c0_54] : memref<36x9x128xf32, #tpu.memory_space<vmem>>, vector<1x9x128xf32>
    %104 = vector.shape_cast %103 : vector<1x9x128xf32> to vector<9x128xf32>
    %cst_55 = arith.constant dense<0.000000e+00> : vector<32x128xf32>
    %105 = tpu.matmul %0, %104, %cst_55 {dimension_numbers = #tpu.dot_dimension_numbers<[1], [0], [0], [1], [0, 0, 1, 1], [], []>} : vector<32x9xf32>, vector<9x128xf32>, vector<32x128xf32> -> vector<32x128xf32>
    %106 = arith.maximumf %101, %105 : vector<32x128xf32>
    %107 = arith.minimumf %102, %105 : vector<32x128xf32>
    %108 = vector.broadcast %1 : vector<32x1xf32> to vector<32x128xf32>
    %109 = arith.mulf %106, %108 : vector<32x128xf32>
    %110 = vector.broadcast %2 : vector<32x1xf32> to vector<32x128xf32>
    %111 = arith.addf %109, %110 : vector<32x128xf32>
    %112 = vector.broadcast %1 : vector<32x1xf32> to vector<32x128xf32>
    %113 = arith.mulf %107, %112 : vector<32x128xf32>
    %114 = vector.broadcast %2 : vector<32x1xf32> to vector<32x128xf32>
    %115 = arith.addf %113, %114 : vector<32x128xf32>
    %116 = arith.maximumf %111, %115 : vector<32x128xf32>
    %cst_56 = arith.constant 0.000000e+00 : f32
    %117 = vector.broadcast %cst_56 : f32 to vector<32x128xf32>
    %118 = arith.maximumf %116, %117 : vector<32x128xf32>
    %c4 = arith.constant 4 : index
    %c0_57 = arith.constant 0 : index
    %c0_58 = arith.constant 0 : index
    %119 = vector.load %arg5[%c4, %c0_57, %c0_58] : memref<36x9x128xf32, #tpu.memory_space<vmem>>, vector<1x9x128xf32>
    %120 = vector.shape_cast %119 : vector<1x9x128xf32> to vector<9x128xf32>
    %cst_59 = arith.constant dense<0.000000e+00> : vector<32x128xf32>
    %121 = tpu.matmul %0, %120, %cst_59 {dimension_numbers = #tpu.dot_dimension_numbers<[1], [0], [0], [1], [0, 0, 1, 1], [], []>} : vector<32x9xf32>, vector<9x128xf32>, vector<32x128xf32> -> vector<32x128xf32>
    %c13 = arith.constant 13 : index
    %c0_60 = arith.constant 0 : index
    %c0_61 = arith.constant 0 : index
    %122 = vector.load %arg5[%c13, %c0_60, %c0_61] : memref<36x9x128xf32, #tpu.memory_space<vmem>>, vector<1x9x128xf32>
    %123 = vector.shape_cast %122 : vector<1x9x128xf32> to vector<9x128xf32>
    %cst_62 = arith.constant dense<0.000000e+00> : vector<32x128xf32>
    %124 = tpu.matmul %0, %123, %cst_62 {dimension_numbers = #tpu.dot_dimension_numbers<[1], [0], [0], [1], [0, 0, 1, 1], [], []>} : vector<32x9xf32>, vector<9x128xf32>, vector<32x128xf32> -> vector<32x128xf32>
    %125 = arith.maximumf %121, %124 : vector<32x128xf32>
    %126 = arith.minimumf %121, %124 : vector<32x128xf32>
    %c22 = arith.constant 22 : index
    %c0_63 = arith.constant 0 : index
    %c0_64 = arith.constant 0 : index
    %127 = vector.load %arg5[%c22, %c0_63, %c0_64] : memref<36x9x128xf32, #tpu.memory_space<vmem>>, vector<1x9x128xf32>
    %128 = vector.shape_cast %127 : vector<1x9x128xf32> to vector<9x128xf32>
    %cst_65 = arith.constant dense<0.000000e+00> : vector<32x128xf32>
    %129 = tpu.matmul %0, %128, %cst_65 {dimension_numbers = #tpu.dot_dimension_numbers<[1], [0], [0], [1], [0, 0, 1, 1], [], []>} : vector<32x9xf32>, vector<9x128xf32>, vector<32x128xf32> -> vector<32x128xf32>
    %130 = arith.maximumf %125, %129 : vector<32x128xf32>
    %131 = arith.minimumf %126, %129 : vector<32x128xf32>
    %c31 = arith.constant 31 : index
    %c0_66 = arith.constant 0 : index
    %c0_67 = arith.constant 0 : index
    %132 = vector.load %arg5[%c31, %c0_66, %c0_67] : memref<36x9x128xf32, #tpu.memory_space<vmem>>, vector<1x9x128xf32>
    %133 = vector.shape_cast %132 : vector<1x9x128xf32> to vector<9x128xf32>
    %cst_68 = arith.constant dense<0.000000e+00> : vector<32x128xf32>
    %134 = tpu.matmul %0, %133, %cst_68 {dimension_numbers = #tpu.dot_dimension_numbers<[1], [0], [0], [1], [0, 0, 1, 1], [], []>} : vector<32x9xf32>, vector<9x128xf32>, vector<32x128xf32> -> vector<32x128xf32>
    %135 = arith.maximumf %130, %134 : vector<32x128xf32>
    %136 = arith.minimumf %131, %134 : vector<32x128xf32>
    %137 = vector.broadcast %1 : vector<32x1xf32> to vector<32x128xf32>
    %138 = arith.mulf %135, %137 : vector<32x128xf32>
    %139 = vector.broadcast %2 : vector<32x1xf32> to vector<32x128xf32>
    %140 = arith.addf %138, %139 : vector<32x128xf32>
    %141 = vector.broadcast %1 : vector<32x1xf32> to vector<32x128xf32>
    %142 = arith.mulf %136, %141 : vector<32x128xf32>
    %143 = vector.broadcast %2 : vector<32x1xf32> to vector<32x128xf32>
    %144 = arith.addf %142, %143 : vector<32x128xf32>
    %145 = arith.maximumf %140, %144 : vector<32x128xf32>
    %cst_69 = arith.constant 0.000000e+00 : f32
    %146 = vector.broadcast %cst_69 : f32 to vector<32x128xf32>
    %147 = arith.maximumf %145, %146 : vector<32x128xf32>
    %c5 = arith.constant 5 : index
    %c0_70 = arith.constant 0 : index
    %c0_71 = arith.constant 0 : index
    %148 = vector.load %arg5[%c5, %c0_70, %c0_71] : memref<36x9x128xf32, #tpu.memory_space<vmem>>, vector<1x9x128xf32>
    %149 = vector.shape_cast %148 : vector<1x9x128xf32> to vector<9x128xf32>
    %cst_72 = arith.constant dense<0.000000e+00> : vector<32x128xf32>
    %150 = tpu.matmul %0, %149, %cst_72 {dimension_numbers = #tpu.dot_dimension_numbers<[1], [0], [0], [1], [0, 0, 1, 1], [], []>} : vector<32x9xf32>, vector<9x128xf32>, vector<32x128xf32> -> vector<32x128xf32>
    %c14 = arith.constant 14 : index
    %c0_73 = arith.constant 0 : index
    %c0_74 = arith.constant 0 : index
    %151 = vector.load %arg5[%c14, %c0_73, %c0_74] : memref<36x9x128xf32, #tpu.memory_space<vmem>>, vector<1x9x128xf32>
    %152 = vector.shape_cast %151 : vector<1x9x128xf32> to vector<9x128xf32>
    %cst_75 = arith.constant dense<0.000000e+00> : vector<32x128xf32>
    %153 = tpu.matmul %0, %152, %cst_75 {dimension_numbers = #tpu.dot_dimension_numbers<[1], [0], [0], [1], [0, 0, 1, 1], [], []>} : vector<32x9xf32>, vector<9x128xf32>, vector<32x128xf32> -> vector<32x128xf32>
    %154 = arith.maximumf %150, %153 : vector<32x128xf32>
    %155 = arith.minimumf %150, %153 : vector<32x128xf32>
    %c23 = arith.constant 23 : index
    %c0_76 = arith.constant 0 : index
    %c0_77 = arith.constant 0 : index
    %156 = vector.load %arg5[%c23, %c0_76, %c0_77] : memref<36x9x128xf32, #tpu.memory_space<vmem>>, vector<1x9x128xf32>
    %157 = vector.shape_cast %156 : vector<1x9x128xf32> to vector<9x128xf32>
    %cst_78 = arith.constant dense<0.000000e+00> : vector<32x128xf32>
    %158 = tpu.matmul %0, %157, %cst_78 {dimension_numbers = #tpu.dot_dimension_numbers<[1], [0], [0], [1], [0, 0, 1, 1], [], []>} : vector<32x9xf32>, vector<9x128xf32>, vector<32x128xf32> -> vector<32x128xf32>
    %159 = arith.maximumf %154, %158 : vector<32x128xf32>
    %160 = arith.minimumf %155, %158 : vector<32x128xf32>
    %c32 = arith.constant 32 : index
    %c0_79 = arith.constant 0 : index
    %c0_80 = arith.constant 0 : index
    %161 = vector.load %arg5[%c32, %c0_79, %c0_80] : memref<36x9x128xf32, #tpu.memory_space<vmem>>, vector<1x9x128xf32>
    %162 = vector.shape_cast %161 : vector<1x9x128xf32> to vector<9x128xf32>
    %cst_81 = arith.constant dense<0.000000e+00> : vector<32x128xf32>
    %163 = tpu.matmul %0, %162, %cst_81 {dimension_numbers = #tpu.dot_dimension_numbers<[1], [0], [0], [1], [0, 0, 1, 1], [], []>} : vector<32x9xf32>, vector<9x128xf32>, vector<32x128xf32> -> vector<32x128xf32>
    %164 = arith.maximumf %159, %163 : vector<32x128xf32>
    %165 = arith.minimumf %160, %163 : vector<32x128xf32>
    %166 = vector.broadcast %1 : vector<32x1xf32> to vector<32x128xf32>
    %167 = arith.mulf %164, %166 : vector<32x128xf32>
    %168 = vector.broadcast %2 : vector<32x1xf32> to vector<32x128xf32>
    %169 = arith.addf %167, %168 : vector<32x128xf32>
    %170 = vector.broadcast %1 : vector<32x1xf32> to vector<32x128xf32>
    %171 = arith.mulf %165, %170 : vector<32x128xf32>
    %172 = vector.broadcast %2 : vector<32x1xf32> to vector<32x128xf32>
    %173 = arith.addf %171, %172 : vector<32x128xf32>
    %174 = arith.maximumf %169, %173 : vector<32x128xf32>
    %cst_82 = arith.constant 0.000000e+00 : f32
    %175 = vector.broadcast %cst_82 : f32 to vector<32x128xf32>
    %176 = arith.maximumf %174, %175 : vector<32x128xf32>
    %c6 = arith.constant 6 : index
    %c0_83 = arith.constant 0 : index
    %c0_84 = arith.constant 0 : index
    %177 = vector.load %arg5[%c6, %c0_83, %c0_84] : memref<36x9x128xf32, #tpu.memory_space<vmem>>, vector<1x9x128xf32>
    %178 = vector.shape_cast %177 : vector<1x9x128xf32> to vector<9x128xf32>
    %cst_85 = arith.constant dense<0.000000e+00> : vector<32x128xf32>
    %179 = tpu.matmul %0, %178, %cst_85 {dimension_numbers = #tpu.dot_dimension_numbers<[1], [0], [0], [1], [0, 0, 1, 1], [], []>} : vector<32x9xf32>, vector<9x128xf32>, vector<32x128xf32> -> vector<32x128xf32>
    %c15 = arith.constant 15 : index
    %c0_86 = arith.constant 0 : index
    %c0_87 = arith.constant 0 : index
    %180 = vector.load %arg5[%c15, %c0_86, %c0_87] : memref<36x9x128xf32, #tpu.memory_space<vmem>>, vector<1x9x128xf32>
    %181 = vector.shape_cast %180 : vector<1x9x128xf32> to vector<9x128xf32>
    %cst_88 = arith.constant dense<0.000000e+00> : vector<32x128xf32>
    %182 = tpu.matmul %0, %181, %cst_88 {dimension_numbers = #tpu.dot_dimension_numbers<[1], [0], [0], [1], [0, 0, 1, 1], [], []>} : vector<32x9xf32>, vector<9x128xf32>, vector<32x128xf32> -> vector<32x128xf32>
    %183 = arith.maximumf %179, %182 : vector<32x128xf32>
    %184 = arith.minimumf %179, %182 : vector<32x128xf32>
    %c24 = arith.constant 24 : index
    %c0_89 = arith.constant 0 : index
    %c0_90 = arith.constant 0 : index
    %185 = vector.load %arg5[%c24, %c0_89, %c0_90] : memref<36x9x128xf32, #tpu.memory_space<vmem>>, vector<1x9x128xf32>
    %186 = vector.shape_cast %185 : vector<1x9x128xf32> to vector<9x128xf32>
    %cst_91 = arith.constant dense<0.000000e+00> : vector<32x128xf32>
    %187 = tpu.matmul %0, %186, %cst_91 {dimension_numbers = #tpu.dot_dimension_numbers<[1], [0], [0], [1], [0, 0, 1, 1], [], []>} : vector<32x9xf32>, vector<9x128xf32>, vector<32x128xf32> -> vector<32x128xf32>
    %188 = arith.maximumf %183, %187 : vector<32x128xf32>
    %189 = arith.minimumf %184, %187 : vector<32x128xf32>
    %c33 = arith.constant 33 : index
    %c0_92 = arith.constant 0 : index
    %c0_93 = arith.constant 0 : index
    %190 = vector.load %arg5[%c33, %c0_92, %c0_93] : memref<36x9x128xf32, #tpu.memory_space<vmem>>, vector<1x9x128xf32>
    %191 = vector.shape_cast %190 : vector<1x9x128xf32> to vector<9x128xf32>
    %cst_94 = arith.constant dense<0.000000e+00> : vector<32x128xf32>
    %192 = tpu.matmul %0, %191, %cst_94 {dimension_numbers = #tpu.dot_dimension_numbers<[1], [0], [0], [1], [0, 0, 1, 1], [], []>} : vector<32x9xf32>, vector<9x128xf32>, vector<32x128xf32> -> vector<32x128xf32>
    %193 = arith.maximumf %188, %192 : vector<32x128xf32>
    %194 = arith.minimumf %189, %192 : vector<32x128xf32>
    %195 = vector.broadcast %1 : vector<32x1xf32> to vector<32x128xf32>
    %196 = arith.mulf %193, %195 : vector<32x128xf32>
    %197 = vector.broadcast %2 : vector<32x1xf32> to vector<32x128xf32>
    %198 = arith.addf %196, %197 : vector<32x128xf32>
    %199 = vector.broadcast %1 : vector<32x1xf32> to vector<32x128xf32>
    %200 = arith.mulf %194, %199 : vector<32x128xf32>
    %201 = vector.broadcast %2 : vector<32x1xf32> to vector<32x128xf32>
    %202 = arith.addf %200, %201 : vector<32x128xf32>
    %203 = arith.maximumf %198, %202 : vector<32x128xf32>
    %cst_95 = arith.constant 0.000000e+00 : f32
    %204 = vector.broadcast %cst_95 : f32 to vector<32x128xf32>
    %205 = arith.maximumf %203, %204 : vector<32x128xf32>
    %c7 = arith.constant 7 : index
    %c0_96 = arith.constant 0 : index
    %c0_97 = arith.constant 0 : index
    %206 = vector.load %arg5[%c7, %c0_96, %c0_97] : memref<36x9x128xf32, #tpu.memory_space<vmem>>, vector<1x9x128xf32>
    %207 = vector.shape_cast %206 : vector<1x9x128xf32> to vector<9x128xf32>
    %cst_98 = arith.constant dense<0.000000e+00> : vector<32x128xf32>
    %208 = tpu.matmul %0, %207, %cst_98 {dimension_numbers = #tpu.dot_dimension_numbers<[1], [0], [0], [1], [0, 0, 1, 1], [], []>} : vector<32x9xf32>, vector<9x128xf32>, vector<32x128xf32> -> vector<32x128xf32>
    %c16 = arith.constant 16 : index
    %c0_99 = arith.constant 0 : index
    %c0_100 = arith.constant 0 : index
    %209 = vector.load %arg5[%c16, %c0_99, %c0_100] : memref<36x9x128xf32, #tpu.memory_space<vmem>>, vector<1x9x128xf32>
    %210 = vector.shape_cast %209 : vector<1x9x128xf32> to vector<9x128xf32>
    %cst_101 = arith.constant dense<0.000000e+00> : vector<32x128xf32>
    %211 = tpu.matmul %0, %210, %cst_101 {dimension_numbers = #tpu.dot_dimension_numbers<[1], [0], [0], [1], [0, 0, 1, 1], [], []>} : vector<32x9xf32>, vector<9x128xf32>, vector<32x128xf32> -> vector<32x128xf32>
    %212 = arith.maximumf %208, %211 : vector<32x128xf32>
    %213 = arith.minimumf %208, %211 : vector<32x128xf32>
    %c25 = arith.constant 25 : index
    %c0_102 = arith.constant 0 : index
    %c0_103 = arith.constant 0 : index
    %214 = vector.load %arg5[%c25, %c0_102, %c0_103] : memref<36x9x128xf32, #tpu.memory_space<vmem>>, vector<1x9x128xf32>
    %215 = vector.shape_cast %214 : vector<1x9x128xf32> to vector<9x128xf32>
    %cst_104 = arith.constant dense<0.000000e+00> : vector<32x128xf32>
    %216 = tpu.matmul %0, %215, %cst_104 {dimension_numbers = #tpu.dot_dimension_numbers<[1], [0], [0], [1], [0, 0, 1, 1], [], []>} : vector<32x9xf32>, vector<9x128xf32>, vector<32x128xf32> -> vector<32x128xf32>
    %217 = arith.maximumf %212, %216 : vector<32x128xf32>
    %218 = arith.minimumf %213, %216 : vector<32x128xf32>
    %c34 = arith.constant 34 : index
    %c0_105 = arith.constant 0 : index
    %c0_106 = arith.constant 0 : index
    %219 = vector.load %arg5[%c34, %c0_105, %c0_106] : memref<36x9x128xf32, #tpu.memory_space<vmem>>, vector<1x9x128xf32>
    %220 = vector.shape_cast %219 : vector<1x9x128xf32> to vector<9x128xf32>
    %cst_107 = arith.constant dense<0.000000e+00> : vector<32x128xf32>
    %221 = tpu.matmul %0, %220, %cst_107 {dimension_numbers = #tpu.dot_dimension_numbers<[1], [0], [0], [1], [0, 0, 1, 1], [], []>} : vector<32x9xf32>, vector<9x128xf32>, vector<32x128xf32> -> vector<32x128xf32>
    %222 = arith.maximumf %217, %221 : vector<32x128xf32>
    %223 = arith.minimumf %218, %221 : vector<32x128xf32>
    %224 = vector.broadcast %1 : vector<32x1xf32> to vector<32x128xf32>
    %225 = arith.mulf %222, %224 : vector<32x128xf32>
    %226 = vector.broadcast %2 : vector<32x1xf32> to vector<32x128xf32>
    %227 = arith.addf %225, %226 : vector<32x128xf32>
    %228 = vector.broadcast %1 : vector<32x1xf32> to vector<32x128xf32>
    %229 = arith.mulf %223, %228 : vector<32x128xf32>
    %230 = vector.broadcast %2 : vector<32x1xf32> to vector<32x128xf32>
    %231 = arith.addf %229, %230 : vector<32x128xf32>
    %232 = arith.maximumf %227, %231 : vector<32x128xf32>
    %cst_108 = arith.constant 0.000000e+00 : f32
    %233 = vector.broadcast %cst_108 : f32 to vector<32x128xf32>
    %234 = arith.maximumf %232, %233 : vector<32x128xf32>
    %c8 = arith.constant 8 : index
    %c0_109 = arith.constant 0 : index
    %c0_110 = arith.constant 0 : index
    %235 = vector.load %arg5[%c8, %c0_109, %c0_110] : memref<36x9x128xf32, #tpu.memory_space<vmem>>, vector<1x9x128xf32>
    %236 = vector.shape_cast %235 : vector<1x9x128xf32> to vector<9x128xf32>
    %cst_111 = arith.constant dense<0.000000e+00> : vector<32x128xf32>
    %237 = tpu.matmul %0, %236, %cst_111 {dimension_numbers = #tpu.dot_dimension_numbers<[1], [0], [0], [1], [0, 0, 1, 1], [], []>} : vector<32x9xf32>, vector<9x128xf32>, vector<32x128xf32> -> vector<32x128xf32>
    %c17 = arith.constant 17 : index
    %c0_112 = arith.constant 0 : index
    %c0_113 = arith.constant 0 : index
    %238 = vector.load %arg5[%c17, %c0_112, %c0_113] : memref<36x9x128xf32, #tpu.memory_space<vmem>>, vector<1x9x128xf32>
    %239 = vector.shape_cast %238 : vector<1x9x128xf32> to vector<9x128xf32>
    %cst_114 = arith.constant dense<0.000000e+00> : vector<32x128xf32>
    %240 = tpu.matmul %0, %239, %cst_114 {dimension_numbers = #tpu.dot_dimension_numbers<[1], [0], [0], [1], [0, 0, 1, 1], [], []>} : vector<32x9xf32>, vector<9x128xf32>, vector<32x128xf32> -> vector<32x128xf32>
    %241 = arith.maximumf %237, %240 : vector<32x128xf32>
    %242 = arith.minimumf %237, %240 : vector<32x128xf32>
    %c26 = arith.constant 26 : index
    %c0_115 = arith.constant 0 : index
    %c0_116 = arith.constant 0 : index
    %243 = vector.load %arg5[%c26, %c0_115, %c0_116] : memref<36x9x128xf32, #tpu.memory_space<vmem>>, vector<1x9x128xf32>
    %244 = vector.shape_cast %243 : vector<1x9x128xf32> to vector<9x128xf32>
    %cst_117 = arith.constant dense<0.000000e+00> : vector<32x128xf32>
    %245 = tpu.matmul %0, %244, %cst_117 {dimension_numbers = #tpu.dot_dimension_numbers<[1], [0], [0], [1], [0, 0, 1, 1], [], []>} : vector<32x9xf32>, vector<9x128xf32>, vector<32x128xf32> -> vector<32x128xf32>
    %246 = arith.maximumf %241, %245 : vector<32x128xf32>
    %247 = arith.minimumf %242, %245 : vector<32x128xf32>
    %c35 = arith.constant 35 : index
    %c0_118 = arith.constant 0 : index
    %c0_119 = arith.constant 0 : index
    %248 = vector.load %arg5[%c35, %c0_118, %c0_119] : memref<36x9x128xf32, #tpu.memory_space<vmem>>, vector<1x9x128xf32>
    %249 = vector.shape_cast %248 : vector<1x9x128xf32> to vector<9x128xf32>
    %cst_120 = arith.constant dense<0.000000e+00> : vector<32x128xf32>
    %250 = tpu.matmul %0, %249, %cst_120 {dimension_numbers = #tpu.dot_dimension_numbers<[1], [0], [0], [1], [0, 0, 1, 1], [], []>} : vector<32x9xf32>, vector<9x128xf32>, vector<32x128xf32> -> vector<32x128xf32>
    %251 = arith.maximumf %246, %250 : vector<32x128xf32>
    %252 = arith.minimumf %247, %250 : vector<32x128xf32>
    %253 = vector.broadcast %1 : vector<32x1xf32> to vector<32x128xf32>
    %254 = arith.mulf %251, %253 : vector<32x128xf32>
    %255 = vector.broadcast %2 : vector<32x1xf32> to vector<32x128xf32>
    %256 = arith.addf %254, %255 : vector<32x128xf32>
    %257 = vector.broadcast %1 : vector<32x1xf32> to vector<32x128xf32>
    %258 = arith.mulf %252, %257 : vector<32x128xf32>
    %259 = vector.broadcast %2 : vector<32x1xf32> to vector<32x128xf32>
    %260 = arith.addf %258, %259 : vector<32x128xf32>
    %261 = arith.maximumf %256, %260 : vector<32x128xf32>
    %cst_121 = arith.constant 0.000000e+00 : f32
    %262 = vector.broadcast %cst_121 : f32 to vector<32x128xf32>
    %263 = arith.maximumf %261, %262 : vector<32x128xf32>
    %264 = tpu.concatenate %31, %60, %89, %118, %147, %176, %205, %234, %263 in 0 : vector<32x128xf32>, vector<32x128xf32>, vector<32x128xf32>, vector<32x128xf32>, vector<32x128xf32>, vector<32x128xf32>, vector<32x128xf32>, vector<32x128xf32>, vector<32x128xf32> -> vector<288x128xf32>
    %c0_122 = arith.constant 0 : index
    %c0_123 = arith.constant 0 : index
    %265 = vector.load %arg4[%c0_122, %c0_123] : memref<12x288xf32, #tpu.memory_space<vmem>>, vector<12x288xf32>
    %cst_124 = arith.constant dense<0.000000e+00> : vector<12x128xf32>
    %266 = tpu.matmul %265, %264, %cst_124 {dimension_numbers = #tpu.dot_dimension_numbers<[1], [0], [0], [1], [0, 0, 1, 1], [], []>} : vector<12x288xf32>, vector<288x128xf32>, vector<12x128xf32> -> vector<12x128xf32>
    %c0_125 = arith.constant 0 : index
    %c0_126 = arith.constant 0 : index
    %267 = vector.load %arg6[%c0_125, %c0_126] : memref<12x128xf32, #tpu.memory_space<vmem>>, vector<12x128xf32>
    tpu.vector_store %arg6[%c0_125, %c0_126], %266 {strides = array<i32>} : memref<12x128xf32, #tpu.memory_space<vmem>>, vector<12x128xf32>,
    return
  }
  func.func @transform_0(%arg0: i32) -> (i32, i32) {
    %c0_i32 = arith.constant 0 : i32
    %c0_i32_0 = arith.constant 0 : i32
    %c0_i32_1 = arith.constant 0 : i32
    return %c0_i32, %c0_i32_0 : i32, i32
  }
  func.func @transform_1(%arg0: i32) -> (i32, i32) {
    %c0_i32 = arith.constant 0 : i32
    %c0_i32_0 = arith.constant 0 : i32
    %c0_i32_1 = arith.constant 0 : i32
    return %c0_i32, %c0_i32_0 : i32, i32
  }
  func.func @transform_2(%arg0: i32) -> (i32, i32) {
    %c0_i32 = arith.constant 0 : i32
    %c0_i32_0 = arith.constant 0 : i32
    %c0_i32_1 = arith.constant 0 : i32
    return %c0_i32, %c0_i32_0 : i32, i32
  }
  func.func @transform_3(%arg0: i32) -> (i32, i32) {
    %c0_i32 = arith.constant 0 : i32
    %c0_i32_0 = arith.constant 0 : i32
    %c0_i32_1 = arith.constant 0 : i32
    return %c0_i32, %c0_i32_0 : i32, i32
  }
  func.func @transform_4(%arg0: i32) -> (i32, i32, i32) {
    %c0_i32 = arith.constant 0 : i32
    %c0_i32_0 = arith.constant 0 : i32
    %c0_i32_1 = arith.constant 0 : i32
    return %c0_i32, %c0_i32_0, %arg0 : i32, i32, i32
  }
  func.func @transform_5(%arg0: i32) -> (i32, i32) {
    %c0_i32 = arith.constant 0 : i32
    %c0_i32_0 = arith.constant 0 : i32
    return %c0_i32, %arg0 : i32, i32
  }
}

</mosaic_0001>

<bundles_post_ra>
// kernel: squeeze.4
= control target key start
LH: loop header
LB: loop body
LE: loop exit
PB: predicated region body
PF: predicated region fallthrough
CT: control target
= control target key end

     0   :  { %vm327_vm0 = vcmask 1047556   ;;  %s2473_s9 = smov 125   ;;  %s2476_s22 = smov 116   ;;  %vm147_vm1 = vcmask 23552   ;;  %s4611_s0 = inlined_call_operand.vmem [shape: f32[2,1,36,36], index: 0, kind: input, shape index: {}]   ;;  %s4612_s1 = inlined_call_operand.vmem [shape: f32[2,12,3,12,3], index: 1, kind: output, shape index: {}]  }
   0x1   :  { %v2028_v0 = vld [vmem:[%s4611_s0 + $0x6] sm:$0x3]  ;;  %v2029_v1 = vld [vmem:[%s4611_s0 + $0x4] sm:$0x3]  ;;  %v2030_v2 = vld [vmem:[%s4611_s0 + $0x2] sm:$0x3] }
   0x2   :  { %135 = vst [vmem:[#allocation0 + $0x18] sm:$0x3] %v2028_v0  ;;  %v144_v3 = vld [vmem:[%s4611_s0] sm:$0x3]  ;;  %v2020_v4 = vld [vmem:[%s4611_s0 + $0x16] sm:$0x3] }
   0x3   :  { %139 = vst [vmem:[#allocation0 + $0x10] sm:$0x3] %v2029_v1  ;;  %v2021_v5 = vld [vmem:[%s4611_s0 + $0x14] sm:$0x3]  ;;  %v2022_v6 = vld [vmem:[%s4611_s0 + $0x12] sm:$0x3] }
   0x4   :  { %143 = vst [vmem:[#allocation0 + $0x8] sm:$0x3] %v2030_v2  ;;  %v2023_v7 = vld [vmem:[%s4611_s0 + $0x10] sm:$0x3]  ;;  %v2024_v8 = vld [vmem:[%s4611_s0 + $0xe] sm:$0x3] }
   0x5   :  { %145 = vst [vmem:[#allocation0] sm:$0x3] %v144_v3  ;;  %v2025_v9 = vld [vmem:[%s4611_s0 + $0xc] sm:$0x3]  ;;  %v2026_v10 = vld [vmem:[%s4611_s0 + $0xa] sm:$0x3] }
   0x6   :  { %103 = vst [vmem:[#allocation0 + $0x58] sm:$0x3] %v2020_v4  ;;  %v2027_v11 = vld [vmem:[%s4611_s0 + $0x8] sm:$0x3]  ;;  %v2016_v13 = vld [vmem:[%s4611_s0 + $0x1e] sm:$0x3] }
   0x7   :  { %107 = vst [vmem:[#allocation0 + $0x50] sm:$0x3] %v2021_v5  ;;  %v2017_v14 = vld [vmem:[%s4611_s0 + $0x1c] sm:$0x3]  ;;  %v2018_v17 = vld [vmem:[%s4611_s0 + $0x1a] sm:$0x3] }
   0x8   :  { %111 = vst [vmem:[#allocation0 + $0x48] sm:$0x3] %v2022_v6  ;;  %v2019_v18 = vld [vmem:[%s4611_s0 + $0x18] sm:$0x3]  ;;  %v2004_v20 = vld [vmem:[%s4611_s0 + $0x36] sm:$0x3] }
   0x9   :  { %115 = vst [vmem:[#allocation0 + $0x40] sm:$0x3] %v2023_v7  ;;  %v2005_v21 = vld [vmem:[%s4611_s0 + $0x34] sm:$0x3]  ;;  %v2006_v24 = vld [vmem:[%s4611_s0 + $0x32] sm:$0x3] }
   0xa   :  { %v326_v12 = vld.sshfl [vmem:[#allocation0 + $0x10] sm:$0xff pattern:$0x98100000]   ;;  %119 = vst [vmem:[#allocation0 + $0x38] sm:$0x3] %v2024_v8  ;;  %s2477_s23 = smov 113  }
   0xb   :  { %123 = vst [vmem:[#allocation0 + $0x30] sm:$0x3] %v2025_v9  ;;  %v2007_v25 = vld [vmem:[%s4611_s0 + $0x30] sm:$0x3]  ;;  %v2000_v27 = vld [vmem:[%s4611_s0 + $0x3e] sm:$0x3] }
   0xc   :  { %v324_v15 = vld.sshfl [vmem:[#allocation0] sm:$0xff pattern:$0x99999810]   ;;  %127 = vst [vmem:[#allocation0 + $0x28] sm:$0x3] %v2026_v10  ;;  %s2478_s7 = smov 110  }
   0xd   :  { %v2537_v16 = vsel %vm327_vm0, %v326_v12, %v324_v15  ;;  %131 = vst [vmem:[#allocation0 + $0x20] sm:$0x3] %v2027_v11  ;;  %v2001_v28 = vld [vmem:[%s4611_s0 + $0x3c] sm:$0x3]  ;;  %v2002_v31 = vld [vmem:[%s4611_s0 + $0x3a] sm:$0x3] }
   0xe   :  { %329 = vrot.lane.b32.xlu0 %v2537_v16, %s2473_s9  ;;  %v360_v19 = vld.sshfl [vmem:[#allocation0 + $0x50] sm:$0xff pattern:$0x98100000]   ;;  %87 = vst [vmem:[#allocation0 + $0x78] sm:$0x3] %v2016_v13  ;;  %s2479_s27 = smov 107  }
   0xf   :  { %91 = vst [vmem:[#allocation0 + $0x70] sm:$0x3] %v2017_v14  ;;  %v2003_v32 = vld [vmem:[%s4611_s0 + $0x38] sm:$0x3]  ;;  %v2012_v34 = vld [vmem:[%s4611_s0 + $0x26] sm:$0x3] }
  0x10   :  { %v358_v22 = vld.sshfl [vmem:[#allocation0 + $0x40] sm:$0xff pattern:$0x99999810]   ;;  %95 = vst [vmem:[#allocation0 + $0x68] sm:$0x3] %v2018_v17  ;;  %s2480_s19 = smov 104  }
  0x11   :  { %v2554_v23 = vsel %vm327_vm0, %v360_v19, %v358_v22  ;;  %99 = vst [vmem:[#allocation0 + $0x60] sm:$0x3] %v2019_v18  ;;  %v2013_v35 = vld [vmem:[%s4611_s0 + $0x24] sm:$0x3]  ;;  %v2014_v38 = vld [vmem:[%s4611_s0 + $0x22] sm:$0x3] }
  0x12   :  { %363 = vrot.lane.b32.xlu1 %v2554_v23, %s2473_s9  ;;  %v343_v26 = vld.sshfl [vmem:[#allocation0 + $0x30] sm:$0xff pattern:$0x98100000]   ;;  %39 = vst [vmem:[#allocation0 + $0xd8] sm:$0x3] %v2004_v20  ;;  %s2481_s11 = smov 101  }
  0x13   :  { %43 = vst [vmem:[#allocation0 + $0xd0] sm:$0x3] %v2005_v21  ;;  %v2015_v39 = vld [vmem:[%s4611_s0 + $0x20] sm:$0x3]  ;;  %v2008_v41 = vld [vmem:[%s4611_s0 + $0x2e] sm:$0x3] }
  0x14   :  { %v341_v29 = vld.sshfl [vmem:[#allocation0 + $0x20] sm:$0xff pattern:$0x99999810]   ;;  %47 = vst [vmem:[#allocation0 + $0xc8] sm:$0x3] %v2006_v24  ;;  %s2483_s30 = smov 95  }
  0x15   :  { %v2571_v30 = vsel %vm327_vm0, %v343_v26, %v341_v29  ;;  %51 = vst [vmem:[#allocation0 + $0xc0] sm:$0x3] %v2007_v25  ;;  %v2009_v42 = vld [vmem:[%s4611_s0 + $0x2c] sm:$0x3]  ;;  %v2010_v45 = vld [vmem:[%s4611_s0 + $0x2a] sm:$0x3] }
  0x16   :  { %346 = vrot.lane.b32.xlu0 %v2571_v30, %s2473_s9  ;;  %v377_v33 = vld.sshfl [vmem:[#allocation0 + $0x70] sm:$0xff pattern:$0x98100000]   ;;  %23 = vst [vmem:[#allocation0 + $0xf8] sm:$0x3] %v2000_v27 }
  0x17   :  { %27 = vst [vmem:[#allocation0 + $0xf0] sm:$0x3] %v2001_v28  ;;  %v2011_v46 = vld [vmem:[%s4611_s0 + $0x28] sm:$0x3]  ;;  %v1996_v48 = vld [vmem:[%s4611_s0 + $0x46] sm:$0x3] }
  0x18   :  { %v375_v36 = vld.sshfl [vmem:[#allocation0 + $0x60] sm:$0xff pattern:$0x99999810]   ;;  %31 = vst [vmem:[#allocation0 + $0xe8] sm:$0x3] %v2002_v31 }
  0x19   :  { %v2588_v37 = vsel %vm327_vm0, %v377_v33, %v375_v36  ;;  %35 = vst [vmem:[#allocation0 + $0xe0] sm:$0x3] %v2003_v32  ;;  %v1997_v49 = vld [vmem:[%s4611_s0 + $0x44] sm:$0x3]  ;;  %v1998_v52 = vld [vmem:[%s4611_s0 + $0x42] sm:$0x3] }
  0x1a   :  { %380 = vrot.lane.b32.xlu1 %v2588_v37, %s2473_s9  ;;  %v428_v40 = vld.sshfl [vmem:[#allocation0 + $0xd0] sm:$0xff pattern:$0x98100000]   ;;  %71 = vst [vmem:[#allocation0 + $0x98] sm:$0x3] %v2012_v34 }
  0x1b   :  { %75 = vst [vmem:[#allocation0 + $0x90] sm:$0x3] %v2013_v35  ;;  %v1999_v53 = vld [vmem:[%s4611_s0 + $0x40] sm:$0x3]  ;;  %s2474_s0 = smov 122  }
  0x1c   :  { %v426_v43 = vld.sshfl [vmem:[#allocation0 + $0xc0] sm:$0xff pattern:$0x99999810]   ;;  %79 = vst [vmem:[#allocation0 + $0x88] sm:$0x3] %v2014_v38 }
  0x1d   :  { %v2605_v44 = vsel %vm327_vm0, %v428_v40, %v426_v43  ;;  %83 = vst [vmem:[#allocation0 + $0x80] sm:$0x3] %v2015_v39  ;;  %v1692_v38 = vld.sshfl [vmem:[#allocation0] sm:$0xff pattern:$0x99999810]  }
  0x1e   :  { %431 = vrot.lane.b32.xlu0 %v2605_v44, %s2473_s9  ;;  %v445_v47 = vld.sshfl [vmem:[#allocation0 + $0xf0] sm:$0xff pattern:$0x98100000]   ;;  %55 = vst [vmem:[#allocation0 + $0xb8] sm:$0x3] %v2008_v41 }
  0x1f   :  { %59 = vst [vmem:[#allocation0 + $0xb0] sm:$0x3] %v2009_v42  ;;  %v1694_v40 = vld.sshfl [vmem:[#allocation0 + $0x10] sm:$0xff pattern:$0x98100000]  }
  0x20   :  { %v443_v50 = vld.sshfl [vmem:[#allocation0 + $0xe0] sm:$0xff pattern:$0x99999810]   ;;  %63 = vst [vmem:[#allocation0 + $0xa8] sm:$0x3] %v2010_v45  ;;  %v3275_v41 = vsel %vm327_vm0, %v1694_v40, %v1692_v38 }
  0x21   :  { %v2622_v51 = vsel %vm327_vm0, %v445_v47, %v443_v50  ;;  %67 = vst [vmem:[#allocation0 + $0xa0] sm:$0x3] %v2011_v46  ;;  %v1709_v42 = vld.sshfl [vmem:[#allocation0 + $0x20] sm:$0xff pattern:$0x99999810]  }
  0x22   :  { %448 = vrot.lane.b32.xlu1 %v2622_v51, %s2473_s9  ;;  %v394_v54 = vld.sshfl [vmem:[#allocation0 + $0x90] sm:$0xff pattern:$0x98100000]   ;;  %7 = vst [vmem:[#allocation0 + $0x118] sm:$0x3] %v1996_v48 }
  0x23   :  { %11 = vst [vmem:[#allocation0 + $0x110] sm:$0x3] %v1997_v49  ;;  %v1711_v43 = vld.sshfl [vmem:[#allocation0 + $0x30] sm:$0xff pattern:$0x98100000]  }
  0x24   :  { %v392_v55 = vld.sshfl [vmem:[#allocation0 + $0x80] sm:$0xff pattern:$0x99999810]   ;;  %15 = vst [vmem:[#allocation0 + $0x108] sm:$0x3] %v1998_v52 }
  0x25   :  { %v2633_v56 = vsel %vm327_vm0, %v394_v54, %v392_v55  ;;  %19 = vst [vmem:[#allocation0 + $0x100] sm:$0x3] %v1999_v53  ;;  %v1574_v45 = vld.sshfl [vmem:[#allocation0 + $0x40] sm:$0xff pattern:$0x99999810]  }
  0x26   :  { %397 = vrot.lane.b32.xlu2 %v2633_v56, %s2473_s9  ;;  %481 = vrot.lane.b32.xlu0 %v2537_v16, %s2474_s0  ;;  %v411_v58 = vld.sshfl [vmem:[#allocation0 + $0xb0] sm:$0xff pattern:$0x98100000]   ;;  %v1743_v50 = vld.sshfl [vmem:[#allocation0 + $0x60] sm:$0xff pattern:$0x99999810]  }
  0x27   :  { %v1576_v47 = vld.sshfl [vmem:[#allocation0 + $0x50] sm:$0xff pattern:$0x98100000]   ;;  %v1760_v54 = vld.sshfl [vmem:[#allocation0 + $0x80] sm:$0xff pattern:$0x99999810]  }
  0x28   :  { %v409_v57 = vld.sshfl [vmem:[#allocation0 + $0xa0] sm:$0xff pattern:$0x99999810]   ;;  %v3303_v48 = vsel %vm327_vm0, %v1576_v47, %v1574_v45  ;;  %v1745_v52 = vld.sshfl [vmem:[#allocation0 + $0x70] sm:$0xff pattern:$0x98100000]  }
  0x29   :  { %v2640_v59 = vsel %vm327_vm0, %v411_v58, %v409_v57  ;;  %v1747_v53 = vsel %vm327_vm0, %v1745_v52, %v1743_v50  ;;  %v1762_v55 = vld.sshfl [vmem:[#allocation0 + $0x90] sm:$0xff pattern:$0x98100000]   ;;  %v1625_v57 = vld.sshfl [vmem:[#allocation0 + $0xa0] sm:$0xff pattern:$0x99999810]  }
  0x2a   :  { %498 = vrot.lane.b32.xlu1 %v2571_v30, %s2474_s0  ;;  %v462_v61 = vld.sshfl [vmem:[#allocation0 + $0x110] sm:$0xff pattern:$0x98100000]  }
  0x2c   :  { %v460_v60 = vld.sshfl [vmem:[#allocation0 + $0x100] sm:$0xff pattern:$0x99999810]  }
  0x2d   :  { %v2647_v62 = vsel %vm327_vm0, %v462_v61, %v460_v60 }
  0x2e   :  { %414 = vrot.lane.b32.xlu2 %v2640_v59, %s2473_s9  ;;  %532 = vrot.lane.b32.xlu0 %v2588_v37, %s2474_s0 }
  0x32   :  { %549 = vrot.lane.b32.xlu1 %v2633_v56, %s2474_s0 }
  0x36   :  { %583 = vrot.lane.b32.xlu0 %v2605_v44, %s2474_s0  ;;  %465 = vrot.lane.b32.xlu2 %v2647_v62, %s2473_s9  ;;  %s2475_s9 = smov 119  }
  0x3a   :  { %600 = vrot.lane.b32.xlu1 %v2622_v51, %s2474_s0 }
  0x3e   :  { %633 = vrot.lane.b32.xlu0 %v2537_v16, %s2475_s9  ;;  %515 = vrot.lane.b32.xlu2 %v2554_v23, %s2474_s0 }
  0x42   :  { %650 = vrot.lane.b32.xlu1 %v2571_v30, %s2475_s9 }
  0x46   :  { %684 = vrot.lane.b32.xlu0 %v2588_v37, %s2475_s9  ;;  %566 = vrot.lane.b32.xlu2 %v2640_v59, %s2474_s0 }
  0x4a   :  { %701 = vrot.lane.b32.xlu1 %v2633_v56, %s2475_s9 }
  0x4e   :  { %735 = vrot.lane.b32.xlu0 %v2605_v44, %s2475_s9  ;;  %617 = vrot.lane.b32.xlu2 %v2647_v62, %s2474_s0 }
  0x52   :  { %752 = vrot.lane.b32.xlu1 %v2622_v51, %s2475_s9 }
  0x56   :  { %785 = vrot.lane.b32.xlu0 %v2537_v16, %s2476_s22  ;;  %667 = vrot.lane.b32.xlu2 %v2554_v23, %s2475_s9 }
  0x5a   :  { %802 = vrot.lane.b32.xlu1 %v2571_v30, %s2476_s22 }
  0x5e   :  { %836 = vrot.lane.b32.xlu0 %v2588_v37, %s2476_s22  ;;  %718 = vrot.lane.b32.xlu2 %v2640_v59, %s2475_s9 }
  0x62   :  { %853 = vrot.lane.b32.xlu1 %v2633_v56, %s2476_s22 }
  0x66   :  { %887 = vrot.lane.b32.xlu0 %v2605_v44, %s2476_s22  ;;  %769 = vrot.lane.b32.xlu2 %v2647_v62, %s2475_s9  ;;  %s2482_s9 = smov 98  }
  0x6a   :  { %904 = vrot.lane.b32.xlu1 %v2622_v51, %s2476_s22 }
  0x6e   :  { %937 = vrot.lane.b32.xlu0 %v2537_v16, %s2477_s23  ;;  %819 = vrot.lane.b32.xlu2 %v2554_v23, %s2476_s22 }
  0x72   :  { %954 = vrot.lane.b32.xlu1 %v2571_v30, %s2477_s23 }
  0x76   :  { %988 = vrot.lane.b32.xlu0 %v2588_v37, %s2477_s23  ;;  %870 = vrot.lane.b32.xlu2 %v2640_v59, %s2476_s22 }
  0x7a   :  { %1005 = vrot.lane.b32.xlu1 %v2633_v56, %s2477_s23 }
  0x7e   :  { %1039 = vrot.lane.b32.xlu0 %v2605_v44, %s2477_s23  ;;  %921 = vrot.lane.b32.xlu2 %v2647_v62, %s2476_s22 }
  0x80   :  { %v330_v63 = vpop.permute.xlu0 %329   ;;  %v398_v0 = vpop.permute.xlu2 %397  }
  0x81   :  { %2066 = vst.msk [vmem:[%s4612_s1 + $0x1] ss:$16 sm:$0x3] %vm147_vm1, %v330_v63  }
  0x82   :  { %1056 = vrot.lane.b32.xlu1 %v2622_v51, %s2477_s23  ;;  %2067 = vst.msk [vmem:[%s4612_s1 + $0x1] ss:$16 sm:$0xc] %vm147_vm1, %v330_v63  }
  0x83   :  { %2068 = vst.msk [vmem:[%s4612_s1 + $0x1] ss:$16 sm:$0x30] %vm147_vm1, %v330_v63  }
  0x84   :  { %2069 = vst.msk [vmem:[%s4612_s1 + $0x1] ss:$16 sm:$0xc0] %vm147_vm1, %v330_v63   ;;  %v364_v1 = vpop.permute.xlu1 %363  }
  0x85   :  { %2074 = vst.msk [vmem:[%s4612_s1 + $0x101] ss:$16 sm:$0x3] %vm147_vm1, %v364_v1  }
  0x86   :  { %2075 = vst.msk [vmem:[%s4612_s1 + $0x101] ss:$16 sm:$0xc] %vm147_vm1, %v364_v1   ;;  %1089 = vrot.lane.b32.xlu0 %v2537_v16, %s2478_s7  ;;  %971 = vrot.lane.b32.xlu2 %v2554_v23, %s2477_s23 }
  0x87   :  { %2076 = vst.msk [vmem:[%s4612_s1 + $0x101] ss:$16 sm:$0x30] %vm147_vm1, %v364_v1  }
  0x88   :  { %2077 = vst.msk [vmem:[%s4612_s1 + $0x101] ss:$16 sm:$0xc0] %vm147_vm1, %v364_v1   ;;  %v347_v2 = vpop.permute.xlu0 %346   ;;  %v415_v3 = vpop.permute.xlu2 %414  }
  0x89   :  { %2082 = vst.msk [vmem:[%s4612_s1 + $0x201] ss:$16 sm:$0x3] %vm147_vm1, %v398_v0  }
  0x8a   :  { %2083 = vst.msk [vmem:[%s4612_s1 + $0x201] ss:$16 sm:$0xc] %vm147_vm1, %v398_v0   ;;  %1106 = vrot.lane.b32.xlu1 %v2571_v30, %s2478_s7 }
  0x8b   :  { %2084 = vst.msk [vmem:[%s4612_s1 + $0x201] ss:$16 sm:$0x30] %vm147_vm1, %v398_v0  }
  0x8c   :  { %2085 = vst.msk [vmem:[%s4612_s1 + $0x201] ss:$16 sm:$0xc0] %vm147_vm1, %v398_v0   ;;  %v381_v4 = vpop.permute.xlu1 %380   ;;  %v1796_v0 = vld.sshfl [vmem:[#allocation0 + $0xd0] sm:$0xff pattern:$0x98100000]  }
  0x8d   :  { %2070 = vst.msk [vmem:[%s4612_s1 + $0x81] ss:$16 sm:$0x3] %vm147_vm1, %v347_v2  }
  0x8e   :  { %2071 = vst.msk [vmem:[%s4612_s1 + $0x81] ss:$16 sm:$0xc] %vm147_vm1, %v347_v2   ;;  %1140 = vrot.lane.b32.xlu0 %v2588_v37, %s2478_s7  ;;  %1022 = vrot.lane.b32.xlu2 %v2640_v59, %s2477_s23 }
  0x8f   :  { %2072 = vst.msk [vmem:[%s4612_s1 + $0x81] ss:$16 sm:$0x30] %vm147_vm1, %v347_v2  }
  0x90   :  { %2073 = vst.msk [vmem:[%s4612_s1 + $0x81] ss:$16 sm:$0xc0] %vm147_vm1, %v347_v2   ;;  %v432_v5 = vpop.permute.xlu0 %431   ;;  %v466_v6 = vpop.permute.xlu2 %465   ;;  %v1811_v2 = vld.sshfl [vmem:[#allocation0 + $0xe0] sm:$0xff pattern:$0x99999810]  }
  0x91   :  { %2078 = vst.msk [vmem:[%s4612_s1 + $0x181] ss:$16 sm:$0x3] %vm147_vm1, %v381_v4  }
  0x92   :  { %2079 = vst.msk [vmem:[%s4612_s1 + $0x181] ss:$16 sm:$0xc] %vm147_vm1, %v381_v4   ;;  %1157 = vrot.lane.b32.xlu1 %v2633_v56, %s2478_s7 }
  0x93   :  { %2080 = vst.msk [vmem:[%s4612_s1 + $0x181] ss:$16 sm:$0x30] %vm147_vm1, %v381_v4  }
  0x94   :  { %2081 = vst.msk [vmem:[%s4612_s1 + $0x181] ss:$16 sm:$0xc0] %vm147_vm1, %v381_v4   ;;  %v449_v7 = vpop.permute.xlu1 %448  }
  0x95   :  { %2086 = vst.msk [vmem:[%s4612_s1 + $0x281] ss:$16 sm:$0x3] %vm147_vm1, %v415_v3  }
  0x96   :  { %2087 = vst.msk [vmem:[%s4612_s1 + $0x281] ss:$16 sm:$0xc] %vm147_vm1, %v415_v3   ;;  %1191 = vrot.lane.b32.xlu0 %v2605_v44, %s2478_s7  ;;  %1073 = vrot.lane.b32.xlu2 %v2647_v62, %s2477_s23 }
  0x97   :  { %2088 = vst.msk [vmem:[%s4612_s1 + $0x281] ss:$16 sm:$0x30] %vm147_vm1, %v415_v3  }
  0x98   :  { %2089 = vst.msk [vmem:[%s4612_s1 + $0x281] ss:$16 sm:$0xc0] %vm147_vm1, %v415_v3   ;;  %v482_v8 = vpop.permute.xlu0 %481   ;;  %v516_v9 = vpop.permute.xlu2 %515   ;;  %v1813_v3 = vld.sshfl [vmem:[#allocation0 + $0xf0] sm:$0xff pattern:$0x98100000]  }
  0x99   :  { %2090 = vst.msk [vmem:[%s4612_s1 + $0x301] ss:$16 sm:$0x3] %vm147_vm1, %v432_v5   ;;  %v1815_v4 = vsel %vm327_vm0, %v1813_v3, %v1811_v2  ;;  %v170_v2 = vld [vmem:[#allocation0 + $0x28] sm:$0x3]  }
  0x9a   :  { %2091 = vst.msk [vmem:[%s4612_s1 + $0x301] ss:$16 sm:$0xc] %vm147_vm1, %v432_v5   ;;  %1208 = vrot.lane.b32.xlu1 %v2622_v51, %s2478_s7  ;;  %v175_v3 = vld [vmem:[#allocation0 + $0x30] sm:$0x3]  }
  0x9b   :  { %2092 = vst.msk [vmem:[%s4612_s1 + $0x301] ss:$16 sm:$0x30] %vm147_vm1, %v432_v5  }
  0x9c   :  { %2093 = vst.msk [vmem:[%s4612_s1 + $0x301] ss:$16 sm:$0xc0] %vm147_vm1, %v432_v5   ;;  %v499_v10 = vpop.permute.xlu1 %498   ;;  %v1676_v5 = vld.sshfl [vmem:[#allocation0 + $0x100] sm:$0xff pattern:$0x99999810]  }
  0x9d   :  { %2094 = vst.msk [vmem:[%s4612_s1 + $0x381] ss:$16 sm:$0x3] %vm147_vm1, %v449_v7  }
  0x9e   :  { %2095 = vst.msk [vmem:[%s4612_s1 + $0x381] ss:$16 sm:$0xc] %vm147_vm1, %v449_v7   ;;  %1241 = vrot.lane.b32.xlu0 %v2537_v16, %s2479_s27  ;;  %1123 = vrot.lane.b32.xlu2 %v2554_v23, %s2478_s7 }
  0x9f   :  { %2096 = vst.msk [vmem:[%s4612_s1 + $0x381] ss:$16 sm:$0x30] %vm147_vm1, %v449_v7  }
  0xa0   :  { %2097 = vst.msk [vmem:[%s4612_s1 + $0x381] ss:$16 sm:$0xc0] %vm147_vm1, %v449_v7   ;;  %v533_v11 = vpop.permute.xlu0 %532   ;;  %v567_v12 = vpop.permute.xlu2 %566   ;;  %v1678_v7 = vld.sshfl [vmem:[#allocation0 + $0x110] sm:$0xff pattern:$0x98100000]  }
  0xa1   :  { %2098 = vst.msk [vmem:[%s4612_s1 + $0x401] ss:$16 sm:$0x3] %vm147_vm1, %v466_v6  }
  0xa2   :  { %2099 = vst.msk [vmem:[%s4612_s1 + $0x401] ss:$16 sm:$0xc] %vm147_vm1, %v466_v6   ;;  %1258 = vrot.lane.b32.xlu1 %v2571_v30, %s2479_s27 }
  0xa3   :  { %2100 = vst.msk [vmem:[%s4612_s1 + $0x401] ss:$16 sm:$0x30] %vm147_vm1, %v466_v6  }
  0xa4   :  { %2101 = vst.msk [vmem:[%s4612_s1 + $0x401] ss:$16 sm:$0xc0] %vm147_vm1, %v466_v6   ;;  %v550_v13 = vpop.permute.xlu1 %549  }
  0xa5   :  { %2102 = vst.msk [vmem:[%s4612_s1 + $0x2] ss:$16 sm:$0x3] %vm147_vm1, %v482_v8  }
  0xa6   :  { %2103 = vst.msk [vmem:[%s4612_s1 + $0x2] ss:$16 sm:$0xc] %vm147_vm1, %v482_v8   ;;  %1292 = vrot.lane.b32.xlu0 %v2588_v37, %s2479_s27  ;;  %1174 = vrot.lane.b32.xlu2 %v2640_v59, %s2478_s7 }
  0xa7   :  { %2104 = vst.msk [vmem:[%s4612_s1 + $0x2] ss:$16 sm:$0x30] %vm147_vm1, %v482_v8  }
  0xa8   :  { %2105 = vst.msk [vmem:[%s4612_s1 + $0x2] ss:$16 sm:$0xc0] %vm147_vm1, %v482_v8   ;;  %v584_v14 = vpop.permute.xlu0 %583   ;;  %v618_v15 = vpop.permute.xlu2 %617   ;;  %v3445_v8 = vsel %vm327_vm0, %v1678_v7, %v1676_v5  ;;  %v185_v5 = vld [vmem:[#allocation0 + $0x40] sm:$0x3]  }
  0xa9   :  { %2106 = vst.msk [vmem:[%s4612_s1 + $0x82] ss:$16 sm:$0x3] %vm147_vm1, %v499_v10   ;;  %v195_v7 = vld [vmem:[#allocation0 + $0x50] sm:$0x3]  }
  0xaa   :  { %2107 = vst.msk [vmem:[%s4612_s1 + $0x82] ss:$16 sm:$0xc] %vm147_vm1, %v499_v10   ;;  %1309 = vrot.lane.b32.xlu1 %v2633_v56, %s2479_s27 }
  0xab   :  { %2108 = vst.msk [vmem:[%s4612_s1 + $0x82] ss:$16 sm:$0x30] %vm147_vm1, %v499_v10  }
  0xac   :  { %2109 = vst.msk [vmem:[%s4612_s1 + $0x82] ss:$16 sm:$0xc0] %vm147_vm1, %v499_v10   ;;  %v601_v17 = vpop.permute.xlu1 %600  }
  0xad   :  { %2110 = vst.msk [vmem:[%s4612_s1 + $0x102] ss:$16 sm:$0x3] %vm147_vm1, %v516_v9  }
  0xae   :  { %2111 = vst.msk [vmem:[%s4612_s1 + $0x102] ss:$16 sm:$0xc] %vm147_vm1, %v516_v9   ;;  %1343 = vrot.lane.b32.xlu0 %v2605_v44, %s2479_s27  ;;  %1225 = vrot.lane.b32.xlu2 %v2647_v62, %s2478_s7 }
  0xaf   :  { %2112 = vst.msk [vmem:[%s4612_s1 + $0x102] ss:$16 sm:$0x30] %vm147_vm1, %v516_v9  }
  0xb0   :  { %2113 = vst.msk [vmem:[%s4612_s1 + $0x102] ss:$16 sm:$0xc0] %vm147_vm1, %v516_v9   ;;  %v634_v18 = vpop.permute.xlu0 %633   ;;  %v668_v19 = vpop.permute.xlu2 %667  }
  0xb1   :  { %2114 = vst.msk [vmem:[%s4612_s1 + $0x182] ss:$16 sm:$0x3] %vm147_vm1, %v533_v11  }
  0xb2   :  { %2115 = vst.msk [vmem:[%s4612_s1 + $0x182] ss:$16 sm:$0xc] %vm147_vm1, %v533_v11   ;;  %1360 = vrot.lane.b32.xlu1 %v2622_v51, %s2479_s27 }
  0xb3   :  { %2116 = vst.msk [vmem:[%s4612_s1 + $0x182] ss:$16 sm:$0x30] %vm147_vm1, %v533_v11  }
  0xb4   :  { %2117 = vst.msk [vmem:[%s4612_s1 + $0x182] ss:$16 sm:$0xc0] %vm147_vm1, %v533_v11   ;;  %v651_v20 = vpop.permute.xlu1 %650  }
  0xb5   :  { %2118 = vst.msk [vmem:[%s4612_s1 + $0x202] ss:$16 sm:$0x3] %vm147_vm1, %v550_v13  }
  0xb6   :  { %2119 = vst.msk [vmem:[%s4612_s1 + $0x202] ss:$16 sm:$0xc] %vm147_vm1, %v550_v13   ;;  %1393 = vrot.lane.b32.xlu0 %v2537_v16, %s2480_s19  ;;  %1275 = vrot.lane.b32.xlu2 %v2554_v23, %s2479_s27 }
  0xb7   :  { %2120 = vst.msk [vmem:[%s4612_s1 + $0x202] ss:$16 sm:$0x30] %vm147_vm1, %v550_v13  }
  0xb8   :  { %2121 = vst.msk [vmem:[%s4612_s1 + $0x202] ss:$16 sm:$0xc0] %vm147_vm1, %v550_v13   ;;  %v685_v21 = vpop.permute.xlu0 %684   ;;  %v719_v22 = vpop.permute.xlu2 %718  }
  0xb9   :  { %2122 = vst.msk [vmem:[%s4612_s1 + $0x282] ss:$16 sm:$0x3] %vm147_vm1, %v567_v12  }
  0xba   :  { %2123 = vst.msk [vmem:[%s4612_s1 + $0x282] ss:$16 sm:$0xc] %vm147_vm1, %v567_v12   ;;  %1410 = vrot.lane.b32.xlu1 %v2571_v30, %s2480_s19 }
  0xbb   :  { %2124 = vst.msk [vmem:[%s4612_s1 + $0x282] ss:$16 sm:$0x30] %vm147_vm1, %v567_v12  }
  0xbc   :  { %2125 = vst.msk [vmem:[%s4612_s1 + $0x282] ss:$16 sm:$0xc0] %vm147_vm1, %v567_v12   ;;  %v702_v24 = vpop.permute.xlu1 %701  }
  0xbd   :  { %2126 = vst.msk [vmem:[%s4612_s1 + $0x302] ss:$16 sm:$0x3] %vm147_vm1, %v584_v14  }
  0xbe   :  { %2127 = vst.msk [vmem:[%s4612_s1 + $0x302] ss:$16 sm:$0xc] %vm147_vm1, %v584_v14   ;;  %1444 = vrot.lane.b32.xlu0 %v2588_v37, %s2480_s19  ;;  %1326 = vrot.lane.b32.xlu2 %v2640_v59, %s2479_s27 }
  0xbf   :  { %2128 = vst.msk [vmem:[%s4612_s1 + $0x302] ss:$16 sm:$0x30] %vm147_vm1, %v584_v14  }
  0xc0   :  { %2129 = vst.msk [vmem:[%s4612_s1 + $0x302] ss:$16 sm:$0xc0] %vm147_vm1, %v584_v14   ;;  %v736_v25 = vpop.permute.xlu0 %735   ;;  %v770_v27 = vpop.permute.xlu2 %769  }
  0xc1   :  { %2130 = vst.msk [vmem:[%s4612_s1 + $0x382] ss:$16 sm:$0x3] %vm147_vm1, %v601_v17  }
  0xc2   :  { %2131 = vst.msk [vmem:[%s4612_s1 + $0x382] ss:$16 sm:$0xc] %vm147_vm1, %v601_v17   ;;  %1461 = vrot.lane.b32.xlu1 %v2633_v56, %s2480_s19 }
  0xc3   :  { %2132 = vst.msk [vmem:[%s4612_s1 + $0x382] ss:$16 sm:$0x30] %vm147_vm1, %v601_v17  }
  0xc4   :  { %2133 = vst.msk [vmem:[%s4612_s1 + $0x382] ss:$16 sm:$0xc0] %vm147_vm1, %v601_v17   ;;  %v753_v26 = vpop.permute.xlu1 %752  }
  0xc5   :  { %2134 = vst.msk [vmem:[%s4612_s1 + $0x402] ss:$16 sm:$0x3] %vm147_vm1, %v618_v15  }
  0xc6   :  { %2135 = vst.msk [vmem:[%s4612_s1 + $0x402] ss:$16 sm:$0xc] %vm147_vm1, %v618_v15   ;;  %1495 = vrot.lane.b32.xlu0 %v2605_v44, %s2480_s19  ;;  %1377 = vrot.lane.b32.xlu2 %v2647_v62, %s2479_s27 }
  0xc7   :  { %2136 = vst.msk [vmem:[%s4612_s1 + $0x402] ss:$16 sm:$0x30] %vm147_vm1, %v618_v15  }
  0xc8   :  { %2137 = vst.msk [vmem:[%s4612_s1 + $0x402] ss:$16 sm:$0xc0] %vm147_vm1, %v618_v15   ;;  %v786_v28 = vpop.permute.xlu0 %785  }
  0xc9   :  { %2138 = vst.msk [vmem:[%s4612_s1 + $0x3] ss:$16 sm:$0x3] %vm147_vm1, %v634_v18  }
  0xca   :  { %2139 = vst.msk [vmem:[%s4612_s1 + $0x3] ss:$16 sm:$0xc] %vm147_vm1, %v634_v18   ;;  %1512 = vrot.lane.b32.xlu1 %v2622_v51, %s2480_s19 }
  0xcb   :  { %2140 = vst.msk [vmem:[%s4612_s1 + $0x3] ss:$16 sm:$0x30] %vm147_vm1, %v634_v18  }
  0xcc   :  { %2141 = vst.msk [vmem:[%s4612_s1 + $0x3] ss:$16 sm:$0xc0] %vm147_vm1, %v634_v18  }
  0xcd   :  { %2142 = vst.msk [vmem:[%s4612_s1 + $0x83] ss:$16 sm:$0x3] %vm147_vm1, %v651_v20  }
  0xce   :  { %2143 = vst.msk [vmem:[%s4612_s1 + $0x83] ss:$16 sm:$0xc] %vm147_vm1, %v651_v20   ;;  %1545 = vrot.lane.b32.xlu0 %v2537_v16, %s2481_s11  ;;  %1427 = vrot.lane.b32.xlu2 %v2554_v23, %s2480_s19  ;;  %v803_v16 = vpop.permute.xlu1 %802   ;;  %v820_v23 = vpop.permute.xlu2 %819  }
  0xcf   :  { %2144 = vst.msk [vmem:[%s4612_s1 + $0x83] ss:$16 sm:$0x30] %vm147_vm1, %v651_v20  }
  0xd0   :  { %2145 = vst.msk [vmem:[%s4612_s1 + $0x83] ss:$16 sm:$0xc0] %vm147_vm1, %v651_v20   ;;  %v837_v29 = vpop.permute.xlu0 %836  }
  0xd1   :  { %2146 = vst.msk [vmem:[%s4612_s1 + $0x103] ss:$16 sm:$0x3] %vm147_vm1, %v668_v19  }
  0xd2   :  { %2147 = vst.msk [vmem:[%s4612_s1 + $0x103] ss:$16 sm:$0xc] %vm147_vm1, %v668_v19   ;;  %1562 = vrot.lane.b32.xlu1 %v2571_v30, %s2481_s11 }
  0xd3   :  { %2148 = vst.msk [vmem:[%s4612_s1 + $0x103] ss:$16 sm:$0x30] %vm147_vm1, %v668_v19  }
  0xd4   :  { %2149 = vst.msk [vmem:[%s4612_s1 + $0x103] ss:$16 sm:$0xc0] %vm147_vm1, %v668_v19  }
  0xd5   :  { %2150 = vst.msk [vmem:[%s4612_s1 + $0x183] ss:$16 sm:$0x3] %vm147_vm1, %v685_v21  }
  0xd6   :  { %2151 = vst.msk [vmem:[%s4612_s1 + $0x183] ss:$16 sm:$0xc] %vm147_vm1, %v685_v21   ;;  %1596 = vrot.lane.b32.xlu0 %v2588_v37, %s2481_s11  ;;  %1478 = vrot.lane.b32.xlu2 %v2640_v59, %s2480_s19  ;;  %v854_v30 = vpop.permute.xlu1 %853   ;;  %v871_v31 = vpop.permute.xlu2 %870   ;;  %v1627_v59 = vld.sshfl [vmem:[#allocation0 + $0xb0] sm:$0xff pattern:$0x98100000]  }
  0xd7   :  { %2152 = vst.msk [vmem:[%s4612_s1 + $0x183] ss:$16 sm:$0x30] %vm147_vm1, %v685_v21   ;;  %v3372_v60 = vsel %vm327_vm0, %v1627_v59, %v1625_v57 }
  0xd8   :  { %2153 = vst.msk [vmem:[%s4612_s1 + $0x183] ss:$16 sm:$0xc0] %vm147_vm1, %v685_v21   ;;  %v888_v32 = vpop.permute.xlu0 %887  }
  0xd9   :  { %2154 = vst.msk [vmem:[%s4612_s1 + $0x203] ss:$16 sm:$0x3] %vm147_vm1, %v702_v24  }
  0xda   :  { %2155 = vst.msk [vmem:[%s4612_s1 + $0x203] ss:$16 sm:$0xc] %vm147_vm1, %v702_v24   ;;  %1613 = vrot.lane.b32.xlu1 %v2633_v56, %s2481_s11  ;;  %v1764_v56 = vsel %vm327_vm0, %v1762_v55, %v1760_v54 }
  0xdb   :  { %2156 = vst.msk [vmem:[%s4612_s1 + $0x203] ss:$16 sm:$0x30] %vm147_vm1, %v702_v24  }
  0xdc   :  { %2157 = vst.msk [vmem:[%s4612_s1 + $0x203] ss:$16 sm:$0xc0] %vm147_vm1, %v702_v24  }
  0xdd   :  { %2158 = vst.msk [vmem:[%s4612_s1 + $0x283] ss:$16 sm:$0x3] %vm147_vm1, %v719_v22  }
  0xde   :  { %2159 = vst.msk [vmem:[%s4612_s1 + $0x283] ss:$16 sm:$0xc] %vm147_vm1, %v719_v22   ;;  %1647 = vrot.lane.b32.xlu0 %v2605_v44, %s2481_s11  ;;  %1529 = vrot.lane.b32.xlu2 %v2647_v62, %s2480_s19  ;;  %v3174_v33 = vpop.permute.xlu1 %904   ;;  %v3188_v34 = vpop.permute.xlu2 %921   ;;  %v3288_v44 = vsel %vm327_vm0, %v1711_v43, %v1709_v42  ;;  %v1794_v62 = vld.sshfl [vmem:[#allocation0 + $0xc0] sm:$0xff pattern:$0x99999810]  }
  0xdf   :  { %2160 = vst.msk [vmem:[%s4612_s1 + $0x283] ss:$16 sm:$0x30] %vm147_vm1, %v719_v22   ;;  %v1798_v1 = vsel %vm327_vm0, %v1796_v0, %v1794_v62  ;;  %v150_v62 = vld [vmem:[#allocation0 + $0x8] sm:$0x3]  }
  0xe0   :  { %2161 = vst.msk [vmem:[%s4612_s1 + $0x283] ss:$16 sm:$0xc0] %vm147_vm1, %v719_v22   ;;  %v3210_v35 = vpop.permute.xlu0 %937   ;;  %v160_v0 = vld [vmem:[#allocation0 + $0x18] sm:$0x3]  }
  0xe1   :  { %2162 = vst.msk [vmem:[%s4612_s1 + $0x303] ss:$16 sm:$0x3] %vm147_vm1, %v736_v25  }
  0xe2   :  { %2163 = vst.msk [vmem:[%s4612_s1 + $0x303] ss:$16 sm:$0xc] %vm147_vm1, %v736_v25   ;;  %1664 = vrot.lane.b32.xlu1 %v2622_v51, %s2481_s11 }
  0xe3   :  { %2164 = vst.msk [vmem:[%s4612_s1 + $0x303] ss:$16 sm:$0x30] %vm147_vm1, %v736_v25  }
  0xe4   :  { %2165 = vst.msk [vmem:[%s4612_s1 + $0x303] ss:$16 sm:$0xc0] %vm147_vm1, %v736_v25  }
  0xe5   :  { %2166 = vst.msk [vmem:[%s4612_s1 + $0x383] ss:$16 sm:$0x3] %vm147_vm1, %v753_v26  }
  0xe6   :  { %2167 = vst.msk [vmem:[%s4612_s1 + $0x383] ss:$16 sm:$0xc] %vm147_vm1, %v753_v26   ;;  %v3228_v36 = vpop.permute.xlu1 %954   ;;  %v3242_v37 = vpop.permute.xlu2 %971   ;;  %1697 = vrot.lane.b32.xlu0 %v3275_v41, %s2482_s9  ;;  %1579 = vrot.lane.b32.xlu2 %v3303_v48, %s2481_s11 }
  0xe7   :  { %2168 = vst.msk [vmem:[%s4612_s1 + $0x383] ss:$16 sm:$0x30] %vm147_vm1, %v753_v26  }
  0xe8   :  { %2169 = vst.msk [vmem:[%s4612_s1 + $0x383] ss:$16 sm:$0xc0] %vm147_vm1, %v753_v26   ;;  %v3264_v39 = vpop.permute.xlu0 %988  }
  0xe9   :  { %2170 = vst.msk [vmem:[%s4612_s1 + $0x403] ss:$16 sm:$0x3] %vm147_vm1, %v770_v27  }
  0xea   :  { %2171 = vst.msk [vmem:[%s4612_s1 + $0x403] ss:$16 sm:$0xc] %vm147_vm1, %v770_v27   ;;  %1714 = vrot.lane.b32.xlu1 %v3288_v44, %s2482_s9 }
  0xeb   :  { %2172 = vst.msk [vmem:[%s4612_s1 + $0x403] ss:$16 sm:$0x30] %vm147_vm1, %v770_v27  }
  0xec   :  { %2173 = vst.msk [vmem:[%s4612_s1 + $0x403] ss:$16 sm:$0xc0] %vm147_vm1, %v770_v27  }
  0xed   :  { %2174 = vst.msk [vmem:[%s4612_s1 + $0x4] ss:$16 sm:$0x3] %vm147_vm1, %v786_v28  }
  0xee   :  { %2175 = vst.msk [vmem:[%s4612_s1 + $0x4] ss:$16 sm:$0xc] %vm147_vm1, %v786_v28   ;;  %v3290_v46 = vpop.permute.xlu1 %1005   ;;  %v3311_v49 = vpop.permute.xlu2 %1022   ;;  %1748 = vrot.lane.b32.xlu0 %v1747_v53, %s2482_s9  ;;  %1630 = vrot.lane.b32.xlu2 %v3372_v60, %s2481_s11 }
  0xef   :  { %2176 = vst.msk [vmem:[%s4612_s1 + $0x4] ss:$16 sm:$0x30] %vm147_vm1, %v786_v28  }
  0xf0   :  { %2177 = vst.msk [vmem:[%s4612_s1 + $0x4] ss:$16 sm:$0xc0] %vm147_vm1, %v786_v28   ;;  %v3333_v51 = vpop.permute.xlu0 %1039  }
  0xf1   :  { %2178 = vst.msk [vmem:[%s4612_s1 + $0x84] ss:$16 sm:$0x3] %vm147_vm1, %v803_v16  }
  0xf2   :  { %2179 = vst.msk [vmem:[%s4612_s1 + $0x84] ss:$16 sm:$0xc] %vm147_vm1, %v803_v16   ;;  %1765 = vrot.lane.b32.xlu1 %v1764_v56, %s2482_s9 }
  0xf3   :  { %2180 = vst.msk [vmem:[%s4612_s1 + $0x84] ss:$16 sm:$0x30] %vm147_vm1, %v803_v16  }
  0xf4   :  { %2181 = vst.msk [vmem:[%s4612_s1 + $0x84] ss:$16 sm:$0xc0] %vm147_vm1, %v803_v16  }
  0xf5   :  { %2182 = vst.msk [vmem:[%s4612_s1 + $0x104] ss:$16 sm:$0x3] %vm147_vm1, %v820_v23  }
  0xf6   :  { %2183 = vst.msk [vmem:[%s4612_s1 + $0x104] ss:$16 sm:$0xc] %vm147_vm1, %v820_v23   ;;  %v3358_v58 = vpop.permute.xlu1 %1056   ;;  %v3381_v61 = vpop.permute.xlu2 %1073   ;;  %1799 = vrot.lane.b32.xlu0 %v1798_v1, %s2482_s9  ;;  %1681 = vrot.lane.b32.xlu2 %v3445_v8, %s2481_s11 }
  0xf7   :  { %2184 = vst.msk [vmem:[%s4612_s1 + $0x104] ss:$16 sm:$0x30] %vm147_vm1, %v820_v23  }
  0xf8   :  { %2185 = vst.msk [vmem:[%s4612_s1 + $0x104] ss:$16 sm:$0xc0] %vm147_vm1, %v820_v23   ;;  %v3408_v63 = vpop.permute.xlu0 %1089  }
  0xf9   :  { %2186 = vst.msk [vmem:[%s4612_s1 + $0x184] ss:$16 sm:$0x3] %vm147_vm1, %v837_v29  }
  0xfa   :  { %2187 = vst.msk [vmem:[%s4612_s1 + $0x184] ss:$16 sm:$0xc] %vm147_vm1, %v837_v29   ;;  %1816 = vrot.lane.b32.xlu1 %v1815_v4, %s2482_s9 }
  0xfb   :  { %2188 = vst.msk [vmem:[%s4612_s1 + $0x184] ss:$16 sm:$0x30] %vm147_vm1, %v837_v29  }
  0xfc   :  { %2189 = vst.msk [vmem:[%s4612_s1 + $0x184] ss:$16 sm:$0xc0] %vm147_vm1, %v837_v29  }
  0xfd   :  { %2190 = vst.msk [vmem:[%s4612_s1 + $0x204] ss:$16 sm:$0x3] %vm147_vm1, %v854_v30  }
  0xfe   :  { %2191 = vst.msk [vmem:[%s4612_s1 + $0x204] ss:$16 sm:$0xc] %vm147_vm1, %v854_v30   ;;  %v1107_v6 = vpop.permute.xlu1 %1106   ;;  %v1124_v9 = vpop.permute.xlu2 %1123   ;;  %1849 = vrot.lane.b32.xlu0 %v3275_v41, %s2483_s30  ;;  %1731 = vrot.lane.b32.xlu2 %v3303_v48, %s2482_s9 }
  0xff   :  { %2192 = vst.msk [vmem:[%s4612_s1 + $0x204] ss:$16 sm:$0x30] %vm147_vm1, %v854_v30  }
 0x100   :  { %2193 = vst.msk [vmem:[%s4612_s1 + $0x204] ss:$16 sm:$0xc0] %vm147_vm1, %v854_v30   ;;  %v1141_v10 = vpop.permute.xlu0 %1140  }
 0x101   :  { %2194 = vst.msk [vmem:[%s4612_s1 + $0x284] ss:$16 sm:$0x3] %vm147_vm1, %v871_v31  }
 0x102   :  { %2195 = vst.msk [vmem:[%s4612_s1 + $0x284] ss:$16 sm:$0xc] %vm147_vm1, %v871_v31   ;;  %1866 = vrot.lane.b32.xlu1 %v3288_v44, %s2483_s30 }
 0x103   :  { %2196 = vst.msk [vmem:[%s4612_s1 + $0x284] ss:$16 sm:$0x30] %vm147_vm1, %v871_v31  }
 0x104   :  { %2197 = vst.msk [vmem:[%s4612_s1 + $0x284] ss:$16 sm:$0xc0] %vm147_vm1, %v871_v31  }
 0x105   :  { %2198 = vst.msk [vmem:[%s4612_s1 + $0x304] ss:$16 sm:$0x3] %vm147_vm1, %v888_v32  }
 0x106   :  { %2199 = vst.msk [vmem:[%s4612_s1 + $0x304] ss:$16 sm:$0xc] %vm147_vm1, %v888_v32   ;;  %v1158_v11 = vpop.permute.xlu1 %1157   ;;  %v1175_v12 = vpop.permute.xlu2 %1174   ;;  %1900 = vrot.lane.b32.xlu0 %v1747_v53, %s2483_s30  ;;  %1782 = vrot.lane.b32.xlu2 %v3372_v60, %s2482_s9 }
 0x107   :  { %2200 = vst.msk [vmem:[%s4612_s1 + $0x304] ss:$16 sm:$0x30] %vm147_vm1, %v888_v32  }
 0x108   :  { %2201 = vst.msk [vmem:[%s4612_s1 + $0x304] ss:$16 sm:$0xc0] %vm147_vm1, %v888_v32   ;;  %v1192_v13 = vpop.permute.xlu0 %1191  }
 0x109   :  { %2202 = vst.msk [vmem:[%s4612_s1 + $0x384] ss:$16 sm:$0x3] %vm147_vm1, %v3174_v33  }
 0x10a   :  { %2203 = vst.msk [vmem:[%s4612_s1 + $0x384] ss:$16 sm:$0xc] %vm147_vm1, %v3174_v33   ;;  %1917 = vrot.lane.b32.xlu1 %v1764_v56, %s2483_s30 }
 0x10b   :  { %2204 = vst.msk [vmem:[%s4612_s1 + $0x384] ss:$16 sm:$0x30] %vm147_vm1, %v3174_v33  }
 0x10c   :  { %2205 = vst.msk [vmem:[%s4612_s1 + $0x384] ss:$16 sm:$0xc0] %vm147_vm1, %v3174_v33  }
 0x10d   :  { %2206 = vst.msk [vmem:[%s4612_s1 + $0x404] ss:$16 sm:$0x3] %vm147_vm1, %v3188_v34  }
 0x10e   :  { %2207 = vst.msk [vmem:[%s4612_s1 + $0x404] ss:$16 sm:$0xc] %vm147_vm1, %v3188_v34   ;;  %1951 = vrot.lane.b32.xlu0 %v1798_v1, %s2483_s30  ;;  %v1209_v14 = vpop.permute.xlu1 %1208   ;;  %v1226_v15 = vpop.permute.xlu2 %1225   ;;  %1833 = vrot.lane.b32.xlu2 %v3445_v8, %s2482_s9  ;;  %v165_v1 = vld [vmem:[#allocation0 + $0x20] sm:$0x3]  }
 0x10f   :  { %2208 = vst.msk [vmem:[%s4612_s1 + $0x404] ss:$16 sm:$0x30] %vm147_vm1, %v3188_v34  }
 0x110   :  { %2209 = vst.msk [vmem:[%s4612_s1 + $0x404] ss:$16 sm:$0xc0] %vm147_vm1, %v3188_v34   ;;  %v1242_v17 = vpop.permute.xlu0 %1241  }
 0x111   :  { %2210 = vst.msk [vmem:[%s4612_s1 + $0x5] ss:$16 sm:$0x3] %vm147_vm1, %v3210_v35  }
 0x112   :  { %2211 = vst.msk [vmem:[%s4612_s1 + $0x5] ss:$16 sm:$0xc] %vm147_vm1, %v3210_v35   ;;  %1968 = vrot.lane.b32.xlu1 %v1815_v4, %s2483_s30  ;;  %v180_v4 = vld [vmem:[#allocation0 + $0x38] sm:$0x3]  }
 0x113   :  { %2212 = vst.msk [vmem:[%s4612_s1 + $0x5] ss:$16 sm:$0x30] %vm147_vm1, %v3210_v35  }
 0x114   :  { %2213 = vst.msk [vmem:[%s4612_s1 + $0x5] ss:$16 sm:$0xc0] %vm147_vm1, %v3210_v35  }
 0x115   :  { %2214 = vst.msk [vmem:[%s4612_s1 + $0x85] ss:$16 sm:$0x3] %vm147_vm1, %v3228_v36  }
 0x116   :  { %2215 = vst.msk [vmem:[%s4612_s1 + $0x85] ss:$16 sm:$0xc] %vm147_vm1, %v3228_v36   ;;  %1883 = vrot.lane.b32.xlu2 %v3303_v48, %s2483_s30  ;;  %v1259_v18 = vpop.permute.xlu1 %1258   ;;  %v1276_v19 = vpop.permute.xlu2 %1275  }
 0x117   :  { %2216 = vst.msk [vmem:[%s4612_s1 + $0x85] ss:$16 sm:$0x30] %vm147_vm1, %v3228_v36  }
 0x118   :  { %2217 = vst.msk [vmem:[%s4612_s1 + $0x85] ss:$16 sm:$0xc0] %vm147_vm1, %v3228_v36   ;;  %v1293_v20 = vpop.permute.xlu0 %1292  }
 0x119   :  { %2218 = vst.msk [vmem:[%s4612_s1 + $0x105] ss:$16 sm:$0x3] %vm147_vm1, %v3242_v37  }
 0x11a   :  { %2219 = vst.msk [vmem:[%s4612_s1 + $0x105] ss:$16 sm:$0xc] %vm147_vm1, %v3242_v37  }
 0x11b   :  { %2220 = vst.msk [vmem:[%s4612_s1 + $0x105] ss:$16 sm:$0x30] %vm147_vm1, %v3242_v37  }
 0x11c   :  { %2221 = vst.msk [vmem:[%s4612_s1 + $0x105] ss:$16 sm:$0xc0] %vm147_vm1, %v3242_v37  }
 0x11d   :  { %2222 = vst.msk [vmem:[%s4612_s1 + $0x185] ss:$16 sm:$0x3] %vm147_vm1, %v3264_v39  }
 0x11e   :  { %2223 = vst.msk [vmem:[%s4612_s1 + $0x185] ss:$16 sm:$0xc] %vm147_vm1, %v3264_v39   ;;  %1934 = vrot.lane.b32.xlu2 %v3372_v60, %s2483_s30  ;;  %v1310_v21 = vpop.permute.xlu1 %1309   ;;  %v1327_v22 = vpop.permute.xlu2 %1326  }
 0x11f   :  { %2224 = vst.msk [vmem:[%s4612_s1 + $0x185] ss:$16 sm:$0x30] %vm147_vm1, %v3264_v39  }
 0x120   :  { %2225 = vst.msk [vmem:[%s4612_s1 + $0x185] ss:$16 sm:$0xc0] %vm147_vm1, %v3264_v39   ;;  %v1344_v24 = vpop.permute.xlu0 %1343  }
 0x121   :  { %2226 = vst.msk [vmem:[%s4612_s1 + $0x205] ss:$16 sm:$0x3] %vm147_vm1, %v3290_v46  }
 0x122   :  { %2227 = vst.msk [vmem:[%s4612_s1 + $0x205] ss:$16 sm:$0xc] %vm147_vm1, %v3290_v46  }
 0x123   :  { %2228 = vst.msk [vmem:[%s4612_s1 + $0x205] ss:$16 sm:$0x30] %vm147_vm1, %v3290_v46  }
 0x124   :  { %2229 = vst.msk [vmem:[%s4612_s1 + $0x205] ss:$16 sm:$0xc0] %vm147_vm1, %v3290_v46  }
 0x125   :  { %2230 = vst.msk [vmem:[%s4612_s1 + $0x285] ss:$16 sm:$0x3] %vm147_vm1, %v3311_v49  }
 0x126   :  { %2231 = vst.msk [vmem:[%s4612_s1 + $0x285] ss:$16 sm:$0xc] %vm147_vm1, %v3311_v49   ;;  %1985 = vrot.lane.b32.xlu2 %v3445_v8, %s2483_s30  ;;  %v1361_v25 = vpop.permute.xlu1 %1360   ;;  %v1378_v26 = vpop.permute.xlu2 %1377   ;;  %v200_v8 = vld [vmem:[#allocation0 + $0x58] sm:$0x3]  }
 0x127   :  { %2232 = vst.msk [vmem:[%s4612_s1 + $0x285] ss:$16 sm:$0x30] %vm147_vm1, %v3311_v49  }
 0x128   :  { %2233 = vst.msk [vmem:[%s4612_s1 + $0x285] ss:$16 sm:$0xc0] %vm147_vm1, %v3311_v49   ;;  %v1394_v27 = vpop.permute.xlu0 %1393  }
 0x129   :  { %2234 = vst.msk [vmem:[%s4612_s1 + $0x305] ss:$16 sm:$0x3] %vm147_vm1, %v3333_v51  }
 0x12a   :  { %2235 = vst.msk [vmem:[%s4612_s1 + $0x305] ss:$16 sm:$0xc] %vm147_vm1, %v3333_v51  }
 0x12b   :  { %2236 = vst.msk [vmem:[%s4612_s1 + $0x305] ss:$16 sm:$0x30] %vm147_vm1, %v3333_v51  }
 0x12c   :  { %2237 = vst.msk [vmem:[%s4612_s1 + $0x305] ss:$16 sm:$0xc0] %vm147_vm1, %v3333_v51  }
 0x12d   :  { %2238 = vst.msk [vmem:[%s4612_s1 + $0x385] ss:$16 sm:$0x3] %vm147_vm1, %v3358_v58  }
 0x12e   :  { %2239 = vst.msk [vmem:[%s4612_s1 + $0x385] ss:$16 sm:$0xc] %vm147_vm1, %v3358_v58   ;;  %v1411_v28 = vpop.permute.xlu1 %1410   ;;  %v1428_v16 = vpop.permute.xlu2 %1427  }
 0x12f   :  { %2240 = vst.msk [vmem:[%s4612_s1 + $0x385] ss:$16 sm:$0x30] %vm147_vm1, %v3358_v58  }
 0x130   :  { %2241 = vst.msk [vmem:[%s4612_s1 + $0x385] ss:$16 sm:$0xc0] %vm147_vm1, %v3358_v58   ;;  %v1445_v23 = vpop.permute.xlu0 %1444  }
 0x131   :  { %2242 = vst.msk [vmem:[%s4612_s1 + $0x405] ss:$16 sm:$0x3] %vm147_vm1, %v3381_v61  }
 0x132   :  { %2243 = vst.msk [vmem:[%s4612_s1 + $0x405] ss:$16 sm:$0xc] %vm147_vm1, %v3381_v61  }
 0x133   :  { %2244 = vst.msk [vmem:[%s4612_s1 + $0x405] ss:$16 sm:$0x30] %vm147_vm1, %v3381_v61  }
 0x134   :  { %2245 = vst.msk [vmem:[%s4612_s1 + $0x405] ss:$16 sm:$0xc0] %vm147_vm1, %v3381_v61   ;;  %v146_v61 = vld [vmem:[#allocation0] sm:$0x3]  }
 0x135   :  { %2246 = vst.msk [vmem:[%s4612_s1 + $0x6] ss:$16 sm:$0x3] %vm147_vm1, %v3408_v63  }
 0x136   :  { %2247 = vst.msk [vmem:[%s4612_s1 + $0x6] ss:$16 sm:$0xc] %vm147_vm1, %v3408_v63   ;;  %v1462_v29 = vpop.permute.xlu1 %1461   ;;  %v1479_v30 = vpop.permute.xlu2 %1478  }
 0x137   :  { %2248 = vst.msk [vmem:[%s4612_s1 + $0x6] ss:$16 sm:$0x30] %vm147_vm1, %v3408_v63  }
 0x138   :  { %2249 = vst.msk [vmem:[%s4612_s1 + $0x6] ss:$16 sm:$0xc0] %vm147_vm1, %v3408_v63   ;;  %v1496_v31 = vpop.permute.xlu0 %1495   ;;  %v155_v63 = vld [vmem:[#allocation0 + $0x10] sm:$0x3]  }
 0x139   :  { %2250 = vst.msk [vmem:[%s4612_s1 + $0x86] ss:$16 sm:$0x3] %vm147_vm1, %v1107_v6  }
 0x13a   :  { %2251 = vst.msk [vmem:[%s4612_s1 + $0x86] ss:$16 sm:$0xc] %vm147_vm1, %v1107_v6  }
 0x13b   :  { %2252 = vst.msk [vmem:[%s4612_s1 + $0x86] ss:$16 sm:$0x30] %vm147_vm1, %v1107_v6  }
 0x13c   :  { %2253 = vst.msk [vmem:[%s4612_s1 + $0x86] ss:$16 sm:$0xc0] %vm147_vm1, %v1107_v6   ;;  %v190_v6 = vld [vmem:[#allocation0 + $0x48] sm:$0x3]  }
 0x13d   :  { %2254 = vst.msk [vmem:[%s4612_s1 + $0x106] ss:$16 sm:$0x3] %vm147_vm1, %v1124_v9  }
 0x13e   :  { %2255 = vst.msk [vmem:[%s4612_s1 + $0x106] ss:$16 sm:$0xc] %vm147_vm1, %v1124_v9   ;;  %v1513_v32 = vpop.permute.xlu1 %1512   ;;  %v1530_v33 = vpop.permute.xlu2 %1529  }
 0x13f   :  { %2256 = vst.msk [vmem:[%s4612_s1 + $0x106] ss:$16 sm:$0x30] %vm147_vm1, %v1124_v9  }
 0x140   :  { %2257 = vst.msk [vmem:[%s4612_s1 + $0x106] ss:$16 sm:$0xc0] %vm147_vm1, %v1124_v9   ;;  %v1546_v34 = vpop.permute.xlu0 %1545   ;;  %v205_v9 = vld [vmem:[#allocation0 + $0x60] sm:$0x3]  }
 0x141   :  { %2258 = vst.msk [vmem:[%s4612_s1 + $0x186] ss:$16 sm:$0x3] %vm147_vm1, %v1141_v10  }
 0x142   :  { %2259 = vst.msk [vmem:[%s4612_s1 + $0x186] ss:$16 sm:$0xc] %vm147_vm1, %v1141_v10  }
 0x143   :  { %2260 = vst.msk [vmem:[%s4612_s1 + $0x186] ss:$16 sm:$0x30] %vm147_vm1, %v1141_v10  }
 0x144   :  { %2261 = vst.msk [vmem:[%s4612_s1 + $0x186] ss:$16 sm:$0xc0] %vm147_vm1, %v1141_v10   ;;  %v210_v10 = vld [vmem:[#allocation0 + $0x68] sm:$0x3]  }
 0x145   :  { %2262 = vst.msk [vmem:[%s4612_s1 + $0x206] ss:$16 sm:$0x3] %vm147_vm1, %v1158_v11  }
 0x146   :  { %2263 = vst.msk [vmem:[%s4612_s1 + $0x206] ss:$16 sm:$0xc] %vm147_vm1, %v1158_v11   ;;  %v1563_v35 = vpop.permute.xlu1 %1562   ;;  %v1580_v36 = vpop.permute.xlu2 %1579  }
 0x147   :  { %2264 = vst.msk [vmem:[%s4612_s1 + $0x206] ss:$16 sm:$0x30] %vm147_vm1, %v1158_v11  }
 0x148   :  { %2265 = vst.msk [vmem:[%s4612_s1 + $0x206] ss:$16 sm:$0xc0] %vm147_vm1, %v1158_v11   ;;  %v1597_v37 = vpop.permute.xlu0 %1596   ;;  %v215_v11 = vld [vmem:[#allocation0 + $0x70] sm:$0x3]  }
 0x149   :  { %2266 = vst.msk [vmem:[%s4612_s1 + $0x286] ss:$16 sm:$0x3] %vm147_vm1, %v1175_v12  }
 0x14a   :  { %2267 = vst.msk [vmem:[%s4612_s1 + $0x286] ss:$16 sm:$0xc] %vm147_vm1, %v1175_v12  }
 0x14b   :  { %2268 = vst.msk [vmem:[%s4612_s1 + $0x286] ss:$16 sm:$0x30] %vm147_vm1, %v1175_v12  }
 0x14c   :  { %2269 = vst.msk [vmem:[%s4612_s1 + $0x286] ss:$16 sm:$0xc0] %vm147_vm1, %v1175_v12   ;;  %v220_v12 = vld [vmem:[#allocation0 + $0x78] sm:$0x3]  }
 0x14d   :  { %2270 = vst.msk [vmem:[%s4612_s1 + $0x306] ss:$16 sm:$0x3] %vm147_vm1, %v1192_v13  }
 0x14e   :  { %2271 = vst.msk [vmem:[%s4612_s1 + $0x306] ss:$16 sm:$0xc] %vm147_vm1, %v1192_v13   ;;  %v1614_v38 = vpop.permute.xlu1 %1613   ;;  %v1631_v39 = vpop.permute.xlu2 %1630  }
 0x14f   :  { %2272 = vst.msk [vmem:[%s4612_s1 + $0x306] ss:$16 sm:$0x30] %vm147_vm1, %v1192_v13  }
 0x150   :  { %2273 = vst.msk [vmem:[%s4612_s1 + $0x306] ss:$16 sm:$0xc0] %vm147_vm1, %v1192_v13   ;;  %v1648_v40 = vpop.permute.xlu0 %1647   ;;  %v225_v13 = vld [vmem:[#allocation0 + $0x80] sm:$0x3]  }
 0x151   :  { %2274 = vst.msk [vmem:[%s4612_s1 + $0x386] ss:$16 sm:$0x3] %vm147_vm1, %v1209_v14  }
 0x152   :  { %2275 = vst.msk [vmem:[%s4612_s1 + $0x386] ss:$16 sm:$0xc] %vm147_vm1, %v1209_v14  }
 0x153   :  { %2276 = vst.msk [vmem:[%s4612_s1 + $0x386] ss:$16 sm:$0x30] %vm147_vm1, %v1209_v14  }
 0x154   :  { %2277 = vst.msk [vmem:[%s4612_s1 + $0x386] ss:$16 sm:$0xc0] %vm147_vm1, %v1209_v14   ;;  %v230_v14 = vld [vmem:[#allocation0 + $0x88] sm:$0x3]  }
 0x155   :  { %2278 = vst.msk [vmem:[%s4612_s1 + $0x406] ss:$16 sm:$0x3] %vm147_vm1, %v1226_v15  }
 0x156   :  { %2279 = vst.msk [vmem:[%s4612_s1 + $0x406] ss:$16 sm:$0xc] %vm147_vm1, %v1226_v15   ;;  %v1665_v41 = vpop.permute.xlu1 %1664   ;;  %v1682_v42 = vpop.permute.xlu2 %1681  }
 0x157   :  { %2280 = vst.msk [vmem:[%s4612_s1 + $0x406] ss:$16 sm:$0x30] %vm147_vm1, %v1226_v15  }
 0x158   :  { %2281 = vst.msk [vmem:[%s4612_s1 + $0x406] ss:$16 sm:$0xc0] %vm147_vm1, %v1226_v15   ;;  %v1698_v43 = vpop.permute.xlu0 %1697   ;;  %v235_v15 = vld [vmem:[#allocation0 + $0x90] sm:$0x3]  }
 0x159   :  { %2282 = vst.msk [vmem:[%s4612_s1 + $0x7] ss:$16 sm:$0x3] %vm147_vm1, %v1242_v17  }
 0x15a   :  { %2283 = vst.msk [vmem:[%s4612_s1 + $0x7] ss:$16 sm:$0xc] %vm147_vm1, %v1242_v17  }
 0x15b   :  { %2284 = vst.msk [vmem:[%s4612_s1 + $0x7] ss:$16 sm:$0x30] %vm147_vm1, %v1242_v17  }
 0x15c   :  { %2285 = vst.msk [vmem:[%s4612_s1 + $0x7] ss:$16 sm:$0xc0] %vm147_vm1, %v1242_v17   ;;  %v240_v17 = vld [vmem:[#allocation0 + $0x98] sm:$0x3]  }
 0x15d   :  { %2286 = vst.msk [vmem:[%s4612_s1 + $0x87] ss:$16 sm:$0x3] %vm147_vm1, %v1259_v18  }
 0x15e   :  { %2287 = vst.msk [vmem:[%s4612_s1 + $0x87] ss:$16 sm:$0xc] %vm147_vm1, %v1259_v18   ;;  %v1715_v44 = vpop.permute.xlu1 %1714   ;;  %v1732_v45 = vpop.permute.xlu2 %1731  }
 0x15f   :  { %2288 = vst.msk [vmem:[%s4612_s1 + $0x87] ss:$16 sm:$0x30] %vm147_vm1, %v1259_v18  }
 0x160   :  { %2289 = vst.msk [vmem:[%s4612_s1 + $0x87] ss:$16 sm:$0xc0] %vm147_vm1, %v1259_v18   ;;  %v1749_v46 = vpop.permute.xlu0 %1748   ;;  %v245_v18 = vld [vmem:[#allocation0 + $0xa0] sm:$0x3]  }
 0x161   :  { %2290 = vst.msk [vmem:[%s4612_s1 + $0x107] ss:$16 sm:$0x3] %vm147_vm1, %v1276_v19  }
 0x162   :  { %2291 = vst.msk [vmem:[%s4612_s1 + $0x107] ss:$16 sm:$0xc] %vm147_vm1, %v1276_v19  }
 0x163   :  { %2292 = vst.msk [vmem:[%s4612_s1 + $0x107] ss:$16 sm:$0x30] %vm147_vm1, %v1276_v19  }
 0x164   :  { %2293 = vst.msk [vmem:[%s4612_s1 + $0x107] ss:$16 sm:$0xc0] %vm147_vm1, %v1276_v19   ;;  %v250_v19 = vld [vmem:[#allocation0 + $0xa8] sm:$0x3]  }
 0x165   :  { %2294 = vst.msk [vmem:[%s4612_s1 + $0x187] ss:$16 sm:$0x3] %vm147_vm1, %v1293_v20  }
 0x166   :  { %2295 = vst.msk [vmem:[%s4612_s1 + $0x187] ss:$16 sm:$0xc] %vm147_vm1, %v1293_v20   ;;  %v1766_v47 = vpop.permute.xlu1 %1765   ;;  %v1783_v48 = vpop.permute.xlu2 %1782  }
 0x167   :  { %2296 = vst.msk [vmem:[%s4612_s1 + $0x187] ss:$16 sm:$0x30] %vm147_vm1, %v1293_v20  }
 0x168   :  { %2297 = vst.msk [vmem:[%s4612_s1 + $0x187] ss:$16 sm:$0xc0] %vm147_vm1, %v1293_v20   ;;  %v1800_v49 = vpop.permute.xlu0 %1799   ;;  %v255_v20 = vld [vmem:[#allocation0 + $0xb0] sm:$0x3]  }
 0x169   :  { %2298 = vst.msk [vmem:[%s4612_s1 + $0x207] ss:$16 sm:$0x3] %vm147_vm1, %v1310_v21  }
 0x16a   :  { %2299 = vst.msk [vmem:[%s4612_s1 + $0x207] ss:$16 sm:$0xc] %vm147_vm1, %v1310_v21  }
 0x16b   :  { %2300 = vst.msk [vmem:[%s4612_s1 + $0x207] ss:$16 sm:$0x30] %vm147_vm1, %v1310_v21  }
 0x16c   :  { %2301 = vst.msk [vmem:[%s4612_s1 + $0x207] ss:$16 sm:$0xc0] %vm147_vm1, %v1310_v21   ;;  %v260_v21 = vld [vmem:[#allocation0 + $0xb8] sm:$0x3]  }
 0x16d   :  { %2302 = vst.msk [vmem:[%s4612_s1 + $0x287] ss:$16 sm:$0x3] %vm147_vm1, %v1327_v22  }
 0x16e   :  { %2303 = vst.msk [vmem:[%s4612_s1 + $0x287] ss:$16 sm:$0xc] %vm147_vm1, %v1327_v22   ;;  %v1817_v50 = vpop.permute.xlu1 %1816   ;;  %v1834_v51 = vpop.permute.xlu2 %1833  }
 0x16f   :  { %2304 = vst.msk [vmem:[%s4612_s1 + $0x287] ss:$16 sm:$0x30] %vm147_vm1, %v1327_v22  }
 0x170   :  { %2305 = vst.msk [vmem:[%s4612_s1 + $0x287] ss:$16 sm:$0xc0] %vm147_vm1, %v1327_v22   ;;  %v1850_v52 = vpop.permute.xlu0 %1849   ;;  %v265_v22 = vld [vmem:[#allocation0 + $0xc0] sm:$0x3]  }
 0x171   :  { %2306 = vst.msk [vmem:[%s4612_s1 + $0x307] ss:$16 sm:$0x3] %vm147_vm1, %v1344_v24  }
 0x172   :  { %2307 = vst.msk [vmem:[%s4612_s1 + $0x307] ss:$16 sm:$0xc] %vm147_vm1, %v1344_v24  }
 0x173   :  { %2308 = vst.msk [vmem:[%s4612_s1 + $0x307] ss:$16 sm:$0x30] %vm147_vm1, %v1344_v24  }
 0x174   :  { %2309 = vst.msk [vmem:[%s4612_s1 + $0x307] ss:$16 sm:$0xc0] %vm147_vm1, %v1344_v24   ;;  %v270_v24 = vld [vmem:[#allocation0 + $0xc8] sm:$0x3]  }
 0x175   :  { %2310 = vst.msk [vmem:[%s4612_s1 + $0x387] ss:$16 sm:$0x3] %vm147_vm1, %v1361_v25  }
 0x176   :  { %2311 = vst.msk [vmem:[%s4612_s1 + $0x387] ss:$16 sm:$0xc] %vm147_vm1, %v1361_v25   ;;  %v1867_v53 = vpop.permute.xlu1 %1866   ;;  %v1884_v54 = vpop.permute.xlu2 %1883  }
 0x177   :  { %2312 = vst.msk [vmem:[%s4612_s1 + $0x387] ss:$16 sm:$0x30] %vm147_vm1, %v1361_v25  }
 0x178   :  { %2313 = vst.msk [vmem:[%s4612_s1 + $0x387] ss:$16 sm:$0xc0] %vm147_vm1, %v1361_v25   ;;  %v1901_v55 = vpop.permute.xlu0 %1900   ;;  %v275_v25 = vld [vmem:[#allocation0 + $0xd0] sm:$0x3]  }
 0x179   :  { %2314 = vst.msk [vmem:[%s4612_s1 + $0x407] ss:$16 sm:$0x3] %vm147_vm1, %v1378_v26  }
 0x17a   :  { %2315 = vst.msk [vmem:[%s4612_s1 + $0x407] ss:$16 sm:$0xc] %vm147_vm1, %v1378_v26  }
 0x17b   :  { %2316 = vst.msk [vmem:[%s4612_s1 + $0x407] ss:$16 sm:$0x30] %vm147_vm1, %v1378_v26  }
 0x17c   :  { %2317 = vst.msk [vmem:[%s4612_s1 + $0x407] ss:$16 sm:$0xc0] %vm147_vm1, %v1378_v26   ;;  %v280_v26 = vld [vmem:[#allocation0 + $0xd8] sm:$0x3]  }
 0x17d   :  { %2318 = vst.msk [vmem:[%s4612_s1 + $0x8] ss:$16 sm:$0x3] %vm147_vm1, %v1394_v27  }
 0x17e   :  { %2319 = vst.msk [vmem:[%s4612_s1 + $0x8] ss:$16 sm:$0xc] %vm147_vm1, %v1394_v27   ;;  %v1918_v56 = vpop.permute.xlu1 %1917   ;;  %v1935_v57 = vpop.permute.xlu2 %1934  }
 0x17f   :  { %2320 = vst.msk [vmem:[%s4612_s1 + $0x8] ss:$16 sm:$0x30] %vm147_vm1, %v1394_v27  }
 0x180   :  { %2321 = vst.msk [vmem:[%s4612_s1 + $0x8] ss:$16 sm:$0xc0] %vm147_vm1, %v1394_v27   ;;  %v1952_v58 = vpop.permute.xlu0 %1951   ;;  %v285_v27 = vld [vmem:[#allocation0 + $0xe0] sm:$0x3]  }
 0x181   :  { %2322 = vst.msk [vmem:[%s4612_s1 + $0x88] ss:$16 sm:$0x3] %vm147_vm1, %v1411_v28  }
 0x182   :  { %2323 = vst.msk [vmem:[%s4612_s1 + $0x88] ss:$16 sm:$0xc] %vm147_vm1, %v1411_v28  }
 0x183   :  { %2324 = vst.msk [vmem:[%s4612_s1 + $0x88] ss:$16 sm:$0x30] %vm147_vm1, %v1411_v28  }
 0x184   :  { %2325 = vst.msk [vmem:[%s4612_s1 + $0x88] ss:$16 sm:$0xc0] %vm147_vm1, %v1411_v28   ;;  %v290_v28 = vld [vmem:[#allocation0 + $0xe8] sm:$0x3]  }
 0x185   :  { %2326 = vst.msk [vmem:[%s4612_s1 + $0x108] ss:$16 sm:$0x3] %vm147_vm1, %v1428_v16  }
 0x186   :  { %2327 = vst.msk [vmem:[%s4612_s1 + $0x108] ss:$16 sm:$0xc] %vm147_vm1, %v1428_v16   ;;  %v1969_v59 = vpop.permute.xlu1 %1968   ;;  %v1986_v60 = vpop.permute.xlu2 %1985  }
 0x187   :  { %2328 = vst.msk [vmem:[%s4612_s1 + $0x108] ss:$16 sm:$0x30] %vm147_vm1, %v1428_v16  }
 0x188   :  { %2329 = vst.msk [vmem:[%s4612_s1 + $0x108] ss:$16 sm:$0xc0] %vm147_vm1, %v1428_v16   ;;  %v295_v16 = vld [vmem:[#allocation0 + $0xf0] sm:$0x3]  }
 0x189   :  { %2330 = vst.msk [vmem:[%s4612_s1 + $0x188] ss:$16 sm:$0x3] %vm147_vm1, %v1445_v23  }
 0x18a   :  { %2331 = vst.msk [vmem:[%s4612_s1 + $0x188] ss:$16 sm:$0xc] %vm147_vm1, %v1445_v23  }
 0x18b   :  { %2332 = vst.msk [vmem:[%s4612_s1 + $0x188] ss:$16 sm:$0x30] %vm147_vm1, %v1445_v23  }
 0x18c   :  { %2333 = vst.msk [vmem:[%s4612_s1 + $0x188] ss:$16 sm:$0xc0] %vm147_vm1, %v1445_v23   ;;  %v300_v23 = vld [vmem:[#allocation0 + $0xf8] sm:$0x3]  }
 0x18d   :  { %2334 = vst.msk [vmem:[%s4612_s1 + $0x208] ss:$16 sm:$0x3] %vm147_vm1, %v1462_v29  }
 0x18e   :  { %2335 = vst.msk [vmem:[%s4612_s1 + $0x208] ss:$16 sm:$0xc] %vm147_vm1, %v1462_v29  }
 0x18f   :  { %2336 = vst.msk [vmem:[%s4612_s1 + $0x208] ss:$16 sm:$0x30] %vm147_vm1, %v1462_v29  }
 0x190   :  { %2337 = vst.msk [vmem:[%s4612_s1 + $0x208] ss:$16 sm:$0xc0] %vm147_vm1, %v1462_v29   ;;  %v305_v29 = vld [vmem:[#allocation0 + $0x100] sm:$0x3]  }
 0x191   :  { %2338 = vst.msk [vmem:[%s4612_s1 + $0x288] ss:$16 sm:$0x3] %vm147_vm1, %v1479_v30  }
 0x192   :  { %2339 = vst.msk [vmem:[%s4612_s1 + $0x288] ss:$16 sm:$0xc] %vm147_vm1, %v1479_v30  }
 0x193   :  { %2340 = vst.msk [vmem:[%s4612_s1 + $0x288] ss:$16 sm:$0x30] %vm147_vm1, %v1479_v30  }
 0x194   :  { %2341 = vst.msk [vmem:[%s4612_s1 + $0x288] ss:$16 sm:$0xc0] %vm147_vm1, %v1479_v30   ;;  %v310_v30 = vld [vmem:[#allocation0 + $0x108] sm:$0x3]  }
 0x195   :  { %2342 = vst.msk [vmem:[%s4612_s1 + $0x308] ss:$16 sm:$0x3] %vm147_vm1, %v1496_v31  }
 0x196   :  { %2343 = vst.msk [vmem:[%s4612_s1 + $0x308] ss:$16 sm:$0xc] %vm147_vm1, %v1496_v31  }
 0x197   :  { %2344 = vst.msk [vmem:[%s4612_s1 + $0x308] ss:$16 sm:$0x30] %vm147_vm1, %v1496_v31  }
 0x198   :  { %2345 = vst.msk [vmem:[%s4612_s1 + $0x308] ss:$16 sm:$0xc0] %vm147_vm1, %v1496_v31   ;;  %v315_v31 = vld [vmem:[#allocation0 + $0x110] sm:$0x3]  }
 0x199   :  { %2346 = vst.msk [vmem:[%s4612_s1 + $0x388] ss:$16 sm:$0x3] %vm147_vm1, %v1513_v32  }
 0x19a   :  { %2347 = vst.msk [vmem:[%s4612_s1 + $0x388] ss:$16 sm:$0xc] %vm147_vm1, %v1513_v32  }
 0x19b   :  { %2348 = vst.msk [vmem:[%s4612_s1 + $0x388] ss:$16 sm:$0x30] %vm147_vm1, %v1513_v32  }
 0x19c   :  { %2349 = vst.msk [vmem:[%s4612_s1 + $0x388] ss:$16 sm:$0xc0] %vm147_vm1, %v1513_v32   ;;  %v320_v32 = vld [vmem:[#allocation0 + $0x118] sm:$0x3]  }
 0x19d   :  { %2350 = vst.msk [vmem:[%s4612_s1 + $0x408] ss:$16 sm:$0x3] %vm147_vm1, %v1530_v33  }
 0x19e   :  { %2351 = vst.msk [vmem:[%s4612_s1 + $0x408] ss:$16 sm:$0xc] %vm147_vm1, %v1530_v33  }
 0x19f   :  { %2352 = vst.msk [vmem:[%s4612_s1 + $0x408] ss:$16 sm:$0x30] %vm147_vm1, %v1530_v33  }
 0x1a0   :  { %2353 = vst.msk [vmem:[%s4612_s1 + $0x408] ss:$16 sm:$0xc0] %vm147_vm1, %v1530_v33  }
 0x1a1   :  { %2354 = vst.msk [vmem:[%s4612_s1 + $0x9] ss:$16 sm:$0x3] %vm147_vm1, %v1546_v34  }
 0x1a2   :  { %2355 = vst.msk [vmem:[%s4612_s1 + $0x9] ss:$16 sm:$0xc] %vm147_vm1, %v1546_v34  }
 0x1a3   :  { %2356 = vst.msk [vmem:[%s4612_s1 + $0x9] ss:$16 sm:$0x30] %vm147_vm1, %v1546_v34  }
 0x1a4   :  { %2357 = vst.msk [vmem:[%s4612_s1 + $0x9] ss:$16 sm:$0xc0] %vm147_vm1, %v1546_v34  }
 0x1a5   :  { %2358 = vst.msk [vmem:[%s4612_s1 + $0x89] ss:$16 sm:$0x3] %vm147_vm1, %v1563_v35  }
 0x1a6   :  { %2359 = vst.msk [vmem:[%s4612_s1 + $0x89] ss:$16 sm:$0xc] %vm147_vm1, %v1563_v35  }
 0x1a7   :  { %2360 = vst.msk [vmem:[%s4612_s1 + $0x89] ss:$16 sm:$0x30] %vm147_vm1, %v1563_v35  }
 0x1a8   :  { %2361 = vst.msk [vmem:[%s4612_s1 + $0x89] ss:$16 sm:$0xc0] %vm147_vm1, %v1563_v35  }
 0x1a9   :  { %2362 = vst.msk [vmem:[%s4612_s1 + $0x109] ss:$16 sm:$0x3] %vm147_vm1, %v1580_v36  }
 0x1aa   :  { %2363 = vst.msk [vmem:[%s4612_s1 + $0x109] ss:$16 sm:$0xc] %vm147_vm1, %v1580_v36  }
 0x1ab   :  { %2364 = vst.msk [vmem:[%s4612_s1 + $0x109] ss:$16 sm:$0x30] %vm147_vm1, %v1580_v36  }
 0x1ac   :  { %2365 = vst.msk [vmem:[%s4612_s1 + $0x109] ss:$16 sm:$0xc0] %vm147_vm1, %v1580_v36  }
 0x1ad   :  { %2366 = vst.msk [vmem:[%s4612_s1 + $0x189] ss:$16 sm:$0x3] %vm147_vm1, %v1597_v37  }
 0x1ae   :  { %2367 = vst.msk [vmem:[%s4612_s1 + $0x189] ss:$16 sm:$0xc] %vm147_vm1, %v1597_v37  }
 0x1af   :  { %2368 = vst.msk [vmem:[%s4612_s1 + $0x189] ss:$16 sm:$0x30] %vm147_vm1, %v1597_v37  }
 0x1b0   :  { %2369 = vst.msk [vmem:[%s4612_s1 + $0x189] ss:$16 sm:$0xc0] %vm147_vm1, %v1597_v37  }
 0x1b1   :  { %2370 = vst.msk [vmem:[%s4612_s1 + $0x209] ss:$16 sm:$0x3] %vm147_vm1, %v1614_v38  }
 0x1b2   :  { %2371 = vst.msk [vmem:[%s4612_s1 + $0x209] ss:$16 sm:$0xc] %vm147_vm1, %v1614_v38  }
 0x1b3   :  { %2372 = vst.msk [vmem:[%s4612_s1 + $0x209] ss:$16 sm:$0x30] %vm147_vm1, %v1614_v38  }
 0x1b4   :  { %2373 = vst.msk [vmem:[%s4612_s1 + $0x209] ss:$16 sm:$0xc0] %vm147_vm1, %v1614_v38  }
 0x1b5   :  { %2374 = vst.msk [vmem:[%s4612_s1 + $0x289] ss:$16 sm:$0x3] %vm147_vm1, %v1631_v39  }
 0x1b6   :  { %2375 = vst.msk [vmem:[%s4612_s1 + $0x289] ss:$16 sm:$0xc] %vm147_vm1, %v1631_v39  }
 0x1b7   :  { %2376 = vst.msk [vmem:[%s4612_s1 + $0x289] ss:$16 sm:$0x30] %vm147_vm1, %v1631_v39  }
 0x1b8   :  { %2377 = vst.msk [vmem:[%s4612_s1 + $0x289] ss:$16 sm:$0xc0] %vm147_vm1, %v1631_v39  }
 0x1b9   :  { %2378 = vst.msk [vmem:[%s4612_s1 + $0x309] ss:$16 sm:$0x3] %vm147_vm1, %v1648_v40  }
 0x1ba   :  { %2379 = vst.msk [vmem:[%s4612_s1 + $0x309] ss:$16 sm:$0xc] %vm147_vm1, %v1648_v40  }
 0x1bb   :  { %2380 = vst.msk [vmem:[%s4612_s1 + $0x309] ss:$16 sm:$0x30] %vm147_vm1, %v1648_v40  }
 0x1bc   :  { %2381 = vst.msk [vmem:[%s4612_s1 + $0x309] ss:$16 sm:$0xc0] %vm147_vm1, %v1648_v40  }
 0x1bd   :  { %2382 = vst.msk [vmem:[%s4612_s1 + $0x389] ss:$16 sm:$0x3] %vm147_vm1, %v1665_v41  }
 0x1be   :  { %2383 = vst.msk [vmem:[%s4612_s1 + $0x389] ss:$16 sm:$0xc] %vm147_vm1, %v1665_v41  }
 0x1bf   :  { %2384 = vst.msk [vmem:[%s4612_s1 + $0x389] ss:$16 sm:$0x30] %vm147_vm1, %v1665_v41  }
 0x1c0   :  { %2385 = vst.msk [vmem:[%s4612_s1 + $0x389] ss:$16 sm:$0xc0] %vm147_vm1, %v1665_v41  }
 0x1c1   :  { %2386 = vst.msk [vmem:[%s4612_s1 + $0x409] ss:$16 sm:$0x3] %vm147_vm1, %v1682_v42  }
 0x1c2   :  { %2387 = vst.msk [vmem:[%s4612_s1 + $0x409] ss:$16 sm:$0xc] %vm147_vm1, %v1682_v42  }
 0x1c3   :  { %2388 = vst.msk [vmem:[%s4612_s1 + $0x409] ss:$16 sm:$0x30] %vm147_vm1, %v1682_v42  }
 0x1c4   :  { %2389 = vst.msk [vmem:[%s4612_s1 + $0x409] ss:$16 sm:$0xc0] %vm147_vm1, %v1682_v42  }
 0x1c5   :  { %2390 = vst.msk [vmem:[%s4612_s1 + $0xa] ss:$16 sm:$0x3] %vm147_vm1, %v1698_v43  }
 0x1c6   :  { %2391 = vst.msk [vmem:[%s4612_s1 + $0xa] ss:$16 sm:$0xc] %vm147_vm1, %v1698_v43  }
 0x1c7   :  { %2392 = vst.msk [vmem:[%s4612_s1 + $0xa] ss:$16 sm:$0x30] %vm147_vm1, %v1698_v43  }
 0x1c8   :  { %2393 = vst.msk [vmem:[%s4612_s1 + $0xa] ss:$16 sm:$0xc0] %vm147_vm1, %v1698_v43  }
 0x1c9   :  { %2394 = vst.msk [vmem:[%s4612_s1 + $0x8a] ss:$16 sm:$0x3] %vm147_vm1, %v1715_v44  }
 0x1ca   :  { %2395 = vst.msk [vmem:[%s4612_s1 + $0x8a] ss:$16 sm:$0xc] %vm147_vm1, %v1715_v44  }
 0x1cb   :  { %2396 = vst.msk [vmem:[%s4612_s1 + $0x8a] ss:$16 sm:$0x30] %vm147_vm1, %v1715_v44  }
 0x1cc   :  { %2397 = vst.msk [vmem:[%s4612_s1 + $0x8a] ss:$16 sm:$0xc0] %vm147_vm1, %v1715_v44  }
 0x1cd   :  { %2398 = vst.msk [vmem:[%s4612_s1 + $0x10a] ss:$16 sm:$0x3] %vm147_vm1, %v1732_v45  }
 0x1ce   :  { %2399 = vst.msk [vmem:[%s4612_s1 + $0x10a] ss:$16 sm:$0xc] %vm147_vm1, %v1732_v45  }
 0x1cf   :  { %2400 = vst.msk [vmem:[%s4612_s1 + $0x10a] ss:$16 sm:$0x30] %vm147_vm1, %v1732_v45  }
 0x1d0   :  { %2401 = vst.msk [vmem:[%s4612_s1 + $0x10a] ss:$16 sm:$0xc0] %vm147_vm1, %v1732_v45  }
 0x1d1   :  { %2402 = vst.msk [vmem:[%s4612_s1 + $0x18a] ss:$16 sm:$0x3] %vm147_vm1, %v1749_v46  }
 0x1d2   :  { %2403 = vst.msk [vmem:[%s4612_s1 + $0x18a] ss:$16 sm:$0xc] %vm147_vm1, %v1749_v46  }
 0x1d3   :  { %2404 = vst.msk [vmem:[%s4612_s1 + $0x18a] ss:$16 sm:$0x30] %vm147_vm1, %v1749_v46  }
 0x1d4   :  { %2405 = vst.msk [vmem:[%s4612_s1 + $0x18a] ss:$16 sm:$0xc0] %vm147_vm1, %v1749_v46  }
 0x1d5   :  { %2406 = vst.msk [vmem:[%s4612_s1 + $0x20a] ss:$16 sm:$0x3] %vm147_vm1, %v1766_v47  }
 0x1d6   :  { %2407 = vst.msk [vmem:[%s4612_s1 + $0x20a] ss:$16 sm:$0xc] %vm147_vm1, %v1766_v47  }
 0x1d7   :  { %2408 = vst.msk [vmem:[%s4612_s1 + $0x20a] ss:$16 sm:$0x30] %vm147_vm1, %v1766_v47  }
 0x1d8   :  { %2409 = vst.msk [vmem:[%s4612_s1 + $0x20a] ss:$16 sm:$0xc0] %vm147_vm1, %v1766_v47  }
 0x1d9   :  { %2410 = vst.msk [vmem:[%s4612_s1 + $0x28a] ss:$16 sm:$0x3] %vm147_vm1, %v1783_v48  }
 0x1da   :  { %2411 = vst.msk [vmem:[%s4612_s1 + $0x28a] ss:$16 sm:$0xc] %vm147_vm1, %v1783_v48  }
 0x1db   :  { %2412 = vst.msk [vmem:[%s4612_s1 + $0x28a] ss:$16 sm:$0x30] %vm147_vm1, %v1783_v48  }
 0x1dc   :  { %2413 = vst.msk [vmem:[%s4612_s1 + $0x28a] ss:$16 sm:$0xc0] %vm147_vm1, %v1783_v48  }
 0x1dd   :  { %2414 = vst.msk [vmem:[%s4612_s1 + $0x30a] ss:$16 sm:$0x3] %vm147_vm1, %v1800_v49  }
 0x1de   :  { %2415 = vst.msk [vmem:[%s4612_s1 + $0x30a] ss:$16 sm:$0xc] %vm147_vm1, %v1800_v49  }
 0x1df   :  { %2416 = vst.msk [vmem:[%s4612_s1 + $0x30a] ss:$16 sm:$0x30] %vm147_vm1, %v1800_v49  }
 0x1e0   :  { %2417 = vst.msk [vmem:[%s4612_s1 + $0x30a] ss:$16 sm:$0xc0] %vm147_vm1, %v1800_v49  }
 0x1e1   :  { %2418 = vst.msk [vmem:[%s4612_s1 + $0x38a] ss:$16 sm:$0x3] %vm147_vm1, %v1817_v50  }
 0x1e2   :  { %2419 = vst.msk [vmem:[%s4612_s1 + $0x38a] ss:$16 sm:$0xc] %vm147_vm1, %v1817_v50  }
 0x1e3   :  { %2420 = vst.msk [vmem:[%s4612_s1 + $0x38a] ss:$16 sm:$0x30] %vm147_vm1, %v1817_v50  }
 0x1e4   :  { %2421 = vst.msk [vmem:[%s4612_s1 + $0x38a] ss:$16 sm:$0xc0] %vm147_vm1, %v1817_v50  }
 0x1e5   :  { %2422 = vst.msk [vmem:[%s4612_s1 + $0x40a] ss:$16 sm:$0x3] %vm147_vm1, %v1834_v51  }
 0x1e6   :  { %2423 = vst.msk [vmem:[%s4612_s1 + $0x40a] ss:$16 sm:$0xc] %vm147_vm1, %v1834_v51  }
 0x1e7   :  { %2424 = vst.msk [vmem:[%s4612_s1 + $0x40a] ss:$16 sm:$0x30] %vm147_vm1, %v1834_v51  }
 0x1e8   :  { %2425 = vst.msk [vmem:[%s4612_s1 + $0x40a] ss:$16 sm:$0xc0] %vm147_vm1, %v1834_v51  }
 0x1e9   :  { %2426 = vst.msk [vmem:[%s4612_s1 + $0xb] ss:$16 sm:$0x3] %vm147_vm1, %v1850_v52  }
 0x1ea   :  { %2427 = vst.msk [vmem:[%s4612_s1 + $0xb] ss:$16 sm:$0xc] %vm147_vm1, %v1850_v52  }
 0x1eb   :  { %2428 = vst.msk [vmem:[%s4612_s1 + $0xb] ss:$16 sm:$0x30] %vm147_vm1, %v1850_v52  }
 0x1ec   :  { %2429 = vst.msk [vmem:[%s4612_s1 + $0xb] ss:$16 sm:$0xc0] %vm147_vm1, %v1850_v52  }
 0x1ed   :  { %2430 = vst.msk [vmem:[%s4612_s1 + $0x8b] ss:$16 sm:$0x3] %vm147_vm1, %v1867_v53  }
 0x1ee   :  { %2431 = vst.msk [vmem:[%s4612_s1 + $0x8b] ss:$16 sm:$0xc] %vm147_vm1, %v1867_v53  }
 0x1ef   :  { %2432 = vst.msk [vmem:[%s4612_s1 + $0x8b] ss:$16 sm:$0x30] %vm147_vm1, %v1867_v53  }
 0x1f0   :  { %2433 = vst.msk [vmem:[%s4612_s1 + $0x8b] ss:$16 sm:$0xc0] %vm147_vm1, %v1867_v53  }
 0x1f1   :  { %2434 = vst.msk [vmem:[%s4612_s1 + $0x10b] ss:$16 sm:$0x3] %vm147_vm1, %v1884_v54  }
 0x1f2   :  { %2435 = vst.msk [vmem:[%s4612_s1 + $0x10b] ss:$16 sm:$0xc] %vm147_vm1, %v1884_v54  }
 0x1f3   :  { %2436 = vst.msk [vmem:[%s4612_s1 + $0x10b] ss:$16 sm:$0x30] %vm147_vm1, %v1884_v54  }
 0x1f4   :  { %2437 = vst.msk [vmem:[%s4612_s1 + $0x10b] ss:$16 sm:$0xc0] %vm147_vm1, %v1884_v54  }
 0x1f5   :  { %2438 = vst.msk [vmem:[%s4612_s1 + $0x18b] ss:$16 sm:$0x3] %vm147_vm1, %v1901_v55  }
 0x1f6   :  { %2439 = vst.msk [vmem:[%s4612_s1 + $0x18b] ss:$16 sm:$0xc] %vm147_vm1, %v1901_v55  }
 0x1f7   :  { %2440 = vst.msk [vmem:[%s4612_s1 + $0x18b] ss:$16 sm:$0x30] %vm147_vm1, %v1901_v55  }
 0x1f8   :  { %2441 = vst.msk [vmem:[%s4612_s1 + $0x18b] ss:$16 sm:$0xc0] %vm147_vm1, %v1901_v55  }
 0x1f9   :  { %2442 = vst.msk [vmem:[%s4612_s1 + $0x20b] ss:$16 sm:$0x3] %vm147_vm1, %v1918_v56  }
 0x1fa   :  { %2443 = vst.msk [vmem:[%s4612_s1 + $0x20b] ss:$16 sm:$0xc] %vm147_vm1, %v1918_v56  }
 0x1fb   :  { %2444 = vst.msk [vmem:[%s4612_s1 + $0x20b] ss:$16 sm:$0x30] %vm147_vm1, %v1918_v56  }
 0x1fc   :  { %2445 = vst.msk [vmem:[%s4612_s1 + $0x20b] ss:$16 sm:$0xc0] %vm147_vm1, %v1918_v56  }
 0x1fd   :  { %2446 = vst.msk [vmem:[%s4612_s1 + $0x28b] ss:$16 sm:$0x3] %vm147_vm1, %v1935_v57  }
 0x1fe   :  { %2447 = vst.msk [vmem:[%s4612_s1 + $0x28b] ss:$16 sm:$0xc] %vm147_vm1, %v1935_v57  }
 0x1ff   :  { %2448 = vst.msk [vmem:[%s4612_s1 + $0x28b] ss:$16 sm:$0x30] %vm147_vm1, %v1935_v57  }
 0x200   :  { %2449 = vst.msk [vmem:[%s4612_s1 + $0x28b] ss:$16 sm:$0xc0] %vm147_vm1, %v1935_v57  }
 0x201   :  { %2450 = vst.msk [vmem:[%s4612_s1 + $0x30b] ss:$16 sm:$0x3] %vm147_vm1, %v1952_v58  }
 0x202   :  { %2451 = vst.msk [vmem:[%s4612_s1 + $0x30b] ss:$16 sm:$0xc] %vm147_vm1, %v1952_v58  }
 0x203   :  { %2452 = vst.msk [vmem:[%s4612_s1 + $0x30b] ss:$16 sm:$0x30] %vm147_vm1, %v1952_v58  }
 0x204   :  { %2453 = vst.msk [vmem:[%s4612_s1 + $0x30b] ss:$16 sm:$0xc0] %vm147_vm1, %v1952_v58  }
 0x205   :  { %2454 = vst.msk [vmem:[%s4612_s1 + $0x38b] ss:$16 sm:$0x3] %vm147_vm1, %v1969_v59  }
 0x206   :  { %2455 = vst.msk [vmem:[%s4612_s1 + $0x38b] ss:$16 sm:$0xc] %vm147_vm1, %v1969_v59  }
 0x207   :  { %2456 = vst.msk [vmem:[%s4612_s1 + $0x38b] ss:$16 sm:$0x30] %vm147_vm1, %v1969_v59  }
 0x208   :  { %2457 = vst.msk [vmem:[%s4612_s1 + $0x38b] ss:$16 sm:$0xc0] %vm147_vm1, %v1969_v59  }
 0x209   :  { %2458 = vst.msk [vmem:[%s4612_s1 + $0x40b] ss:$16 sm:$0x3] %vm147_vm1, %v1986_v60  }
 0x20a   :  { %2459 = vst.msk [vmem:[%s4612_s1 + $0x40b] ss:$16 sm:$0xc] %vm147_vm1, %v1986_v60  }
 0x20b   :  { %2460 = vst.msk [vmem:[%s4612_s1 + $0x40b] ss:$16 sm:$0x30] %vm147_vm1, %v1986_v60  }
 0x20c   :  { %2461 = vst.msk [vmem:[%s4612_s1 + $0x40b] ss:$16 sm:$0xc0] %vm147_vm1, %v1986_v60  }
 0x20d   :  { %148 = vst.msk [vmem:[%s4612_s1] ss:$16 sm:$0x3] %vm147_vm1, %v146_v61  }
 0x20e   :  { %2031 = vst.msk [vmem:[%s4612_s1 + $0x20] ss:$16 sm:$0x3] %vm147_vm1, %v150_v62  }
 0x20f   :  { %2032 = vst.msk [vmem:[%s4612_s1 + $0x40] ss:$16 sm:$0x3] %vm147_vm1, %v155_v63  }
 0x210   :  { %2033 = vst.msk [vmem:[%s4612_s1 + $0x60] ss:$16 sm:$0x3] %vm147_vm1, %v160_v0  }
 0x211   :  { %2034 = vst.msk [vmem:[%s4612_s1 + $0x80] ss:$16 sm:$0x3] %vm147_vm1, %v165_v1  }
 0x212   :  { %2035 = vst.msk [vmem:[%s4612_s1 + $0xa0] ss:$16 sm:$0x3] %vm147_vm1, %v170_v2  }
 0x213   :  { %2036 = vst.msk [vmem:[%s4612_s1 + $0xc0] ss:$16 sm:$0x3] %vm147_vm1, %v175_v3  }
 0x214   :  { %2037 = vst.msk [vmem:[%s4612_s1 + $0xe0] ss:$16 sm:$0x3] %vm147_vm1, %v180_v4  }
 0x215   :  { %2038 = vst.msk [vmem:[%s4612_s1 + $0x100] ss:$16 sm:$0x3] %vm147_vm1, %v185_v5  }
 0x216   :  { %2039 = vst.msk [vmem:[%s4612_s1 + $0x120] ss:$16 sm:$0x3] %vm147_vm1, %v190_v6  }
 0x217   :  { %2040 = vst.msk [vmem:[%s4612_s1 + $0x140] ss:$16 sm:$0x3] %vm147_vm1, %v195_v7  }
 0x218   :  { %2041 = vst.msk [vmem:[%s4612_s1 + $0x160] ss:$16 sm:$0x3] %vm147_vm1, %v200_v8  }
 0x219   :  { %2042 = vst.msk [vmem:[%s4612_s1 + $0x180] ss:$16 sm:$0x3] %vm147_vm1, %v205_v9  }
 0x21a   :  { %2043 = vst.msk [vmem:[%s4612_s1 + $0x1a0] ss:$16 sm:$0x3] %vm147_vm1, %v210_v10  }
 0x21b   :  { %2044 = vst.msk [vmem:[%s4612_s1 + $0x1c0] ss:$16 sm:$0x3] %vm147_vm1, %v215_v11  }
 0x21c   :  { %2045 = vst.msk [vmem:[%s4612_s1 + $0x1e0] ss:$16 sm:$0x3] %vm147_vm1, %v220_v12  }
 0x21d   :  { %2046 = vst.msk [vmem:[%s4612_s1 + $0x200] ss:$16 sm:$0x3] %vm147_vm1, %v225_v13  }
 0x21e   :  { %2047 = vst.msk [vmem:[%s4612_s1 + $0x220] ss:$16 sm:$0x3] %vm147_vm1, %v230_v14  }
 0x21f   :  { %2048 = vst.msk [vmem:[%s4612_s1 + $0x240] ss:$16 sm:$0x3] %vm147_vm1, %v235_v15  }
 0x220   :  { %2049 = vst.msk [vmem:[%s4612_s1 + $0x260] ss:$16 sm:$0x3] %vm147_vm1, %v240_v17  }
 0x221   :  { %2050 = vst.msk [vmem:[%s4612_s1 + $0x280] ss:$16 sm:$0x3] %vm147_vm1, %v245_v18  }
 0x222   :  { %2051 = vst.msk [vmem:[%s4612_s1 + $0x2a0] ss:$16 sm:$0x3] %vm147_vm1, %v250_v19  }
 0x223   :  { %2052 = vst.msk [vmem:[%s4612_s1 + $0x2c0] ss:$16 sm:$0x3] %vm147_vm1, %v255_v20  }
 0x224   :  { %2053 = vst.msk [vmem:[%s4612_s1 + $0x2e0] ss:$16 sm:$0x3] %vm147_vm1, %v260_v21  }
 0x225   :  { %2054 = vst.msk [vmem:[%s4612_s1 + $0x300] ss:$16 sm:$0x3] %vm147_vm1, %v265_v22  }
 0x226   :  { %2055 = vst.msk [vmem:[%s4612_s1 + $0x320] ss:$16 sm:$0x3] %vm147_vm1, %v270_v24  }
 0x227   :  { %2056 = vst.msk [vmem:[%s4612_s1 + $0x340] ss:$16 sm:$0x3] %vm147_vm1, %v275_v25  }
 0x228   :  { %2057 = vst.msk [vmem:[%s4612_s1 + $0x360] ss:$16 sm:$0x3] %vm147_vm1, %v280_v26  }
 0x229   :  { %2058 = vst.msk [vmem:[%s4612_s1 + $0x380] ss:$16 sm:$0x3] %vm147_vm1, %v285_v27  }
 0x22a   :  { %2059 = vst.msk [vmem:[%s4612_s1 + $0x3a0] ss:$16 sm:$0x3] %vm147_vm1, %v290_v28  }
 0x22b   :  { %2060 = vst.msk [vmem:[%s4612_s1 + $0x3c0] ss:$16 sm:$0x3] %vm147_vm1, %v295_v16  }
 0x22c   :  { %2061 = vst.msk [vmem:[%s4612_s1 + $0x3e0] ss:$16 sm:$0x3] %vm147_vm1, %v300_v23  }
 0x22d   :  { %2062 = vst.msk [vmem:[%s4612_s1 + $0x400] ss:$16 sm:$0x3] %vm147_vm1, %v305_v29  }
 0x22e   :  { %2063 = vst.msk [vmem:[%s4612_s1 + $0x420] ss:$16 sm:$0x3] %vm147_vm1, %v310_v30  }
 0x22f   :  { %2064 = vst.msk [vmem:[%s4612_s1 + $0x440] ss:$16 sm:$0x3] %vm147_vm1, %v315_v31  }
 0x230   :  { %2065 = vst.msk [vmem:[%s4612_s1 + $0x460] ss:$16 sm:$0x3] %vm147_vm1, %v320_v32  }

// kernel: squeeze.7
= control target key start
LH: loop header
LB: loop body
LE: loop exit
PB: predicated region body
PF: predicated region fallthrough
CT: control target
= control target key end

     0   :  { %s4506_s12 = smov 125   ;;  %s4507_s25 = smov 122   ;;  %vm3_vm0 = vcmask 23552   ;;  %s6771_s0 = inlined_call_operand.vmem [shape: f32[2,36,36], index: 0, kind: input, shape index: {}]   ;;  %s6772_s1 = inlined_call_operand.vmem [shape: f32[2,2,3,2,3,2,3,2,3], index: 1, kind: output, shape index: {}]  }
   0x1   :  { %v3979_v0 = vld.sshfl [vmem:[%s6771_s0 + $0x20] sm:$0xff pattern:$0xba983210]   ;;  %v3977_v1 = vld [vmem:[%s6771_s0 + $0x10] sm:$0xff]   ;;  %v4542_v4 = vld [vmem:[%s6771_s0 + $0x18] sm:$0xff]   ;;  %s4508_s26 = smov 119  }
   0x2   :  { %v99_v2 = vld [vmem:[%s6771_s0] sm:$0xff]   ;;  %152 = vrot.lane.b32.xlu2 %v3979_v0, %s4506_s12  ;;  %126 = vrot.lane.b32.xlu1 %v3977_v1, %s4506_s12  ;;  %v3980_v3 = vld [vmem:[%s6771_s0 + $0x2c] sm:$0xff]   ;;  %23 = vst.msk [vmem:[#allocation0 + $0x300] ss:$48 sm:$0x3] %vm3_vm0, %v3977_v1   ;;  %s4509_s8 = smov 116  }
   0x3   :  { %100 = vrot.lane.b32.xlu0 %v99_v2, %s4506_s12  ;;  %v4547_v5 = vld [vmem:[%s6771_s0 + $0x8] sm:$0xff]   ;;  %v3982_v7 = vld [vmem:[%s6771_s0 + $0x3c] sm:$0xff]   ;;  %v3981_v8 = vld [vmem:[%s6771_s0 + $0x34] sm:$0xff]   ;;  %25 = vst.msk [vmem:[#allocation0 + $0x300] ss:$48 sm:$0xc] %vm3_vm0, %v3977_v1  }
   0x4   :  { %v3983_v6 = vld [vmem:[%s6771_s0 + $0x44] sm:$0xff]   ;;  %v3970_v9 = vld [vmem:[%s6771_s0 + $0x20] sm:$0xf]   ;;  %27 = vst.msk [vmem:[#allocation0 + $0x300] ss:$48 sm:$0x30] %vm3_vm0, %v3977_v1  }
   0x5   :  { %v3971_v10 = vld [vmem:[%s6771_s0 + $0x28] sm:$0xff]   ;;  %45 = vst.msk [vmem:[#allocation0 + $0x600] ss:$48 sm:$0x3] %vm3_vm0, %v3970_v9   ;;  %v3972_v14 = vld [vmem:[%s6771_s0 + $0x30] sm:$0xff]   ;;  %v4666_v22 = vld [vmem:[%s6771_s0 + $0x40] sm:$0xff]  }
   0x6   :  { %47 = vst.msk [vmem:[#allocation0 + $0x600] ss:$48 sm:$0xc] %vm3_vm0, %v3970_v9   ;;  %v4582_v11 = vld.sshfl [vmem:[%s6771_s0 + $0x10] sm:$0xff pattern:$0x67452301]  }
   0x7   :  { %52 = vst.msk [vmem:[#allocation0 + $0x6c0] ss:$48 sm:$0x3] %vm3_vm0, %v3971_v10   ;;  %v4588_v12 = vld.sshfl [vmem:[%s6771_s0 + $0x8] sm:$0xff pattern:$0x67452301]  }
   0x8   :  { %54 = vst.msk [vmem:[#allocation0 + $0x6c0] ss:$48 sm:$0xc] %vm3_vm0, %v3971_v10   ;;  %v4594_v13 = vld.sshfl [vmem:[%s6771_s0] sm:$0xff pattern:$0x67452301]  }
   0x9   :  { %56 = vst.msk [vmem:[#allocation0 + $0x6c0] ss:$48 sm:$0x30] %vm3_vm0, %v3971_v10   ;;  %v4613_v15 = vld.sshfl [vmem:[%s6771_s0 + $0x2c] sm:$0xff pattern:$0x67452301]  }
   0xa   :  { %165 = vrot.lane.b32.xlu2 %v3980_v3, %s4506_s12  ;;  %139 = vrot.lane.b32.xlu1 %v4542_v4, %s4506_s12  ;;  %58 = vst.msk [vmem:[#allocation0 + $0x6c0] ss:$48 sm:$0xc0] %vm3_vm0, %v3971_v10   ;;  %v4619_v16 = vld.sshfl [vmem:[%s6771_s0 + $0x20] sm:$0xff pattern:$0xab892301]  }
   0xb   :  { %113 = vrot.lane.b32.xlu0 %v4547_v5, %s4506_s12  ;;  %29 = vst.msk [vmem:[#allocation0 + $0x300] ss:$48 sm:$0xc0] %vm3_vm0, %v3977_v1   ;;  %v4625_v17 = vld.sshfl [vmem:[%s6771_s0 + $0x18] sm:$0xff pattern:$0x67452301]  }
   0xc   :  { %4 = vst.msk [vmem:[#allocation0] ss:$48 sm:$0x3] %vm3_vm0, %v99_v2   ;;  %v4646_v18 = vld.sshfl [vmem:[%s6771_s0 + $0x44] sm:$0xff pattern:$0x67452301]  }
   0xd   :  { %5 = vst.msk [vmem:[#allocation0] ss:$48 sm:$0xc] %vm3_vm0, %v99_v2   ;;  %v4651_v19 = vld.sshfl [vmem:[%s6771_s0 + $0x3c] sm:$0xff pattern:$0x67452301]  }
   0xe   :  { %6 = vst.msk [vmem:[#allocation0] ss:$48 sm:$0x30] %vm3_vm0, %v99_v2   ;;  %v4656_v20 = vld.sshfl [vmem:[%s6771_s0 + $0x34] sm:$0xff pattern:$0x67452301]  }
   0xf   :  { %7 = vst.msk [vmem:[#allocation0] ss:$48 sm:$0xc0] %vm3_vm0, %v99_v2   ;;  %v3975_v23 = vld [vmem:[%s6771_s0 + $0x48] sm:$0xf]   ;;  %s4510_s27 = smov 113  }
  0x10   :  { %34 = vst.msk [vmem:[#allocation0 + $0x480] ss:$48 sm:$0x3] %vm3_vm0, %v4542_v4   ;;  %s4512_s19 = smov 107   ;;  %s4513_s17 = smov 104  }
  0x11   :  { %36 = vst.msk [vmem:[#allocation0 + $0x480] ss:$48 sm:$0xc] %vm3_vm0, %v4542_v4   ;;  %s4514_s15 = smov 101   ;;  %s4515_s7 = smov 98  }
  0x12   :  { %204 = vrot.lane.b32.xlu2 %v3983_v6, %s4506_s12  ;;  %191 = vrot.lane.b32.xlu1 %v3982_v7, %s4506_s12  ;;  %63 = vst.msk [vmem:[#allocation0 + $0x840] ss:$48 sm:$0x3] %vm3_vm0, %v3972_v14   ;;  %s4516_s24 = smov 95  }
  0x13   :  { %178 = vrot.lane.b32.xlu0 %v3981_v8, %s4506_s12  ;;  %65 = vst.msk [vmem:[#allocation0 + $0x840] ss:$48 sm:$0xc] %vm3_vm0, %v3972_v14  }
  0x14   :  { %67 = vst.msk [vmem:[#allocation0 + $0x840] ss:$48 sm:$0x30] %vm3_vm0, %v3972_v14  }
  0x15   :  { %69 = vst.msk [vmem:[#allocation0 + $0x840] ss:$48 sm:$0xc0] %vm3_vm0, %v3972_v14  }
  0x16   :  { %38 = vst.msk [vmem:[#allocation0 + $0x480] ss:$48 sm:$0x30] %vm3_vm0, %v4542_v4  }
  0x17   :  { %40 = vst.msk [vmem:[#allocation0 + $0x480] ss:$48 sm:$0xc0] %vm3_vm0, %v4542_v4  }
  0x18   :  { %12 = vst.msk [vmem:[#allocation0 + $0x180] ss:$48 sm:$0x3] %vm3_vm0, %v4547_v5  }
  0x19   :  { %14 = vst.msk [vmem:[#allocation0 + $0x180] ss:$48 sm:$0xc] %vm3_vm0, %v4547_v5  }
  0x1a   :  { %242 = vrot.lane.b32.xlu2 %v3977_v1, %s4507_s25  ;;  %229 = vrot.lane.b32.xlu1 %v4547_v5, %s4507_s25  ;;  %16 = vst.msk [vmem:[#allocation0 + $0x180] ss:$48 sm:$0x30] %vm3_vm0, %v4547_v5  }
  0x1b   :  { %216 = vrot.lane.b32.xlu0 %v99_v2, %s4507_s25  ;;  %18 = vst.msk [vmem:[#allocation0 + $0x180] ss:$48 sm:$0xc0] %vm3_vm0, %v4547_v5  }
  0x1c   :  { %89 = vst.msk [vmem:[#allocation0 + $0xb40] ss:$48 sm:$0x30] %vm3_vm0, %v4666_v22  }
  0x1d   :  { %91 = vst.msk [vmem:[#allocation0 + $0xb40] ss:$48 sm:$0xc0] %vm3_vm0, %v4666_v22  }
  0x1e   :  { %96 = vst.msk [vmem:[#allocation0 + $0xcc0] ss:$48 sm:$0x3] %vm3_vm0, %v3975_v23  }
  0x1f   :  { %98 = vst.msk [vmem:[#allocation0 + $0xcc0] ss:$48 sm:$0xc] %vm3_vm0, %v3975_v23  }
  0x20   :  { %85 = vst.msk [vmem:[#allocation0 + $0xb40] ss:$48 sm:$0x3] %vm3_vm0, %v4666_v22  }
  0x21   :  { %87 = vst.msk [vmem:[#allocation0 + $0xb40] ss:$48 sm:$0xc] %vm3_vm0, %v4666_v22  }
  0x22   :  { %281 = vrot.lane.b32.xlu2 %v3980_v3, %s4507_s25  ;;  %268 = vrot.lane.b32.xlu1 %v3979_v0, %s4507_s25 }
  0x23   :  { %255 = vrot.lane.b32.xlu0 %v4542_v4, %s4507_s25 }
  0x2a   :  { %320 = vrot.lane.b32.xlu2 %v3983_v6, %s4507_s25  ;;  %307 = vrot.lane.b32.xlu1 %v3982_v7, %s4507_s25 }
  0x2b   :  { %294 = vrot.lane.b32.xlu0 %v3981_v8, %s4507_s25 }
  0x32   :  { %358 = vrot.lane.b32.xlu2 %v3977_v1, %s4508_s26  ;;  %345 = vrot.lane.b32.xlu1 %v4547_v5, %s4508_s26 }
  0x33   :  { %332 = vrot.lane.b32.xlu0 %v99_v2, %s4508_s26 }
  0x3a   :  { %397 = vrot.lane.b32.xlu2 %v3980_v3, %s4508_s26  ;;  %384 = vrot.lane.b32.xlu1 %v3979_v0, %s4508_s26 }
  0x3b   :  { %371 = vrot.lane.b32.xlu0 %v4542_v4, %s4508_s26 }
  0x42   :  { %436 = vrot.lane.b32.xlu2 %v3983_v6, %s4508_s26  ;;  %423 = vrot.lane.b32.xlu1 %v3982_v7, %s4508_s26 }
  0x43   :  { %410 = vrot.lane.b32.xlu0 %v3981_v8, %s4508_s26 }
  0x4a   :  { %474 = vrot.lane.b32.xlu2 %v4582_v11, %s4509_s8  ;;  %461 = vrot.lane.b32.xlu1 %v4588_v12, %s4509_s8 }
  0x4b   :  { %448 = vrot.lane.b32.xlu0 %v4594_v13, %s4509_s8 }
  0x52   :  { %513 = vrot.lane.b32.xlu2 %v4613_v15, %s4509_s8  ;;  %500 = vrot.lane.b32.xlu1 %v4619_v16, %s4509_s8 }
  0x53   :  { %487 = vrot.lane.b32.xlu0 %v4625_v17, %s4509_s8 }
  0x5a   :  { %552 = vrot.lane.b32.xlu2 %v4646_v18, %s4509_s8  ;;  %539 = vrot.lane.b32.xlu1 %v4651_v19, %s4509_s8 }
  0x5b   :  { %526 = vrot.lane.b32.xlu0 %v4656_v20, %s4509_s8 }
  0x5c   :  { %v153_v21 = vpop.permute.xlu2 %152  }
  0x5d   :  { %156 = vst.msk [vmem:[#allocation0 + $0x601] ss:$48 sm:$0x3] %vm3_vm0, %v153_v21  }
  0x5e   :  { %158 = vst.msk [vmem:[#allocation0 + $0x601] ss:$48 sm:$0xc] %vm3_vm0, %v153_v21  }
  0x5f   :  { %160 = vst.msk [vmem:[#allocation0 + $0x601] ss:$48 sm:$0x30] %vm3_vm0, %v153_v21  }
  0x60   :  { %162 = vst.msk [vmem:[#allocation0 + $0x601] ss:$48 sm:$0xc0] %vm3_vm0, %v153_v21  }
  0x62   :  { %590 = vrot.lane.b32.xlu2 %v4582_v11, %s4510_s27  ;;  %577 = vrot.lane.b32.xlu1 %v4588_v12, %s4510_s27 }
  0x63   :  { %564 = vrot.lane.b32.xlu0 %v4594_v13, %s4510_s27 }
  0x64   :  { %v2528_v24 = vld [vmem:[#allocation0 + $0x600] sm:$0x3]  ;;  %v2564_v25 = vld [vmem:[#allocation0 + $0x630] sm:$0x3]  ;;  %v166_v26 = vpop.permute.xlu2 %165  }
  0x65   :  { %4255 = vst [vmem:[%s6772_s1 + $0x180] sm:$0x3] %v2528_v24  ;;  %v2600_v27 = vld [vmem:[#allocation0 + $0x660] sm:$0x3]  ;;  %v2636_v28 = vld [vmem:[#allocation0 + $0x690] sm:$0x3] }
  0x66   :  { %4261 = vst [vmem:[%s6772_s1 + $0x18c] sm:$0x3] %v2564_v25  ;;  %v2672_v29 = vld [vmem:[#allocation0 + $0x6c0] sm:$0x3]  ;;  %v2708_v30 = vld [vmem:[#allocation0 + $0x6f0] sm:$0x3] }
  0x67   :  { %4267 = vst [vmem:[%s6772_s1 + $0x198] sm:$0x3] %v2600_v27  ;;  %v2744_v31 = vld [vmem:[#allocation0 + $0x720] sm:$0x3]  ;;  %v2780_v32 = vld [vmem:[#allocation0 + $0x750] sm:$0x3] }
  0x68   :  { %4273 = vst [vmem:[%s6772_s1 + $0x1a4] sm:$0x3] %v2636_v28  ;;  %v3973_v27 = vld [vmem:[%s6771_s0 + $0x38] sm:$0xff]  }
  0x69   :  { %4279 = vst [vmem:[%s6772_s1 + $0x1b0] sm:$0x3] %v2672_v29 }
  0x6a   :  { %4285 = vst [vmem:[%s6772_s1 + $0x1bc] sm:$0x3] %v2708_v30  ;;  %629 = vrot.lane.b32.xlu2 %v4613_v15, %s4510_s27  ;;  %616 = vrot.lane.b32.xlu1 %v4619_v16, %s4510_s27 }
  0x6b   :  { %4291 = vst [vmem:[%s6772_s1 + $0x1c8] sm:$0x3] %v2744_v31  ;;  %603 = vrot.lane.b32.xlu0 %v4625_v17, %s4510_s27 }
  0x6c   :  { %4297 = vst [vmem:[%s6772_s1 + $0x1d4] sm:$0x3] %v2780_v32  ;;  %v205_v33 = vpop.permute.xlu2 %204  }
  0x6d   :  { %169 = vst.msk [vmem:[#allocation0 + $0x781] ss:$48 sm:$0x3] %vm3_vm0, %v166_v26  }
  0x6e   :  { %171 = vst.msk [vmem:[#allocation0 + $0x781] ss:$48 sm:$0xc] %vm3_vm0, %v166_v26  }
  0x6f   :  { %173 = vst.msk [vmem:[#allocation0 + $0x781] ss:$48 sm:$0x30] %vm3_vm0, %v166_v26  }
  0x70   :  { %175 = vst.msk [vmem:[#allocation0 + $0x781] ss:$48 sm:$0xc0] %vm3_vm0, %v166_v26  }
  0x71   :  { %208 = vst.msk [vmem:[#allocation0 + $0xc01] ss:$48 sm:$0x3] %vm3_vm0, %v205_v33  }
  0x72   :  { %668 = vrot.lane.b32.xlu2 %v4646_v18, %s4510_s27  ;;  %655 = vrot.lane.b32.xlu1 %v4651_v19, %s4510_s27  ;;  %210 = vst.msk [vmem:[#allocation0 + $0xc01] ss:$48 sm:$0xc] %vm3_vm0, %v205_v33  }
  0x73   :  { %642 = vrot.lane.b32.xlu0 %v4656_v20, %s4510_s27  ;;  %s4511_s27 = smov 110   ;;  %212 = vst.msk [vmem:[#allocation0 + $0xc01] ss:$48 sm:$0x30] %vm3_vm0, %v205_v33  }
  0x74   :  { %v2816_v34 = vld [vmem:[#allocation0 + $0x780] sm:$0x3]  ;;  %v2852_v35 = vld [vmem:[#allocation0 + $0x7b0] sm:$0x3]  ;;  %v243_v36 = vpop.permute.xlu2 %242   ;;  %v127_v37 = vpop.permute.xlu1 %126  }
  0x75   :  { %4303 = vst [vmem:[%s6772_s1 + $0x1e0] sm:$0x3] %v2816_v34  ;;  %v2888_v38 = vld [vmem:[#allocation0 + $0x7e0] sm:$0x3]  ;;  %v2924_v39 = vld [vmem:[#allocation0 + $0x810] sm:$0x3]  ;;  %v4730_v40 = vpop.permute.xlu0 %100  }
  0x76   :  { %4309 = vst [vmem:[%s6772_s1 + $0x1ec] sm:$0x3] %v2852_v35  ;;  %v2960_v41 = vld [vmem:[#allocation0 + $0x840] sm:$0x3]  ;;  %v2996_v42 = vld [vmem:[#allocation0 + $0x870] sm:$0x3] }
  0x77   :  { %4315 = vst [vmem:[%s6772_s1 + $0x1f8] sm:$0x3] %v2888_v38  ;;  %v3032_v43 = vld [vmem:[#allocation0 + $0x8a0] sm:$0x3]  ;;  %v3068_v44 = vld [vmem:[#allocation0 + $0x8d0] sm:$0x3] }
  0x78   :  { %4321 = vst [vmem:[%s6772_s1 + $0x204] sm:$0x3] %v2924_v39  ;;  %v3680_v45 = vld [vmem:[#allocation0 + $0xc00] sm:$0x3]  ;;  %v3716_v46 = vld [vmem:[#allocation0 + $0xc30] sm:$0x3] }
  0x79   :  { %4327 = vst [vmem:[%s6772_s1 + $0x210] sm:$0x3] %v2960_v41  ;;  %v3752_v47 = vld [vmem:[#allocation0 + $0xc60] sm:$0x3]  ;;  %v3788_v48 = vld [vmem:[#allocation0 + $0xc90] sm:$0x3] }
  0x7a   :  { %4333 = vst [vmem:[%s6772_s1 + $0x21c] sm:$0x3] %v2996_v42  ;;  %706 = vrot.lane.b32.xlu2 %v4582_v11, %s4511_s27  ;;  %693 = vrot.lane.b32.xlu1 %v4588_v12, %s4511_s27  ;;  %v3824_v49 = vld [vmem:[#allocation0 + $0xcc0] sm:$0x3]  ;;  %v3860_v50 = vld [vmem:[#allocation0 + $0xcf0] sm:$0x3] }
  0x7b   :  { %4339 = vst [vmem:[%s6772_s1 + $0x228] sm:$0x3] %v3032_v43  ;;  %680 = vrot.lane.b32.xlu0 %v4594_v13, %s4511_s27 }
  0x7c   :  { %4345 = vst [vmem:[%s6772_s1 + $0x234] sm:$0x3] %v3068_v44  ;;  %v4787_v53 = vpop.permute.xlu2 %281   ;;  %v4789_v54 = vpop.permute.xlu1 %139  }
  0x7d   :  { %214 = vst.msk [vmem:[#allocation0 + $0xc01] ss:$48 sm:$0xc0] %vm3_vm0, %v205_v33   ;;  %v4815_v55 = vpop.permute.xlu0 %113  }
  0x7e   :  { %4447 = vst [vmem:[%s6772_s1 + $0x300] sm:$0x3] %v3680_v45 }
  0x7f   :  { %4453 = vst [vmem:[%s6772_s1 + $0x30c] sm:$0x3] %v3716_v46 }
  0x80   :  { %4459 = vst [vmem:[%s6772_s1 + $0x318] sm:$0x3] %v3752_v47 }
  0x81   :  { %4465 = vst [vmem:[%s6772_s1 + $0x324] sm:$0x3] %v3788_v48 }
  0x82   :  { %745 = vrot.lane.b32.xlu2 %v4613_v15, %s4511_s27  ;;  %732 = vrot.lane.b32.xlu1 %v4619_v16, %s4511_s27  ;;  %4471 = vst [vmem:[%s6772_s1 + $0x330] sm:$0x3] %v3824_v49 }
  0x83   :  { %719 = vrot.lane.b32.xlu0 %v4625_v17, %s4511_s27  ;;  %4477 = vst [vmem:[%s6772_s1 + $0x33c] sm:$0x3] %v3860_v50 }
  0x84   :  { %v3896_v51 = vld [vmem:[#allocation0 + $0xd20] sm:$0x3]  ;;  %v3932_v52 = vld [vmem:[#allocation0 + $0xd50] sm:$0x3]  ;;  %v321_v6 = vpop.permute.xlu2 %320   ;;  %v192_v7 = vpop.permute.xlu1 %191  }
  0x85   :  { %4483 = vst [vmem:[%s6772_s1 + $0x348] sm:$0x3] %v3896_v51  ;;  %v4911_v10 = vpop.permute.xlu0 %178  }
  0x86   :  { %4489 = vst [vmem:[%s6772_s1 + $0x354] sm:$0x3] %v3932_v52 }
  0x87   :  { %246 = vst.msk [vmem:[#allocation0 + $0x308] ss:$48 sm:$0x3] %vm3_vm0, %v243_v36  }
  0x88   :  { %248 = vst.msk [vmem:[#allocation0 + $0x308] ss:$48 sm:$0xc] %vm3_vm0, %v243_v36  }
  0x89   :  { %250 = vst.msk [vmem:[#allocation0 + $0x308] ss:$48 sm:$0x30] %vm3_vm0, %v243_v36  }
  0x8a   :  { %784 = vrot.lane.b32.xlu2 %v4646_v18, %s4511_s27  ;;  %771 = vrot.lane.b32.xlu1 %v4651_v19, %s4511_s27  ;;  %252 = vst.msk [vmem:[#allocation0 + $0x308] ss:$48 sm:$0xc0] %vm3_vm0, %v243_v36  }
  0x8b   :  { %758 = vrot.lane.b32.xlu0 %v4656_v20, %s4511_s27  ;;  %130 = vst.msk [vmem:[#allocation0 + $0x301] ss:$48 sm:$0x3] %vm3_vm0, %v127_v37  }
  0x8c   :  { %132 = vst.msk [vmem:[#allocation0 + $0x301] ss:$48 sm:$0xc] %vm3_vm0, %v127_v37   ;;  %v359_v28 = vpop.permute.xlu2 %358   ;;  %v4972_v29 = vpop.permute.xlu1 %229  }
  0x8d   :  { %134 = vst.msk [vmem:[#allocation0 + $0x301] ss:$48 sm:$0x30] %vm3_vm0, %v127_v37   ;;  %v4985_v34 = vpop.permute.xlu0 %216  }
  0x8e   :  { %136 = vst.msk [vmem:[#allocation0 + $0x301] ss:$48 sm:$0xc0] %vm3_vm0, %v127_v37  }
  0x8f   :  { %104 = vst.msk [vmem:[#allocation0 + $0x1] ss:$48 sm:$0x3] %vm3_vm0, %v4730_v40  }
  0x90   :  { %106 = vst.msk [vmem:[#allocation0 + $0x1] ss:$48 sm:$0xc] %vm3_vm0, %v4730_v40  }
  0x91   :  { %108 = vst.msk [vmem:[#allocation0 + $0x1] ss:$48 sm:$0x30] %vm3_vm0, %v4730_v40  }
  0x92   :  { %822 = vrot.lane.b32.xlu2 %v4582_v11, %s4512_s19  ;;  %809 = vrot.lane.b32.xlu1 %v4588_v12, %s4512_s19  ;;  %v1952_v56 = vld [vmem:[#allocation0 + $0x300] sm:$0x3]  ;;  %v1988_v57 = vld [vmem:[#allocation0 + $0x330] sm:$0x3] }
  0x93   :  { %796 = vrot.lane.b32.xlu0 %v4594_v13, %s4512_s19  ;;  %4159 = vst [vmem:[%s6772_s1 + $0xc0] sm:$0x3] %v1952_v56  ;;  %v2024_v58 = vld [vmem:[#allocation0 + $0x360] sm:$0x3]  ;;  %v2060_v59 = vld [vmem:[#allocation0 + $0x390] sm:$0x3] }
  0x94   :  { %4165 = vst [vmem:[%s6772_s1 + $0xcc] sm:$0x3] %v1988_v57  ;;  %v2096_v60 = vld [vmem:[#allocation0 + $0x3c0] sm:$0x3]  ;;  %v2132_v61 = vld [vmem:[#allocation0 + $0x3f0] sm:$0x3]  ;;  %v398_v39 = vpop.permute.xlu2 %397   ;;  %v269_v42 = vpop.permute.xlu1 %268  }
  0x95   :  { %4171 = vst [vmem:[%s6772_s1 + $0xd8] sm:$0x3] %v2024_v58  ;;  %v2168_v62 = vld [vmem:[#allocation0 + $0x420] sm:$0x3]  ;;  %v2204_v63 = vld [vmem:[#allocation0 + $0x450] sm:$0x3]  ;;  %v5031_v49 = vpop.permute.xlu0 %255  }
  0x96   :  { %4177 = vst [vmem:[%s6772_s1 + $0xe4] sm:$0x3] %v2060_v59  ;;  %v1377_v0 = vld [vmem:[#allocation0] sm:$0x3]  ;;  %v1412_v1 = vld [vmem:[#allocation0 + $0x30] sm:$0x3] }
  0x97   :  { %4183 = vst [vmem:[%s6772_s1 + $0xf0] sm:$0x3] %v2096_v60  ;;  %v1448_v2 = vld [vmem:[#allocation0 + $0x60] sm:$0x3]  ;;  %v1484_v3 = vld [vmem:[#allocation0 + $0x90] sm:$0x3] }
  0x98   :  { %4189 = vst [vmem:[%s6772_s1 + $0xfc] sm:$0x3] %v2132_v61  ;;  %v1520_v4 = vld [vmem:[#allocation0 + $0xc0] sm:$0x3]  ;;  %v1556_v5 = vld [vmem:[#allocation0 + $0xf0] sm:$0x3] }
  0x99   :  { %4195 = vst [vmem:[%s6772_s1 + $0x108] sm:$0x3] %v2168_v62 }
  0x9a   :  { %861 = vrot.lane.b32.xlu2 %v4613_v15, %s4512_s19  ;;  %848 = vrot.lane.b32.xlu1 %v4619_v16, %s4512_s19  ;;  %4201 = vst [vmem:[%s6772_s1 + $0x114] sm:$0x3] %v2204_v63 }
  0x9b   :  { %835 = vrot.lane.b32.xlu0 %v4625_v17, %s4512_s19  ;;  %110 = vst.msk [vmem:[#allocation0 + $0x1] ss:$48 sm:$0xc0] %vm3_vm0, %v4730_v40  }
  0x9c   :  { %1380 = vst [vmem:[%s6772_s1] sm:$0x3] %v1377_v0  ;;  %v5076_v59 = vpop.permute.xlu1 %307  }
  0x9d   :  { %4069 = vst [vmem:[%s6772_s1 + $0xc] sm:$0x3] %v1412_v1  ;;  %v5091_v60 = vpop.permute.xlu0 %294  }
  0x9e   :  { %4075 = vst [vmem:[%s6772_s1 + $0x18] sm:$0x3] %v1448_v2 }
  0x9f   :  { %4081 = vst [vmem:[%s6772_s1 + $0x24] sm:$0x3] %v1484_v3 }
  0xa0   :  { %4087 = vst [vmem:[%s6772_s1 + $0x30] sm:$0x3] %v1520_v4 }
  0xa1   :  { %4093 = vst [vmem:[%s6772_s1 + $0x3c] sm:$0x3] %v1556_v5 }
  0xa2   :  { %900 = vrot.lane.b32.xlu2 %v4646_v18, %s4512_s19  ;;  %887 = vrot.lane.b32.xlu1 %v4651_v19, %s4512_s19  ;;  %v1592_v8 = vld [vmem:[#allocation0 + $0x120] sm:$0x3]  ;;  %v1628_v9 = vld [vmem:[#allocation0 + $0x150] sm:$0x3] }
  0xa3   :  { %874 = vrot.lane.b32.xlu0 %v4656_v20, %s4512_s19  ;;  %4099 = vst [vmem:[%s6772_s1 + $0x48] sm:$0x3] %v1592_v8 }
  0xa4   :  { %4105 = vst [vmem:[%s6772_s1 + $0x54] sm:$0x3] %v1628_v9 }
  0xa5   :  { %285 = vst.msk [vmem:[#allocation0 + $0x788] ss:$48 sm:$0x3] %vm3_vm0, %v4787_v53  }
  0xa6   :  { %287 = vst.msk [vmem:[#allocation0 + $0x788] ss:$48 sm:$0xc] %vm3_vm0, %v4787_v53  }
  0xa7   :  { %289 = vst.msk [vmem:[#allocation0 + $0x788] ss:$48 sm:$0x30] %vm3_vm0, %v4787_v53  }
  0xa8   :  { %291 = vst.msk [vmem:[#allocation0 + $0x788] ss:$48 sm:$0xc0] %vm3_vm0, %v4787_v53  }
  0xa9   :  { %143 = vst.msk [vmem:[#allocation0 + $0x481] ss:$48 sm:$0x3] %vm3_vm0, %v4789_v54  }
  0xaa   :  { %145 = vst.msk [vmem:[#allocation0 + $0x481] ss:$48 sm:$0xc] %vm3_vm0, %v4789_v54  }
  0xab   :  { %147 = vst.msk [vmem:[#allocation0 + $0x481] ss:$48 sm:$0x30] %vm3_vm0, %v4789_v54  }
  0xac   :  { %149 = vst.msk [vmem:[#allocation0 + $0x481] ss:$48 sm:$0xc0] %vm3_vm0, %v4789_v54   ;;  %v437_v54 = vpop.permute.xlu2 %436  }
  0xad   :  { %117 = vst.msk [vmem:[#allocation0 + $0x181] ss:$48 sm:$0x3] %vm3_vm0, %v4815_v55  }
  0xae   :  { %119 = vst.msk [vmem:[#allocation0 + $0x181] ss:$48 sm:$0xc] %vm3_vm0, %v4815_v55  }
  0xaf   :  { %121 = vst.msk [vmem:[#allocation0 + $0x181] ss:$48 sm:$0x30] %vm3_vm0, %v4815_v55  }
  0xb0   :  { %v2240_v11 = vld [vmem:[#allocation0 + $0x480] sm:$0x3]  ;;  %v2276_v12 = vld [vmem:[#allocation0 + $0x4b0] sm:$0x3] }
  0xb1   :  { %4207 = vst [vmem:[%s6772_s1 + $0x120] sm:$0x3] %v2240_v11  ;;  %v2312_v13 = vld [vmem:[#allocation0 + $0x4e0] sm:$0x3]  ;;  %v2348_v14 = vld [vmem:[#allocation0 + $0x510] sm:$0x3] }
  0xb2   :  { %4213 = vst [vmem:[%s6772_s1 + $0x12c] sm:$0x3] %v2276_v12  ;;  %v2384_v15 = vld [vmem:[#allocation0 + $0x540] sm:$0x3]  ;;  %v2420_v16 = vld [vmem:[#allocation0 + $0x570] sm:$0x3] }
  0xb3   :  { %4219 = vst [vmem:[%s6772_s1 + $0x138] sm:$0x3] %v2312_v13  ;;  %v2456_v17 = vld [vmem:[#allocation0 + $0x5a0] sm:$0x3]  ;;  %v2492_v18 = vld [vmem:[#allocation0 + $0x5d0] sm:$0x3] }
  0xb4   :  { %4225 = vst [vmem:[%s6772_s1 + $0x144] sm:$0x3] %v2348_v14  ;;  %v1664_v19 = vld [vmem:[#allocation0 + $0x180] sm:$0x3]  ;;  %v1700_v20 = vld [vmem:[#allocation0 + $0x1b0] sm:$0x3]  ;;  %v475_v1 = vpop.permute.xlu2 %474  }
  0xb5   :  { %4231 = vst [vmem:[%s6772_s1 + $0x150] sm:$0x3] %v2384_v15  ;;  %v1736_v21 = vld [vmem:[#allocation0 + $0x1e0] sm:$0x3]  ;;  %v1772_v22 = vld [vmem:[#allocation0 + $0x210] sm:$0x3] }
  0xb6   :  { %4237 = vst [vmem:[%s6772_s1 + $0x15c] sm:$0x3] %v2420_v16  ;;  %v1808_v23 = vld [vmem:[#allocation0 + $0x240] sm:$0x3]  ;;  %v1844_v24 = vld [vmem:[#allocation0 + $0x270] sm:$0x3] }
  0xb7   :  { %4243 = vst [vmem:[%s6772_s1 + $0x168] sm:$0x3] %v2456_v17  ;;  %v5155_v15 = vld [vmem:[%s6771_s0 + $0x10] sm:$0xff]   ;;  %v5168_v17 = vld [vmem:[%s6771_s0 + $0x8] sm:$0xff]  }
  0xb8   :  { %4249 = vst [vmem:[%s6772_s1 + $0x174] sm:$0x3] %v2492_v18  ;;  %938 = vrot.lane.b32.xlu2 %v5155_v15, %s4513_s17  ;;  %v5173_v18 = vld [vmem:[%s6771_s0] sm:$0xff]   ;;  %925 = vrot.lane.b32.xlu1 %v5168_v17, %s4513_s17 }
  0xb9   :  { %123 = vst.msk [vmem:[#allocation0 + $0x181] ss:$48 sm:$0xc0] %vm3_vm0, %v4815_v55   ;;  %912 = vrot.lane.b32.xlu0 %v5173_v18, %s4513_s17 }
  0xba   :  { %4111 = vst [vmem:[%s6772_s1 + $0x60] sm:$0x3] %v1664_v19 }
  0xbb   :  { %4117 = vst [vmem:[%s6772_s1 + $0x6c] sm:$0x3] %v1700_v20 }
  0xbc   :  { %4123 = vst [vmem:[%s6772_s1 + $0x78] sm:$0x3] %v1736_v21  ;;  %v514_v19 = vpop.permute.xlu2 %513  }
  0xbd   :  { %4129 = vst [vmem:[%s6772_s1 + $0x84] sm:$0x3] %v1772_v22 }
  0xbe   :  { %4135 = vst [vmem:[%s6772_s1 + $0x90] sm:$0x3] %v1808_v23 }
  0xbf   :  { %4141 = vst [vmem:[%s6772_s1 + $0x9c] sm:$0x3] %v1844_v24 }
  0xc0   :  { %v1880_v25 = vld [vmem:[#allocation0 + $0x2a0] sm:$0x3]  ;;  %v1916_v26 = vld [vmem:[#allocation0 + $0x2d0] sm:$0x3] }
  0xc1   :  { %4147 = vst [vmem:[%s6772_s1 + $0xa8] sm:$0x3] %v1880_v25 }
  0xc2   :  { %4153 = vst [vmem:[%s6772_s1 + $0xb4] sm:$0x3] %v1916_v26 }
  0xc3   :  { %324 = vst.msk [vmem:[#allocation0 + $0xc08] ss:$48 sm:$0x3] %vm3_vm0, %v321_v6  }
  0xc4   :  { %326 = vst.msk [vmem:[#allocation0 + $0xc08] ss:$48 sm:$0xc] %vm3_vm0, %v321_v6  }
  0xc5   :  { %328 = vst.msk [vmem:[#allocation0 + $0xc08] ss:$48 sm:$0x30] %vm3_vm0, %v321_v6  }
  0xc6   :  { %330 = vst.msk [vmem:[#allocation0 + $0xc08] ss:$48 sm:$0xc0] %vm3_vm0, %v321_v6   ;;  %v346_v6 = vpop.permute.xlu1 %345  }
  0xc7   :  { %78 = vst.msk [vmem:[#allocation0 + $0x9c0] ss:$48 sm:$0x30] %vm3_vm0, %v3973_v27  }
  0xc8   :  { %80 = vst.msk [vmem:[#allocation0 + $0x9c0] ss:$48 sm:$0xc0] %vm3_vm0, %v3973_v27  }
  0xc9   :  { %195 = vst.msk [vmem:[#allocation0 + $0xa81] ss:$48 sm:$0x3] %vm3_vm0, %v192_v7  }
  0xca   :  { %197 = vst.msk [vmem:[#allocation0 + $0xa81] ss:$48 sm:$0xc] %vm3_vm0, %v192_v7  }
  0xcb   :  { %199 = vst.msk [vmem:[#allocation0 + $0xa81] ss:$48 sm:$0x30] %vm3_vm0, %v192_v7  }
  0xcc   :  { %201 = vst.msk [vmem:[#allocation0 + $0xa81] ss:$48 sm:$0xc0] %vm3_vm0, %v192_v7   ;;  %v5124_v7 = vpop.permute.xlu0 %332  }
  0xcd   :  { %74 = vst.msk [vmem:[#allocation0 + $0x9c0] ss:$48 sm:$0x3] %vm3_vm0, %v3973_v27  }
  0xce   :  { %76 = vst.msk [vmem:[#allocation0 + $0x9c0] ss:$48 sm:$0xc] %vm3_vm0, %v3973_v27   ;;  %v5187_v20 = vpop.permute.xlu1 %384  }
  0xcf   :  { %182 = vst.msk [vmem:[#allocation0 + $0x901] ss:$48 sm:$0x3] %vm3_vm0, %v4911_v10  }
  0xd0   :  { %v3392_v30 = vld [vmem:[#allocation0 + $0xa80] sm:$0x3]  ;;  %v3428_v31 = vld [vmem:[#allocation0 + $0xab0] sm:$0x3] }
  0xd1   :  { %4399 = vst [vmem:[%s6772_s1 + $0x2a0] sm:$0x3] %v3392_v30  ;;  %v3464_v32 = vld [vmem:[#allocation0 + $0xae0] sm:$0x3]  ;;  %v3500_v33 = vld [vmem:[#allocation0 + $0xb10] sm:$0x3] }
  0xd2   :  { %4405 = vst [vmem:[%s6772_s1 + $0x2ac] sm:$0x3] %v3428_v31  ;;  %v3536_v35 = vld [vmem:[#allocation0 + $0xb40] sm:$0x3]  ;;  %v3572_v36 = vld [vmem:[#allocation0 + $0xb70] sm:$0x3] }
  0xd3   :  { %4411 = vst [vmem:[%s6772_s1 + $0x2b8] sm:$0x3] %v3464_v32  ;;  %v3608_v37 = vld [vmem:[#allocation0 + $0xba0] sm:$0x3]  ;;  %v3644_v38 = vld [vmem:[#allocation0 + $0xbd0] sm:$0x3] }
  0xd4   :  { %4417 = vst [vmem:[%s6772_s1 + $0x2c4] sm:$0x3] %v3500_v33  ;;  %v5203_v21 = vpop.permute.xlu0 %371   ;;  %v5239_v32 = vld [vmem:[%s6771_s0 + $0x2c] sm:$0xff]  }
  0xd5   :  { %4423 = vst [vmem:[%s6772_s1 + $0x2d0] sm:$0x3] %v3536_v35  ;;  %977 = vrot.lane.b32.xlu2 %v5239_v32, %s4513_s17  ;;  %v5252_v35 = vld.sshfl [vmem:[%s6771_s0 + $0x20] sm:$0xff pattern:$0xba983210]  }
  0xd6   :  { %4429 = vst [vmem:[%s6772_s1 + $0x2dc] sm:$0x3] %v3572_v36  ;;  %v3104_v40 = vld [vmem:[#allocation0 + $0x900] sm:$0x3]  ;;  %v3140_v41 = vld [vmem:[#allocation0 + $0x930] sm:$0x3]  ;;  %964 = vrot.lane.b32.xlu1 %v5252_v35, %s4513_s17 }
  0xd7   :  { %4435 = vst [vmem:[%s6772_s1 + $0x2e8] sm:$0x3] %v3608_v37  ;;  %v5257_v36 = vld [vmem:[%s6771_s0 + $0x18] sm:$0xff]  }
  0xd8   :  { %4441 = vst [vmem:[%s6772_s1 + $0x2f4] sm:$0x3] %v3644_v38  ;;  %951 = vrot.lane.b32.xlu0 %v5257_v36, %s4513_s17 }
  0xd9   :  { %184 = vst.msk [vmem:[#allocation0 + $0x901] ss:$48 sm:$0xc] %vm3_vm0, %v4911_v10  }
  0xda   :  { %186 = vst.msk [vmem:[#allocation0 + $0x901] ss:$48 sm:$0x30] %vm3_vm0, %v4911_v10  }
  0xdb   :  { %188 = vst.msk [vmem:[#allocation0 + $0x901] ss:$48 sm:$0xc0] %vm3_vm0, %v4911_v10  }
  0xdc   :  { %4351 = vst [vmem:[%s6772_s1 + $0x240] sm:$0x3] %v3104_v40  ;;  %v5274_v40 = vpop.permute.xlu1 %423  }
  0xdd   :  { %4357 = vst [vmem:[%s6772_s1 + $0x24c] sm:$0x3] %v3140_v41 }
  0xde   :  { %362 = vst.msk [vmem:[#allocation0 + $0x309] ss:$48 sm:$0x3] %vm3_vm0, %v359_v28  }
  0xdf   :  { %364 = vst.msk [vmem:[#allocation0 + $0x309] ss:$48 sm:$0xc] %vm3_vm0, %v359_v28  }
  0xe0   :  { %v3176_v43 = vld [vmem:[#allocation0 + $0x960] sm:$0x3]  ;;  %v3212_v44 = vld [vmem:[#allocation0 + $0x990] sm:$0x3] }
  0xe1   :  { %4363 = vst [vmem:[%s6772_s1 + $0x258] sm:$0x3] %v3176_v43  ;;  %v3248_v45 = vld [vmem:[#allocation0 + $0x9c0] sm:$0x3]  ;;  %v3284_v46 = vld [vmem:[#allocation0 + $0x9f0] sm:$0x3]  ;;  %v5292_v43 = vpop.permute.xlu0 %410  }
  0xe2   :  { %4369 = vst [vmem:[%s6772_s1 + $0x264] sm:$0x3] %v3212_v44  ;;  %v3320_v47 = vld [vmem:[#allocation0 + $0xa20] sm:$0x3]  ;;  %v3356_v48 = vld [vmem:[#allocation0 + $0xa50] sm:$0x3] }
  0xe3   :  { %4375 = vst [vmem:[%s6772_s1 + $0x270] sm:$0x3] %v3248_v45 }
  0xe4   :  { %4381 = vst [vmem:[%s6772_s1 + $0x27c] sm:$0x3] %v3284_v46 }
  0xe5   :  { %4387 = vst [vmem:[%s6772_s1 + $0x288] sm:$0x3] %v3320_v47  ;;  %v1958_v52 = vld [vmem:[#allocation0 + $0x308] sm:$0x3]  ;;  %v1994_v53 = vld [vmem:[#allocation0 + $0x338] sm:$0x3] }
  0xe6   :  { %4393 = vst [vmem:[%s6772_s1 + $0x294] sm:$0x3] %v3356_v48  ;;  %v2030_v50 = vld [vmem:[#allocation0 + $0x368] sm:$0x3]  ;;  %v2066_v51 = vld [vmem:[#allocation0 + $0x398] sm:$0x3] }
  0xe7   :  { %366 = vst.msk [vmem:[#allocation0 + $0x309] ss:$48 sm:$0x30] %vm3_vm0, %v359_v28  }
  0xe8   :  { %368 = vst.msk [vmem:[#allocation0 + $0x309] ss:$48 sm:$0xc0] %vm3_vm0, %v359_v28  }
  0xe9   :  { %4172 = vst [vmem:[%s6772_s1 + $0xda] sm:$0x3] %v2030_v50 }
  0xea   :  { %4178 = vst [vmem:[%s6772_s1 + $0xe6] sm:$0x3] %v2066_v51 }
  0xeb   :  { %233 = vst.msk [vmem:[#allocation0 + $0x188] ss:$48 sm:$0x3] %vm3_vm0, %v4972_v29  }
  0xec   :  { %235 = vst.msk [vmem:[#allocation0 + $0x188] ss:$48 sm:$0xc] %vm3_vm0, %v4972_v29  }
  0xed   :  { %237 = vst.msk [vmem:[#allocation0 + $0x188] ss:$48 sm:$0x30] %vm3_vm0, %v4972_v29  }
  0xee   :  { %4160 = vst [vmem:[%s6772_s1 + $0xc2] sm:$0x3] %v1958_v52  ;;  %v2102_v57 = vld [vmem:[#allocation0 + $0x3c8] sm:$0x3]  ;;  %v2138_v58 = vld [vmem:[#allocation0 + $0x3f8] sm:$0x3] }
  0xef   :  { %v2174_v55 = vld [vmem:[#allocation0 + $0x428] sm:$0x3]  ;;  %v2210_v56 = vld [vmem:[#allocation0 + $0x458] sm:$0x3]  ;;  %4166 = vst [vmem:[%s6772_s1 + $0xce] sm:$0x3] %v1994_v53 }
  0xf0   :  { %4196 = vst [vmem:[%s6772_s1 + $0x10a] sm:$0x3] %v2174_v55  ;;  %v5331_v53 = vld [vmem:[%s6771_s0 + $0x44] sm:$0xff]  }
  0xf1   :  { %4202 = vst [vmem:[%s6772_s1 + $0x116] sm:$0x3] %v2210_v56  ;;  %1016 = vrot.lane.b32.xlu2 %v5331_v53, %s4513_s17 }
  0xf2   :  { %239 = vst.msk [vmem:[#allocation0 + $0x188] ss:$48 sm:$0xc0] %vm3_vm0, %v4972_v29  }
  0xf3   :  { %4184 = vst [vmem:[%s6772_s1 + $0xf2] sm:$0x3] %v2102_v57 }
  0xf4   :  { %4190 = vst [vmem:[%s6772_s1 + $0xfe] sm:$0x3] %v2138_v58  ;;  %v5350_v58 = vld [vmem:[%s6771_s0 + $0x3c] sm:$0xff]  }
  0xf5   :  { %220 = vst.msk [vmem:[#allocation0 + $0x8] ss:$48 sm:$0x3] %vm3_vm0, %v4985_v34   ;;  %1003 = vrot.lane.b32.xlu1 %v5350_v58, %s4513_s17 }
  0xf6   :  { %222 = vst.msk [vmem:[#allocation0 + $0x8] ss:$48 sm:$0xc] %vm3_vm0, %v4985_v34  }
  0xf7   :  { %224 = vst.msk [vmem:[#allocation0 + $0x8] ss:$48 sm:$0x30] %vm3_vm0, %v4985_v34  }
  0xf8   :  { %226 = vst.msk [vmem:[#allocation0 + $0x8] ss:$48 sm:$0xc0] %vm3_vm0, %v4985_v34  }
  0xf9   :  { %401 = vst.msk [vmem:[#allocation0 + $0x789] ss:$48 sm:$0x3] %vm3_vm0, %v398_v39   ;;  %1054 = vrot.lane.b32.xlu2 %v5155_v15, %s4514_s15 }
  0xfa   :  { %403 = vst.msk [vmem:[#allocation0 + $0x789] ss:$48 sm:$0xc] %vm3_vm0, %v398_v39  }
  0xfb   :  { %405 = vst.msk [vmem:[#allocation0 + $0x789] ss:$48 sm:$0x30] %vm3_vm0, %v398_v39  }
  0xfc   :  { %407 = vst.msk [vmem:[#allocation0 + $0x789] ss:$48 sm:$0xc0] %vm3_vm0, %v398_v39   ;;  %v5272_v39 = vpop.permute.xlu2 %552  }
  0xfd   :  { %272 = vst.msk [vmem:[#allocation0 + $0x608] ss:$48 sm:$0x3] %vm3_vm0, %v269_v42   ;;  %1041 = vrot.lane.b32.xlu1 %v5168_v17, %s4514_s15 }
  0xfe   :  { %274 = vst.msk [vmem:[#allocation0 + $0x608] ss:$48 sm:$0xc] %vm3_vm0, %v269_v42  }
  0xff   :  { %276 = vst.msk [vmem:[#allocation0 + $0x608] ss:$48 sm:$0x30] %vm3_vm0, %v269_v42  }
 0x100   :  { %v2822_v61 = vld [vmem:[#allocation0 + $0x788] sm:$0x3]  ;;  %v2858_v62 = vld [vmem:[#allocation0 + $0x7b8] sm:$0x3] }
 0x101   :  { %v2894_v63 = vld [vmem:[#allocation0 + $0x7e8] sm:$0x3]  ;;  %4304 = vst [vmem:[%s6772_s1 + $0x1e2] sm:$0x3] %v2822_v61  ;;  %v2930_v0 = vld [vmem:[#allocation0 + $0x818] sm:$0x3]  ;;  %1093 = vrot.lane.b32.xlu2 %v5239_v32, %s4514_s15 }
 0x102   :  { %4310 = vst [vmem:[%s6772_s1 + $0x1ee] sm:$0x3] %v2858_v62  ;;  %v2966_v2 = vld [vmem:[#allocation0 + $0x848] sm:$0x3]  ;;  %v3002_v3 = vld [vmem:[#allocation0 + $0x878] sm:$0x3] }
 0x103   :  { %4316 = vst [vmem:[%s6772_s1 + $0x1fa] sm:$0x3] %v2894_v63  ;;  %v3038_v4 = vld [vmem:[#allocation0 + $0x8a8] sm:$0x3]  ;;  %v3074_v5 = vld [vmem:[#allocation0 + $0x8d8] sm:$0x3] }
 0x104   :  { %278 = vst.msk [vmem:[#allocation0 + $0x608] ss:$48 sm:$0xc0] %vm3_vm0, %v269_v42   ;;  %v5370_v63 = vpop.permute.xlu2 %590  }
 0x105   :  { %4322 = vst [vmem:[%s6772_s1 + $0x206] sm:$0x3] %v2930_v0  ;;  %v5385_v0 = vpop.permute.xlu1 %461   ;;  %1080 = vrot.lane.b32.xlu1 %v5252_v35, %s4514_s15 }
 0x106   :  { %4328 = vst [vmem:[%s6772_s1 + $0x212] sm:$0x3] %v2966_v2 }
 0x107   :  { %4334 = vst [vmem:[%s6772_s1 + $0x21e] sm:$0x3] %v3002_v3 }
 0x108   :  { %4340 = vst [vmem:[%s6772_s1 + $0x22a] sm:$0x3] %v3038_v4 }
 0x109   :  { %4346 = vst [vmem:[%s6772_s1 + $0x236] sm:$0x3] %v3074_v5  ;;  %1132 = vrot.lane.b32.xlu2 %v5331_v53, %s4514_s15 }
 0x10a   :  { %259 = vst.msk [vmem:[#allocation0 + $0x488] ss:$48 sm:$0x3] %vm3_vm0, %v5031_v49  }
 0x10b   :  { %261 = vst.msk [vmem:[#allocation0 + $0x488] ss:$48 sm:$0xc] %vm3_vm0, %v5031_v49  }
 0x10c   :  { %263 = vst.msk [vmem:[#allocation0 + $0x488] ss:$48 sm:$0x30] %vm3_vm0, %v5031_v49  }
 0x10d   :  { %265 = vst.msk [vmem:[#allocation0 + $0x488] ss:$48 sm:$0xc0] %vm3_vm0, %v5031_v49   ;;  %1119 = vrot.lane.b32.xlu1 %v5350_v58, %s4514_s15 }
 0x10e   :  { %440 = vst.msk [vmem:[#allocation0 + $0xc09] ss:$48 sm:$0x3] %vm3_vm0, %v437_v54  }
 0x10f   :  { %442 = vst.msk [vmem:[#allocation0 + $0xc09] ss:$48 sm:$0xc] %vm3_vm0, %v437_v54  }
 0x110   :  { %444 = vst.msk [vmem:[#allocation0 + $0xc09] ss:$48 sm:$0x30] %vm3_vm0, %v437_v54  }
 0x111   :  { %446 = vst.msk [vmem:[#allocation0 + $0xc09] ss:$48 sm:$0xc0] %vm3_vm0, %v437_v54   ;;  %1170 = vrot.lane.b32.xlu2 %v5155_v15, %s4515_s7 }
 0x112   :  { %311 = vst.msk [vmem:[#allocation0 + $0xa88] ss:$48 sm:$0x3] %vm3_vm0, %v5076_v59  }
 0x113   :  { %313 = vst.msk [vmem:[#allocation0 + $0xa88] ss:$48 sm:$0xc] %vm3_vm0, %v5076_v59  }
 0x114   :  { %315 = vst.msk [vmem:[#allocation0 + $0xa88] ss:$48 sm:$0x30] %vm3_vm0, %v5076_v59  }
 0x115   :  { %v3686_v8 = vld [vmem:[#allocation0 + $0xc08] sm:$0x3]  ;;  %v3722_v9 = vld [vmem:[#allocation0 + $0xc38] sm:$0x3]  ;;  %1157 = vrot.lane.b32.xlu1 %v5168_v17, %s4515_s7 }
 0x116   :  { %4448 = vst [vmem:[%s6772_s1 + $0x302] sm:$0x3] %v3686_v8  ;;  %v3758_v10 = vld [vmem:[#allocation0 + $0xc68] sm:$0x3]  ;;  %v3794_v11 = vld [vmem:[#allocation0 + $0xc98] sm:$0x3] }
 0x117   :  { %4454 = vst [vmem:[%s6772_s1 + $0x30e] sm:$0x3] %v3722_v9  ;;  %v3830_v12 = vld [vmem:[#allocation0 + $0xcc8] sm:$0x3]  ;;  %v3866_v13 = vld [vmem:[#allocation0 + $0xcf8] sm:$0x3] }
 0x118   :  { %4460 = vst [vmem:[%s6772_s1 + $0x31a] sm:$0x3] %v3758_v10  ;;  %v3902_v14 = vld [vmem:[#allocation0 + $0xd28] sm:$0x3]  ;;  %v3938_v16 = vld [vmem:[#allocation0 + $0xd58] sm:$0x3]  ;;  %v5438_v10 = vpop.permute.xlu2 %629  }
 0x119   :  { %4466 = vst [vmem:[%s6772_s1 + $0x326] sm:$0x3] %v3794_v11  ;;  %1209 = vrot.lane.b32.xlu2 %v5239_v32, %s4515_s7 }
 0x11a   :  { %4472 = vst [vmem:[%s6772_s1 + $0x332] sm:$0x3] %v3830_v12 }
 0x11b   :  { %4478 = vst [vmem:[%s6772_s1 + $0x33e] sm:$0x3] %v3866_v13 }
 0x11c   :  { %4484 = vst [vmem:[%s6772_s1 + $0x34a] sm:$0x3] %v3902_v14 }
 0x11d   :  { %4490 = vst [vmem:[%s6772_s1 + $0x356] sm:$0x3] %v3938_v16  ;;  %1196 = vrot.lane.b32.xlu1 %v5252_v35, %s4515_s7 }
 0x11e   :  { %317 = vst.msk [vmem:[#allocation0 + $0xa88] ss:$48 sm:$0xc0] %vm3_vm0, %v5076_v59   ;;  %v5355_v59 = vld [vmem:[%s6771_s0 + $0x34] sm:$0xff]  }
 0x11f   :  { %298 = vst.msk [vmem:[#allocation0 + $0x908] ss:$48 sm:$0x3] %vm3_vm0, %v5091_v60   ;;  %990 = vrot.lane.b32.xlu0 %v5355_v59, %s4513_s17 }
 0x120   :  { %300 = vst.msk [vmem:[#allocation0 + $0x908] ss:$48 sm:$0xc] %vm3_vm0, %v5091_v60  }
 0x121   :  { %302 = vst.msk [vmem:[#allocation0 + $0x908] ss:$48 sm:$0x30] %vm3_vm0, %v5091_v60   ;;  %1248 = vrot.lane.b32.xlu2 %v5331_v53, %s4515_s7 }
 0x122   :  { %304 = vst.msk [vmem:[#allocation0 + $0x908] ss:$48 sm:$0xc0] %vm3_vm0, %v5091_v60  }
 0x123   :  { %478 = vst.msk [vmem:[#allocation0 + $0x340] ss:$-48 sm:$0x3] %vm3_vm0, %v475_v1  }
 0x124   :  { %480 = vst.msk [vmem:[#allocation0 + $0x400] ss:$-48 sm:$0xc] %vm3_vm0, %v475_v1  }
 0x125   :  { %482 = vst.msk [vmem:[#allocation0 + $0x4c0] ss:$-48 sm:$0x30] %vm3_vm0, %v475_v1   ;;  %1235 = vrot.lane.b32.xlu1 %v5350_v58, %s4515_s7 }
 0x126   :  { %484 = vst.msk [vmem:[#allocation0 + $0x580] ss:$-48 sm:$0xc0] %vm3_vm0, %v475_v1   ;;  %v5409_v1 = vpop.permute.xlu0 %448  }
 0x127   :  { %349 = vst.msk [vmem:[#allocation0 + $0x189] ss:$48 sm:$0x3] %vm3_vm0, %v346_v6   ;;  %1028 = vrot.lane.b32.xlu0 %v5173_v18, %s4514_s15 }
 0x128   :  { %351 = vst.msk [vmem:[#allocation0 + $0x189] ss:$48 sm:$0xc] %vm3_vm0, %v346_v6  }
 0x129   :  { %353 = vst.msk [vmem:[#allocation0 + $0x189] ss:$48 sm:$0x30] %vm3_vm0, %v346_v6   ;;  %1286 = vrot.lane.b32.xlu2 %v5155_v15, %s4516_s24 }
 0x12a   :  { %355 = vst.msk [vmem:[#allocation0 + $0x189] ss:$48 sm:$0xc0] %vm3_vm0, %v346_v6  }
 0x12b   :  { %336 = vst.msk [vmem:[#allocation0 + $0x9] ss:$48 sm:$0x3] %vm3_vm0, %v5124_v7  }
 0x12c   :  { %338 = vst.msk [vmem:[#allocation0 + $0x9] ss:$48 sm:$0xc] %vm3_vm0, %v5124_v7  }
 0x12d   :  { %340 = vst.msk [vmem:[#allocation0 + $0x9] ss:$48 sm:$0x30] %vm3_vm0, %v5124_v7   ;;  %1273 = vrot.lane.b32.xlu1 %v5168_v17, %s4516_s24 }
 0x12e   :  { %v1670_v22 = vld [vmem:[#allocation0 + $0x188] sm:$0x3]  ;;  %v1706_v23 = vld [vmem:[#allocation0 + $0x1b8] sm:$0x3] }
 0x12f   :  { %4112 = vst [vmem:[%s6772_s1 + $0x62] sm:$0x3] %v1670_v22  ;;  %v1742_v24 = vld [vmem:[#allocation0 + $0x1e8] sm:$0x3]  ;;  %v1778_v25 = vld [vmem:[#allocation0 + $0x218] sm:$0x3]  ;;  %1067 = vrot.lane.b32.xlu0 %v5257_v36, %s4514_s15 }
 0x130   :  { %4118 = vst [vmem:[%s6772_s1 + $0x6e] sm:$0x3] %v1706_v23  ;;  %v1814_v26 = vld [vmem:[#allocation0 + $0x248] sm:$0x3]  ;;  %v1850_v27 = vld [vmem:[#allocation0 + $0x278] sm:$0x3]  ;;  %v5485_v23 = vpop.permute.xlu0 %487  }
 0x131   :  { %4124 = vst [vmem:[%s6772_s1 + $0x7a] sm:$0x3] %v1742_v24  ;;  %v1886_v37 = vld [vmem:[#allocation0 + $0x2a8] sm:$0x3]  ;;  %v1922_v38 = vld [vmem:[#allocation0 + $0x2d8] sm:$0x3]  ;;  %1325 = vrot.lane.b32.xlu2 %v5239_v32, %s4516_s24 }
 0x132   :  { %4130 = vst [vmem:[%s6772_s1 + $0x86] sm:$0x3] %v1778_v25  ;;  %v1382_v28 = vld [vmem:[#allocation0 + $0x8] sm:$0x3]  ;;  %v1418_v29 = vld [vmem:[#allocation0 + $0x38] sm:$0x3] }
 0x133   :  { %4136 = vst [vmem:[%s6772_s1 + $0x92] sm:$0x3] %v1814_v26  ;;  %v1454_v30 = vld [vmem:[#allocation0 + $0x68] sm:$0x3]  ;;  %v1490_v31 = vld [vmem:[#allocation0 + $0x98] sm:$0x3] }
 0x134   :  { %4142 = vst [vmem:[%s6772_s1 + $0x9e] sm:$0x3] %v1850_v27  ;;  %v1526_v33 = vld [vmem:[#allocation0 + $0xc8] sm:$0x3]  ;;  %v1562_v34 = vld [vmem:[#allocation0 + $0xf8] sm:$0x3] }
 0x135   :  { %342 = vst.msk [vmem:[#allocation0 + $0x9] ss:$48 sm:$0xc0] %vm3_vm0, %v5124_v7   ;;  %1312 = vrot.lane.b32.xlu1 %v5252_v35, %s4516_s24 }
 0x136   :  { %4064 = vst [vmem:[%s6772_s1 + $0x2] sm:$0x3] %v1382_v28  ;;  %v669_v28 = vpop.permute.xlu2 %668  }
 0x137   :  { %4070 = vst [vmem:[%s6772_s1 + $0xe] sm:$0x3] %v1418_v29  ;;  %1106 = vrot.lane.b32.xlu0 %v5355_v59, %s4514_s15 }
 0x138   :  { %4076 = vst [vmem:[%s6772_s1 + $0x1a] sm:$0x3] %v1454_v30 }
 0x139   :  { %4082 = vst [vmem:[%s6772_s1 + $0x26] sm:$0x3] %v1490_v31  ;;  %1364 = vrot.lane.b32.xlu2 %v5331_v53, %s4516_s24 }
 0x13a   :  { %4088 = vst [vmem:[%s6772_s1 + $0x32] sm:$0x3] %v1526_v33 }
 0x13b   :  { %4094 = vst [vmem:[%s6772_s1 + $0x3e] sm:$0x3] %v1562_v34 }
 0x13c   :  { %v1598_v41 = vld [vmem:[#allocation0 + $0x128] sm:$0x3]  ;;  %v1634_v42 = vld [vmem:[#allocation0 + $0x158] sm:$0x3]  ;;  %4148 = vst [vmem:[%s6772_s1 + $0xaa] sm:$0x3] %v1886_v37  ;;  %v5559_v37 = vpop.permute.xlu0 %526  }
 0x13d   :  { %4154 = vst [vmem:[%s6772_s1 + $0xb6] sm:$0x3] %v1922_v38  ;;  %1351 = vrot.lane.b32.xlu1 %v5350_v58, %s4516_s24 }
 0x13e   :  { %4100 = vst [vmem:[%s6772_s1 + $0x4a] sm:$0x3] %v1598_v41 }
 0x13f   :  { %4106 = vst [vmem:[%s6772_s1 + $0x56] sm:$0x3] %v1634_v42  ;;  %1144 = vrot.lane.b32.xlu0 %v5173_v18, %s4515_s7  ;;  %v707_v42 = vpop.permute.xlu2 %706  }
 0x140   :  { %517 = vst.msk [vmem:[#allocation0 + $0x7c0] ss:$-48 sm:$0x3] %vm3_vm0, %v514_v19  }
 0x141   :  { %519 = vst.msk [vmem:[#allocation0 + $0x880] ss:$-48 sm:$0xc] %vm3_vm0, %v514_v19  }
 0x142   :  { %521 = vst.msk [vmem:[#allocation0 + $0x940] ss:$-48 sm:$0x30] %vm3_vm0, %v514_v19  }
 0x143   :  { %523 = vst.msk [vmem:[#allocation0 + $0xa00] ss:$-48 sm:$0xc0] %vm3_vm0, %v514_v19  }
 0x144   :  { %388 = vst.msk [vmem:[#allocation0 + $0x609] ss:$48 sm:$0x3] %vm3_vm0, %v5187_v20  }
 0x145   :  { %390 = vst.msk [vmem:[#allocation0 + $0x609] ss:$48 sm:$0xc] %vm3_vm0, %v5187_v20  }
 0x146   :  { %392 = vst.msk [vmem:[#allocation0 + $0x609] ss:$48 sm:$0x30] %vm3_vm0, %v5187_v20  }
 0x147   :  { %394 = vst.msk [vmem:[#allocation0 + $0x609] ss:$48 sm:$0xc0] %vm3_vm0, %v5187_v20   ;;  %1183 = vrot.lane.b32.xlu0 %v5257_v36, %s4515_s7 }
 0x148   :  { %375 = vst.msk [vmem:[#allocation0 + $0x489] ss:$48 sm:$0x3] %vm3_vm0, %v5203_v21  }
 0x149   :  { %377 = vst.msk [vmem:[#allocation0 + $0x489] ss:$48 sm:$0xc] %vm3_vm0, %v5203_v21  }
 0x14a   :  { %379 = vst.msk [vmem:[#allocation0 + $0x489] ss:$48 sm:$0x30] %vm3_vm0, %v5203_v21  }
 0x14b   :  { %v2534_v44 = vld [vmem:[#allocation0 + $0x608] sm:$0x3]  ;;  %v2570_v45 = vld [vmem:[#allocation0 + $0x638] sm:$0x3] }
 0x14c   :  { %4256 = vst [vmem:[%s6772_s1 + $0x182] sm:$0x3] %v2534_v44  ;;  %v2606_v46 = vld [vmem:[#allocation0 + $0x668] sm:$0x3]  ;;  %v2642_v47 = vld [vmem:[#allocation0 + $0x698] sm:$0x3] }
 0x14d   :  { %4262 = vst [vmem:[%s6772_s1 + $0x18e] sm:$0x3] %v2570_v45  ;;  %v2678_v48 = vld [vmem:[#allocation0 + $0x6c8] sm:$0x3]  ;;  %v2714_v49 = vld [vmem:[#allocation0 + $0x6f8] sm:$0x3] }
 0x14e   :  { %4268 = vst [vmem:[%s6772_s1 + $0x19a] sm:$0x3] %v2606_v46  ;;  %v2750_v50 = vld [vmem:[#allocation0 + $0x728] sm:$0x3]  ;;  %v2786_v51 = vld [vmem:[#allocation0 + $0x758] sm:$0x3] }
 0x14f   :  { %4274 = vst [vmem:[%s6772_s1 + $0x1a6] sm:$0x3] %v2642_v47  ;;  %v2246_v52 = vld [vmem:[#allocation0 + $0x488] sm:$0x3]  ;;  %v2282_v54 = vld [vmem:[#allocation0 + $0x4b8] sm:$0x3]  ;;  %1222 = vrot.lane.b32.xlu0 %v5355_v59, %s4515_s7 }
 0x150   :  { %4280 = vst [vmem:[%s6772_s1 + $0x1b2] sm:$0x3] %v2678_v48  ;;  %v2318_v55 = vld [vmem:[#allocation0 + $0x4e8] sm:$0x3]  ;;  %v2354_v56 = vld [vmem:[#allocation0 + $0x518] sm:$0x3]  ;;  %v5595_v48 = vpop.permute.xlu0 %564  }
 0x151   :  { %4286 = vst [vmem:[%s6772_s1 + $0x1be] sm:$0x3] %v2714_v49  ;;  %v2390_v57 = vld [vmem:[#allocation0 + $0x548] sm:$0x3]  ;;  %v2426_v60 = vld [vmem:[#allocation0 + $0x578] sm:$0x3] }
 0x152   :  { %381 = vst.msk [vmem:[#allocation0 + $0x489] ss:$48 sm:$0xc0] %vm3_vm0, %v5203_v21   ;;  %v5467_v21 = vpop.permute.xlu1 %500  }
 0x153   :  { %4292 = vst [vmem:[%s6772_s1 + $0x1ca] sm:$0x3] %v2750_v50 }
 0x154   :  { %4298 = vst [vmem:[%s6772_s1 + $0x1d6] sm:$0x3] %v2786_v51 }
 0x155   :  { %4208 = vst [vmem:[%s6772_s1 + $0x122] sm:$0x3] %v2246_v52 }
 0x156   :  { %4214 = vst [vmem:[%s6772_s1 + $0x12e] sm:$0x3] %v2282_v54 }
 0x157   :  { %4220 = vst [vmem:[%s6772_s1 + $0x13a] sm:$0x3] %v2318_v55  ;;  %1260 = vrot.lane.b32.xlu0 %v5173_v18, %s4516_s24 }
 0x158   :  { %4226 = vst [vmem:[%s6772_s1 + $0x146] sm:$0x3] %v2354_v56  ;;  %v5670_v53 = vpop.permute.xlu0 %603  }
 0x159   :  { %v2462_v61 = vld [vmem:[#allocation0 + $0x5a8] sm:$0x3]  ;;  %v2498_v62 = vld [vmem:[#allocation0 + $0x5d8] sm:$0x3]  ;;  %4232 = vst [vmem:[%s6772_s1 + $0x152] sm:$0x3] %v2390_v57 }
 0x15a   :  { %4238 = vst [vmem:[%s6772_s1 + $0x15e] sm:$0x3] %v2426_v60  ;;  %v5539_v34 = vpop.permute.xlu1 %539  }
 0x15b   :  { %4244 = vst [vmem:[%s6772_s1 + $0x16a] sm:$0x3] %v2462_v61 }
 0x15c   :  { %4250 = vst [vmem:[%s6772_s1 + $0x176] sm:$0x3] %v2498_v62 }
 0x15d   :  { %556 = vst.msk [vmem:[#allocation0 + $0xc40] ss:$-48 sm:$0x3] %vm3_vm0, %v5272_v39  }
 0x15e   :  { %558 = vst.msk [vmem:[#allocation0 + $0xd00] ss:$-48 sm:$0xc] %vm3_vm0, %v5272_v39  }
 0x15f   :  { %560 = vst.msk [vmem:[#allocation0 + $0xdc0] ss:$-48 sm:$0x30] %vm3_vm0, %v5272_v39   ;;  %1299 = vrot.lane.b32.xlu0 %v5257_v36, %s4516_s24  ;;  %v746_v36 = vpop.permute.xlu2 %745  }
 0x160   :  { %562 = vst.msk [vmem:[#allocation0 + $0xe80] ss:$-48 sm:$0xc0] %vm3_vm0, %v5272_v39  }
 0x161   :  { %427 = vst.msk [vmem:[#allocation0 + $0xa89] ss:$48 sm:$0x3] %vm3_vm0, %v5274_v40  }
 0x162   :  { %429 = vst.msk [vmem:[#allocation0 + $0xa89] ss:$48 sm:$0xc] %vm3_vm0, %v5274_v40   ;;  %v578_v47 = vpop.permute.xlu1 %577  }
 0x163   :  { %431 = vst.msk [vmem:[#allocation0 + $0xa89] ss:$48 sm:$0x30] %vm3_vm0, %v5274_v40  }
 0x164   :  { %433 = vst.msk [vmem:[#allocation0 + $0xa89] ss:$48 sm:$0xc0] %vm3_vm0, %v5274_v40  }
 0x165   :  { %414 = vst.msk [vmem:[#allocation0 + $0x909] ss:$48 sm:$0x3] %vm3_vm0, %v5292_v43  }
 0x166   :  { %416 = vst.msk [vmem:[#allocation0 + $0x909] ss:$48 sm:$0xc] %vm3_vm0, %v5292_v43  }
 0x167   :  { %418 = vst.msk [vmem:[#allocation0 + $0x909] ss:$48 sm:$0x30] %vm3_vm0, %v5292_v43   ;;  %1338 = vrot.lane.b32.xlu0 %v5355_v59, %s4516_s24 }
 0x168   :  { %v3398_v2 = vld [vmem:[#allocation0 + $0xa88] sm:$0x3]  ;;  %v3434_v3 = vld [vmem:[#allocation0 + $0xab8] sm:$0x3] }
 0x169   :  { %v3470_v4 = vld [vmem:[#allocation0 + $0xae8] sm:$0x3]  ;;  %4400 = vst [vmem:[%s6772_s1 + $0x2a2] sm:$0x3] %v3398_v2  ;;  %v3506_v5 = vld [vmem:[#allocation0 + $0xb18] sm:$0x3] }
 0x16a   :  { %4406 = vst [vmem:[%s6772_s1 + $0x2ae] sm:$0x3] %v3434_v3  ;;  %v3542_v6 = vld [vmem:[#allocation0 + $0xb48] sm:$0x3]  ;;  %v3578_v7 = vld [vmem:[#allocation0 + $0xb78] sm:$0x3]  ;;  %v5649_v52 = vpop.permute.xlu1 %616  }
 0x16b   :  { %4412 = vst [vmem:[%s6772_s1 + $0x2ba] sm:$0x3] %v3470_v4  ;;  %v3614_v8 = vld [vmem:[#allocation0 + $0xba8] sm:$0x3]  ;;  %v3650_v9 = vld [vmem:[#allocation0 + $0xbd8] sm:$0x3]  ;;  %v785_v4 = vpop.permute.xlu2 %784  }
 0x16c   :  { %420 = vst.msk [vmem:[#allocation0 + $0x909] ss:$48 sm:$0xc0] %vm3_vm0, %v5292_v43   ;;  %v3110_v11 = vld [vmem:[#allocation0 + $0x908] sm:$0x3] }
 0x16d   :  { %4418 = vst [vmem:[%s6772_s1 + $0x2c6] sm:$0x3] %v3506_v5  ;;  %v3146_v12 = vld [vmem:[#allocation0 + $0x938] sm:$0x3]  ;;  %v3182_v16 = vld [vmem:[#allocation0 + $0x968] sm:$0x3] }
 0x16e   :  { %4424 = vst [vmem:[%s6772_s1 + $0x2d2] sm:$0x3] %v3542_v6  ;;  %v3218_v19 = vld [vmem:[#allocation0 + $0x998] sm:$0x3]  ;;  %v3254_v20 = vld [vmem:[#allocation0 + $0x9c8] sm:$0x3] }
 0x16f   :  { %4430 = vst [vmem:[%s6772_s1 + $0x2de] sm:$0x3] %v3578_v7  ;;  %v3290_v22 = vld [vmem:[#allocation0 + $0x9f8] sm:$0x3] }
 0x170   :  { %4436 = vst [vmem:[%s6772_s1 + $0x2ea] sm:$0x3] %v3614_v8  ;;  %v5735_v8 = vpop.permute.xlu0 %642  }
 0x171   :  { %4442 = vst [vmem:[%s6772_s1 + $0x2f6] sm:$0x3] %v3650_v9 }
 0x172   :  { %4352 = vst [vmem:[%s6772_s1 + $0x242] sm:$0x3] %v3110_v11  ;;  %v656_v5 = vpop.permute.xlu1 %655  }
 0x173   :  { %v3326_v13 = vld [vmem:[#allocation0 + $0xa28] sm:$0x3]  ;;  %v3362_v14 = vld [vmem:[#allocation0 + $0xa58] sm:$0x3]  ;;  %4358 = vst [vmem:[%s6772_s1 + $0x24e] sm:$0x3] %v3146_v12 }
 0x174   :  { %4388 = vst [vmem:[%s6772_s1 + $0x28a] sm:$0x3] %v3326_v13 }
 0x175   :  { %4394 = vst [vmem:[%s6772_s1 + $0x296] sm:$0x3] %v3362_v14 }
 0x176   :  { %4364 = vst [vmem:[%s6772_s1 + $0x25a] sm:$0x3] %v3182_v16 }
 0x177   :  { %4370 = vst [vmem:[%s6772_s1 + $0x266] sm:$0x3] %v3218_v19 }
 0x178   :  { %4376 = vst [vmem:[%s6772_s1 + $0x272] sm:$0x3] %v3254_v20 }
 0x179   :  { %4382 = vst [vmem:[%s6772_s1 + $0x27e] sm:$0x3] %v3290_v22 }
 0x17a   :  { %594 = vst.msk [vmem:[#allocation0 + $0x341] ss:$-48 sm:$0x3] %vm3_vm0, %v5370_v63  }
 0x17b   :  { %596 = vst.msk [vmem:[#allocation0 + $0x401] ss:$-48 sm:$0xc] %vm3_vm0, %v5370_v63  }
 0x17c   :  { %598 = vst.msk [vmem:[#allocation0 + $0x4c1] ss:$-48 sm:$0x30] %vm3_vm0, %v5370_v63  }
 0x17d   :  { %600 = vst.msk [vmem:[#allocation0 + $0x581] ss:$-48 sm:$0xc0] %vm3_vm0, %v5370_v63  }
 0x17e   :  { %465 = vst.msk [vmem:[#allocation0 + $0x1c0] ss:$-48 sm:$0x3] %vm3_vm0, %v5385_v0  }
 0x17f   :  { %467 = vst.msk [vmem:[#allocation0 + $0x280] ss:$-48 sm:$0xc] %vm3_vm0, %v5385_v0  }
 0x180   :  { %469 = vst.msk [vmem:[#allocation0 + $0x340] ss:$-48 sm:$0x30] %vm3_vm0, %v5385_v0  }
 0x181   :  { %v1964_v24 = vld [vmem:[#allocation0 + $0x310] sm:$0x3]  ;;  %v2000_v25 = vld [vmem:[#allocation0 + $0x340] sm:$0x3] }
 0x182   :  { %v2036_v26 = vld [vmem:[#allocation0 + $0x370] sm:$0x3]  ;;  %4161 = vst [vmem:[%s6772_s1 + $0xc4] sm:$0x3] %v1964_v24  ;;  %v2072_v27 = vld [vmem:[#allocation0 + $0x3a0] sm:$0x3] }
 0x183   :  { %4167 = vst [vmem:[%s6772_s1 + $0xd0] sm:$0x3] %v2000_v25  ;;  %v2108_v29 = vld [vmem:[#allocation0 + $0x3d0] sm:$0x3]  ;;  %v2144_v30 = vld [vmem:[#allocation0 + $0x400] sm:$0x3] }
 0x184   :  { %4173 = vst [vmem:[%s6772_s1 + $0xdc] sm:$0x3] %v2036_v26  ;;  %v2180_v31 = vld [vmem:[#allocation0 + $0x430] sm:$0x3]  ;;  %v2216_v33 = vld [vmem:[#allocation0 + $0x460] sm:$0x3] }
 0x185   :  { %471 = vst.msk [vmem:[#allocation0 + $0x400] ss:$-48 sm:$0xc0] %vm3_vm0, %v5385_v0  }
 0x186   :  { %4179 = vst [vmem:[%s6772_s1 + $0xe8] sm:$0x3] %v2072_v27 }
 0x187   :  { %4185 = vst [vmem:[%s6772_s1 + $0xf4] sm:$0x3] %v2108_v29  ;;  %v5803_v29 = vpop.permute.xlu1 %693  }
 0x188   :  { %4191 = vst [vmem:[%s6772_s1 + $0x100] sm:$0x3] %v2144_v30  ;;  %v5817_v30 = vpop.permute.xlu0 %680  }
 0x189   :  { %4197 = vst [vmem:[%s6772_s1 + $0x10c] sm:$0x3] %v2180_v31 }
 0x18a   :  { %4203 = vst [vmem:[%s6772_s1 + $0x118] sm:$0x3] %v2216_v33 }
 0x18b   :  { %452 = vst.msk [vmem:[#allocation0 + $0x40] ss:$-48 sm:$0x3] %vm3_vm0, %v5409_v1  }
 0x18c   :  { %454 = vst.msk [vmem:[#allocation0 + $0x100] ss:$-48 sm:$0xc] %vm3_vm0, %v5409_v1  }
 0x18d   :  { %456 = vst.msk [vmem:[#allocation0 + $0x1c0] ss:$-48 sm:$0x30] %vm3_vm0, %v5409_v1  }
 0x18e   :  { %458 = vst.msk [vmem:[#allocation0 + $0x280] ss:$-48 sm:$0xc0] %vm3_vm0, %v5409_v1  }
 0x18f   :  { %633 = vst.msk [vmem:[#allocation0 + $0x7c1] ss:$-48 sm:$0x3] %vm3_vm0, %v5438_v10  }
 0x190   :  { %635 = vst.msk [vmem:[#allocation0 + $0x881] ss:$-48 sm:$0xc] %vm3_vm0, %v5438_v10  }
 0x191   :  { %637 = vst.msk [vmem:[#allocation0 + $0x941] ss:$-48 sm:$0x30] %vm3_vm0, %v5438_v10  }
 0x192   :  { %639 = vst.msk [vmem:[#allocation0 + $0xa01] ss:$-48 sm:$0xc0] %vm3_vm0, %v5438_v10  }
 0x193   :  { %504 = vst.msk [vmem:[#allocation0 + $0x640] ss:$-48 sm:$0x3] %vm3_vm0, %v5467_v21  }
 0x194   :  { %506 = vst.msk [vmem:[#allocation0 + $0x700] ss:$-48 sm:$0xc] %vm3_vm0, %v5467_v21  }
 0x195   :  { %508 = vst.msk [vmem:[#allocation0 + $0x7c0] ss:$-48 sm:$0x30] %vm3_vm0, %v5467_v21  }
 0x196   :  { %v2828_v38 = vld [vmem:[#allocation0 + $0x790] sm:$0x3]  ;;  %v2864_v41 = vld [vmem:[#allocation0 + $0x7c0] sm:$0x3] }
 0x197   :  { %v2900_v39 = vld [vmem:[#allocation0 + $0x7f0] sm:$0x3]  ;;  %v2936_v40 = vld [vmem:[#allocation0 + $0x820] sm:$0x3]  ;;  %4305 = vst [vmem:[%s6772_s1 + $0x1e4] sm:$0x3] %v2828_v38 }
 0x198   :  { %4317 = vst [vmem:[%s6772_s1 + $0x1fc] sm:$0x3] %v2900_v39  ;;  %v2972_v43 = vld [vmem:[#allocation0 + $0x850] sm:$0x3]  ;;  %v3008_v44 = vld [vmem:[#allocation0 + $0x880] sm:$0x3] }
 0x199   :  { %4323 = vst [vmem:[%s6772_s1 + $0x208] sm:$0x3] %v2936_v40  ;;  %v3044_v45 = vld [vmem:[#allocation0 + $0x8b0] sm:$0x3]  ;;  %v3080_v46 = vld [vmem:[#allocation0 + $0x8e0] sm:$0x3] }
 0x19a   :  { %510 = vst.msk [vmem:[#allocation0 + $0x880] ss:$-48 sm:$0xc0] %vm3_vm0, %v5467_v21  }
 0x19b   :  { %4311 = vst [vmem:[%s6772_s1 + $0x1f0] sm:$0x3] %v2864_v41 }
 0x19c   :  { %4329 = vst [vmem:[%s6772_s1 + $0x214] sm:$0x3] %v2972_v43 }
 0x19d   :  { %4335 = vst [vmem:[%s6772_s1 + $0x220] sm:$0x3] %v3008_v44 }
 0x19e   :  { %4341 = vst [vmem:[%s6772_s1 + $0x22c] sm:$0x3] %v3044_v45 }
 0x19f   :  { %4347 = vst [vmem:[%s6772_s1 + $0x238] sm:$0x3] %v3080_v46 }
 0x1a0   :  { %491 = vst.msk [vmem:[#allocation0 + $0x4c0] ss:$-48 sm:$0x3] %vm3_vm0, %v5485_v23  }
 0x1a1   :  { %493 = vst.msk [vmem:[#allocation0 + $0x580] ss:$-48 sm:$0xc] %vm3_vm0, %v5485_v23  }
 0x1a2   :  { %495 = vst.msk [vmem:[#allocation0 + $0x640] ss:$-48 sm:$0x30] %vm3_vm0, %v5485_v23  }
 0x1a3   :  { %497 = vst.msk [vmem:[#allocation0 + $0x700] ss:$-48 sm:$0xc0] %vm3_vm0, %v5485_v23  }
 0x1a4   :  { %672 = vst.msk [vmem:[#allocation0 + $0xc41] ss:$-48 sm:$0x3] %vm3_vm0, %v669_v28  }
 0x1a5   :  { %674 = vst.msk [vmem:[#allocation0 + $0xd01] ss:$-48 sm:$0xc] %vm3_vm0, %v669_v28  }
 0x1a6   :  { %676 = vst.msk [vmem:[#allocation0 + $0xdc1] ss:$-48 sm:$0x30] %vm3_vm0, %v669_v28  }
 0x1a7   :  { %678 = vst.msk [vmem:[#allocation0 + $0xe81] ss:$-48 sm:$0xc0] %vm3_vm0, %v669_v28   ;;  %v823_v28 = vpop.permute.xlu2 %822  }
 0x1a8   :  { %543 = vst.msk [vmem:[#allocation0 + $0xac0] ss:$-48 sm:$0x3] %vm3_vm0, %v5539_v34  }
 0x1a9   :  { %545 = vst.msk [vmem:[#allocation0 + $0xb80] ss:$-48 sm:$0xc] %vm3_vm0, %v5539_v34  }
 0x1aa   :  { %547 = vst.msk [vmem:[#allocation0 + $0xc40] ss:$-48 sm:$0x30] %vm3_vm0, %v5539_v34  }
 0x1ab   :  { %v3692_v15 = vld [vmem:[#allocation0 + $0xc10] sm:$0x3]  ;;  %v3728_v17 = vld [vmem:[#allocation0 + $0xc40] sm:$0x3] }
 0x1ac   :  { %4449 = vst [vmem:[%s6772_s1 + $0x304] sm:$0x3] %v3692_v15  ;;  %v3764_v18 = vld [vmem:[#allocation0 + $0xc70] sm:$0x3]  ;;  %v3800_v49 = vld [vmem:[#allocation0 + $0xca0] sm:$0x3] }
 0x1ad   :  { %4455 = vst [vmem:[%s6772_s1 + $0x310] sm:$0x3] %v3728_v17  ;;  %v3836_v50 = vld [vmem:[#allocation0 + $0xcd0] sm:$0x3]  ;;  %v3872_v51 = vld [vmem:[#allocation0 + $0xd00] sm:$0x3]  ;;  %v733_v17 = vpop.permute.xlu1 %732  }
 0x1ae   :  { %4461 = vst [vmem:[%s6772_s1 + $0x31c] sm:$0x3] %v3764_v18  ;;  %v3908_v32 = vld [vmem:[#allocation0 + $0xd30] sm:$0x3]  ;;  %v3944_v35 = vld [vmem:[#allocation0 + $0xd60] sm:$0x3] }
 0x1af   :  { %4467 = vst [vmem:[%s6772_s1 + $0x328] sm:$0x3] %v3800_v49  ;;  %v720_v49 = vpop.permute.xlu0 %719  }
 0x1b0   :  { %4473 = vst [vmem:[%s6772_s1 + $0x334] sm:$0x3] %v3836_v50 }
 0x1b1   :  { %4479 = vst [vmem:[%s6772_s1 + $0x340] sm:$0x3] %v3872_v51 }
 0x1b2   :  { %4485 = vst [vmem:[%s6772_s1 + $0x34c] sm:$0x3] %v3908_v32 }
 0x1b3   :  { %4491 = vst [vmem:[%s6772_s1 + $0x358] sm:$0x3] %v3944_v35 }
 0x1b4   :  { %549 = vst.msk [vmem:[#allocation0 + $0xd00] ss:$-48 sm:$0xc0] %vm3_vm0, %v5539_v34  }
 0x1b5   :  { %530 = vst.msk [vmem:[#allocation0 + $0x940] ss:$-48 sm:$0x3] %vm3_vm0, %v5559_v37  }
 0x1b6   :  { %532 = vst.msk [vmem:[#allocation0 + $0xa00] ss:$-48 sm:$0xc] %vm3_vm0, %v5559_v37  }
 0x1b7   :  { %534 = vst.msk [vmem:[#allocation0 + $0xac0] ss:$-48 sm:$0x30] %vm3_vm0, %v5559_v37  }
 0x1b8   :  { %536 = vst.msk [vmem:[#allocation0 + $0xb80] ss:$-48 sm:$0xc0] %vm3_vm0, %v5559_v37  }
 0x1b9   :  { %710 = vst.msk [vmem:[#allocation0 + $0x348] ss:$-48 sm:$0x3] %vm3_vm0, %v707_v42  }
 0x1ba   :  { %712 = vst.msk [vmem:[#allocation0 + $0x408] ss:$-48 sm:$0xc] %vm3_vm0, %v707_v42  }
 0x1bb   :  { %714 = vst.msk [vmem:[#allocation0 + $0x4c8] ss:$-48 sm:$0x30] %vm3_vm0, %v707_v42  }
 0x1bc   :  { %716 = vst.msk [vmem:[#allocation0 + $0x588] ss:$-48 sm:$0xc0] %vm3_vm0, %v707_v42   ;;  %v862_v42 = vpop.permute.xlu2 %861  }
 0x1bd   :  { %581 = vst.msk [vmem:[#allocation0 + $0x1c1] ss:$-48 sm:$0x3] %vm3_vm0, %v578_v47  }
 0x1be   :  { %583 = vst.msk [vmem:[#allocation0 + $0x281] ss:$-48 sm:$0xc] %vm3_vm0, %v578_v47  }
 0x1bf   :  { %585 = vst.msk [vmem:[#allocation0 + $0x341] ss:$-48 sm:$0x30] %vm3_vm0, %v578_v47  }
 0x1c0   :  { %587 = vst.msk [vmem:[#allocation0 + $0x401] ss:$-48 sm:$0xc0] %vm3_vm0, %v578_v47  }
 0x1c1   :  { %568 = vst.msk [vmem:[#allocation0 + $0x41] ss:$-48 sm:$0x3] %vm3_vm0, %v5595_v48  }
 0x1c2   :  { %570 = vst.msk [vmem:[#allocation0 + $0x101] ss:$-48 sm:$0xc] %vm3_vm0, %v5595_v48  }
 0x1c3   :  { %572 = vst.msk [vmem:[#allocation0 + $0x1c1] ss:$-48 sm:$0x30] %vm3_vm0, %v5595_v48  }
 0x1c4   :  { %v1676_v54 = vld [vmem:[#allocation0 + $0x190] sm:$0x3]  ;;  %v1712_v55 = vld [vmem:[#allocation0 + $0x1c0] sm:$0x3]  ;;  %v901_v35 = vpop.permute.xlu2 %900  }
 0x1c5   :  { %4113 = vst [vmem:[%s6772_s1 + $0x64] sm:$0x3] %v1676_v54  ;;  %v1748_v56 = vld [vmem:[#allocation0 + $0x1f0] sm:$0x3]  ;;  %v1784_v57 = vld [vmem:[#allocation0 + $0x220] sm:$0x3] }
 0x1c6   :  { %4119 = vst [vmem:[%s6772_s1 + $0x70] sm:$0x3] %v1712_v55  ;;  %v1820_v58 = vld [vmem:[#allocation0 + $0x250] sm:$0x3]  ;;  %v1856_v59 = vld [vmem:[#allocation0 + $0x280] sm:$0x3] }
 0x1c7   :  { %4125 = vst [vmem:[%s6772_s1 + $0x7c] sm:$0x3] %v1748_v56  ;;  %v1892_v0 = vld [vmem:[#allocation0 + $0x2b0] sm:$0x3]  ;;  %v1928_v1 = vld [vmem:[#allocation0 + $0x2e0] sm:$0x3]  ;;  %v772_v56 = vpop.permute.xlu1 %771  }
 0x1c8   :  { %4131 = vst [vmem:[%s6772_s1 + $0x88] sm:$0x3] %v1784_v57  ;;  %v1388_v60 = vld [vmem:[#allocation0 + $0x10] sm:$0x3]  ;;  %v1424_v61 = vld [vmem:[#allocation0 + $0x40] sm:$0x3]  ;;  %v759_v57 = vpop.permute.xlu0 %758  }
 0x1c9   :  { %4137 = vst [vmem:[%s6772_s1 + $0x94] sm:$0x3] %v1820_v58  ;;  %v1460_v62 = vld [vmem:[#allocation0 + $0x70] sm:$0x3]  ;;  %v1496_v63 = vld [vmem:[#allocation0 + $0xa0] sm:$0x3] }
 0x1ca   :  { %4143 = vst [vmem:[%s6772_s1 + $0xa0] sm:$0x3] %v1856_v59  ;;  %v1532_v2 = vld [vmem:[#allocation0 + $0xd0] sm:$0x3]  ;;  %v1568_v3 = vld [vmem:[#allocation0 + $0x100] sm:$0x3] }
 0x1cb   :  { %574 = vst.msk [vmem:[#allocation0 + $0x281] ss:$-48 sm:$0xc0] %vm3_vm0, %v5595_v48  }
 0x1cc   :  { %4065 = vst [vmem:[%s6772_s1 + $0x4] sm:$0x3] %v1388_v60 }
 0x1cd   :  { %4071 = vst [vmem:[%s6772_s1 + $0x10] sm:$0x3] %v1424_v61 }
 0x1ce   :  { %4077 = vst [vmem:[%s6772_s1 + $0x1c] sm:$0x3] %v1460_v62  ;;  %v939_v62 = vpop.permute.xlu2 %938  }
 0x1cf   :  { %4083 = vst [vmem:[%s6772_s1 + $0x28] sm:$0x3] %v1496_v63 }
 0x1d0   :  { %4149 = vst [vmem:[%s6772_s1 + $0xac] sm:$0x3] %v1892_v0 }
 0x1d1   :  { %4155 = vst [vmem:[%s6772_s1 + $0xb8] sm:$0x3] %v1928_v1 }
 0x1d2   :  { %v1604_v6 = vld [vmem:[#allocation0 + $0x130] sm:$0x3]  ;;  %v1640_v7 = vld [vmem:[#allocation0 + $0x160] sm:$0x3]  ;;  %4089 = vst [vmem:[%s6772_s1 + $0x34] sm:$0x3] %v1532_v2 }
 0x1d3   :  { %4095 = vst [vmem:[%s6772_s1 + $0x40] sm:$0x3] %v1568_v3  ;;  %v810_v3 = vpop.permute.xlu1 %809  }
 0x1d4   :  { %4101 = vst [vmem:[%s6772_s1 + $0x4c] sm:$0x3] %v1604_v6 }
 0x1d5   :  { %4107 = vst [vmem:[%s6772_s1 + $0x58] sm:$0x3] %v1640_v7 }
 0x1d6   :  { %749 = vst.msk [vmem:[#allocation0 + $0x7c8] ss:$-48 sm:$0x3] %vm3_vm0, %v746_v36  }
 0x1d7   :  { %751 = vst.msk [vmem:[#allocation0 + $0x888] ss:$-48 sm:$0xc] %vm3_vm0, %v746_v36  }
 0x1d8   :  { %753 = vst.msk [vmem:[#allocation0 + $0x948] ss:$-48 sm:$0x30] %vm3_vm0, %v746_v36  }
 0x1d9   :  { %755 = vst.msk [vmem:[#allocation0 + $0xa08] ss:$-48 sm:$0xc0] %vm3_vm0, %v746_v36  }
 0x1da   :  { %620 = vst.msk [vmem:[#allocation0 + $0x641] ss:$-48 sm:$0x3] %vm3_vm0, %v5649_v52  }
 0x1db   :  { %622 = vst.msk [vmem:[#allocation0 + $0x701] ss:$-48 sm:$0xc] %vm3_vm0, %v5649_v52  }
 0x1dc   :  { %624 = vst.msk [vmem:[#allocation0 + $0x7c1] ss:$-48 sm:$0x30] %vm3_vm0, %v5649_v52  }
 0x1dd   :  { %626 = vst.msk [vmem:[#allocation0 + $0x881] ss:$-48 sm:$0xc0] %vm3_vm0, %v5649_v52  }
 0x1de   :  { %607 = vst.msk [vmem:[#allocation0 + $0x4c1] ss:$-48 sm:$0x3] %vm3_vm0, %v5670_v53  }
 0x1df   :  { %609 = vst.msk [vmem:[#allocation0 + $0x581] ss:$-48 sm:$0xc] %vm3_vm0, %v5670_v53  }
 0x1e0   :  { %611 = vst.msk [vmem:[#allocation0 + $0x641] ss:$-48 sm:$0x30] %vm3_vm0, %v5670_v53  }
 0x1e1   :  { %v2540_v9 = vld [vmem:[#allocation0 + $0x610] sm:$0x3]  ;;  %v2576_v10 = vld [vmem:[#allocation0 + $0x640] sm:$0x3] }
 0x1e2   :  { %v2612_v11 = vld [vmem:[#allocation0 + $0x670] sm:$0x3]  ;;  %4257 = vst [vmem:[%s6772_s1 + $0x184] sm:$0x3] %v2540_v9  ;;  %v2648_v14 = vld [vmem:[#allocation0 + $0x6a0] sm:$0x3] }
 0x1e3   :  { %4263 = vst [vmem:[%s6772_s1 + $0x190] sm:$0x3] %v2576_v10  ;;  %v2684_v16 = vld [vmem:[#allocation0 + $0x6d0] sm:$0x3]  ;;  %v2720_v19 = vld [vmem:[#allocation0 + $0x700] sm:$0x3] }
 0x1e4   :  { %v2756_v12 = vld [vmem:[#allocation0 + $0x730] sm:$0x3]  ;;  %v2792_v13 = vld [vmem:[#allocation0 + $0x760] sm:$0x3]  ;;  %4269 = vst [vmem:[%s6772_s1 + $0x19c] sm:$0x3] %v2612_v11 }
 0x1e5   :  { %4293 = vst [vmem:[%s6772_s1 + $0x1cc] sm:$0x3] %v2756_v12  ;;  %v2252_v20 = vld [vmem:[#allocation0 + $0x490] sm:$0x3]  ;;  %v2288_v21 = vld [vmem:[#allocation0 + $0x4c0] sm:$0x3] }
 0x1e6   :  { %4299 = vst [vmem:[%s6772_s1 + $0x1d8] sm:$0x3] %v2792_v13  ;;  %v2324_v22 = vld [vmem:[#allocation0 + $0x4f0] sm:$0x3]  ;;  %v2360_v23 = vld [vmem:[#allocation0 + $0x520] sm:$0x3]  ;;  %v978_v13 = vpop.permute.xlu2 %977  }
 0x1e7   :  { %613 = vst.msk [vmem:[#allocation0 + $0x701] ss:$-48 sm:$0xc0] %vm3_vm0, %v5670_v53   ;;  %v2396_v24 = vld [vmem:[#allocation0 + $0x550] sm:$0x3] }
 0x1e8   :  { %4275 = vst [vmem:[%s6772_s1 + $0x1a8] sm:$0x3] %v2648_v14  ;;  %v2432_v27 = vld [vmem:[#allocation0 + $0x580] sm:$0x3]  ;;  %v849_v14 = vpop.permute.xlu1 %848  }
 0x1e9   :  { %4281 = vst [vmem:[%s6772_s1 + $0x1b4] sm:$0x3] %v2684_v16 }
 0x1ea   :  { %4287 = vst [vmem:[%s6772_s1 + $0x1c0] sm:$0x3] %v2720_v19 }
 0x1eb   :  { %4209 = vst [vmem:[%s6772_s1 + $0x124] sm:$0x3] %v2252_v20 }
 0x1ec   :  { %4215 = vst [vmem:[%s6772_s1 + $0x130] sm:$0x3] %v2288_v21 }
 0x1ed   :  { %4221 = vst [vmem:[%s6772_s1 + $0x13c] sm:$0x3] %v2324_v22 }
 0x1ee   :  { %v2468_v25 = vld [vmem:[#allocation0 + $0x5b0] sm:$0x3]  ;;  %v2504_v26 = vld [vmem:[#allocation0 + $0x5e0] sm:$0x3]  ;;  %4227 = vst [vmem:[%s6772_s1 + $0x148] sm:$0x3] %v2360_v23 }
 0x1ef   :  { %4245 = vst [vmem:[%s6772_s1 + $0x16c] sm:$0x3] %v2468_v25 }
 0x1f0   :  { %4251 = vst [vmem:[%s6772_s1 + $0x178] sm:$0x3] %v2504_v26 }
 0x1f1   :  { %4233 = vst [vmem:[%s6772_s1 + $0x154] sm:$0x3] %v2396_v24 }
 0x1f2   :  { %4239 = vst [vmem:[%s6772_s1 + $0x160] sm:$0x3] %v2432_v27 }
 0x1f3   :  { %788 = vst.msk [vmem:[#allocation0 + $0xc48] ss:$-48 sm:$0x3] %vm3_vm0, %v785_v4  }
 0x1f4   :  { %790 = vst.msk [vmem:[#allocation0 + $0xd08] ss:$-48 sm:$0xc] %vm3_vm0, %v785_v4  }
 0x1f5   :  { %792 = vst.msk [vmem:[#allocation0 + $0xdc8] ss:$-48 sm:$0x30] %vm3_vm0, %v785_v4  }
 0x1f6   :  { %794 = vst.msk [vmem:[#allocation0 + $0xe88] ss:$-48 sm:$0xc0] %vm3_vm0, %v785_v4   ;;  %v797_v4 = vpop.permute.xlu0 %796  }
 0x1f7   :  { %659 = vst.msk [vmem:[#allocation0 + $0xac1] ss:$-48 sm:$0x3] %vm3_vm0, %v656_v5  }
 0x1f8   :  { %661 = vst.msk [vmem:[#allocation0 + $0xb81] ss:$-48 sm:$0xc] %vm3_vm0, %v656_v5  }
 0x1f9   :  { %663 = vst.msk [vmem:[#allocation0 + $0xc41] ss:$-48 sm:$0x30] %vm3_vm0, %v656_v5  }
 0x1fa   :  { %665 = vst.msk [vmem:[#allocation0 + $0xd01] ss:$-48 sm:$0xc0] %vm3_vm0, %v656_v5  }
 0x1fb   :  { %646 = vst.msk [vmem:[#allocation0 + $0x941] ss:$-48 sm:$0x3] %vm3_vm0, %v5735_v8  }
 0x1fc   :  { %648 = vst.msk [vmem:[#allocation0 + $0xa01] ss:$-48 sm:$0xc] %vm3_vm0, %v5735_v8  }
 0x1fd   :  { %650 = vst.msk [vmem:[#allocation0 + $0xac1] ss:$-48 sm:$0x30] %vm3_vm0, %v5735_v8  }
 0x1fe   :  { %v3404_v31 = vld [vmem:[#allocation0 + $0xa90] sm:$0x3]  ;;  %v3440_v37 = vld [vmem:[#allocation0 + $0xac0] sm:$0x3]  ;;  %v5991_v16 = vpop.permute.xlu0 %835  }
 0x1ff   :  { %v3476_v33 = vld [vmem:[#allocation0 + $0xaf0] sm:$0x3]  ;;  %v3512_v34 = vld [vmem:[#allocation0 + $0xb20] sm:$0x3]  ;;  %4401 = vst [vmem:[%s6772_s1 + $0x2a4] sm:$0x3] %v3404_v31 }
 0x200   :  { %4413 = vst [vmem:[%s6772_s1 + $0x2bc] sm:$0x3] %v3476_v33  ;;  %v3548_v38 = vld [vmem:[#allocation0 + $0xb50] sm:$0x3]  ;;  %v3584_v39 = vld [vmem:[#allocation0 + $0xb80] sm:$0x3]  ;;  %v1017_v33 = vpop.permute.xlu2 %1016  }
 0x201   :  { %4419 = vst [vmem:[%s6772_s1 + $0x2c8] sm:$0x3] %v3512_v34  ;;  %v3620_v40 = vld [vmem:[#allocation0 + $0xbb0] sm:$0x3]  ;;  %v3656_v41 = vld [vmem:[#allocation0 + $0xbe0] sm:$0x3] }
 0x202   :  { %652 = vst.msk [vmem:[#allocation0 + $0xb81] ss:$-48 sm:$0xc0] %vm3_vm0, %v5735_v8   ;;  %v3116_v43 = vld [vmem:[#allocation0 + $0x910] sm:$0x3] }
 0x203   :  { %4407 = vst [vmem:[%s6772_s1 + $0x2b0] sm:$0x3] %v3440_v37  ;;  %v3152_v44 = vld [vmem:[#allocation0 + $0x940] sm:$0x3]  ;;  %v3188_v47 = vld [vmem:[#allocation0 + $0x970] sm:$0x3] }
 0x204   :  { %4425 = vst [vmem:[%s6772_s1 + $0x2d4] sm:$0x3] %v3548_v38  ;;  %v3224_v48 = vld [vmem:[#allocation0 + $0x9a0] sm:$0x3]  ;;  %v3260_v15 = vld [vmem:[#allocation0 + $0x9d0] sm:$0x3]  ;;  %v888_v38 = vpop.permute.xlu1 %887  }
 0x205   :  { %4431 = vst [vmem:[%s6772_s1 + $0x2e0] sm:$0x3] %v3584_v39  ;;  %v3296_v18 = vld [vmem:[#allocation0 + $0xa00] sm:$0x3] }
 0x206   :  { %4437 = vst [vmem:[%s6772_s1 + $0x2ec] sm:$0x3] %v3620_v40  ;;  %v6051_v40 = vpop.permute.xlu0 %874  }
 0x207   :  { %4443 = vst [vmem:[%s6772_s1 + $0x2f8] sm:$0x3] %v3656_v41 }
 0x208   :  { %4353 = vst [vmem:[%s6772_s1 + $0x244] sm:$0x3] %v3116_v43 }
 0x209   :  { %v3332_v45 = vld [vmem:[#allocation0 + $0xa30] sm:$0x3]  ;;  %v3368_v46 = vld [vmem:[#allocation0 + $0xa60] sm:$0x3]  ;;  %4359 = vst [vmem:[%s6772_s1 + $0x250] sm:$0x3] %v3152_v44 }
 0x20a   :  { %4389 = vst [vmem:[%s6772_s1 + $0x28c] sm:$0x3] %v3332_v45 }
 0x20b   :  { %4395 = vst [vmem:[%s6772_s1 + $0x298] sm:$0x3] %v3368_v46 }
 0x20c   :  { %4365 = vst [vmem:[%s6772_s1 + $0x25c] sm:$0x3] %v3188_v47 }
 0x20d   :  { %4371 = vst [vmem:[%s6772_s1 + $0x268] sm:$0x3] %v3224_v48 }
 0x20e   :  { %4377 = vst [vmem:[%s6772_s1 + $0x274] sm:$0x3] %v3260_v15 }
 0x20f   :  { %4383 = vst [vmem:[%s6772_s1 + $0x280] sm:$0x3] %v3296_v18 }
 0x210   :  { %826 = vst.msk [vmem:[#allocation0 + $0x349] ss:$-48 sm:$0x3] %vm3_vm0, %v823_v28  }
 0x211   :  { %828 = vst.msk [vmem:[#allocation0 + $0x409] ss:$-48 sm:$0xc] %vm3_vm0, %v823_v28  }
 0x212   :  { %830 = vst.msk [vmem:[#allocation0 + $0x4c9] ss:$-48 sm:$0x30] %vm3_vm0, %v823_v28  }
 0x213   :  { %832 = vst.msk [vmem:[#allocation0 + $0x589] ss:$-48 sm:$0xc0] %vm3_vm0, %v823_v28  }
 0x214   :  { %697 = vst.msk [vmem:[#allocation0 + $0x1c8] ss:$-48 sm:$0x3] %vm3_vm0, %v5803_v29  }
 0x215   :  { %699 = vst.msk [vmem:[#allocation0 + $0x288] ss:$-48 sm:$0xc] %vm3_vm0, %v5803_v29  }
 0x216   :  { %701 = vst.msk [vmem:[#allocation0 + $0x348] ss:$-48 sm:$0x30] %vm3_vm0, %v5803_v29  }
 0x217   :  { %v1970_v50 = vld [vmem:[#allocation0 + $0x318] sm:$0x3]  ;;  %v2006_v51 = vld [vmem:[#allocation0 + $0x348] sm:$0x3] }
 0x218   :  { %v2042_v32 = vld [vmem:[#allocation0 + $0x378] sm:$0x3]  ;;  %4162 = vst [vmem:[%s6772_s1 + $0xc6] sm:$0x3] %v1970_v50  ;;  %v2078_v53 = vld [vmem:[#allocation0 + $0x3a8] sm:$0x3] }
 0x219   :  { %4168 = vst [vmem:[%s6772_s1 + $0xd2] sm:$0x3] %v2006_v51  ;;  %v2114_v54 = vld [vmem:[#allocation0 + $0x3d8] sm:$0x3]  ;;  %v2150_v55 = vld [vmem:[#allocation0 + $0x408] sm:$0x3] }
 0x21a   :  { %v2186_v36 = vld [vmem:[#allocation0 + $0x438] sm:$0x3]  ;;  %v2222_v52 = vld [vmem:[#allocation0 + $0x468] sm:$0x3]  ;;  %4174 = vst [vmem:[%s6772_s1 + $0xde] sm:$0x3] %v2042_v32 }
 0x21b   :  { %4198 = vst [vmem:[%s6772_s1 + $0x10e] sm:$0x3] %v2186_v36 }
 0x21c   :  { %4204 = vst [vmem:[%s6772_s1 + $0x11a] sm:$0x3] %v2222_v52  ;;  %v6110_v52 = vpop.permute.xlu1 %925  }
 0x21d   :  { %703 = vst.msk [vmem:[#allocation0 + $0x408] ss:$-48 sm:$0xc0] %vm3_vm0, %v5803_v29  }
 0x21e   :  { %4180 = vst [vmem:[%s6772_s1 + $0xea] sm:$0x3] %v2078_v53  ;;  %v6122_v53 = vpop.permute.xlu0 %912  }
 0x21f   :  { %4186 = vst [vmem:[%s6772_s1 + $0xf6] sm:$0x3] %v2114_v54 }
 0x220   :  { %4192 = vst [vmem:[%s6772_s1 + $0x102] sm:$0x3] %v2150_v55 }
 0x221   :  { %684 = vst.msk [vmem:[#allocation0 + $0x48] ss:$-48 sm:$0x3] %vm3_vm0, %v5817_v30  }
 0x222   :  { %686 = vst.msk [vmem:[#allocation0 + $0x108] ss:$-48 sm:$0xc] %vm3_vm0, %v5817_v30  }
 0x223   :  { %688 = vst.msk [vmem:[#allocation0 + $0x1c8] ss:$-48 sm:$0x30] %vm3_vm0, %v5817_v30  }
 0x224   :  { %690 = vst.msk [vmem:[#allocation0 + $0x288] ss:$-48 sm:$0xc0] %vm3_vm0, %v5817_v30  }
 0x225   :  { %865 = vst.msk [vmem:[#allocation0 + $0x7c9] ss:$-48 sm:$0x3] %vm3_vm0, %v862_v42  }
 0x226   :  { %867 = vst.msk [vmem:[#allocation0 + $0x889] ss:$-48 sm:$0xc] %vm3_vm0, %v862_v42  }
 0x227   :  { %869 = vst.msk [vmem:[#allocation0 + $0x949] ss:$-48 sm:$0x30] %vm3_vm0, %v862_v42  }
 0x228   :  { %871 = vst.msk [vmem:[#allocation0 + $0xa09] ss:$-48 sm:$0xc0] %vm3_vm0, %v862_v42  }
 0x229   :  { %736 = vst.msk [vmem:[#allocation0 + $0x648] ss:$-48 sm:$0x3] %vm3_vm0, %v733_v17  }
 0x22a   :  { %738 = vst.msk [vmem:[#allocation0 + $0x708] ss:$-48 sm:$0xc] %vm3_vm0, %v733_v17  }
 0x22b   :  { %740 = vst.msk [vmem:[#allocation0 + $0x7c8] ss:$-48 sm:$0x30] %vm3_vm0, %v733_v17  }
 0x22c   :  { %v2834_v58 = vld [vmem:[#allocation0 + $0x798] sm:$0x3]  ;;  %v2870_v59 = vld [vmem:[#allocation0 + $0x7c8] sm:$0x3] }
 0x22d   :  { %v2906_v60 = vld [vmem:[#allocation0 + $0x7f8] sm:$0x3]  ;;  %4306 = vst [vmem:[%s6772_s1 + $0x1e6] sm:$0x3] %v2834_v58  ;;  %v2942_v61 = vld [vmem:[#allocation0 + $0x828] sm:$0x3] }
 0x22e   :  { %4312 = vst [vmem:[%s6772_s1 + $0x1f2] sm:$0x3] %v2870_v59  ;;  %v2978_v63 = vld [vmem:[#allocation0 + $0x858] sm:$0x3]  ;;  %v3014_v0 = vld [vmem:[#allocation0 + $0x888] sm:$0x3] }
 0x22f   :  { %4318 = vst [vmem:[%s6772_s1 + $0x1fe] sm:$0x3] %v2906_v60  ;;  %v3050_v1 = vld [vmem:[#allocation0 + $0x8b8] sm:$0x3]  ;;  %v3086_v2 = vld [vmem:[#allocation0 + $0x8e8] sm:$0x3] }
 0x230   :  { %742 = vst.msk [vmem:[#allocation0 + $0x888] ss:$-48 sm:$0xc0] %vm3_vm0, %v733_v17  }
 0x231   :  { %4324 = vst [vmem:[%s6772_s1 + $0x20a] sm:$0x3] %v2942_v61 }
 0x232   :  { %4330 = vst [vmem:[%s6772_s1 + $0x216] sm:$0x3] %v2978_v63 }
 0x233   :  { %4336 = vst [vmem:[%s6772_s1 + $0x222] sm:$0x3] %v3014_v0 }
 0x234   :  { %4342 = vst [vmem:[%s6772_s1 + $0x22e] sm:$0x3] %v3050_v1 }
 0x235   :  { %4348 = vst [vmem:[%s6772_s1 + $0x23a] sm:$0x3] %v3086_v2  ;;  %v965_v2 = vpop.permute.xlu1 %964  }
 0x236   :  { %723 = vst.msk [vmem:[#allocation0 + $0x4c8] ss:$-48 sm:$0x3] %vm3_vm0, %v720_v49  }
 0x237   :  { %725 = vst.msk [vmem:[#allocation0 + $0x588] ss:$-48 sm:$0xc] %vm3_vm0, %v720_v49  }
 0x238   :  { %727 = vst.msk [vmem:[#allocation0 + $0x648] ss:$-48 sm:$0x30] %vm3_vm0, %v720_v49  }
 0x239   :  { %729 = vst.msk [vmem:[#allocation0 + $0x708] ss:$-48 sm:$0xc0] %vm3_vm0, %v720_v49   ;;  %v1055_v49 = vpop.permute.xlu2 %1054  }
 0x23a   :  { %904 = vst.msk [vmem:[#allocation0 + $0xc49] ss:$-48 sm:$0x3] %vm3_vm0, %v901_v35  }
 0x23b   :  { %906 = vst.msk [vmem:[#allocation0 + $0xd09] ss:$-48 sm:$0xc] %vm3_vm0, %v901_v35  }
 0x23c   :  { %908 = vst.msk [vmem:[#allocation0 + $0xdc9] ss:$-48 sm:$0x30] %vm3_vm0, %v901_v35  }
 0x23d   :  { %910 = vst.msk [vmem:[#allocation0 + $0xe89] ss:$-48 sm:$0xc0] %vm3_vm0, %v901_v35  }
 0x23e   :  { %775 = vst.msk [vmem:[#allocation0 + $0xac8] ss:$-48 sm:$0x3] %vm3_vm0, %v772_v56  }
 0x23f   :  { %777 = vst.msk [vmem:[#allocation0 + $0xb88] ss:$-48 sm:$0xc] %vm3_vm0, %v772_v56  }
 0x240   :  { %779 = vst.msk [vmem:[#allocation0 + $0xc48] ss:$-48 sm:$0x30] %vm3_vm0, %v772_v56  }
 0x241   :  { %v3698_v5 = vld [vmem:[#allocation0 + $0xc18] sm:$0x3]  ;;  %v3734_v6 = vld [vmem:[#allocation0 + $0xc48] sm:$0x3]  ;;  %v1094_v61 = vpop.permute.xlu2 %1093  }
 0x242   :  { %4450 = vst [vmem:[%s6772_s1 + $0x306] sm:$0x3] %v3698_v5  ;;  %v3770_v7 = vld [vmem:[#allocation0 + $0xc78] sm:$0x3]  ;;  %v3806_v8 = vld [vmem:[#allocation0 + $0xca8] sm:$0x3] }
 0x243   :  { %4456 = vst [vmem:[%s6772_s1 + $0x312] sm:$0x3] %v3734_v6  ;;  %v3842_v9 = vld [vmem:[#allocation0 + $0xcd8] sm:$0x3]  ;;  %v3878_v10 = vld [vmem:[#allocation0 + $0xd08] sm:$0x3]  ;;  %v6170_v6 = vpop.permute.xlu0 %951  }
 0x244   :  { %4462 = vst [vmem:[%s6772_s1 + $0x31e] sm:$0x3] %v3770_v7  ;;  %v3914_v11 = vld [vmem:[#allocation0 + $0xd38] sm:$0x3]  ;;  %v3950_v12 = vld [vmem:[#allocation0 + $0xd68] sm:$0x3] }
 0x245   :  { %4468 = vst [vmem:[%s6772_s1 + $0x32a] sm:$0x3] %v3806_v8 }
 0x246   :  { %4474 = vst [vmem:[%s6772_s1 + $0x336] sm:$0x3] %v3842_v9 }
 0x247   :  { %4480 = vst [vmem:[%s6772_s1 + $0x342] sm:$0x3] %v3878_v10 }
 0x248   :  { %781 = vst.msk [vmem:[#allocation0 + $0xd08] ss:$-48 sm:$0xc0] %vm3_vm0, %v772_v56  }
 0x249   :  { %4486 = vst [vmem:[%s6772_s1 + $0x34e] sm:$0x3] %v3914_v11 }
 0x24a   :  { %4492 = vst [vmem:[%s6772_s1 + $0x35a] sm:$0x3] %v3950_v12 }
 0x24b   :  { %762 = vst.msk [vmem:[#allocation0 + $0x948] ss:$-48 sm:$0x3] %vm3_vm0, %v759_v57  }
 0x24c   :  { %764 = vst.msk [vmem:[#allocation0 + $0xa08] ss:$-48 sm:$0xc] %vm3_vm0, %v759_v57  }
 0x24d   :  { %766 = vst.msk [vmem:[#allocation0 + $0xac8] ss:$-48 sm:$0x30] %vm3_vm0, %v759_v57  }
 0x24e   :  { %768 = vst.msk [vmem:[#allocation0 + $0xb88] ss:$-48 sm:$0xc0] %vm3_vm0, %v759_v57  }
 0x24f   :  { %942 = vst.msk [vmem:[#allocation0 + $0x320] ss:$48 sm:$0x3] %vm3_vm0, %v939_v62  }
 0x250   :  { %944 = vst.msk [vmem:[#allocation0 + $0x320] ss:$48 sm:$0xc] %vm3_vm0, %v939_v62  }
 0x251   :  { %946 = vst.msk [vmem:[#allocation0 + $0x320] ss:$48 sm:$0x30] %vm3_vm0, %v939_v62  }
 0x252   :  { %948 = vst.msk [vmem:[#allocation0 + $0x320] ss:$48 sm:$0xc0] %vm3_vm0, %v939_v62  }
 0x253   :  { %813 = vst.msk [vmem:[#allocation0 + $0x1c9] ss:$-48 sm:$0x3] %vm3_vm0, %v810_v3  }
 0x254   :  { %815 = vst.msk [vmem:[#allocation0 + $0x289] ss:$-48 sm:$0xc] %vm3_vm0, %v810_v3  }
 0x255   :  { %817 = vst.msk [vmem:[#allocation0 + $0x349] ss:$-48 sm:$0x30] %vm3_vm0, %v810_v3  }
 0x256   :  { %819 = vst.msk [vmem:[#allocation0 + $0x409] ss:$-48 sm:$0xc0] %vm3_vm0, %v810_v3  }
 0x257   :  { %800 = vst.msk [vmem:[#allocation0 + $0x49] ss:$-48 sm:$0x3] %vm3_vm0, %v797_v4  }
 0x258   :  { %802 = vst.msk [vmem:[#allocation0 + $0x109] ss:$-48 sm:$0xc] %vm3_vm0, %v797_v4  }
 0x259   :  { %804 = vst.msk [vmem:[#allocation0 + $0x1c9] ss:$-48 sm:$0x30] %vm3_vm0, %v797_v4  }
 0x25a   :  { %v1682_v19 = vld [vmem:[#allocation0 + $0x198] sm:$0x3]  ;;  %v1718_v20 = vld [vmem:[#allocation0 + $0x1c8] sm:$0x3] }
 0x25b   :  { %4114 = vst [vmem:[%s6772_s1 + $0x66] sm:$0x3] %v1682_v19  ;;  %v1754_v21 = vld [vmem:[#allocation0 + $0x1f8] sm:$0x3]  ;;  %v1790_v22 = vld [vmem:[#allocation0 + $0x228] sm:$0x3] }
 0x25c   :  { %4120 = vst [vmem:[%s6772_s1 + $0x72] sm:$0x3] %v1718_v20  ;;  %v1826_v23 = vld [vmem:[#allocation0 + $0x258] sm:$0x3]  ;;  %v1862_v24 = vld [vmem:[#allocation0 + $0x288] sm:$0x3] }
 0x25d   :  { %4126 = vst [vmem:[%s6772_s1 + $0x7e] sm:$0x3] %v1754_v21  ;;  %v1898_v31 = vld [vmem:[#allocation0 + $0x2b8] sm:$0x3]  ;;  %v1934_v34 = vld [vmem:[#allocation0 + $0x2e8] sm:$0x3]  ;;  %v1004_v21 = vpop.permute.xlu1 %1003  }
 0x25e   :  { %4132 = vst [vmem:[%s6772_s1 + $0x8a] sm:$0x3] %v1790_v22  ;;  %v1394_v25 = vld [vmem:[#allocation0 + $0x18] sm:$0x3]  ;;  %v1430_v26 = vld [vmem:[#allocation0 + $0x48] sm:$0x3]  ;;  %v991_v22 = vpop.permute.xlu0 %990  }
 0x25f   :  { %4138 = vst [vmem:[%s6772_s1 + $0x96] sm:$0x3] %v1826_v23  ;;  %v1466_v27 = vld [vmem:[#allocation0 + $0x78] sm:$0x3]  ;;  %v1502_v28 = vld [vmem:[#allocation0 + $0xa8] sm:$0x3] }
 0x260   :  { %4144 = vst [vmem:[%s6772_s1 + $0xa2] sm:$0x3] %v1862_v24  ;;  %v1538_v29 = vld [vmem:[#allocation0 + $0xd8] sm:$0x3]  ;;  %v1574_v30 = vld [vmem:[#allocation0 + $0x108] sm:$0x3] }
 0x261   :  { %806 = vst.msk [vmem:[#allocation0 + $0x289] ss:$-48 sm:$0xc0] %vm3_vm0, %v797_v4  }
 0x262   :  { %4066 = vst [vmem:[%s6772_s1 + $0x6] sm:$0x3] %v1394_v25 }
 0x263   :  { %4072 = vst [vmem:[%s6772_s1 + $0x12] sm:$0x3] %v1430_v26 }
 0x264   :  { %4078 = vst [vmem:[%s6772_s1 + $0x1e] sm:$0x3] %v1466_v27 }
 0x265   :  { %4084 = vst [vmem:[%s6772_s1 + $0x2a] sm:$0x3] %v1502_v28 }
 0x266   :  { %4090 = vst [vmem:[%s6772_s1 + $0x36] sm:$0x3] %v1538_v29 }
 0x267   :  { %4096 = vst [vmem:[%s6772_s1 + $0x42] sm:$0x3] %v1574_v30 }
 0x268   :  { %4150 = vst [vmem:[%s6772_s1 + $0xae] sm:$0x3] %v1898_v31  ;;  %v1610_v37 = vld [vmem:[#allocation0 + $0x138] sm:$0x3]  ;;  %v1646_v39 = vld [vmem:[#allocation0 + $0x168] sm:$0x3] }
 0x269   :  { %4156 = vst [vmem:[%s6772_s1 + $0xba] sm:$0x3] %v1934_v34  ;;  %v1029_v34 = vpop.permute.xlu0 %1028  }
 0x26a   :  { %981 = vst.msk [vmem:[#allocation0 + $0x7a0] ss:$48 sm:$0x3] %vm3_vm0, %v978_v13  }
 0x26b   :  { %983 = vst.msk [vmem:[#allocation0 + $0x7a0] ss:$48 sm:$0xc] %vm3_vm0, %v978_v13  }
 0x26c   :  { %985 = vst.msk [vmem:[#allocation0 + $0x7a0] ss:$48 sm:$0x30] %vm3_vm0, %v978_v13  }
 0x26d   :  { %987 = vst.msk [vmem:[#allocation0 + $0x7a0] ss:$48 sm:$0xc0] %vm3_vm0, %v978_v13   ;;  %v1133_v13 = vpop.permute.xlu2 %1132  }
 0x26e   :  { %4102 = vst [vmem:[%s6772_s1 + $0x4e] sm:$0x3] %v1610_v37 }
 0x26f   :  { %4108 = vst [vmem:[%s6772_s1 + $0x5a] sm:$0x3] %v1646_v39 }
 0x270   :  { %852 = vst.msk [vmem:[#allocation0 + $0x649] ss:$-48 sm:$0x3] %vm3_vm0, %v849_v14  }
 0x271   :  { %854 = vst.msk [vmem:[#allocation0 + $0x709] ss:$-48 sm:$0xc] %vm3_vm0, %v849_v14  }
 0x272   :  { %856 = vst.msk [vmem:[#allocation0 + $0x7c9] ss:$-48 sm:$0x30] %vm3_vm0, %v849_v14  }
 0x273   :  { %858 = vst.msk [vmem:[#allocation0 + $0x889] ss:$-48 sm:$0xc0] %vm3_vm0, %v849_v14  }
 0x274   :  { %839 = vst.msk [vmem:[#allocation0 + $0x4c9] ss:$-48 sm:$0x3] %vm3_vm0, %v5991_v16  }
 0x275   :  { %841 = vst.msk [vmem:[#allocation0 + $0x589] ss:$-48 sm:$0xc] %vm3_vm0, %v5991_v16   ;;  %v1171_v27 = vpop.permute.xlu2 %1170  }
 0x276   :  { %843 = vst.msk [vmem:[#allocation0 + $0x649] ss:$-48 sm:$0x30] %vm3_vm0, %v5991_v16  }
 0x277   :  { %v2546_v41 = vld [vmem:[#allocation0 + $0x618] sm:$0x3]  ;;  %v2582_v42 = vld [vmem:[#allocation0 + $0x648] sm:$0x3] }
 0x278   :  { %4258 = vst [vmem:[%s6772_s1 + $0x186] sm:$0x3] %v2546_v41  ;;  %v2618_v43 = vld [vmem:[#allocation0 + $0x678] sm:$0x3]  ;;  %v2654_v44 = vld [vmem:[#allocation0 + $0x6a8] sm:$0x3] }
 0x279   :  { %4264 = vst [vmem:[%s6772_s1 + $0x192] sm:$0x3] %v2582_v42  ;;  %v2690_v45 = vld [vmem:[#allocation0 + $0x6d8] sm:$0x3]  ;;  %v2726_v46 = vld [vmem:[#allocation0 + $0x708] sm:$0x3] }
 0x27a   :  { %4270 = vst [vmem:[%s6772_s1 + $0x19e] sm:$0x3] %v2618_v43  ;;  %v2762_v51 = vld [vmem:[#allocation0 + $0x738] sm:$0x3]  ;;  %v2798_v32 = vld [vmem:[#allocation0 + $0x768] sm:$0x3] }
 0x27b   :  { %4276 = vst [vmem:[%s6772_s1 + $0x1aa] sm:$0x3] %v2654_v44  ;;  %v2258_v47 = vld [vmem:[#allocation0 + $0x498] sm:$0x3]  ;;  %v2294_v48 = vld [vmem:[#allocation0 + $0x4c8] sm:$0x3] }
 0x27c   :  { %4282 = vst [vmem:[%s6772_s1 + $0x1b6] sm:$0x3] %v2690_v45  ;;  %v2330_v15 = vld [vmem:[#allocation0 + $0x4f8] sm:$0x3]  ;;  %v2366_v17 = vld [vmem:[#allocation0 + $0x528] sm:$0x3] }
 0x27d   :  { %4288 = vst [vmem:[%s6772_s1 + $0x1c2] sm:$0x3] %v2726_v46  ;;  %v2402_v18 = vld [vmem:[#allocation0 + $0x558] sm:$0x3]  ;;  %v2438_v50 = vld [vmem:[#allocation0 + $0x588] sm:$0x3]  ;;  %v1210_v43 = vpop.permute.xlu2 %1209  }
 0x27e   :  { %845 = vst.msk [vmem:[#allocation0 + $0x709] ss:$-48 sm:$0xc0] %vm3_vm0, %v5991_v16  }
 0x27f   :  { %4210 = vst [vmem:[%s6772_s1 + $0x126] sm:$0x3] %v2258_v47  ;;  %v1068_v47 = vpop.permute.xlu0 %1067  }
 0x280   :  { %4216 = vst [vmem:[%s6772_s1 + $0x132] sm:$0x3] %v2294_v48 }
 0x281   :  { %4222 = vst [vmem:[%s6772_s1 + $0x13e] sm:$0x3] %v2330_v15 }
 0x282   :  { %4228 = vst [vmem:[%s6772_s1 + $0x14a] sm:$0x3] %v2366_v17 }
 0x283   :  { %4234 = vst [vmem:[%s6772_s1 + $0x156] sm:$0x3] %v2402_v18 }
 0x284   :  { %4240 = vst [vmem:[%s6772_s1 + $0x162] sm:$0x3] %v2438_v50 }
 0x285   :  { %4294 = vst [vmem:[%s6772_s1 + $0x1ce] sm:$0x3] %v2762_v51  ;;  %v2474_v35 = vld [vmem:[#allocation0 + $0x5b8] sm:$0x3]  ;;  %v2510_v36 = vld [vmem:[#allocation0 + $0x5e8] sm:$0x3] }
 0x286   :  { %4300 = vst [vmem:[%s6772_s1 + $0x1da] sm:$0x3] %v2798_v32 }
 0x287   :  { %1020 = vst.msk [vmem:[#allocation0 + $0xc20] ss:$48 sm:$0x3] %vm3_vm0, %v1017_v33  }
 0x288   :  { %1022 = vst.msk [vmem:[#allocation0 + $0xc20] ss:$48 sm:$0xc] %vm3_vm0, %v1017_v33  }
 0x289   :  { %1024 = vst.msk [vmem:[#allocation0 + $0xc20] ss:$48 sm:$0x30] %vm3_vm0, %v1017_v33  }
 0x28a   :  { %1026 = vst.msk [vmem:[#allocation0 + $0xc20] ss:$48 sm:$0xc0] %vm3_vm0, %v1017_v33   ;;  %v1042_v33 = vpop.permute.xlu1 %1041  }
 0x28b   :  { %4246 = vst [vmem:[%s6772_s1 + $0x16e] sm:$0x3] %v2474_v35 }
 0x28c   :  { %4252 = vst [vmem:[%s6772_s1 + $0x17a] sm:$0x3] %v2510_v36  ;;  %v1249_v36 = vpop.permute.xlu2 %1248  }
 0x28d   :  { %891 = vst.msk [vmem:[#allocation0 + $0xac9] ss:$-48 sm:$0x3] %vm3_vm0, %v888_v38  }
 0x28e   :  { %893 = vst.msk [vmem:[#allocation0 + $0xb89] ss:$-48 sm:$0xc] %vm3_vm0, %v888_v38  }
 0x28f   :  { %895 = vst.msk [vmem:[#allocation0 + $0xc49] ss:$-48 sm:$0x30] %vm3_vm0, %v888_v38  }
 0x290   :  { %897 = vst.msk [vmem:[#allocation0 + $0xd09] ss:$-48 sm:$0xc0] %vm3_vm0, %v888_v38  }
 0x291   :  { %878 = vst.msk [vmem:[#allocation0 + $0x949] ss:$-48 sm:$0x3] %vm3_vm0, %v6051_v40  }
 0x292   :  { %880 = vst.msk [vmem:[#allocation0 + $0xa09] ss:$-48 sm:$0xc] %vm3_vm0, %v6051_v40   ;;  %v1081_v46 = vpop.permute.xlu1 %1080  }
 0x293   :  { %882 = vst.msk [vmem:[#allocation0 + $0xac9] ss:$-48 sm:$0x30] %vm3_vm0, %v6051_v40  }
 0x294   :  { %v3410_v54 = vld [vmem:[#allocation0 + $0xa98] sm:$0x3]  ;;  %v3446_v55 = vld [vmem:[#allocation0 + $0xac8] sm:$0x3] }
 0x295   :  { %v3482_v56 = vld [vmem:[#allocation0 + $0xaf8] sm:$0x3]  ;;  %4402 = vst [vmem:[%s6772_s1 + $0x2a6] sm:$0x3] %v3410_v54  ;;  %v3518_v57 = vld [vmem:[#allocation0 + $0xb28] sm:$0x3] }
 0x296   :  { %4408 = vst [vmem:[%s6772_s1 + $0x2b2] sm:$0x3] %v3446_v55  ;;  %v3554_v58 = vld [vmem:[#allocation0 + $0xb58] sm:$0x3]  ;;  %v3590_v59 = vld [vmem:[#allocation0 + $0xb88] sm:$0x3] }
 0x297   :  { %4414 = vst [vmem:[%s6772_s1 + $0x2be] sm:$0x3] %v3482_v56  ;;  %v3626_v60 = vld [vmem:[#allocation0 + $0xbb8] sm:$0x3]  ;;  %v3662_v62 = vld [vmem:[#allocation0 + $0xbe8] sm:$0x3] }
 0x298   :  { %884 = vst.msk [vmem:[#allocation0 + $0xb89] ss:$-48 sm:$0xc0] %vm3_vm0, %v6051_v40   ;;  %v3122_v63 = vld [vmem:[#allocation0 + $0x918] sm:$0x3] }
 0x299   :  { %4420 = vst [vmem:[%s6772_s1 + $0x2ca] sm:$0x3] %v3518_v57  ;;  %v3158_v3 = vld [vmem:[#allocation0 + $0x948] sm:$0x3]  ;;  %v3194_v4 = vld [vmem:[#allocation0 + $0x978] sm:$0x3] }
 0x29a   :  { %4426 = vst [vmem:[%s6772_s1 + $0x2d6] sm:$0x3] %v3554_v58  ;;  %v3230_v5 = vld [vmem:[#allocation0 + $0x9a8] sm:$0x3]  ;;  %v3266_v7 = vld [vmem:[#allocation0 + $0x9d8] sm:$0x3] }
 0x29b   :  { %4432 = vst [vmem:[%s6772_s1 + $0x2e2] sm:$0x3] %v3590_v59  ;;  %v3302_v8 = vld [vmem:[#allocation0 + $0xa08] sm:$0x3]  ;;  %v1120_v59 = vpop.permute.xlu1 %1119  }
 0x29c   :  { %4438 = vst [vmem:[%s6772_s1 + $0x2ee] sm:$0x3] %v3626_v60  ;;  %v1107_v60 = vpop.permute.xlu0 %1106  }
 0x29d   :  { %4444 = vst [vmem:[%s6772_s1 + $0x2fa] sm:$0x3] %v3662_v62 }
 0x29e   :  { %4354 = vst [vmem:[%s6772_s1 + $0x246] sm:$0x3] %v3122_v63 }
 0x29f   :  { %v3338_v0 = vld [vmem:[#allocation0 + $0xa38] sm:$0x3]  ;;  %v3374_v1 = vld [vmem:[#allocation0 + $0xa68] sm:$0x3]  ;;  %4360 = vst [vmem:[%s6772_s1 + $0x252] sm:$0x3] %v3158_v3 }
 0x2a0   :  { %4390 = vst [vmem:[%s6772_s1 + $0x28e] sm:$0x3] %v3338_v0 }
 0x2a1   :  { %4396 = vst [vmem:[%s6772_s1 + $0x29a] sm:$0x3] %v3374_v1 }
 0x2a2   :  { %1058 = vst.msk [vmem:[#allocation0 + $0x321] ss:$48 sm:$0x3] %vm3_vm0, %v1055_v49  }
 0x2a3   :  { %1060 = vst.msk [vmem:[#allocation0 + $0x321] ss:$48 sm:$0xc] %vm3_vm0, %v1055_v49  }
 0x2a4   :  { %1062 = vst.msk [vmem:[#allocation0 + $0x321] ss:$48 sm:$0x30] %vm3_vm0, %v1055_v49  }
 0x2a5   :  { %1064 = vst.msk [vmem:[#allocation0 + $0x321] ss:$48 sm:$0xc0] %vm3_vm0, %v1055_v49  }
 0x2a6   :  { %4366 = vst [vmem:[%s6772_s1 + $0x25e] sm:$0x3] %v3194_v4 }
 0x2a7   :  { %4372 = vst [vmem:[%s6772_s1 + $0x26a] sm:$0x3] %v3230_v5 }
 0x2a8   :  { %4378 = vst [vmem:[%s6772_s1 + $0x276] sm:$0x3] %v3266_v7 }
 0x2a9   :  { %v1976_v9 = vld [vmem:[#allocation0 + $0x320] sm:$0x3]  ;;  %v2012_v10 = vld [vmem:[#allocation0 + $0x350] sm:$0x3]  ;;  %4384 = vst [vmem:[%s6772_s1 + $0x282] sm:$0x3] %v3302_v8 }
 0x2aa   :  { %4163 = vst [vmem:[%s6772_s1 + $0xc8] sm:$0x3] %v1976_v9  ;;  %v2048_v11 = vld [vmem:[#allocation0 + $0x380] sm:$0x3]  ;;  %v2084_v12 = vld [vmem:[#allocation0 + $0x3b0] sm:$0x3] }
 0x2ab   :  { %4169 = vst [vmem:[%s6772_s1 + $0xd4] sm:$0x3] %v2012_v10  ;;  %v2120_v14 = vld [vmem:[#allocation0 + $0x3e0] sm:$0x3]  ;;  %v2156_v16 = vld [vmem:[#allocation0 + $0x410] sm:$0x3] }
 0x2ac   :  { %929 = vst.msk [vmem:[#allocation0 + $0x1a0] ss:$48 sm:$0x3] %vm3_vm0, %v6110_v52   ;;  %v2192_v19 = vld [vmem:[#allocation0 + $0x440] sm:$0x3] }
 0x2ad   :  { %931 = vst.msk [vmem:[#allocation0 + $0x1a0] ss:$48 sm:$0xc] %vm3_vm0, %v6110_v52   ;;  %v2228_v20 = vld [vmem:[#allocation0 + $0x470] sm:$0x3] }
 0x2ae   :  { %933 = vst.msk [vmem:[#allocation0 + $0x1a0] ss:$48 sm:$0x30] %vm3_vm0, %v6110_v52  }
 0x2af   :  { %935 = vst.msk [vmem:[#allocation0 + $0x1a0] ss:$48 sm:$0xc0] %vm3_vm0, %v6110_v52  }
 0x2b0   :  { %4175 = vst [vmem:[%s6772_s1 + $0xe0] sm:$0x3] %v2048_v11 }
 0x2b1   :  { %4181 = vst [vmem:[%s6772_s1 + $0xec] sm:$0x3] %v2084_v12 }
 0x2b2   :  { %4187 = vst [vmem:[%s6772_s1 + $0xf8] sm:$0x3] %v2120_v14  ;;  %v1158_v14 = vpop.permute.xlu1 %1157  }
 0x2b3   :  { %4193 = vst [vmem:[%s6772_s1 + $0x104] sm:$0x3] %v2156_v16  ;;  %v6428_v16 = vpop.permute.xlu0 %1144  }
 0x2b4   :  { %4199 = vst [vmem:[%s6772_s1 + $0x110] sm:$0x3] %v2192_v19 }
 0x2b5   :  { %4205 = vst [vmem:[%s6772_s1 + $0x11c] sm:$0x3] %v2228_v20 }
 0x2b6   :  { %916 = vst.msk [vmem:[#allocation0 + $0x20] ss:$48 sm:$0x3] %vm3_vm0, %v6122_v53  }
 0x2b7   :  { %918 = vst.msk [vmem:[#allocation0 + $0x20] ss:$48 sm:$0xc] %vm3_vm0, %v6122_v53  }
 0x2b8   :  { %920 = vst.msk [vmem:[#allocation0 + $0x20] ss:$48 sm:$0x30] %vm3_vm0, %v6122_v53  }
 0x2b9   :  { %922 = vst.msk [vmem:[#allocation0 + $0x20] ss:$48 sm:$0xc0] %vm3_vm0, %v6122_v53  }
 0x2ba   :  { %1097 = vst.msk [vmem:[#allocation0 + $0x7a1] ss:$48 sm:$0x3] %vm3_vm0, %v1094_v61  }
 0x2bb   :  { %1099 = vst.msk [vmem:[#allocation0 + $0x7a1] ss:$48 sm:$0xc] %vm3_vm0, %v1094_v61  }
 0x2bc   :  { %1101 = vst.msk [vmem:[#allocation0 + $0x7a1] ss:$48 sm:$0x30] %vm3_vm0, %v1094_v61  }
 0x2bd   :  { %1103 = vst.msk [vmem:[#allocation0 + $0x7a1] ss:$48 sm:$0xc0] %vm3_vm0, %v1094_v61  }
 0x2be   :  { %968 = vst.msk [vmem:[#allocation0 + $0x620] ss:$48 sm:$0x3] %vm3_vm0, %v965_v2  }
 0x2bf   :  { %970 = vst.msk [vmem:[#allocation0 + $0x620] ss:$48 sm:$0xc] %vm3_vm0, %v965_v2  }
 0x2c0   :  { %972 = vst.msk [vmem:[#allocation0 + $0x620] ss:$48 sm:$0x30] %vm3_vm0, %v965_v2  }
 0x2c1   :  { %v2840_v23 = vld [vmem:[#allocation0 + $0x7a0] sm:$0x3]  ;;  %v2876_v24 = vld [vmem:[#allocation0 + $0x7d0] sm:$0x3] }
 0x2c2   :  { %v2912_v25 = vld [vmem:[#allocation0 + $0x800] sm:$0x3]  ;;  %4307 = vst [vmem:[%s6772_s1 + $0x1e8] sm:$0x3] %v2840_v23  ;;  %v2948_v26 = vld [vmem:[#allocation0 + $0x830] sm:$0x3] }
 0x2c3   :  { %4313 = vst [vmem:[%s6772_s1 + $0x1f4] sm:$0x3] %v2876_v24  ;;  %v2984_v28 = vld [vmem:[#allocation0 + $0x860] sm:$0x3]  ;;  %v3020_v29 = vld [vmem:[#allocation0 + $0x890] sm:$0x3] }
 0x2c4   :  { %4319 = vst [vmem:[%s6772_s1 + $0x200] sm:$0x3] %v2912_v25  ;;  %v3056_v30 = vld [vmem:[#allocation0 + $0x8c0] sm:$0x3]  ;;  %v3092_v31 = vld [vmem:[#allocation0 + $0x8f0] sm:$0x3] }
 0x2c5   :  { %974 = vst.msk [vmem:[#allocation0 + $0x620] ss:$48 sm:$0xc0] %vm3_vm0, %v965_v2  }
 0x2c6   :  { %4325 = vst [vmem:[%s6772_s1 + $0x20c] sm:$0x3] %v2948_v26 }
 0x2c7   :  { %4331 = vst [vmem:[%s6772_s1 + $0x218] sm:$0x3] %v2984_v28 }
 0x2c8   :  { %4337 = vst [vmem:[%s6772_s1 + $0x224] sm:$0x3] %v3020_v29 }
 0x2c9   :  { %4343 = vst [vmem:[%s6772_s1 + $0x230] sm:$0x3] %v3056_v30  ;;  %v1197_v30 = vpop.permute.xlu1 %1196  }
 0x2ca   :  { %4349 = vst [vmem:[%s6772_s1 + $0x23c] sm:$0x3] %v3092_v31 }
 0x2cb   :  { %955 = vst.msk [vmem:[#allocation0 + $0x4a0] ss:$48 sm:$0x3] %vm3_vm0, %v6170_v6  }
 0x2cc   :  { %957 = vst.msk [vmem:[#allocation0 + $0x4a0] ss:$48 sm:$0xc] %vm3_vm0, %v6170_v6  }
 0x2cd   :  { %959 = vst.msk [vmem:[#allocation0 + $0x4a0] ss:$48 sm:$0x30] %vm3_vm0, %v6170_v6  }
 0x2ce   :  { %961 = vst.msk [vmem:[#allocation0 + $0x4a0] ss:$48 sm:$0xc0] %vm3_vm0, %v6170_v6   ;;  %v1287_v6 = vpop.permute.xlu2 %1286  }
 0x2cf   :  { %1136 = vst.msk [vmem:[#allocation0 + $0xc21] ss:$48 sm:$0x3] %vm3_vm0, %v1133_v13  }
 0x2d0   :  { %1138 = vst.msk [vmem:[#allocation0 + $0xc21] ss:$48 sm:$0xc] %vm3_vm0, %v1133_v13  }
 0x2d1   :  { %1140 = vst.msk [vmem:[#allocation0 + $0xc21] ss:$48 sm:$0x30] %vm3_vm0, %v1133_v13  }
 0x2d2   :  { %1142 = vst.msk [vmem:[#allocation0 + $0xc21] ss:$48 sm:$0xc0] %vm3_vm0, %v1133_v13  }
 0x2d3   :  { %1007 = vst.msk [vmem:[#allocation0 + $0xaa0] ss:$48 sm:$0x3] %vm3_vm0, %v1004_v21  }
 0x2d4   :  { %1009 = vst.msk [vmem:[#allocation0 + $0xaa0] ss:$48 sm:$0xc] %vm3_vm0, %v1004_v21  }
 0x2d5   :  { %1011 = vst.msk [vmem:[#allocation0 + $0xaa0] ss:$48 sm:$0x30] %vm3_vm0, %v1004_v21  }
 0x2d6   :  { %v3704_v37 = vld [vmem:[#allocation0 + $0xc20] sm:$0x3]  ;;  %v3740_v38 = vld [vmem:[#allocation0 + $0xc50] sm:$0x3]  ;;  %v1326_v26 = vpop.permute.xlu2 %1325  }
 0x2d7   :  { %v3776_v39 = vld [vmem:[#allocation0 + $0xc80] sm:$0x3]  ;;  %4451 = vst [vmem:[%s6772_s1 + $0x308] sm:$0x3] %v3704_v37  ;;  %v3812_v40 = vld [vmem:[#allocation0 + $0xcb0] sm:$0x3] }
 0x2d8   :  { %4457 = vst [vmem:[%s6772_s1 + $0x314] sm:$0x3] %v3740_v38  ;;  %v3848_v41 = vld [vmem:[#allocation0 + $0xce0] sm:$0x3]  ;;  %v3884_v42 = vld [vmem:[#allocation0 + $0xd10] sm:$0x3]  ;;  %v6474_v38 = vpop.permute.xlu0 %1183  }
 0x2d9   :  { %4463 = vst [vmem:[%s6772_s1 + $0x320] sm:$0x3] %v3776_v39  ;;  %v3920_v44 = vld [vmem:[#allocation0 + $0xd40] sm:$0x3]  ;;  %v3956_v45 = vld [vmem:[#allocation0 + $0xd70] sm:$0x3] }
 0x2da   :  { %1013 = vst.msk [vmem:[#allocation0 + $0xaa0] ss:$48 sm:$0xc0] %vm3_vm0, %v1004_v21  }
 0x2db   :  { %4469 = vst [vmem:[%s6772_s1 + $0x32c] sm:$0x3] %v3812_v40 }
 0x2dc   :  { %4475 = vst [vmem:[%s6772_s1 + $0x338] sm:$0x3] %v3848_v41 }
 0x2dd   :  { %4481 = vst [vmem:[%s6772_s1 + $0x344] sm:$0x3] %v3884_v42 }
 0x2de   :  { %4487 = vst [vmem:[%s6772_s1 + $0x350] sm:$0x3] %v3920_v44 }
 0x2df   :  { %4493 = vst [vmem:[%s6772_s1 + $0x35c] sm:$0x3] %v3956_v45  ;;  %v1365_v45 = vpop.permute.xlu2 %1364  }
 0x2e0   :  { %994 = vst.msk [vmem:[#allocation0 + $0x920] ss:$48 sm:$0x3] %vm3_vm0, %v991_v22  }
 0x2e1   :  { %996 = vst.msk [vmem:[#allocation0 + $0x920] ss:$48 sm:$0xc] %vm3_vm0, %v991_v22  }
 0x2e2   :  { %998 = vst.msk [vmem:[#allocation0 + $0x920] ss:$48 sm:$0x30] %vm3_vm0, %v991_v22  }
 0x2e3   :  { %1000 = vst.msk [vmem:[#allocation0 + $0x920] ss:$48 sm:$0xc0] %vm3_vm0, %v991_v22  }
 0x2e4   :  { %1174 = vst.msk [vmem:[#allocation0 + $0x328] ss:$48 sm:$0x3] %vm3_vm0, %v1171_v27  }
 0x2e5   :  { %1176 = vst.msk [vmem:[#allocation0 + $0x328] ss:$48 sm:$0xc] %vm3_vm0, %v1171_v27  }
 0x2e6   :  { %1178 = vst.msk [vmem:[#allocation0 + $0x328] ss:$48 sm:$0x30] %vm3_vm0, %v1171_v27  }
 0x2e7   :  { %1180 = vst.msk [vmem:[#allocation0 + $0x328] ss:$48 sm:$0xc0] %vm3_vm0, %v1171_v27  }
 0x2e8   :  { %1045 = vst.msk [vmem:[#allocation0 + $0x1a1] ss:$48 sm:$0x3] %vm3_vm0, %v1042_v33  }
 0x2e9   :  { %1047 = vst.msk [vmem:[#allocation0 + $0x1a1] ss:$48 sm:$0xc] %vm3_vm0, %v1042_v33  }
 0x2ea   :  { %1049 = vst.msk [vmem:[#allocation0 + $0x1a1] ss:$48 sm:$0x30] %vm3_vm0, %v1042_v33  }
 0x2eb   :  { %1051 = vst.msk [vmem:[#allocation0 + $0x1a1] ss:$48 sm:$0xc0] %vm3_vm0, %v1042_v33  }
 0x2ec   :  { %1032 = vst.msk [vmem:[#allocation0 + $0x21] ss:$48 sm:$0x3] %vm3_vm0, %v1029_v34  }
 0x2ed   :  { %1034 = vst.msk [vmem:[#allocation0 + $0x21] ss:$48 sm:$0xc] %vm3_vm0, %v1029_v34  }
 0x2ee   :  { %1036 = vst.msk [vmem:[#allocation0 + $0x21] ss:$48 sm:$0x30] %vm3_vm0, %v1029_v34  }
 0x2ef   :  { %v1688_v48 = vld [vmem:[#allocation0 + $0x1a0] sm:$0x3]  ;;  %v1724_v15 = vld [vmem:[#allocation0 + $0x1d0] sm:$0x3] }
 0x2f0   :  { %v1760_v17 = vld [vmem:[#allocation0 + $0x200] sm:$0x3]  ;;  %4115 = vst [vmem:[%s6772_s1 + $0x68] sm:$0x3] %v1688_v48  ;;  %v1796_v18 = vld [vmem:[#allocation0 + $0x230] sm:$0x3] }
 0x2f1   :  { %4121 = vst [vmem:[%s6772_s1 + $0x74] sm:$0x3] %v1724_v15  ;;  %v1832_v49 = vld [vmem:[#allocation0 + $0x260] sm:$0x3]  ;;  %v1868_v50 = vld [vmem:[#allocation0 + $0x290] sm:$0x3] }
 0x2f2   :  { %4127 = vst [vmem:[%s6772_s1 + $0x80] sm:$0x3] %v1760_v17  ;;  %v1904_v51 = vld [vmem:[#allocation0 + $0x2c0] sm:$0x3]  ;;  %v1940_v32 = vld [vmem:[#allocation0 + $0x2f0] sm:$0x3]  ;;  %v1236_v17 = vpop.permute.xlu1 %1235  }
 0x2f3   :  { %1038 = vst.msk [vmem:[#allocation0 + $0x21] ss:$48 sm:$0xc0] %vm3_vm0, %v1029_v34   ;;  %v1400_v35 = vld [vmem:[#allocation0 + $0x20] sm:$0x3] }
 0x2f4   :  { %4133 = vst [vmem:[%s6772_s1 + $0x8c] sm:$0x3] %v1796_v18  ;;  %v1436_v52 = vld [vmem:[#allocation0 + $0x50] sm:$0x3]  ;;  %v1472_v53 = vld [vmem:[#allocation0 + $0x80] sm:$0x3]  ;;  %v1223_v18 = vpop.permute.xlu0 %1222  }
 0x2f5   :  { %4139 = vst [vmem:[%s6772_s1 + $0x98] sm:$0x3] %v1832_v49  ;;  %v1508_v54 = vld [vmem:[#allocation0 + $0xb0] sm:$0x3]  ;;  %v1544_v55 = vld [vmem:[#allocation0 + $0xe0] sm:$0x3] }
 0x2f6   :  { %4145 = vst [vmem:[%s6772_s1 + $0xa4] sm:$0x3] %v1868_v50  ;;  %v1580_v56 = vld [vmem:[#allocation0 + $0x110] sm:$0x3] }
 0x2f7   :  { %4151 = vst [vmem:[%s6772_s1 + $0xb0] sm:$0x3] %v1904_v51 }
 0x2f8   :  { %4157 = vst [vmem:[%s6772_s1 + $0xbc] sm:$0x3] %v1940_v32 }
 0x2f9   :  { %4067 = vst [vmem:[%s6772_s1 + $0x8] sm:$0x3] %v1400_v35 }
 0x2fa   :  { %1213 = vst.msk [vmem:[#allocation0 + $0x7a8] ss:$48 sm:$0x3] %vm3_vm0, %v1210_v43   ;;  %v1616_v57 = vld [vmem:[#allocation0 + $0x140] sm:$0x3]  ;;  %v1274_v35 = vpop.permute.xlu1 %1273  }
 0x2fb   :  { %1215 = vst.msk [vmem:[#allocation0 + $0x7a8] ss:$48 sm:$0xc] %vm3_vm0, %v1210_v43   ;;  %v1652_v58 = vld [vmem:[#allocation0 + $0x170] sm:$0x3] }
 0x2fc   :  { %1217 = vst.msk [vmem:[#allocation0 + $0x7a8] ss:$48 sm:$0x30] %vm3_vm0, %v1210_v43  }
 0x2fd   :  { %1219 = vst.msk [vmem:[#allocation0 + $0x7a8] ss:$48 sm:$0xc0] %vm3_vm0, %v1210_v43  }
 0x2fe   :  { %4073 = vst [vmem:[%s6772_s1 + $0x14] sm:$0x3] %v1436_v52 }
 0x2ff   :  { %4079 = vst [vmem:[%s6772_s1 + $0x20] sm:$0x3] %v1472_v53 }
 0x300   :  { %4085 = vst [vmem:[%s6772_s1 + $0x2c] sm:$0x3] %v1508_v54 }
 0x301   :  { %4091 = vst [vmem:[%s6772_s1 + $0x38] sm:$0x3] %v1544_v55  ;;  %v1261_v55 = vpop.permute.xlu0 %1260  }
 0x302   :  { %4097 = vst [vmem:[%s6772_s1 + $0x44] sm:$0x3] %v1580_v56 }
 0x303   :  { %4103 = vst [vmem:[%s6772_s1 + $0x50] sm:$0x3] %v1616_v57 }
 0x304   :  { %4109 = vst [vmem:[%s6772_s1 + $0x5c] sm:$0x3] %v1652_v58  ;;  %v1313_v58 = vpop.permute.xlu1 %1312  }
 0x305   :  { %1084 = vst.msk [vmem:[#allocation0 + $0x621] ss:$48 sm:$0x3] %vm3_vm0, %v1081_v46  }
 0x306   :  { %1086 = vst.msk [vmem:[#allocation0 + $0x621] ss:$48 sm:$0xc] %vm3_vm0, %v1081_v46  }
 0x307   :  { %1088 = vst.msk [vmem:[#allocation0 + $0x621] ss:$48 sm:$0x30] %vm3_vm0, %v1081_v46  }
 0x308   :  { %1090 = vst.msk [vmem:[#allocation0 + $0x621] ss:$48 sm:$0xc0] %vm3_vm0, %v1081_v46  }
 0x309   :  { %1071 = vst.msk [vmem:[#allocation0 + $0x4a1] ss:$48 sm:$0x3] %vm3_vm0, %v1068_v47  }
 0x30a   :  { %1073 = vst.msk [vmem:[#allocation0 + $0x4a1] ss:$48 sm:$0xc] %vm3_vm0, %v1068_v47  }
 0x30b   :  { %1075 = vst.msk [vmem:[#allocation0 + $0x4a1] ss:$48 sm:$0x30] %vm3_vm0, %v1068_v47  }
 0x30c   :  { %v2552_v61 = vld [vmem:[#allocation0 + $0x620] sm:$0x3]  ;;  %v2588_v62 = vld [vmem:[#allocation0 + $0x650] sm:$0x3] }
 0x30d   :  { %v2624_v63 = vld [vmem:[#allocation0 + $0x680] sm:$0x3]  ;;  %4259 = vst [vmem:[%s6772_s1 + $0x188] sm:$0x3] %v2552_v61  ;;  %v2660_v0 = vld [vmem:[#allocation0 + $0x6b0] sm:$0x3] }
 0x30e   :  { %4265 = vst [vmem:[%s6772_s1 + $0x194] sm:$0x3] %v2588_v62  ;;  %v2696_v1 = vld [vmem:[#allocation0 + $0x6e0] sm:$0x3]  ;;  %v2732_v2 = vld [vmem:[#allocation0 + $0x710] sm:$0x3] }
 0x30f   :  { %4271 = vst [vmem:[%s6772_s1 + $0x1a0] sm:$0x3] %v2624_v63  ;;  %v2768_v3 = vld [vmem:[#allocation0 + $0x740] sm:$0x3]  ;;  %v2804_v4 = vld [vmem:[#allocation0 + $0x770] sm:$0x3] }
 0x310   :  { %1077 = vst.msk [vmem:[#allocation0 + $0x4a1] ss:$48 sm:$0xc0] %vm3_vm0, %v1068_v47   ;;  %v2264_v5 = vld [vmem:[#allocation0 + $0x4a0] sm:$0x3] }
 0x311   :  { %4277 = vst [vmem:[%s6772_s1 + $0x1ac] sm:$0x3] %v2660_v0  ;;  %v2300_v7 = vld [vmem:[#allocation0 + $0x4d0] sm:$0x3]  ;;  %v2336_v8 = vld [vmem:[#allocation0 + $0x500] sm:$0x3] }
 0x312   :  { %4283 = vst [vmem:[%s6772_s1 + $0x1b8] sm:$0x3] %v2696_v1  ;;  %v2372_v9 = vld [vmem:[#allocation0 + $0x530] sm:$0x3]  ;;  %v2408_v10 = vld [vmem:[#allocation0 + $0x560] sm:$0x3]  ;;  %v1300_v1 = vpop.permute.xlu0 %1299  }
 0x313   :  { %4289 = vst [vmem:[%s6772_s1 + $0x1c4] sm:$0x3] %v2732_v2  ;;  %v2444_v11 = vld [vmem:[#allocation0 + $0x590] sm:$0x3] }
 0x314   :  { %4295 = vst [vmem:[%s6772_s1 + $0x1d0] sm:$0x3] %v2768_v3 }
 0x315   :  { %4301 = vst [vmem:[%s6772_s1 + $0x1dc] sm:$0x3] %v2804_v4 }
 0x316   :  { %4211 = vst [vmem:[%s6772_s1 + $0x128] sm:$0x3] %v2264_v5  ;;  %v1352_v5 = vpop.permute.xlu1 %1351  }
 0x317   :  { %1252 = vst.msk [vmem:[#allocation0 + $0xc28] ss:$48 sm:$0x3] %vm3_vm0, %v1249_v36   ;;  %v2480_v12 = vld [vmem:[#allocation0 + $0x5c0] sm:$0x3] }
 0x318   :  { %1254 = vst.msk [vmem:[#allocation0 + $0xc28] ss:$48 sm:$0xc] %vm3_vm0, %v1249_v36   ;;  %v2516_v13 = vld [vmem:[#allocation0 + $0x5f0] sm:$0x3] }
 0x319   :  { %1256 = vst.msk [vmem:[#allocation0 + $0xc28] ss:$48 sm:$0x30] %vm3_vm0, %v1249_v36  }
 0x31a   :  { %1258 = vst.msk [vmem:[#allocation0 + $0xc28] ss:$48 sm:$0xc0] %vm3_vm0, %v1249_v36  }
 0x31b   :  { %4217 = vst [vmem:[%s6772_s1 + $0x134] sm:$0x3] %v2300_v7 }
 0x31c   :  { %4223 = vst [vmem:[%s6772_s1 + $0x140] sm:$0x3] %v2336_v8 }
 0x31d   :  { %4229 = vst [vmem:[%s6772_s1 + $0x14c] sm:$0x3] %v2372_v9 }
 0x31e   :  { %4235 = vst [vmem:[%s6772_s1 + $0x158] sm:$0x3] %v2408_v10 }
 0x31f   :  { %4241 = vst [vmem:[%s6772_s1 + $0x164] sm:$0x3] %v2444_v11 }
 0x320   :  { %4247 = vst [vmem:[%s6772_s1 + $0x170] sm:$0x3] %v2480_v12 }
 0x321   :  { %4253 = vst [vmem:[%s6772_s1 + $0x17c] sm:$0x3] %v2516_v13 }
 0x322   :  { %1123 = vst.msk [vmem:[#allocation0 + $0xaa1] ss:$48 sm:$0x3] %vm3_vm0, %v1120_v59  }
 0x323   :  { %1125 = vst.msk [vmem:[#allocation0 + $0xaa1] ss:$48 sm:$0xc] %vm3_vm0, %v1120_v59  }
 0x324   :  { %1127 = vst.msk [vmem:[#allocation0 + $0xaa1] ss:$48 sm:$0x30] %vm3_vm0, %v1120_v59  }
 0x325   :  { %1129 = vst.msk [vmem:[#allocation0 + $0xaa1] ss:$48 sm:$0xc0] %vm3_vm0, %v1120_v59  }
 0x326   :  { %1110 = vst.msk [vmem:[#allocation0 + $0x921] ss:$48 sm:$0x3] %vm3_vm0, %v1107_v60  }
 0x327   :  { %1112 = vst.msk [vmem:[#allocation0 + $0x921] ss:$48 sm:$0xc] %vm3_vm0, %v1107_v60  }
 0x328   :  { %1114 = vst.msk [vmem:[#allocation0 + $0x921] ss:$48 sm:$0x30] %vm3_vm0, %v1107_v60  }
 0x329   :  { %v3416_v19 = vld [vmem:[#allocation0 + $0xaa0] sm:$0x3]  ;;  %v3452_v20 = vld [vmem:[#allocation0 + $0xad0] sm:$0x3] }
 0x32a   :  { %v3488_v21 = vld [vmem:[#allocation0 + $0xb00] sm:$0x3]  ;;  %4403 = vst [vmem:[%s6772_s1 + $0x2a8] sm:$0x3] %v3416_v19  ;;  %v3524_v22 = vld [vmem:[#allocation0 + $0xb30] sm:$0x3] }
 0x32b   :  { %4409 = vst [vmem:[%s6772_s1 + $0x2b4] sm:$0x3] %v3452_v20  ;;  %v3560_v23 = vld [vmem:[#allocation0 + $0xb60] sm:$0x3]  ;;  %v3596_v24 = vld [vmem:[#allocation0 + $0xb90] sm:$0x3] }
 0x32c   :  { %4415 = vst [vmem:[%s6772_s1 + $0x2c0] sm:$0x3] %v3488_v21  ;;  %v3632_v25 = vld [vmem:[#allocation0 + $0xbc0] sm:$0x3]  ;;  %v3668_v27 = vld [vmem:[#allocation0 + $0xbf0] sm:$0x3] }
 0x32d   :  { %1116 = vst.msk [vmem:[#allocation0 + $0x921] ss:$48 sm:$0xc0] %vm3_vm0, %v1107_v60   ;;  %v3128_v28 = vld [vmem:[#allocation0 + $0x920] sm:$0x3] }
 0x32e   :  { %4421 = vst [vmem:[%s6772_s1 + $0x2cc] sm:$0x3] %v3524_v22  ;;  %v3164_v29 = vld [vmem:[#allocation0 + $0x950] sm:$0x3]  ;;  %v3200_v31 = vld [vmem:[#allocation0 + $0x980] sm:$0x3]  ;;  %v1339_v22 = vpop.permute.xlu0 %1338  }
 0x32f   :  { %4427 = vst [vmem:[%s6772_s1 + $0x2d8] sm:$0x3] %v3560_v23  ;;  %v3236_v33 = vld [vmem:[#allocation0 + $0x9b0] sm:$0x3]  ;;  %v3272_v34 = vld [vmem:[#allocation0 + $0x9e0] sm:$0x3] }
 0x330   :  { %4433 = vst [vmem:[%s6772_s1 + $0x2e4] sm:$0x3] %v3596_v24  ;;  %v3308_v37 = vld [vmem:[#allocation0 + $0xa10] sm:$0x3] }
 0x331   :  { %4439 = vst [vmem:[%s6772_s1 + $0x2f0] sm:$0x3] %v3632_v25 }
 0x332   :  { %4445 = vst [vmem:[%s6772_s1 + $0x2fc] sm:$0x3] %v3668_v27 }
 0x333   :  { %4355 = vst [vmem:[%s6772_s1 + $0x248] sm:$0x3] %v3128_v28 }
 0x334   :  { %1290 = vst.msk [vmem:[#allocation0 + $0x329] ss:$48 sm:$0x3] %vm3_vm0, %v1287_v6   ;;  %v3344_v39 = vld [vmem:[#allocation0 + $0xa40] sm:$0x3] }
 0x335   :  { %1292 = vst.msk [vmem:[#allocation0 + $0x329] ss:$48 sm:$0xc] %vm3_vm0, %v1287_v6   ;;  %v3380_v40 = vld [vmem:[#allocation0 + $0xa70] sm:$0x3] }
 0x336   :  { %1294 = vst.msk [vmem:[#allocation0 + $0x329] ss:$48 sm:$0x30] %vm3_vm0, %v1287_v6  }
 0x337   :  { %1296 = vst.msk [vmem:[#allocation0 + $0x329] ss:$48 sm:$0xc0] %vm3_vm0, %v1287_v6  }
 0x338   :  { %4361 = vst [vmem:[%s6772_s1 + $0x254] sm:$0x3] %v3164_v29 }
 0x339   :  { %4367 = vst [vmem:[%s6772_s1 + $0x260] sm:$0x3] %v3200_v31 }
 0x33a   :  { %4373 = vst [vmem:[%s6772_s1 + $0x26c] sm:$0x3] %v3236_v33 }
 0x33b   :  { %4379 = vst [vmem:[%s6772_s1 + $0x278] sm:$0x3] %v3272_v34  ;;  %v1982_v41 = vld [vmem:[#allocation0 + $0x328] sm:$0x3]  ;;  %v2018_v42 = vld [vmem:[#allocation0 + $0x358] sm:$0x3] }
 0x33c   :  { %4385 = vst [vmem:[%s6772_s1 + $0x284] sm:$0x3] %v3308_v37  ;;  %v2054_v43 = vld [vmem:[#allocation0 + $0x388] sm:$0x3]  ;;  %v2090_v44 = vld [vmem:[#allocation0 + $0x3b8] sm:$0x3] }
 0x33d   :  { %4391 = vst [vmem:[%s6772_s1 + $0x290] sm:$0x3] %v3344_v39  ;;  %v2126_v46 = vld [vmem:[#allocation0 + $0x3e8] sm:$0x3]  ;;  %v2162_v47 = vld [vmem:[#allocation0 + $0x418] sm:$0x3] }
 0x33e   :  { %4397 = vst [vmem:[%s6772_s1 + $0x29c] sm:$0x3] %v3380_v40  ;;  %v2198_v48 = vld [vmem:[#allocation0 + $0x448] sm:$0x3]  ;;  %v2234_v15 = vld [vmem:[#allocation0 + $0x478] sm:$0x3] }
 0x33f   :  { %1161 = vst.msk [vmem:[#allocation0 + $0x1a8] ss:$48 sm:$0x3] %vm3_vm0, %v1158_v14  }
 0x340   :  { %1163 = vst.msk [vmem:[#allocation0 + $0x1a8] ss:$48 sm:$0xc] %vm3_vm0, %v1158_v14  }
 0x341   :  { %1165 = vst.msk [vmem:[#allocation0 + $0x1a8] ss:$48 sm:$0x30] %vm3_vm0, %v1158_v14  }
 0x342   :  { %1167 = vst.msk [vmem:[#allocation0 + $0x1a8] ss:$48 sm:$0xc0] %vm3_vm0, %v1158_v14  }
 0x343   :  { %4164 = vst [vmem:[%s6772_s1 + $0xca] sm:$0x3] %v1982_v41 }
 0x344   :  { %4170 = vst [vmem:[%s6772_s1 + $0xd6] sm:$0x3] %v2018_v42 }
 0x345   :  { %4176 = vst [vmem:[%s6772_s1 + $0xe2] sm:$0x3] %v2054_v43 }
 0x346   :  { %4182 = vst [vmem:[%s6772_s1 + $0xee] sm:$0x3] %v2090_v44 }
 0x347   :  { %4188 = vst [vmem:[%s6772_s1 + $0xfa] sm:$0x3] %v2126_v46 }
 0x348   :  { %4194 = vst [vmem:[%s6772_s1 + $0x106] sm:$0x3] %v2162_v47 }
 0x349   :  { %4200 = vst [vmem:[%s6772_s1 + $0x112] sm:$0x3] %v2198_v48 }
 0x34a   :  { %4206 = vst [vmem:[%s6772_s1 + $0x11e] sm:$0x3] %v2234_v15 }
 0x34b   :  { %1148 = vst.msk [vmem:[#allocation0 + $0x28] ss:$48 sm:$0x3] %vm3_vm0, %v6428_v16  }
 0x34c   :  { %1150 = vst.msk [vmem:[#allocation0 + $0x28] ss:$48 sm:$0xc] %vm3_vm0, %v6428_v16  }
 0x34d   :  { %1152 = vst.msk [vmem:[#allocation0 + $0x28] ss:$48 sm:$0x30] %vm3_vm0, %v6428_v16  }
 0x34e   :  { %1154 = vst.msk [vmem:[#allocation0 + $0x28] ss:$48 sm:$0xc0] %vm3_vm0, %v6428_v16  }
 0x34f   :  { %1329 = vst.msk [vmem:[#allocation0 + $0x7a9] ss:$48 sm:$0x3] %vm3_vm0, %v1326_v26  }
 0x350   :  { %1331 = vst.msk [vmem:[#allocation0 + $0x7a9] ss:$48 sm:$0xc] %vm3_vm0, %v1326_v26  }
 0x351   :  { %1333 = vst.msk [vmem:[#allocation0 + $0x7a9] ss:$48 sm:$0x30] %vm3_vm0, %v1326_v26  }
 0x352   :  { %1335 = vst.msk [vmem:[#allocation0 + $0x7a9] ss:$48 sm:$0xc0] %vm3_vm0, %v1326_v26  }
 0x353   :  { %1200 = vst.msk [vmem:[#allocation0 + $0x628] ss:$48 sm:$0x3] %vm3_vm0, %v1197_v30  }
 0x354   :  { %1202 = vst.msk [vmem:[#allocation0 + $0x628] ss:$48 sm:$0xc] %vm3_vm0, %v1197_v30  }
 0x355   :  { %1204 = vst.msk [vmem:[#allocation0 + $0x628] ss:$48 sm:$0x30] %vm3_vm0, %v1197_v30  }
 0x356   :  { %v2846_v49 = vld [vmem:[#allocation0 + $0x7a8] sm:$0x3]  ;;  %v2882_v50 = vld [vmem:[#allocation0 + $0x7d8] sm:$0x3] }
 0x357   :  { %v2918_v51 = vld [vmem:[#allocation0 + $0x808] sm:$0x3]  ;;  %4308 = vst [vmem:[%s6772_s1 + $0x1ea] sm:$0x3] %v2846_v49  ;;  %v2954_v32 = vld [vmem:[#allocation0 + $0x838] sm:$0x3] }
 0x358   :  { %4314 = vst [vmem:[%s6772_s1 + $0x1f6] sm:$0x3] %v2882_v50  ;;  %v2990_v36 = vld [vmem:[#allocation0 + $0x868] sm:$0x3]  ;;  %v3026_v52 = vld [vmem:[#allocation0 + $0x898] sm:$0x3] }
 0x359   :  { %4320 = vst [vmem:[%s6772_s1 + $0x202] sm:$0x3] %v2918_v51  ;;  %v3062_v53 = vld [vmem:[#allocation0 + $0x8c8] sm:$0x3]  ;;  %v3098_v54 = vld [vmem:[#allocation0 + $0x8f8] sm:$0x3] }
 0x35a   :  { %1206 = vst.msk [vmem:[#allocation0 + $0x628] ss:$48 sm:$0xc0] %vm3_vm0, %v1197_v30  }
 0x35b   :  { %4326 = vst [vmem:[%s6772_s1 + $0x20e] sm:$0x3] %v2954_v32 }
 0x35c   :  { %4332 = vst [vmem:[%s6772_s1 + $0x21a] sm:$0x3] %v2990_v36 }
 0x35d   :  { %4338 = vst [vmem:[%s6772_s1 + $0x226] sm:$0x3] %v3026_v52 }
 0x35e   :  { %4344 = vst [vmem:[%s6772_s1 + $0x232] sm:$0x3] %v3062_v53 }
 0x35f   :  { %4350 = vst [vmem:[%s6772_s1 + $0x23e] sm:$0x3] %v3098_v54 }
 0x360   :  { %1187 = vst.msk [vmem:[#allocation0 + $0x4a8] ss:$48 sm:$0x3] %vm3_vm0, %v6474_v38  }
 0x361   :  { %1189 = vst.msk [vmem:[#allocation0 + $0x4a8] ss:$48 sm:$0xc] %vm3_vm0, %v6474_v38  }
 0x362   :  { %1191 = vst.msk [vmem:[#allocation0 + $0x4a8] ss:$48 sm:$0x30] %vm3_vm0, %v6474_v38  }
 0x363   :  { %1193 = vst.msk [vmem:[#allocation0 + $0x4a8] ss:$48 sm:$0xc0] %vm3_vm0, %v6474_v38  }
 0x364   :  { %1368 = vst.msk [vmem:[#allocation0 + $0xc29] ss:$48 sm:$0x3] %vm3_vm0, %v1365_v45  }
 0x365   :  { %1370 = vst.msk [vmem:[#allocation0 + $0xc29] ss:$48 sm:$0xc] %vm3_vm0, %v1365_v45  }
 0x366   :  { %1372 = vst.msk [vmem:[#allocation0 + $0xc29] ss:$48 sm:$0x30] %vm3_vm0, %v1365_v45  }
 0x367   :  { %1374 = vst.msk [vmem:[#allocation0 + $0xc29] ss:$48 sm:$0xc0] %vm3_vm0, %v1365_v45  }
 0x368   :  { %1239 = vst.msk [vmem:[#allocation0 + $0xaa8] ss:$48 sm:$0x3] %vm3_vm0, %v1236_v17  }
 0x369   :  { %1241 = vst.msk [vmem:[#allocation0 + $0xaa8] ss:$48 sm:$0xc] %vm3_vm0, %v1236_v17  }
 0x36a   :  { %1243 = vst.msk [vmem:[#allocation0 + $0xaa8] ss:$48 sm:$0x30] %vm3_vm0, %v1236_v17  }
 0x36b   :  { %v3710_v56 = vld [vmem:[#allocation0 + $0xc28] sm:$0x3]  ;;  %v3746_v57 = vld [vmem:[#allocation0 + $0xc58] sm:$0x3] }
 0x36c   :  { %4452 = vst [vmem:[%s6772_s1 + $0x30a] sm:$0x3] %v3710_v56  ;;  %v3782_v59 = vld [vmem:[#allocation0 + $0xc88] sm:$0x3]  ;;  %v3818_v60 = vld [vmem:[#allocation0 + $0xcb8] sm:$0x3] }
 0x36d   :  { %4458 = vst [vmem:[%s6772_s1 + $0x316] sm:$0x3] %v3746_v57  ;;  %v3854_v61 = vld [vmem:[#allocation0 + $0xce8] sm:$0x3]  ;;  %v3890_v62 = vld [vmem:[#allocation0 + $0xd18] sm:$0x3] }
 0x36e   :  { %4464 = vst [vmem:[%s6772_s1 + $0x322] sm:$0x3] %v3782_v59  ;;  %v3926_v63 = vld [vmem:[#allocation0 + $0xd48] sm:$0x3]  ;;  %v3962_v0 = vld [vmem:[#allocation0 + $0xd78] sm:$0x3] }
 0x36f   :  { %4470 = vst [vmem:[%s6772_s1 + $0x32e] sm:$0x3] %v3818_v60 }
 0x370   :  { %4476 = vst [vmem:[%s6772_s1 + $0x33a] sm:$0x3] %v3854_v61 }
 0x371   :  { %4482 = vst [vmem:[%s6772_s1 + $0x346] sm:$0x3] %v3890_v62 }
 0x372   :  { %4488 = vst [vmem:[%s6772_s1 + $0x352] sm:$0x3] %v3926_v63 }
 0x373   :  { %4494 = vst [vmem:[%s6772_s1 + $0x35e] sm:$0x3] %v3962_v0 }
 0x374   :  { %1245 = vst.msk [vmem:[#allocation0 + $0xaa8] ss:$48 sm:$0xc0] %vm3_vm0, %v1236_v17  }
 0x375   :  { %1226 = vst.msk [vmem:[#allocation0 + $0x928] ss:$48 sm:$0x3] %vm3_vm0, %v1223_v18  }
 0x376   :  { %1228 = vst.msk [vmem:[#allocation0 + $0x928] ss:$48 sm:$0xc] %vm3_vm0, %v1223_v18  }
 0x377   :  { %1230 = vst.msk [vmem:[#allocation0 + $0x928] ss:$48 sm:$0x30] %vm3_vm0, %v1223_v18  }
 0x378   :  { %1232 = vst.msk [vmem:[#allocation0 + $0x928] ss:$48 sm:$0xc0] %vm3_vm0, %v1223_v18  }
 0x379   :  { %1277 = vst.msk [vmem:[#allocation0 + $0x1a9] ss:$48 sm:$0x3] %vm3_vm0, %v1274_v35  }
 0x37a   :  { %1279 = vst.msk [vmem:[#allocation0 + $0x1a9] ss:$48 sm:$0xc] %vm3_vm0, %v1274_v35  }
 0x37b   :  { %1281 = vst.msk [vmem:[#allocation0 + $0x1a9] ss:$48 sm:$0x30] %vm3_vm0, %v1274_v35  }
 0x37c   :  { %1283 = vst.msk [vmem:[#allocation0 + $0x1a9] ss:$48 sm:$0xc0] %vm3_vm0, %v1274_v35  }
 0x37d   :  { %1264 = vst.msk [vmem:[#allocation0 + $0x29] ss:$48 sm:$0x3] %vm3_vm0, %v1261_v55  }
 0x37e   :  { %1266 = vst.msk [vmem:[#allocation0 + $0x29] ss:$48 sm:$0xc] %vm3_vm0, %v1261_v55  }
 0x37f   :  { %1268 = vst.msk [vmem:[#allocation0 + $0x29] ss:$48 sm:$0x30] %vm3_vm0, %v1261_v55  }
 0x380   :  { %v1694_v2 = vld [vmem:[#allocation0 + $0x1a8] sm:$0x3]  ;;  %v1730_v3 = vld [vmem:[#allocation0 + $0x1d8] sm:$0x3] }
 0x381   :  { %v1766_v4 = vld [vmem:[#allocation0 + $0x208] sm:$0x3]  ;;  %4116 = vst [vmem:[%s6772_s1 + $0x6a] sm:$0x3] %v1694_v2  ;;  %v1802_v6 = vld [vmem:[#allocation0 + $0x238] sm:$0x3] }
 0x382   :  { %4122 = vst [vmem:[%s6772_s1 + $0x76] sm:$0x3] %v1730_v3  ;;  %v1838_v7 = vld [vmem:[#allocation0 + $0x268] sm:$0x3]  ;;  %v1874_v8 = vld [vmem:[#allocation0 + $0x298] sm:$0x3] }
 0x383   :  { %4128 = vst [vmem:[%s6772_s1 + $0x82] sm:$0x3] %v1766_v4  ;;  %v1910_v9 = vld [vmem:[#allocation0 + $0x2c8] sm:$0x3]  ;;  %v1946_v10 = vld [vmem:[#allocation0 + $0x2f8] sm:$0x3] }
 0x384   :  { %1270 = vst.msk [vmem:[#allocation0 + $0x29] ss:$48 sm:$0xc0] %vm3_vm0, %v1261_v55   ;;  %v1406_v11 = vld [vmem:[#allocation0 + $0x28] sm:$0x3] }
 0x385   :  { %4134 = vst [vmem:[%s6772_s1 + $0x8e] sm:$0x3] %v1802_v6  ;;  %v1442_v12 = vld [vmem:[#allocation0 + $0x58] sm:$0x3]  ;;  %v1478_v13 = vld [vmem:[#allocation0 + $0x88] sm:$0x3] }
 0x386   :  { %4140 = vst [vmem:[%s6772_s1 + $0x9a] sm:$0x3] %v1838_v7  ;;  %v1514_v14 = vld [vmem:[#allocation0 + $0xb8] sm:$0x3]  ;;  %v1550_v16 = vld [vmem:[#allocation0 + $0xe8] sm:$0x3] }
 0x387   :  { %4146 = vst [vmem:[%s6772_s1 + $0xa6] sm:$0x3] %v1874_v8  ;;  %v1586_v19 = vld [vmem:[#allocation0 + $0x118] sm:$0x3] }
 0x388   :  { %4152 = vst [vmem:[%s6772_s1 + $0xb2] sm:$0x3] %v1910_v9 }
 0x389   :  { %4158 = vst [vmem:[%s6772_s1 + $0xbe] sm:$0x3] %v1946_v10 }
 0x38a   :  { %4068 = vst [vmem:[%s6772_s1 + $0xa] sm:$0x3] %v1406_v11 }
 0x38b   :  { %1316 = vst.msk [vmem:[#allocation0 + $0x629] ss:$48 sm:$0x3] %vm3_vm0, %v1313_v58   ;;  %v1622_v20 = vld [vmem:[#allocation0 + $0x148] sm:$0x3] }
 0x38c   :  { %1318 = vst.msk [vmem:[#allocation0 + $0x629] ss:$48 sm:$0xc] %vm3_vm0, %v1313_v58   ;;  %v1658_v21 = vld [vmem:[#allocation0 + $0x178] sm:$0x3] }
 0x38d   :  { %1320 = vst.msk [vmem:[#allocation0 + $0x629] ss:$48 sm:$0x30] %vm3_vm0, %v1313_v58  }
 0x38e   :  { %1322 = vst.msk [vmem:[#allocation0 + $0x629] ss:$48 sm:$0xc0] %vm3_vm0, %v1313_v58  }
 0x38f   :  { %4074 = vst [vmem:[%s6772_s1 + $0x16] sm:$0x3] %v1442_v12 }
 0x390   :  { %4080 = vst [vmem:[%s6772_s1 + $0x22] sm:$0x3] %v1478_v13 }
 0x391   :  { %4086 = vst [vmem:[%s6772_s1 + $0x2e] sm:$0x3] %v1514_v14 }
 0x392   :  { %4092 = vst [vmem:[%s6772_s1 + $0x3a] sm:$0x3] %v1550_v16  ;;  %v2558_v23 = vld [vmem:[#allocation0 + $0x628] sm:$0x3]  ;;  %v2594_v24 = vld [vmem:[#allocation0 + $0x658] sm:$0x3] }
 0x393   :  { %4098 = vst [vmem:[%s6772_s1 + $0x46] sm:$0x3] %v1586_v19  ;;  %v2630_v25 = vld [vmem:[#allocation0 + $0x688] sm:$0x3]  ;;  %v2666_v26 = vld [vmem:[#allocation0 + $0x6b8] sm:$0x3] }
 0x394   :  { %4104 = vst [vmem:[%s6772_s1 + $0x52] sm:$0x3] %v1622_v20  ;;  %v2702_v27 = vld [vmem:[#allocation0 + $0x6e8] sm:$0x3]  ;;  %v2738_v28 = vld [vmem:[#allocation0 + $0x718] sm:$0x3] }
 0x395   :  { %4110 = vst [vmem:[%s6772_s1 + $0x5e] sm:$0x3] %v1658_v21  ;;  %v2774_v29 = vld [vmem:[#allocation0 + $0x748] sm:$0x3]  ;;  %v2810_v30 = vld [vmem:[#allocation0 + $0x778] sm:$0x3] }
 0x396   :  { %1303 = vst.msk [vmem:[#allocation0 + $0x4a9] ss:$48 sm:$0x3] %vm3_vm0, %v1300_v1  }
 0x397   :  { %1305 = vst.msk [vmem:[#allocation0 + $0x4a9] ss:$48 sm:$0xc] %vm3_vm0, %v1300_v1  }
 0x398   :  { %1307 = vst.msk [vmem:[#allocation0 + $0x4a9] ss:$48 sm:$0x30] %vm3_vm0, %v1300_v1  }
 0x399   :  { %1309 = vst.msk [vmem:[#allocation0 + $0x4a9] ss:$48 sm:$0xc0] %vm3_vm0, %v1300_v1  }
 0x39a   :  { %4260 = vst [vmem:[%s6772_s1 + $0x18a] sm:$0x3] %v2558_v23 }
 0x39b   :  { %4266 = vst [vmem:[%s6772_s1 + $0x196] sm:$0x3] %v2594_v24 }
 0x39c   :  { %4272 = vst [vmem:[%s6772_s1 + $0x1a2] sm:$0x3] %v2630_v25 }
 0x39d   :  { %4278 = vst [vmem:[%s6772_s1 + $0x1ae] sm:$0x3] %v2666_v26  ;;  %v2270_v31 = vld [vmem:[#allocation0 + $0x4a8] sm:$0x3]  ;;  %v2306_v33 = vld [vmem:[#allocation0 + $0x4d8] sm:$0x3] }
 0x39e   :  { %4284 = vst [vmem:[%s6772_s1 + $0x1ba] sm:$0x3] %v2702_v27  ;;  %v2342_v34 = vld [vmem:[#allocation0 + $0x508] sm:$0x3]  ;;  %v2378_v37 = vld [vmem:[#allocation0 + $0x538] sm:$0x3] }
 0x39f   :  { %4290 = vst [vmem:[%s6772_s1 + $0x1c6] sm:$0x3] %v2738_v28  ;;  %v2414_v46 = vld [vmem:[#allocation0 + $0x568] sm:$0x3]  ;;  %v2450_v47 = vld [vmem:[#allocation0 + $0x598] sm:$0x3] }
 0x3a0   :  { %4296 = vst [vmem:[%s6772_s1 + $0x1d2] sm:$0x3] %v2774_v29  ;;  %v2486_v48 = vld [vmem:[#allocation0 + $0x5c8] sm:$0x3]  ;;  %v2522_v15 = vld [vmem:[#allocation0 + $0x5f8] sm:$0x3] }
 0x3a1   :  { %4302 = vst [vmem:[%s6772_s1 + $0x1de] sm:$0x3] %v2810_v30 }
 0x3a2   :  { %1355 = vst.msk [vmem:[#allocation0 + $0xaa9] ss:$48 sm:$0x3] %vm3_vm0, %v1352_v5  }
 0x3a3   :  { %1357 = vst.msk [vmem:[#allocation0 + $0xaa9] ss:$48 sm:$0xc] %vm3_vm0, %v1352_v5  }
 0x3a4   :  { %1359 = vst.msk [vmem:[#allocation0 + $0xaa9] ss:$48 sm:$0x30] %vm3_vm0, %v1352_v5  }
 0x3a5   :  { %1361 = vst.msk [vmem:[#allocation0 + $0xaa9] ss:$48 sm:$0xc0] %vm3_vm0, %v1352_v5  }
 0x3a6   :  { %4212 = vst [vmem:[%s6772_s1 + $0x12a] sm:$0x3] %v2270_v31 }
 0x3a7   :  { %4218 = vst [vmem:[%s6772_s1 + $0x136] sm:$0x3] %v2306_v33 }
 0x3a8   :  { %4224 = vst [vmem:[%s6772_s1 + $0x142] sm:$0x3] %v2342_v34 }
 0x3a9   :  { %v3422_v38 = vld [vmem:[#allocation0 + $0xaa8] sm:$0x3]  ;;  %v3458_v39 = vld [vmem:[#allocation0 + $0xad8] sm:$0x3]  ;;  %4230 = vst [vmem:[%s6772_s1 + $0x14e] sm:$0x3] %v2378_v37 }
 0x3aa   :  { %4404 = vst [vmem:[%s6772_s1 + $0x2aa] sm:$0x3] %v3422_v38  ;;  %v3494_v40 = vld [vmem:[#allocation0 + $0xb08] sm:$0x3]  ;;  %v3530_v41 = vld [vmem:[#allocation0 + $0xb38] sm:$0x3] }
 0x3ab   :  { %4410 = vst [vmem:[%s6772_s1 + $0x2b6] sm:$0x3] %v3458_v39  ;;  %v3566_v42 = vld [vmem:[#allocation0 + $0xb68] sm:$0x3]  ;;  %v3602_v43 = vld [vmem:[#allocation0 + $0xb98] sm:$0x3] }
 0x3ac   :  { %4416 = vst [vmem:[%s6772_s1 + $0x2c2] sm:$0x3] %v3494_v40  ;;  %v3638_v44 = vld [vmem:[#allocation0 + $0xbc8] sm:$0x3]  ;;  %v3674_v45 = vld [vmem:[#allocation0 + $0xbf8] sm:$0x3] }
 0x3ad   :  { %4422 = vst [vmem:[%s6772_s1 + $0x2ce] sm:$0x3] %v3530_v41 }
 0x3ae   :  { %4428 = vst [vmem:[%s6772_s1 + $0x2da] sm:$0x3] %v3566_v42 }
 0x3af   :  { %4434 = vst [vmem:[%s6772_s1 + $0x2e6] sm:$0x3] %v3602_v43 }
 0x3b0   :  { %4440 = vst [vmem:[%s6772_s1 + $0x2f2] sm:$0x3] %v3638_v44 }
 0x3b1   :  { %4446 = vst [vmem:[%s6772_s1 + $0x2fe] sm:$0x3] %v3674_v45 }
 0x3b2   :  { %4236 = vst [vmem:[%s6772_s1 + $0x15a] sm:$0x3] %v2414_v46 }
 0x3b3   :  { %4242 = vst [vmem:[%s6772_s1 + $0x166] sm:$0x3] %v2450_v47 }
 0x3b4   :  { %4248 = vst [vmem:[%s6772_s1 + $0x172] sm:$0x3] %v2486_v48 }
 0x3b5   :  { %4254 = vst [vmem:[%s6772_s1 + $0x17e] sm:$0x3] %v2522_v15 }
 0x3b6   :  { %1342 = vst.msk [vmem:[#allocation0 + $0x929] ss:$48 sm:$0x3] %vm3_vm0, %v1339_v22  }
 0x3b7   :  { %1344 = vst.msk [vmem:[#allocation0 + $0x929] ss:$48 sm:$0xc] %vm3_vm0, %v1339_v22  }
 0x3b8   :  { %1346 = vst.msk [vmem:[#allocation0 + $0x929] ss:$48 sm:$0x30] %vm3_vm0, %v1339_v22  }
 0x3b9   :  { %1348 = vst.msk [vmem:[#allocation0 + $0x929] ss:$48 sm:$0xc0] %vm3_vm0, %v1339_v22  }
 0x3bd   :  { %v3134_v17 = vld [vmem:[#allocation0 + $0x928] sm:$0x3]  ;;  %v3170_v18 = vld [vmem:[#allocation0 + $0x958] sm:$0x3] }
 0x3be   :  { %4356 = vst [vmem:[%s6772_s1 + $0x24a] sm:$0x3] %v3134_v17  ;;  %v3206_v49 = vld [vmem:[#allocation0 + $0x988] sm:$0x3]  ;;  %v3242_v50 = vld [vmem:[#allocation0 + $0x9b8] sm:$0x3] }
 0x3bf   :  { %4362 = vst [vmem:[%s6772_s1 + $0x256] sm:$0x3] %v3170_v18  ;;  %v3278_v51 = vld [vmem:[#allocation0 + $0x9e8] sm:$0x3]  ;;  %v3314_v32 = vld [vmem:[#allocation0 + $0xa18] sm:$0x3] }
 0x3c0   :  { %4368 = vst [vmem:[%s6772_s1 + $0x262] sm:$0x3] %v3206_v49  ;;  %v3350_v35 = vld [vmem:[#allocation0 + $0xa48] sm:$0x3]  ;;  %v3386_v36 = vld [vmem:[#allocation0 + $0xa78] sm:$0x3] }
 0x3c1   :  { %4374 = vst [vmem:[%s6772_s1 + $0x26e] sm:$0x3] %v3242_v50 }
 0x3c2   :  { %4380 = vst [vmem:[%s6772_s1 + $0x27a] sm:$0x3] %v3278_v51 }
 0x3c3   :  { %4386 = vst [vmem:[%s6772_s1 + $0x286] sm:$0x3] %v3314_v32 }
 0x3c4   :  { %4392 = vst [vmem:[%s6772_s1 + $0x292] sm:$0x3] %v3350_v35 }
 0x3c5   :  { %4398 = vst [vmem:[%s6772_s1 + $0x29e] sm:$0x3] %v3386_v36 }

// kernel: gaf_layers_forward.2
= control target key start
LH: loop header
LB: loop body
LE: loop exit
PB: predicated region body
PF: predicated region fallthrough
CT: control target
= control target key end

     0   :  { %s419_s9 = smov 0   ;;  %s421_s10 = smov 0   ;;  %s522_s0 = inlined_call_operand.vmem [shape: f32[32,9], index: 0, kind: input, shape index: {}]   ;;  %s523_s1 = inlined_call_operand.vmem [shape: f32[9,384], index: 1, kind: input, shape index: {}]   ;;  %s524_s2 = inlined_call_operand.vmem [shape: f32[64,1], index: 2, kind: output, shape index: {}]  }
   0x1   :  { %s423_s11 = smov 0  }
   0x2 LB: > { %s332_s12 = sadd.s32 4294967295, %s401_s11   ;;  %s436_s13 = sadd.s32 1, %s401_s11   ;;  %s401_s11 = sphi %s423_s11, %s527_s11   ;;  %s397_s10 = sphi %s421_s10, %s526_s10   ;;  %s393_s9 = sphi %s419_s9, %s525_s9  }
   0x3   : > { %s37_s14 = ssub.s32 %s401_s11, %s436_s13  ;;  %s40_s15 = sadd.s32 1, %s397_s10 }
   0x4   : > { %p38_p0 = scmp.eq.s32.totalorder %s37_s14, 0  ;;  %p47_p1 = scmp.ne.s32.totalorder %s397_s10, %s393_s9 }
   0x5   : > { %p48_p2 = scmp.eq.s32.totalorder %s401_s11, 0  ;;  %p334_p4 = scmp.ge.s32.totalorder %s401_s11, 3 }
   0x6   : > { %s445_s16 = scalar_select %p38_p0, %s397_s10, %s40_s15  }
   0x7   : > { %p49_p3 = por %p48_p2, %p47_p1  ;;  %97 = sbr.rel (%p334_p4) target bundleno = 18 (0x12), region = 20 }
   0xc   : > { %100 = sbr.rel (!%p49_p3) target bundleno = 18 (0x12), region = 24  ;;  %s102_s17 = sand.u32 (%p49_p3), 1, %s397_s10  }
   0xd   : > { %s336_s18 = sshll.u32 (%p49_p3), %s401_s11, 3  ;;  %s335_s19 = sshll.u32 (%p49_p3), %s102_s17, 4 }
   0xe   : > { %s106_s22 = scalar_lea.vmem (%p49_p3), %s523_s1, %s336_s18  ;;  %s104_s23 = scalar_lea.vmem (%p49_p3), [#allocation3], %s335_s19 }
   0xf   : > { %v137_v0 = vld [vmem:[%s106_s22] sm:$0xff] (%p49_p3)  ;;  %v139_v1 = vld [vmem:[%s106_s22 + $0x18] sm:$0xff] (%p49_p3) }
  0x10   : > { %138 = vst [vmem:[%s104_s23] sm:$0xff] (%p49_p3), %v137_v0 }
  0x11   : > { %140 = vst [vmem:[%s104_s23 + $0x8] sm:$0xff] %v139_v1 }
  0x12 PF: > { %p337_p5 = scmp.ge.s32.totalorder %s401_s11, 1  ;;  %p145_p6 = scmp.lt.s32.totalorder %s401_s11, 4 }
  0x14   : > { %p146_p7 = pnand %p337_p5, %p145_p6 }
  0x15   : > { %s152_s24 = sand.u32 (!%p146_p7), 1, %s393_s9   ;;  %p339_p8 = scmp.ne.s32.totalorder (!%p146_p7), %s332_s12, 0 }
  0x16   : > { %149 = sbr.rel (%p146_p7) target bundleno = 321 (0x141), region = 62  ;;  %s338_s25 = sshll.u32 (!%p146_p7), %s152_s24, 4 }
  0x17   : > { %s154_s26 = scalar_lea.vmem (!%p146_p7), [#allocation3], %s338_s25 }
  0x1b   : > { %171 = sbr.rel (%p339_p8) target bundleno = 41 (0x29), region = 70 }
  0x20   : > { %vm172_vm0 = vcmask 7168   ;;  %v403_v2 = vmov 0.0  }
  0x21   : > { %173 = vst.msk [vmem:[#allocation2] sm:$0xff] %vm172_vm0, %v403_v2 }
  0x22   : > { %174 = vst.msk [vmem:[#allocation2 + $0x8] sm:$0xff] %vm172_vm0, %v403_v2 }
  0x23   : > { %175 = vst.msk [vmem:[#allocation2 + $0x10] sm:$0xff] %vm172_vm0, %v403_v2 }
  0x24   : > { %176 = vst.msk [vmem:[#allocation2 + $0x18] sm:$0xff] %vm172_vm0, %v403_v2 }
  0x25   : > { %177 = vst.msk [vmem:[#allocation2 + $0x20] sm:$0xff] %vm172_vm0, %v403_v2 }
  0x26   : > { %178 = vst.msk [vmem:[#allocation2 + $0x28] sm:$0xff] %vm172_vm0, %v403_v2 }
  0x27   : > { %179 = vst.msk [vmem:[#allocation2 + $0x30] sm:$0xff] %vm172_vm0, %v403_v2 }
  0x28   : > { %180 = vst.msk [vmem:[#allocation2 + $0x38] sm:$0xff] %vm172_vm0, %v403_v2 }
  0x29 PF: > { %v186_v3 = vld [vmem:[%s154_s26 + $0x8] sm:$0x1]  ;;  %vm200_vm1 = vcmask 1040384   ;;  %v185_v4 = vld [vmem:[%s154_s26] sm:$0xff]  ;;  %vm187_vm2 = vcmask 72704   ;;  %vm269_vm3 = vcmask 7168  }
  0x2a   : > { %340 = vmatpush.msk.msra.mxu0 %vm200_vm1, %v186_v3  ;;  %349 = vmatpush.msk.msra.mxu2 %vm200_vm1, %v186_v3  ;;  %v181_v5 = vld [vmem:[%s522_s0] sm:$0xff]  ;;  %v183_v6 = vld [vmem:[%s522_s0 + $0x10] sm:$0xff]  ;;  %v182_v7 = vld [vmem:[%s522_s0 + $0x8] sm:$0xff]  ;;  %p345_p9 = scmp.ne.s32.totalorder %s332_s12, 2 }
  0x2b   : > { %348 = vmatpush.msk.msra.mxu1 %vm200_vm1, %v186_v3  ;;  %350 = vmatpush.msk.msra.mxu3 %vm200_vm1, %v186_v3  ;;  %v184_v8 = vld [vmem:[%s522_s0 + $0x18] sm:$0xff]  ;;  %v237_v17 = vld [vmem:[#allocation2] sm:$0xff]  ;;  %v239_v23 = vld [vmem:[#allocation2 + $0x10] sm:$0xff] }
  0x2c   : > { %219 = vmatpush.msra.mxu0 %v185_v4  ;;  %352 = vmatpush.msra.mxu2 %v185_v4  ;;  %v241_v19 = vld [vmem:[#allocation2 + $0x20] sm:$0xff]  ;;  %v238_v25 = vld [vmem:[#allocation2 + $0x8] sm:$0xff]  ;;  %v240_v32 = vld [vmem:[#allocation2 + $0x18] sm:$0xff] }
  0x2d   : > { %341 = vmatmul.msk.f32.vlgmr.msra.gmra.mxu0 %vm187_vm2, %v181_v5  ;;  %343 = vmatmul.msk.f32.vlgmr.msra.gmra.mxu2 %vm187_vm2, %v183_v6  ;;  %v242_v28 = vld [vmem:[#allocation2 + $0x28] sm:$0xff] }
  0x2e   : > { %351 = vmatpush.msra.mxu1 %v185_v4  ;;  %353 = vmatpush.msra.mxu3 %v185_v4  ;;  %v243_v34 = vld [vmem:[#allocation2 + $0x30] sm:$0xff] }
  0x2f   : > { %342 = vmatmul.msk.f32.vlgmr.msra.gmra.mxu1 %vm187_vm2, %v182_v7  ;;  %344 = vmatmul.msk.f32.vlgmr.msra.gmra.mxu3 %vm187_vm2, %v184_v8  ;;  %v244_v38 = vld [vmem:[#allocation2 + $0x38] sm:$0xff] }
  0xaa   : > { %v221_v9 = vpop.f32.mrf.mxu0 }
  0xab   : > { %245 = vadd.xlane.f32.xlu0 %v221_v9  ;;  %v233_v10 = vmul.f32 %v221_v9, %v221_v9 }
  0xac   : > { %v224_v12 = vpop.f32.mrf.mxu1 }
  0xad   : > { %253 = vadd.xlane.f32.xlu2 %v233_v10  ;;  %v234_v13 = vmul.f32 %v224_v12, %v224_v12 }
  0xb0   : > { %v227_v11 = vpop.f32.mrf.mxu2 }
  0xb1   : > { %249 = vadd.xlane.f32.xlu1 %v227_v11  ;;  %v235_v15 = vmul.f32 %v227_v11, %v227_v11 }
  0xb2   : > { %v230_v14 = vpop.f32.mrf.mxu3 }
  0xb3   : > { %247 = vadd.xlane.f32.xlu0 %v224_v12  ;;  %v236_v16 = vmul.f32 %v230_v14, %v230_v14 }
  0xb5   : > { %255 = vadd.xlane.f32.xlu2 %v234_v13 }
  0xb9   : > { %251 = vadd.xlane.f32.xlu1 %v230_v14 }
  0xbb   : > { %257 = vadd.xlane.f32.xlu0 %v235_v15 }
  0xc1   : > { %259 = vadd.xlane.f32.xlu1 %v236_v16 }
 0x11e   : > { %v246_v18 = vpop.xlane.xlu0 %245 }
 0x11f   : > { %v261_v20 = vadd.f32 %v246_v18, %v237_v17 }
 0x120   : > { %v254_v21 = vpop.xlane.xlu2 %253 }
 0x121   : > { %270 = vst.msk [vmem:[#allocation2] sm:$0xff] %vm269_vm3, %v261_v20  ;;  %v265_v22 = vadd.f32 %v254_v21, %v241_v19 }
 0x123   : > { %274 = vst.msk [vmem:[#allocation2 + $0x20] sm:$0xff] %vm269_vm3, %v265_v22 }
 0x124   : > { %v250_v24 = vpop.xlane.xlu1 %249 }
 0x125   : > { %v263_v26 = vadd.f32 %v250_v24, %v239_v23 }
 0x126   : > { %v248_v27 = vpop.xlane.xlu0 %247 }
 0x127   : > { %272 = vst.msk [vmem:[#allocation2 + $0x10] sm:$0xff] %vm269_vm3, %v263_v26  ;;  %v262_v29 = vadd.f32 %v248_v27, %v238_v25 }
 0x128   : > { %v256_v30 = vpop.xlane.xlu2 %255 }
 0x129   : > { %271 = vst.msk [vmem:[#allocation2 + $0x8] sm:$0xff] %vm269_vm3, %v262_v29  ;;  %v266_v31 = vadd.f32 %v256_v30, %v242_v28 }
 0x12b   : > { %275 = vst.msk [vmem:[#allocation2 + $0x28] sm:$0xff] %vm269_vm3, %v266_v31 }
 0x12c   : > { %v252_v33 = vpop.xlane.xlu1 %251 }
 0x12d   : > { %v264_v35 = vadd.f32 %v252_v33, %v240_v32 }
 0x12e   : > { %v258_v36 = vpop.xlane.xlu0 %257 }
 0x12f   : > { %273 = vst.msk [vmem:[#allocation2 + $0x18] sm:$0xff] %vm269_vm3, %v264_v35  ;;  %v267_v37 = vadd.f32 %v258_v36, %v243_v34 }
 0x131   : > { %276 = vst.msk [vmem:[#allocation2 + $0x30] sm:$0xff] %vm269_vm3, %v267_v37 }
 0x133   : > { %281 = sbr.rel (%p345_p9) target bundleno = 321 (0x141), region = 74 }
 0x134   : > { %v260_v39 = vpop.xlane.xlu1 %259 }
 0x135   : > { %v268_v40 = vadd.f32 %v260_v39, %v244_v38 }
 0x137   : > { %277 = vst.msk [vmem:[#allocation2 + $0x38] sm:$0xff] %vm269_vm3, %v268_v40 }
 0x138   : > { %v282_v41 = vld [vmem:[#allocation2] sm:$0xff]  ;;  %v283_v42 = vld [vmem:[#allocation2 + $0x8] sm:$0xff]  ;;  %v284_v43 = vld [vmem:[#allocation2 + $0x10] sm:$0xff] }
 0x139   : > { %290 = vst.msk [vmem:[%s524_s2] sm:$0xff] %vm269_vm3, %v282_v41  ;;  %v285_v44 = vld [vmem:[#allocation2 + $0x18] sm:$0xff]  ;;  %v286_v45 = vld [vmem:[#allocation2 + $0x20] sm:$0xff]  ;;  %v287_v46 = vld [vmem:[#allocation2 + $0x28] sm:$0xff] }
 0x13a   : > { %291 = vst.msk [vmem:[%s524_s2 + $0x8] sm:$0xff] %vm269_vm3, %v283_v42  ;;  %v288_v47 = vld [vmem:[#allocation2 + $0x30] sm:$0xff] }
 0x13b   : > { %292 = vst.msk [vmem:[%s524_s2 + $0x10] sm:$0xff] %vm269_vm3, %v284_v43 }
 0x13c   : > { %293 = vst.msk [vmem:[%s524_s2 + $0x18] sm:$0xff] %vm269_vm3, %v285_v44 }
 0x13d   : > { %294 = vst.msk [vmem:[%s524_s2 + $0x20] sm:$0xff] %vm269_vm3, %v286_v45 }
 0x13e   : > { %v289_v48 = vld [vmem:[#allocation2 + $0x38] sm:$0xff]  ;;  %295 = vst.msk [vmem:[%s524_s2 + $0x28] sm:$0xff] %vm269_vm3, %v287_v46 }
 0x13f   : > { %296 = vst.msk [vmem:[%s524_s2 + $0x30] sm:$0xff] %vm269_vm3, %v288_v47 }
 0x140   : > { %297 = vst.msk [vmem:[%s524_s2 + $0x38] sm:$0xff] %vm269_vm3, %v289_v48 }
 0x141 PF: > { %p9_p10 = scmp.ge.s32.totalorder %s436_s13, 5   ;;  %s525_s9 = smov %s397_s10 }
 0x142   : > { %s526_s10 = smov %s445_s16  ;;  %s527_s11 = smov %s436_s13 }
 0x143   :  { %11 = sbr.rel (!%p9_p10) target bundleno = 2 (0x2), region = 105 }

// kernel: gaf_layers_forward.3
= control target key start
LH: loop header
LB: loop body
LE: loop exit
PB: predicated region body
PF: predicated region fallthrough
CT: control target
= control target key end

     0   :  { %vm47_vm0 = vcmask 1040384   ;;  %v2141_v3 = vmov 0   ;;  %vm34_vm1 = vcmask 72704   ;;  %vm1783_vm2 = vcmask 261120   ;;  %s3185_s4 = inlined_call_operand.vmem [shape: f32[36,9,128], index: 4, kind: input, shape index: {}]   ;;  %s3186_s0 = inlined_call_operand.vmem [shape: f32[32,9], index: 0, kind: input, shape index: {}]   ;;  %s3187_s2 = inlined_call_operand.vmem [shape: f32[32,1], index: 2, kind: input, shape index: {}]   ;;  %s3188_s1 = inlined_call_operand.vmem [shape: f32[32,1], index: 1, kind: input, shape index: {}]   ;;  %s3189_s3 = inlined_call_operand.vmem [shape: f32[12,288], index: 3, kind: input, shape index: {}]   ;;  %s3190_s5 = inlined_call_operand.vmem [shape: f32[12,128], index: 5, kind: output, shape index: {}]  }
   0x1   :  { %v1878_v0 = vld [vmem:[%s3185_s4 + $0x128] sm:$0x1]  ;;  %v1877_v1 = vld [vmem:[%s3185_s4 + $0x120] sm:$0xff]  ;;  %v1885_v2 = vld [vmem:[%s3185_s4 + $0x1b8] sm:$0x1]  ;;  %2135 = vset.pattern.permute.xlu1 %v2141_v3  ;;  %2134 = vset.pattern.permute.xlu0 %v2141_v3 }
   0x2   :  { %1879 = vmatpush.msk.msra.mxu2 %vm47_vm0, %v1878_v0  ;;  %1886 = vmatpush.msk.msra.mxu3 %vm47_vm0, %v1885_v2  ;;  %v2186_v4 = vld [vmem:[%s3186_s0] sm:$0xff]  ;;  %v33_v5 = vld [vmem:[%s3185_s4 + $0x8] sm:$0x1]  ;;  %v1871_v6 = vld [vmem:[%s3185_s4 + $0x98] sm:$0x1] }
   0x3   :  { %1865 = vmatpush.msk.msra.mxu0 %vm47_vm0, %v33_v5  ;;  %1872 = vmatpush.msk.msra.mxu1 %vm47_vm0, %v1871_v6  ;;  %v1884_v7 = vld [vmem:[%s3185_s4 + $0x1b0] sm:$0xff]  ;;  %v32_v8 = vld [vmem:[%s3185_s4] sm:$0xff]  ;;  %v31_v10 = vld [vmem:[%s3187_s2 + $0x18] sm:$0xff] }
   0x4   :  { %v1870_v9 = vld [vmem:[%s3185_s4 + $0x90] sm:$0xff]  ;;  %144 = vmatpush.msra.mxu2 %v1877_v1  ;;  %187 = vmatpush.msra.mxu3 %v1884_v7  ;;  %v27_v11 = vld [vmem:[%s3188_s1 + $0x18] sm:$0xff]  ;;  %v1913_v13 = vld [vmem:[%s3185_s4 + $0x1c8] sm:$0x1] }
   0x5   :  { %1880 = vmatmul.msk.f32.vlgmr.msra.gmra.mxu2 %vm34_vm1, %v2186_v4  ;;  %1887 = vmatmul.msk.f32.vlgmr.msra.gmra.mxu3 %vm34_vm1, %v2186_v4  ;;  %v1906_v12 = vld [vmem:[%s3185_s4 + $0x138] sm:$0x1]  ;;  %v1899_v15 = vld [vmem:[%s3185_s4 + $0xa8] sm:$0x1]  ;;  %v1905_v16 = vld [vmem:[%s3185_s4 + $0x130] sm:$0xff] }
   0x6   :  { %66 = vmatpush.msra.mxu0 %v32_v8  ;;  %101 = vmatpush.msra.mxu1 %v1870_v9  ;;  %v1892_v14 = vld [vmem:[%s3185_s4 + $0x18] sm:$0x1]  ;;  %v1912_v17 = vld [vmem:[%s3185_s4 + $0x1c0] sm:$0xff]  ;;  %v1891_v18 = vld [vmem:[%s3185_s4 + $0x10] sm:$0xff] }
   0x7   :  { %1866 = vmatmul.msk.f32.vlgmr.msra.gmra.mxu0 %vm34_vm1, %v2186_v4  ;;  %1873 = vmatmul.msk.f32.vlgmr.msra.gmra.mxu1 %vm34_vm1, %v2186_v4  ;;  %v1898_v19 = vld [vmem:[%s3185_s4 + $0xa0] sm:$0xff]  ;;  %v2248_v20 = vld [vmem:[%s3186_s0 + $0x8] sm:$0xff]  ;;  %v26_v22 = vld [vmem:[%s3188_s1 + $0x10] sm:$0xff] }
   0x8   :  { %250 = vperm.xlu1 %2135, %v31_v10   ;;  %226 = vperm.xlu0 %2134, %v27_v11   ;;  %v25_v21 = vld [vmem:[%s3188_s1 + $0x8] sm:$0xff]  ;;  %v30_v23 = vld [vmem:[%s3187_s2 + $0x10] sm:$0xff]  ;;  %v28_v25 = vld [vmem:[%s3187_s2] sm:$0xff] }
   0x9   :  { %1907 = vmatpush.msk.msrb.mxu2 %vm47_vm0, %v1906_v12  ;;  %1914 = vmatpush.msk.msrb.mxu3 %vm47_vm0, %v1913_v13  ;;  %v2272_v24 = vld [vmem:[%s3186_s0 + $0x10] sm:$0xff]  ;;  %v29_v26 = vld [vmem:[%s3187_s2 + $0x8] sm:$0xff]  ;;  %v24_v27 = vld [vmem:[%s3188_s1] sm:$0xff] }
   0xa   :  { %1893 = vmatpush.msk.msrb.mxu0 %vm47_vm0, %v1892_v14  ;;  %1900 = vmatpush.msk.msrb.mxu1 %vm47_vm0, %v1899_v15  ;;  %v2294_v28 = vld [vmem:[%s3186_s0 + $0x18] sm:$0xff]  ;;  %v1934_v29 = vld [vmem:[%s3185_s4 + $0x148] sm:$0x1]  ;;  %v1933_v33 = vld [vmem:[%s3185_s4 + $0x140] sm:$0xff] }
   0xb   :  { %372 = vmatpush.msrb.mxu2 %v1905_v16  ;;  %415 = vmatpush.msrb.mxu3 %v1912_v17  ;;  %v1941_v30 = vld [vmem:[%s3185_s4 + $0x1d8] sm:$0x1]  ;;  %v1920_v31 = vld [vmem:[%s3185_s4 + $0x28] sm:$0x1]  ;;  %v1940_v34 = vld [vmem:[%s3185_s4 + $0x1d0] sm:$0xff] }
   0xc   :  { %294 = vmatpush.msrb.mxu0 %v1891_v18  ;;  %329 = vmatpush.msrb.mxu1 %v1898_v19  ;;  %v1927_v32 = vld [vmem:[%s3185_s4 + $0xb8] sm:$0x1]  ;;  %v1919_v35 = vld [vmem:[%s3185_s4 + $0x20] sm:$0xff]  ;;  %v1926_v36 = vld [vmem:[%s3185_s4 + $0xb0] sm:$0xff] }
   0xd   :  { %1881 = vmatmul.msk.f32.gmra.mxu2 %vm34_vm1, %v2248_v20  ;;  %1888 = vmatmul.msk.f32.gmra.mxu3 %vm34_vm1, %v2248_v20  ;;  %v1962_v37 = vld [vmem:[%s3185_s4 + $0x158] sm:$0x1]  ;;  %v1969_v38 = vld [vmem:[%s3185_s4 + $0x1e8] sm:$0x1]  ;;  %v1961_v41 = vld [vmem:[%s3185_s4 + $0x150] sm:$0xff] }
   0xe   :  { %2136 = vset.pattern.permute.xlu2 %v2141_v3  ;;  %1935 = vmatpush.msk.msra.mxu2 %vm47_vm0, %v1934_v29  ;;  %v1948_v39 = vld [vmem:[%s3185_s4 + $0x38] sm:$0x1]  ;;  %v1955_v40 = vld [vmem:[%s3185_s4 + $0xc8] sm:$0x1]  ;;  %v1968_v42 = vld [vmem:[%s3185_s4 + $0x1e0] sm:$0xff] }
   0xf   :  { %1867 = vmatmul.msk.f32.gmra.mxu0 %vm34_vm1, %v2248_v20  ;;  %1874 = vmatmul.msk.f32.gmra.mxu1 %vm34_vm1, %v2248_v20  ;;  %v1947_v43 = vld [vmem:[%s3185_s4 + $0x30] sm:$0xff]  ;;  %v1954_v44 = vld [vmem:[%s3185_s4 + $0xc0] sm:$0xff]  ;;  %v1990_v45 = vld [vmem:[%s3185_s4 + $0x168] sm:$0x1] }
  0x10   :  { %216 = vperm.xlu1 %2135, %v25_v21   ;;  %221 = vperm.xlu0 %2134, %v26_v22   ;;  %v1997_v46 = vld [vmem:[%s3185_s4 + $0x1f8] sm:$0x1]  ;;  %v1976_v47 = vld [vmem:[%s3185_s4 + $0x48] sm:$0x1]  ;;  %v1989_v49 = vld [vmem:[%s3185_s4 + $0x160] sm:$0xff] }
  0x11   :  { %245 = vperm.xlu2 %2136, %v30_v23   ;;  %1942 = vmatpush.msk.msra.mxu3 %vm47_vm0, %v1941_v30  ;;  %v1983_v48 = vld [vmem:[%s3185_s4 + $0xd8] sm:$0x1]  ;;  %v1996_v50 = vld [vmem:[%s3185_s4 + $0x1f0] sm:$0xff]  ;;  %v1975_v51 = vld [vmem:[%s3185_s4 + $0x40] sm:$0xff] }
  0x12   :  { %1921 = vmatpush.msk.msra.mxu0 %vm47_vm0, %v1920_v31  ;;  %1928 = vmatpush.msk.msra.mxu1 %vm47_vm0, %v1927_v32  ;;  %v1982_v52 = vld [vmem:[%s3185_s4 + $0xd0] sm:$0xff]  ;;  %v2018_v54 = vld [vmem:[%s3185_s4 + $0x178] sm:$0x1]  ;;  %v2025_v57 = vld [vmem:[%s3185_s4 + $0x208] sm:$0x1] }
  0x13   :  { %560 = vmatpush.msra.mxu2 %v1933_v33  ;;  %603 = vmatpush.msra.mxu3 %v1940_v34  ;;  %v2017_v59 = vld [vmem:[%s3185_s4 + $0x170] sm:$0xff]  ;;  %v2004_v0 = vld [vmem:[%s3185_s4 + $0x58] sm:$0x1]  ;;  %v2011_v1 = vld [vmem:[%s3185_s4 + $0xe8] sm:$0x1] }
  0x14   :  { %482 = vmatpush.msra.mxu0 %v1919_v35  ;;  %517 = vmatpush.msra.mxu1 %v1926_v36  ;;  %v2024_v2 = vld [vmem:[%s3185_s4 + $0x200] sm:$0xff]  ;;  %v2003_v3 = vld [vmem:[%s3185_s4 + $0x50] sm:$0xff] }
  0x15   :  { %1882 = vmatmul.msk.f32.gmra.mxu2 %vm34_vm1, %v2272_v24  ;;  %1889 = vmatmul.msk.f32.gmra.mxu3 %vm34_vm1, %v2272_v24  ;;  %v2010_v5 = vld [vmem:[%s3185_s4 + $0xe0] sm:$0xff] }
  0x17   :  { %1868 = vmatmul.msk.f32.gmra.mxu0 %vm34_vm1, %v2272_v24  ;;  %1875 = vmatmul.msk.f32.gmra.mxu1 %vm34_vm1, %v2272_v24 }
  0x18   :  { %235 = vperm.xlu1 %2135, %v28_v25   ;;  %240 = vperm.xlu0 %2134, %v29_v26  }
  0x19   :  { %211 = vperm.xlu2 %2136, %v24_v27  }
  0x1d   :  { %1883 = vmatmul.msk.f32.gmra.mxu2 %vm34_vm1, %v2294_v28  ;;  %1890 = vmatmul.msk.f32.gmra.mxu3 %vm34_vm1, %v2294_v28 }
  0x1f   :  { %1869 = vmatmul.msk.f32.gmra.mxu0 %vm34_vm1, %v2294_v28  ;;  %1876 = vmatmul.msk.f32.gmra.mxu1 %vm34_vm1, %v2294_v28 }
  0x25   :  { %1908 = vmatmul.msk.f32.vlgmr.msrb.gmra.mxu2 %vm34_vm1, %v2186_v4  ;;  %1915 = vmatmul.msk.f32.vlgmr.msrb.gmra.mxu3 %vm34_vm1, %v2186_v4 }
  0x26   :  { %1963 = vmatpush.msk.msrb.mxu2 %vm47_vm0, %v1962_v37  ;;  %1970 = vmatpush.msk.msrb.mxu3 %vm47_vm0, %v1969_v38 }
  0x27   :  { %1894 = vmatmul.msk.f32.vlgmr.msrb.gmra.mxu0 %vm34_vm1, %v2186_v4  ;;  %1901 = vmatmul.msk.f32.vlgmr.msrb.gmra.mxu1 %vm34_vm1, %v2186_v4 }
  0x28   :  { %1949 = vmatpush.msk.msrb.mxu0 %vm47_vm0, %v1948_v39  ;;  %1956 = vmatpush.msk.msrb.mxu1 %vm47_vm0, %v1955_v40 }
  0x29   :  { %748 = vmatpush.msrb.mxu2 %v1961_v41  ;;  %791 = vmatpush.msrb.mxu3 %v1968_v42 }
  0x2a   :  { %670 = vmatpush.msrb.mxu0 %v1947_v43  ;;  %705 = vmatpush.msrb.mxu1 %v1954_v44 }
  0x2d   :  { %1909 = vmatmul.msk.f32.gmra.mxu2 %vm34_vm1, %v2248_v20  ;;  %1916 = vmatmul.msk.f32.gmra.mxu3 %vm34_vm1, %v2248_v20 }
  0x2f   :  { %1895 = vmatmul.msk.f32.gmra.mxu0 %vm34_vm1, %v2248_v20  ;;  %1902 = vmatmul.msk.f32.gmra.mxu1 %vm34_vm1, %v2248_v20 }
  0x35   :  { %1910 = vmatmul.msk.f32.gmra.mxu2 %vm34_vm1, %v2272_v24  ;;  %1917 = vmatmul.msk.f32.gmra.mxu3 %vm34_vm1, %v2272_v24 }
  0x37   :  { %1896 = vmatmul.msk.f32.gmra.mxu0 %vm34_vm1, %v2272_v24  ;;  %1903 = vmatmul.msk.f32.gmra.mxu1 %vm34_vm1, %v2272_v24 }
  0x3d   :  { %1911 = vmatmul.msk.f32.gmra.mxu2 %vm34_vm1, %v2294_v28  ;;  %1918 = vmatmul.msk.f32.gmra.mxu3 %vm34_vm1, %v2294_v28 }
  0x3f   :  { %1897 = vmatmul.msk.f32.gmra.mxu0 %vm34_vm1, %v2294_v28  ;;  %1904 = vmatmul.msk.f32.gmra.mxu1 %vm34_vm1, %v2294_v28 }
  0x45   :  { %1936 = vmatmul.msk.f32.vlgmr.msra.gmra.mxu2 %vm34_vm1, %v2186_v4  ;;  %1943 = vmatmul.msk.f32.vlgmr.msra.gmra.mxu3 %vm34_vm1, %v2186_v4 }
  0x46   :  { %1991 = vmatpush.msk.msra.mxu2 %vm47_vm0, %v1990_v45  ;;  %1998 = vmatpush.msk.msra.mxu3 %vm47_vm0, %v1997_v46 }
  0x47   :  { %1922 = vmatmul.msk.f32.vlgmr.msra.gmra.mxu0 %vm34_vm1, %v2186_v4  ;;  %1929 = vmatmul.msk.f32.vlgmr.msra.gmra.mxu1 %vm34_vm1, %v2186_v4 }
  0x48   :  { %1977 = vmatpush.msk.msra.mxu0 %vm47_vm0, %v1976_v47  ;;  %1984 = vmatpush.msk.msra.mxu1 %vm47_vm0, %v1983_v48 }
  0x49   :  { %936 = vmatpush.msra.mxu2 %v1989_v49  ;;  %979 = vmatpush.msra.mxu3 %v1996_v50 }
  0x4a   :  { %858 = vmatpush.msra.mxu0 %v1975_v51  ;;  %893 = vmatpush.msra.mxu1 %v1982_v52 }
  0x4d   :  { %1937 = vmatmul.msk.f32.gmra.mxu2 %vm34_vm1, %v2248_v20  ;;  %1944 = vmatmul.msk.f32.gmra.mxu3 %vm34_vm1, %v2248_v20 }
  0x4f   :  { %1923 = vmatmul.msk.f32.gmra.mxu0 %vm34_vm1, %v2248_v20  ;;  %1930 = vmatmul.msk.f32.gmra.mxu1 %vm34_vm1, %v2248_v20 }
  0x55   :  { %1938 = vmatmul.msk.f32.gmra.mxu2 %vm34_vm1, %v2272_v24  ;;  %1945 = vmatmul.msk.f32.gmra.mxu3 %vm34_vm1, %v2272_v24 }
  0x57   :  { %1924 = vmatmul.msk.f32.gmra.mxu0 %vm34_vm1, %v2272_v24  ;;  %1931 = vmatmul.msk.f32.gmra.mxu1 %vm34_vm1, %v2272_v24 }
  0x5d   :  { %1939 = vmatmul.msk.f32.gmra.mxu2 %vm34_vm1, %v2294_v28  ;;  %1946 = vmatmul.msk.f32.gmra.mxu3 %vm34_vm1, %v2294_v28 }
  0x5f   :  { %1925 = vmatmul.msk.f32.gmra.mxu0 %vm34_vm1, %v2294_v28  ;;  %1932 = vmatmul.msk.f32.gmra.mxu1 %vm34_vm1, %v2294_v28 }
  0x65   :  { %1964 = vmatmul.msk.f32.vlgmr.msrb.gmra.mxu2 %vm34_vm1, %v2186_v4  ;;  %1971 = vmatmul.msk.f32.vlgmr.msrb.gmra.mxu3 %vm34_vm1, %v2186_v4 }
  0x66   :  { %2019 = vmatpush.msk.msrb.mxu2 %vm47_vm0, %v2018_v54  ;;  %2026 = vmatpush.msk.msrb.mxu3 %vm47_vm0, %v2025_v57 }
  0x67   :  { %1950 = vmatmul.msk.f32.vlgmr.msrb.gmra.mxu0 %vm34_vm1, %v2186_v4  ;;  %1957 = vmatmul.msk.f32.vlgmr.msrb.gmra.mxu1 %vm34_vm1, %v2186_v4 }
  0x68   :  { %1124 = vmatpush.msrb.mxu2 %v2017_v59  ;;  %2005 = vmatpush.msk.msrb.mxu0 %vm47_vm0, %v2004_v0  ;;  %v2046_v59 = vld [vmem:[%s3185_s4 + $0x188] sm:$0x1] }
  0x69   :  { %2012 = vmatpush.msk.msrb.mxu1 %vm47_vm0, %v2011_v1  ;;  %1167 = vmatpush.msrb.mxu3 %v2024_v2  ;;  %v2053_v2 = vld [vmem:[%s3185_s4 + $0x218] sm:$0x1] }
  0x6a   :  { %1046 = vmatpush.msrb.mxu0 %v2003_v3 }
  0x6b   :  { %v2492_v56 = vpop.permute.xlu2 %245  ;;  %1081 = vmatpush.msrb.mxu1 %v2010_v5 }
  0x6d   :  { %1965 = vmatmul.msk.f32.gmra.mxu2 %vm34_vm1, %v2248_v20  ;;  %1972 = vmatmul.msk.f32.gmra.mxu3 %vm34_vm1, %v2248_v20 }
  0x6f   :  { %1951 = vmatmul.msk.f32.gmra.mxu0 %vm34_vm1, %v2248_v20  ;;  %1958 = vmatmul.msk.f32.gmra.mxu1 %vm34_vm1, %v2248_v20 }
  0x73   :  { %v2530_v11 = vpop.permute.xlu2 %211 }
  0x75   :  { %1966 = vmatmul.msk.f32.gmra.mxu2 %vm34_vm1, %v2272_v24  ;;  %1973 = vmatmul.msk.f32.gmra.mxu3 %vm34_vm1, %v2272_v24 }
  0x77   :  { %1952 = vmatmul.msk.f32.gmra.mxu0 %vm34_vm1, %v2272_v24  ;;  %1959 = vmatmul.msk.f32.gmra.mxu1 %vm34_vm1, %v2272_v24 }
  0x7a   :  { %v2476_v53 = vpop.permute.xlu1 %250  ;;  %v2490_v55 = vpop.permute.xlu0 %226 }
  0x7d   :  { %1967 = vmatmul.msk.f32.gmra.mxu2 %vm34_vm1, %v2294_v28  ;;  %1974 = vmatmul.msk.f32.gmra.mxu3 %vm34_vm1, %v2294_v28 }
  0x7f   :  { %1953 = vmatmul.msk.f32.gmra.mxu0 %vm34_vm1, %v2294_v28  ;;  %1960 = vmatmul.msk.f32.gmra.mxu1 %vm34_vm1, %v2294_v28 }
  0x82   :  { %v2497_v58 = vpop.permute.xlu1 %216  ;;  %v2528_v10 = vpop.permute.xlu0 %221 }
  0x84   :  { %v68_v60 = vpop.f32.mrf.mxu0  ;;  %v103_v61 = vpop.f32.mrf.mxu1 }
  0x85   :  { %1992 = vmatmul.msk.f32.vlgmr.msra.gmra.mxu2 %vm34_vm1, %v2186_v4  ;;  %v115_v62 = vmax.f32 %v68_v60, %v103_v61  ;;  %v119_v63 = vmin.f32 %v68_v60, %v103_v61  ;;  %1999 = vmatmul.msk.f32.vlgmr.msra.gmra.mxu3 %vm34_vm1, %v2186_v4 }
  0x86   :  { %2047 = vmatpush.msk.msra.mxu2 %vm47_vm0, %v2046_v59  ;;  %2054 = vmatpush.msk.msra.mxu3 %vm47_vm0, %v2053_v2 }
  0x87   :  { %1978 = vmatmul.msk.f32.vlgmr.msra.gmra.mxu0 %vm34_vm1, %v2186_v4  ;;  %1985 = vmatmul.msk.f32.vlgmr.msra.gmra.mxu1 %vm34_vm1, %v2186_v4 }
  0x88   :  { %v146_v6 = vpop.f32.mrf.mxu2  ;;  %v189_v7 = vpop.f32.mrf.mxu3 }
  0x89   :  { %v158_v8 = vmax.f32 %v115_v62, %v146_v6  ;;  %v162_v9 = vmin.f32 %v119_v63, %v146_v6 }
  0x8a   :  { %v2532_v14 = vpop.permute.xlu1 %235  ;;  %v2552_v33 = vpop.permute.xlu0 %240 }
  0x8b   :  { %v201_v12 = vmax.f32 %v158_v8, %v189_v7  ;;  %v205_v13 = vmin.f32 %v162_v9, %v189_v7  ;;  %v2045_v7 = vld [vmem:[%s3185_s4 + $0x180] sm:$0xff] }
  0x8c   :  { %v71_v15 = vpop.f32.mrf.mxu0  ;;  %v106_v16 = vpop.f32.mrf.mxu1  ;;  %1312 = vmatpush.msra.mxu2 %v2045_v7 }
  0x8d   :  { %1993 = vmatmul.msk.f32.gmra.mxu2 %vm34_vm1, %v2248_v20  ;;  %v116_v17 = vmax.f32 %v71_v15, %v106_v16  ;;  %v120_v18 = vmin.f32 %v71_v15, %v106_v16  ;;  %2000 = vmatmul.msk.f32.gmra.mxu3 %vm34_vm1, %v2248_v20  ;;  %v229_v19 = vmul.f32 %v2530_v11, %v201_v12 }
  0x8e   :  { %v257_v21 = vmul.f32 %v2530_v11, %v205_v13 }
  0x8f   :  { %1979 = vmatmul.msk.f32.gmra.mxu0 %vm34_vm1, %v2248_v20  ;;  %1986 = vmatmul.msk.f32.gmra.mxu1 %vm34_vm1, %v2248_v20  ;;  %v2545_v22 = vadd.f32 %v2532_v14, %v229_v19  ;;  %v2052_v19 = vld [vmem:[%s3185_s4 + $0x210] sm:$0xff] }
  0x90   :  { %v149_v23 = vpop.f32.mrf.mxu2  ;;  %v192_v25 = vpop.f32.mrf.mxu3  ;;  %v2548_v26 = vadd.f32 %v257_v21, %v2532_v14  ;;  %v2031_v21 = vld [vmem:[%s3185_s4 + $0x60] sm:$0xff]  ;;  %1355 = vmatpush.msra.mxu3 %v2052_v19 }
  0x91   :  { %v159_v27 = vmax.f32 %v116_v17, %v149_v23  ;;  %v163_v29 = vmin.f32 %v120_v18, %v149_v23  ;;  %v2032_v17 = vld [vmem:[%s3185_s4 + $0x68] sm:$0x1]  ;;  %v2039_v18 = vld [vmem:[%s3185_s4 + $0xf8] sm:$0x1]  ;;  %v2038_v23 = vld [vmem:[%s3185_s4 + $0xf0] sm:$0xff] }
  0x92   :  { %3197 = vst [vmem:[#allocation2_spill] sm:$0xff] %v2548_v26  ;;  %2033 = vmatpush.msk.msra.mxu0 %vm47_vm0, %v2032_v17  ;;  %2040 = vmatpush.msk.msra.mxu1 %vm47_vm0, %v2039_v18 }
  0x93   :  { %v202_v31 = vmax.f32 %v159_v27, %v192_v25  ;;  %v206_v32 = vmin.f32 %v163_v29, %v192_v25 }
  0x94   :  { %v74_v34 = vpop.f32.mrf.mxu0  ;;  %v109_v35 = vpop.f32.mrf.mxu1  ;;  %1234 = vmatpush.msra.mxu0 %v2031_v21  ;;  %1269 = vmatpush.msra.mxu1 %v2038_v23 }
  0x95   :  { %v230_v36 = vmul.f32 %v2497_v58, %v202_v31  ;;  %v258_v37 = vmul.f32 %v2497_v58, %v206_v32  ;;  %1994 = vmatmul.msk.f32.gmra.mxu2 %vm34_vm1, %v2272_v24  ;;  %v117_v38 = vmax.f32 %v74_v34, %v109_v35  ;;  %v121_v39 = vmin.f32 %v74_v34, %v109_v35 }
  0x96   :  { %2001 = vmatmul.msk.f32.gmra.mxu3 %vm34_vm1, %v2272_v24 }
  0x97   :  { %1980 = vmatmul.msk.f32.gmra.mxu0 %vm34_vm1, %v2272_v24  ;;  %1987 = vmatmul.msk.f32.gmra.mxu1 %vm34_vm1, %v2272_v24  ;;  %v2565_v40 = vadd.f32 %v2552_v33, %v230_v36  ;;  %v2568_v41 = vadd.f32 %v258_v37, %v2552_v33 }
  0x98   :  { %v152_v42 = vpop.f32.mrf.mxu2  ;;  %v195_v43 = vpop.f32.mrf.mxu3 }
  0x99   :  { %v160_v44 = vmax.f32 %v117_v38, %v152_v42  ;;  %v164_v45 = vmin.f32 %v121_v39, %v152_v42 }
  0x9b   :  { %v203_v47 = vmax.f32 %v160_v44, %v195_v43  ;;  %v207_v48 = vmin.f32 %v164_v45, %v195_v43 }
  0x9c   :  { %v77_v49 = vpop.f32.mrf.mxu0  ;;  %v112_v50 = vpop.f32.mrf.mxu1 }
  0x9d   :  { %v231_v51 = vmul.f32 %v2528_v10, %v203_v47  ;;  %v259_v52 = vmul.f32 %v2528_v10, %v207_v48  ;;  %1995 = vmatmul.msk.f32.gmra.mxu2 %vm34_vm1, %v2294_v28  ;;  %v118_v54 = vmax.f32 %v77_v49, %v112_v50  ;;  %v122_v57 = vmin.f32 %v77_v49, %v112_v50 }
  0x9e   :  { %2002 = vmatmul.msk.f32.gmra.mxu3 %vm34_vm1, %v2294_v28 }
  0x9f   :  { %1981 = vmatmul.msk.f32.gmra.mxu0 %vm34_vm1, %v2294_v28  ;;  %1988 = vmatmul.msk.f32.gmra.mxu1 %vm34_vm1, %v2294_v28  ;;  %v2587_v60 = vadd.f32 %v2492_v56, %v231_v51  ;;  %v2590_v61 = vadd.f32 %v259_v52, %v2492_v56 }
  0xa0   :  { %v155_v62 = vpop.f32.mrf.mxu2  ;;  %v198_v63 = vpop.f32.mrf.mxu3 }
  0xa1   :  { %v161_v0 = vmax.f32 %v118_v54, %v155_v62  ;;  %v165_v1 = vmin.f32 %v122_v57, %v155_v62 }
  0xa3   :  { %v204_v5 = vmax.f32 %v161_v0, %v198_v63  ;;  %v208_v6 = vmin.f32 %v165_v1, %v198_v63 }
  0xa4   :  { %v296_v8 = vpop.f32.mrf.mxu0  ;;  %v331_v9 = vpop.f32.mrf.mxu1 }
  0xa5   :  { %v232_v12 = vmul.f32 %v2490_v55, %v204_v5  ;;  %v260_v13 = vmul.f32 %v2490_v55, %v208_v6  ;;  %2020 = vmatmul.msk.f32.vlgmr.msrb.gmra.mxu2 %vm34_vm1, %v2186_v4  ;;  %v343_v15 = vmax.f32 %v296_v8, %v331_v9  ;;  %v347_v16 = vmin.f32 %v296_v8, %v331_v9 }
  0xa6   :  { %2027 = vmatmul.msk.f32.vlgmr.msrb.gmra.mxu3 %vm34_vm1, %v2186_v4 }
  0xa7   :  { %2006 = vmatmul.msk.f32.vlgmr.msrb.gmra.mxu0 %vm34_vm1, %v2186_v4  ;;  %2013 = vmatmul.msk.f32.vlgmr.msrb.gmra.mxu1 %vm34_vm1, %v2186_v4  ;;  %v2628_v25 = vadd.f32 %v2476_v53, %v232_v12  ;;  %v2631_v27 = vadd.f32 %v260_v13, %v2476_v53 }
  0xa8   :  { %v374_v29 = vpop.f32.mrf.mxu2  ;;  %v417_v31 = vpop.f32.mrf.mxu3 }
  0xa9   :  { %v386_v32 = vmax.f32 %v343_v15, %v374_v29  ;;  %v390_v34 = vmin.f32 %v347_v16, %v374_v29 }
  0xab   :  { %v429_v36 = vmax.f32 %v386_v32, %v417_v31  ;;  %v433_v37 = vmin.f32 %v390_v34, %v417_v31  ;;  %v2074_v32 = vld [vmem:[%s3185_s4 + $0x198] sm:$0x1] }
  0xac   :  { %v299_v38 = vpop.f32.mrf.mxu0  ;;  %v334_v39 = vpop.f32.mrf.mxu1  ;;  %2075 = vmatpush.msk.msrb.mxu2 %vm47_vm0, %v2074_v32 }
  0xad   :  { %v437_v42 = vmul.f32 %v429_v36, %v2530_v11  ;;  %v445_v43 = vmul.f32 %v433_v37, %v2530_v11  ;;  %2021 = vmatmul.msk.f32.gmra.mxu2 %vm34_vm1, %v2248_v20  ;;  %v344_v44 = vmax.f32 %v299_v38, %v334_v39  ;;  %v348_v45 = vmin.f32 %v299_v38, %v334_v39 }
  0xae   :  { %2028 = vmatmul.msk.f32.gmra.mxu3 %vm34_vm1, %v2248_v20 }
  0xaf   :  { %2007 = vmatmul.msk.f32.gmra.mxu0 %vm34_vm1, %v2248_v20  ;;  %2014 = vmatmul.msk.f32.gmra.mxu1 %vm34_vm1, %v2248_v20  ;;  %v2647_v47 = vadd.f32 %v437_v42, %v2532_v14  ;;  %v2650_v48 = vadd.f32 %v445_v43, %v2532_v14  ;;  %v2081_v43 = vld [vmem:[%s3185_s4 + $0x228] sm:$0x1] }
  0xb0   :  { %v377_v49 = vpop.f32.mrf.mxu2  ;;  %v420_v50 = vpop.f32.mrf.mxu3  ;;  %2082 = vmatpush.msk.msrb.mxu3 %vm47_vm0, %v2081_v43 }
  0xb1   :  { %v387_v51 = vmax.f32 %v344_v44, %v377_v49  ;;  %v391_v52 = vmin.f32 %v348_v45, %v377_v49 }
  0xb3   :  { %v430_v57 = vmax.f32 %v387_v51, %v420_v50  ;;  %v434_v59 = vmin.f32 %v391_v52, %v420_v50  ;;  %v2073_v50 = vld [vmem:[%s3185_s4 + $0x190] sm:$0xff] }
  0xb4   :  { %v302_v62 = vpop.f32.mrf.mxu0  ;;  %v337_v63 = vpop.f32.mrf.mxu1  ;;  %1500 = vmatpush.msrb.mxu2 %v2073_v50 }
  0xb5   :  { %v438_v0 = vmul.f32 %v430_v57, %v2497_v58  ;;  %v446_v1 = vmul.f32 %v434_v59, %v2497_v58  ;;  %2022 = vmatmul.msk.f32.gmra.mxu2 %vm34_vm1, %v2272_v24  ;;  %v345_v2 = vmax.f32 %v302_v62, %v337_v63  ;;  %v349_v5 = vmin.f32 %v302_v62, %v337_v63 }
  0xb6   :  { %2029 = vmatmul.msk.f32.gmra.mxu3 %vm34_vm1, %v2272_v24 }
  0xb7   :  { %2008 = vmatmul.msk.f32.gmra.mxu0 %vm34_vm1, %v2272_v24  ;;  %2015 = vmatmul.msk.f32.gmra.mxu1 %vm34_vm1, %v2272_v24  ;;  %v2665_v6 = vadd.f32 %v438_v0, %v2552_v33  ;;  %v2668_v7 = vadd.f32 %v446_v1, %v2552_v33  ;;  %v2060_v0 = vld [vmem:[%s3185_s4 + $0x78] sm:$0x1]  ;;  %v2067_v1 = vld [vmem:[%s3185_s4 + $0x108] sm:$0x1] }
  0xb8   :  { %v380_v8 = vpop.f32.mrf.mxu2  ;;  %v423_v9 = vpop.f32.mrf.mxu3  ;;  %2061 = vmatpush.msk.msrb.mxu0 %vm47_vm0, %v2060_v0  ;;  %2068 = vmatpush.msk.msrb.mxu1 %vm47_vm0, %v2067_v1  ;;  %v2109_v1 = vld [vmem:[%s3185_s4 + $0x238] sm:$0x1] }
  0xb9   :  { %v388_v12 = vmax.f32 %v345_v2, %v380_v8  ;;  %v392_v13 = vmin.f32 %v349_v5, %v380_v8  ;;  %v2080_v2 = vld [vmem:[%s3185_s4 + $0x220] sm:$0xff]  ;;  %v2059_v5 = vld [vmem:[%s3185_s4 + $0x70] sm:$0xff] }
  0xba   :  { %v2066_v8 = vld [vmem:[%s3185_s4 + $0x100] sm:$0xff]  ;;  %1543 = vmatpush.msrb.mxu3 %v2080_v2  ;;  %1422 = vmatpush.msrb.mxu0 %v2059_v5 }
  0xbb   :  { %v431_v16 = vmax.f32 %v388_v12, %v423_v9  ;;  %v435_v17 = vmin.f32 %v392_v13, %v423_v9  ;;  %1457 = vmatpush.msrb.mxu1 %v2066_v8  ;;  %v2101_v2 = vld [vmem:[%s3185_s4 + $0x1a0] sm:$0xff] }
  0xbc   :  { %v305_v18 = vpop.f32.mrf.mxu0  ;;  %v340_v19 = vpop.f32.mrf.mxu1 }
  0xbd   :  { %v439_v21 = vmul.f32 %v431_v16, %v2528_v10  ;;  %v447_v23 = vmul.f32 %v435_v17, %v2528_v10  ;;  %2023 = vmatmul.msk.f32.gmra.mxu2 %vm34_vm1, %v2294_v28  ;;  %v346_v29 = vmax.f32 %v305_v18, %v340_v19  ;;  %v350_v31 = vmin.f32 %v305_v18, %v340_v19 }
  0xbe   :  { %2030 = vmatmul.msk.f32.gmra.mxu3 %vm34_vm1, %v2294_v28 }
  0xbf   :  { %2009 = vmatmul.msk.f32.gmra.mxu0 %vm34_vm1, %v2294_v28  ;;  %2016 = vmatmul.msk.f32.gmra.mxu1 %vm34_vm1, %v2294_v28  ;;  %v2687_v34 = vadd.f32 %v439_v21, %v2492_v56  ;;  %v2690_v36 = vadd.f32 %v447_v23, %v2492_v56 }
  0xc0   :  { %v383_v37 = vpop.f32.mrf.mxu2  ;;  %v426_v38 = vpop.f32.mrf.mxu3 }
  0xc1   :  { %v389_v39 = vmax.f32 %v346_v29, %v383_v37  ;;  %v393_v42 = vmin.f32 %v350_v31, %v383_v37 }
  0xc3   :  { %v432_v45 = vmax.f32 %v389_v39, %v426_v38  ;;  %v436_v49 = vmin.f32 %v393_v42, %v426_v38 }
  0xc4   :  { %v484_v51 = vpop.f32.mrf.mxu0  ;;  %v519_v52 = vpop.f32.mrf.mxu1 }
  0xc5   :  { %v440_v57 = vmul.f32 %v432_v45, %v2490_v55  ;;  %v448_v59 = vmul.f32 %v436_v49, %v2490_v55  ;;  %2048 = vmatmul.msk.f32.vlgmr.msra.gmra.mxu2 %vm34_vm1, %v2186_v4  ;;  %v531_v62 = vmax.f32 %v484_v51, %v519_v52  ;;  %v535_v63 = vmin.f32 %v484_v51, %v519_v52 }
  0xc6   :  { %2055 = vmatmul.msk.f32.vlgmr.msra.gmra.mxu3 %vm34_vm1, %v2186_v4 }
  0xc7   :  { %2034 = vmatmul.msk.f32.vlgmr.msra.gmra.mxu0 %vm34_vm1, %v2186_v4  ;;  %2041 = vmatmul.msk.f32.vlgmr.msra.gmra.mxu1 %vm34_vm1, %v2186_v4  ;;  %v2728_v9 = vadd.f32 %v440_v57, %v2476_v53  ;;  %v2731_v12 = vadd.f32 %v448_v59, %v2476_v53 }
  0xc8   :  { %v562_v13 = vpop.f32.mrf.mxu2  ;;  %v605_v16 = vpop.f32.mrf.mxu3  ;;  %2110 = vmatpush.msk.msra.mxu3 %vm47_vm0, %v2109_v1 }
  0xc9   :  { %v574_v17 = vmax.f32 %v531_v62, %v562_v13  ;;  %v578_v18 = vmin.f32 %v535_v63, %v562_v13  ;;  %v2102_v62 = vld [vmem:[%s3185_s4 + $0x1a8] sm:$0x1] }
  0xca   :  { %2103 = vmatpush.msk.msra.mxu2 %vm47_vm0, %v2102_v62  ;;  %v2088_v13 = vld [vmem:[%s3185_s4 + $0x88] sm:$0x1] }
  0xcb   :  { %v617_v21 = vmax.f32 %v574_v17, %v605_v16  ;;  %v621_v23 = vmin.f32 %v578_v18, %v605_v16  ;;  %v2095_v16 = vld [vmem:[%s3185_s4 + $0x118] sm:$0x1]  ;;  %v2108_v17 = vld [vmem:[%s3185_s4 + $0x230] sm:$0xff]  ;;  %2089 = vmatpush.msk.msra.mxu0 %vm47_vm0, %v2088_v13  ;;  %v2087_v18 = vld [vmem:[%s3185_s4 + $0x80] sm:$0xff] }
  0xcc   :  { %v2736_v29 = vpop.f32.mrf.mxu0  ;;  %v2738_v31 = vpop.f32.mrf.mxu1  ;;  %1688 = vmatpush.msra.mxu2 %v2101_v2  ;;  %2096 = vmatpush.msk.msra.mxu1 %vm47_vm0, %v2095_v16 }
  0xcd   :  { %v625_v32 = vmul.f32 %v617_v21, %v2530_v11  ;;  %v633_v37 = vmul.f32 %v621_v23, %v2530_v11  ;;  %2049 = vmatmul.msk.f32.gmra.mxu2 %vm34_vm1, %v2248_v20  ;;  %v2094_v21 = vld [vmem:[%s3185_s4 + $0x110] sm:$0xff]  ;;  %1731 = vmatpush.msra.mxu3 %v2108_v17  ;;  %v532_v35 = vmax.f32 %v2736_v29, %v2738_v31 }
  0xce   :  { %2056 = vmatmul.msk.f32.gmra.mxu3 %vm34_vm1, %v2248_v20  ;;  %1610 = vmatpush.msra.mxu0 %v2087_v18 }
  0xcf   :  { %2035 = vmatmul.msk.f32.gmra.mxu0 %vm34_vm1, %v2248_v20  ;;  %2042 = vmatmul.msk.f32.gmra.mxu1 %vm34_vm1, %v2248_v20  ;;  %v2751_v38 = vadd.f32 %v625_v32, %v2532_v14  ;;  %v2754_v39 = vadd.f32 %v633_v37, %v2532_v14 }
  0xd0   :  { %v2756_v42 = vpop.f32.mrf.mxu2  ;;  %v2758_v43 = vpop.f32.mrf.mxu3  ;;  %1645 = vmatpush.msra.mxu1 %v2094_v21 }
  0xd1   :  { %v2861_v26 = vmax.f32 %v532_v35, %v2756_v42 }
  0xd4   :  { %v2762_v49 = vpop.f32.mrf.mxu0  ;;  %v2764_v50 = vpop.f32.mrf.mxu1 }
  0xd5   :  { %2050 = vmatmul.msk.f32.gmra.mxu2 %vm34_vm1, %v2272_v24 }
  0xd6   :  { %2057 = vmatmul.msk.f32.gmra.mxu3 %vm34_vm1, %v2272_v24 }
  0xd7   :  { %2036 = vmatmul.msk.f32.gmra.mxu0 %vm34_vm1, %v2272_v24  ;;  %2043 = vmatmul.msk.f32.gmra.mxu1 %vm34_vm1, %v2272_v24 }
  0xd8   :  { %v2774_v51 = vpop.f32.mrf.mxu2  ;;  %v2776_v52 = vpop.f32.mrf.mxu3 }
  0xdc   :  { %v2778_v57 = vpop.f32.mrf.mxu0  ;;  %v2780_v59 = vpop.f32.mrf.mxu1 }
  0xdd   :  { %2051 = vmatmul.msk.f32.gmra.mxu2 %vm34_vm1, %v2294_v28 }
  0xde   :  { %2058 = vmatmul.msk.f32.gmra.mxu3 %vm34_vm1, %v2294_v28 }
  0xdf   :  { %2037 = vmatmul.msk.f32.gmra.mxu0 %vm34_vm1, %v2294_v28  ;;  %2044 = vmatmul.msk.f32.gmra.mxu1 %vm34_vm1, %v2294_v28 }
  0xe0   :  { %v2793_v63 = vpop.f32.mrf.mxu2  ;;  %v2795_v0 = vpop.f32.mrf.mxu3 }
  0xe4   :  { %v672_v5 = vpop.f32.mrf.mxu0  ;;  %v707_v8 = vpop.f32.mrf.mxu1 }
  0xe5   :  { %2076 = vmatmul.msk.f32.vlgmr.msrb.gmra.mxu2 %vm34_vm1, %v2186_v4  ;;  %v723_v30 = vmin.f32 %v672_v5, %v707_v8 }
  0xe6   :  { %2083 = vmatmul.msk.f32.vlgmr.msrb.gmra.mxu3 %vm34_vm1, %v2186_v4 }
  0xe7   :  { %2062 = vmatmul.msk.f32.vlgmr.msrb.gmra.mxu0 %vm34_vm1, %v2186_v4  ;;  %2069 = vmatmul.msk.f32.vlgmr.msrb.gmra.mxu1 %vm34_vm1, %v2186_v4 }
  0xe8   :  { %v750_v23 = vpop.f32.mrf.mxu2  ;;  %v2829_v32 = vpop.f32.mrf.mxu3 }
  0xe9   :  { %v766_v44 = vmin.f32 %v723_v30, %v750_v23 }
  0xec   :  { %v675_v37 = vpop.f32.mrf.mxu0  ;;  %v710_v62 = vpop.f32.mrf.mxu1 }
  0xed   :  { %2077 = vmatmul.msk.f32.gmra.mxu2 %vm34_vm1, %v2248_v20  ;;  %v720_v18 = vmax.f32 %v675_v37, %v710_v62  ;;  %v724_v21 = vmin.f32 %v675_v37, %v710_v62  ;;  %v534_v37 = vmax.f32 %v2778_v57, %v2780_v59  ;;  %v538_v62 = vmin.f32 %v2778_v57, %v2780_v59 }
  0xee   :  { %2084 = vmatmul.msk.f32.gmra.mxu3 %vm34_vm1, %v2248_v20 }
  0xef   :  { %2063 = vmatmul.msk.f32.gmra.mxu0 %vm34_vm1, %v2248_v20  ;;  %2070 = vmatmul.msk.f32.gmra.mxu1 %vm34_vm1, %v2248_v20  ;;  %v719_v20 = vmax.f32 %v672_v5, %v707_v8  ;;  %v581_v30 = vmin.f32 %v538_v62, %v2793_v63 }
  0xf0   :  { %v753_v4 = vpop.f32.mrf.mxu2  ;;  %v796_v1 = vpop.f32.mrf.mxu3 }
  0xf1   :  { %v763_v15 = vmax.f32 %v720_v18, %v753_v4  ;;  %v767_v5 = vmin.f32 %v724_v21, %v753_v4  ;;  %v762_v8 = vmax.f32 %v719_v20, %v750_v23 }
  0xf3   :  { %v805_v35 = vmax.f32 %v762_v8, %v2829_v32 }
  0xf4   :  { %v678_v2 = vpop.f32.mrf.mxu0  ;;  %v713_v13 = vpop.f32.mrf.mxu1 }
  0xf5   :  { %2078 = vmatmul.msk.f32.gmra.mxu2 %vm34_vm1, %v2272_v24  ;;  %v721_v16 = vmax.f32 %v678_v2, %v713_v13  ;;  %v725_v17 = vmin.f32 %v678_v2, %v713_v13  ;;  %v533_v13 = vmax.f32 %v2762_v49, %v2764_v50 }
  0xf6   :  { %2085 = vmatmul.msk.f32.gmra.mxu3 %vm34_vm1, %v2272_v24 }
  0xf7   :  { %2064 = vmatmul.msk.f32.gmra.mxu0 %vm34_vm1, %v2272_v24  ;;  %2071 = vmatmul.msk.f32.gmra.mxu1 %vm34_vm1, %v2272_v24  ;;  %v537_v24 = vmin.f32 %v2762_v49, %v2764_v50  ;;  %v576_v49 = vmax.f32 %v533_v13, %v2774_v51  ;;  %v577_v50 = vmax.f32 %v534_v37, %v2793_v63 }
  0xf8   :  { %v756_v46 = vpop.f32.mrf.mxu2  ;;  %v799_v3 = vpop.f32.mrf.mxu3 }
  0xf9   :  { %v764_v54 = vmax.f32 %v721_v16, %v756_v46  ;;  %v768_v2 = vmin.f32 %v725_v17, %v756_v46  ;;  %v536_v17 = vmin.f32 %v2736_v29, %v2738_v31  ;;  %v810_v29 = vmin.f32 %v767_v5, %v796_v1 }
  0xfa   :  { %v809_v31 = vmin.f32 %v766_v44, %v2829_v32  ;;  %v619_v20 = vmax.f32 %v576_v49, %v2776_v52 }
  0xfb   :  { %v807_v19 = vmax.f32 %v764_v54, %v799_v3  ;;  %v811_v45 = vmin.f32 %v768_v2, %v799_v3  ;;  %v806_v3 = vmax.f32 %v763_v15, %v796_v1  ;;  %v580_v54 = vmin.f32 %v537_v24, %v2774_v51 }
  0xfc   :  { %v681_v16 = vpop.f32.mrf.mxu0  ;;  %v716_v46 = vpop.f32.mrf.mxu1  ;;  %v579_v18 = vmin.f32 %v536_v17, %v2756_v42  ;;  %v618_v51 = vmax.f32 %v2861_v26, %v2758_v43  ;;  %v624_v2 = vmin.f32 %v581_v30, %v2795_v0  ;;  %v813_v42 = vmul.f32 %v805_v35, %v2530_v11 }
  0xfd   :  { %2079 = vmatmul.msk.f32.gmra.mxu2 %vm34_vm1, %v2294_v28  ;;  %v722_v57 = vmax.f32 %v681_v16, %v716_v46  ;;  %v726_v59 = vmin.f32 %v681_v16, %v716_v46  ;;  %v815_v23 = vmul.f32 %v807_v19, %v2528_v10  ;;  %v823_v15 = vmul.f32 %v811_v45, %v2528_v10 }
  0xfe   :  { %2086 = vmatmul.msk.f32.gmra.mxu3 %vm34_vm1, %v2294_v28  ;;  %v814_v44 = vmul.f32 %v806_v3, %v2497_v58  ;;  %v623_v19 = vmin.f32 %v580_v54, %v2776_v52  ;;  %v822_v45 = vmul.f32 %v810_v29, %v2497_v58  ;;  %v821_v26 = vmul.f32 %v809_v31, %v2530_v11  ;;  %v2137_v52 = vld [vmem:[%s3186_s0] sm:$0xff] }
  0xff   :  { %2065 = vmatmul.msk.f32.gmra.mxu0 %vm34_vm1, %v2294_v28  ;;  %2072 = vmatmul.msk.f32.gmra.mxu1 %vm34_vm1, %v2294_v28  ;;  %v620_v28 = vmax.f32 %v577_v50, %v2795_v0  ;;  %v819_v37 = vadd.f32 %v815_v23, %v2492_v56  ;;  %v827_v62 = vadd.f32 %v823_v15, %v2492_v56 }
 0x100   :  { %v759_v63 = vpop.f32.mrf.mxu2  ;;  %v802_v4 = vpop.f32.mrf.mxu3  ;;  %v622_v17 = vmin.f32 %v579_v18, %v2758_v43  ;;  %v818_v49 = vadd.f32 %v814_v44, %v2552_v33  ;;  %v826_v50 = vadd.f32 %v822_v45, %v2552_v33  ;;  %v627_v43 = vmul.f32 %v619_v20, %v2528_v10 }
 0x101   :  { %v765_v1 = vmax.f32 %v722_v57, %v759_v63  ;;  %v769_v21 = vmin.f32 %v726_v59, %v759_v63  ;;  %v628_v57 = vmul.f32 %v620_v28, %v2490_v55  ;;  %v636_v59 = vmul.f32 %v624_v2, %v2490_v55 }
 0x102   :  { %v635_v54 = vmul.f32 %v623_v19, %v2528_v10  ;;  %v817_v31 = vadd.f32 %v813_v42, %v2532_v14  ;;  %v825_v23 = vadd.f32 %v821_v26, %v2532_v14  ;;  %v831_v18 = vmax.f32 %v819_v37, %v827_v62  ;;  %v2138_v62 = vld [vmem:[%s3186_s0 + $0x8] sm:$0xff] }
 0x103   :  { %v808_v32 = vmax.f32 %v765_v1, %v802_v4  ;;  %v812_v13 = vmin.f32 %v769_v21, %v802_v4  ;;  %v626_v1 = vmul.f32 %v618_v51, %v2497_v58  ;;  %v634_v21 = vmul.f32 %v622_v17, %v2497_v58 }
 0x104   :  { %v860_v24 = vpop.f32.mrf.mxu0  ;;  %v895_v5 = vpop.f32.mrf.mxu1  ;;  %v632_v28 = vadd.f32 %v628_v57, %v2476_v53  ;;  %v640_v20 = vadd.f32 %v636_v59, %v2476_v53  ;;  %v830_v45 = vmax.f32 %v818_v49, %v826_v50  ;;  %v829_v42 = vmax.f32 %v817_v31, %v825_v23 }
 0x105   :  { %v816_v0 = vmul.f32 %v808_v32, %v2490_v55  ;;  %v824_v8 = vmul.f32 %v812_v13, %v2490_v55  ;;  %2104 = vmatmul.msk.f32.vlgmr.msra.gmra.mxu2 %vm34_vm1, %v2137_v52  ;;  %v907_v16 = vmax.f32 %v860_v24, %v895_v5  ;;  %v911_v46 = vmin.f32 %v860_v24, %v895_v5 }
 0x106   :  { %2111 = vmatmul.msk.f32.vlgmr.msra.gmra.mxu3 %vm34_vm1, %v2137_v52  ;;  %v631_v26 = vadd.f32 %v627_v43, %v2492_v56  ;;  %v639_v24 = vadd.f32 %v635_v54, %v2492_v56  ;;  %v834_v57 = vmax.f32 %v830_v45, 0.0  ;;  %v644_v59 = vmax.f32 %v632_v28, %v640_v20 }
 0x107   :  { %v820_v30 = vadd.f32 %v816_v0, %v2476_v53  ;;  %v828_v3 = vadd.f32 %v824_v8, %v2476_v53  ;;  %2090 = vmatmul.msk.f32.vlgmr.msra.gmra.mxu0 %vm34_vm1, %v2137_v52  ;;  %2097 = vmatmul.msk.f32.vlgmr.msra.gmra.mxu1 %vm34_vm1, %v2137_v52  ;;  %v835_v0 = vmax.f32 %v831_v18, 0.0  ;;  %v630_v52 = vadd.f32 %v626_v1, %v2552_v33 }
 0x108   :  { %v938_v29 = vpop.f32.mrf.mxu2  ;;  %v981_v35 = vpop.f32.mrf.mxu3  ;;  %v833_v54 = vmax.f32 %v829_v42, 0.0  ;;  %v648_v23 = vmax.f32 %v644_v59, 0.0 }
 0x109   :  { %v832_v15 = vmax.f32 %v820_v30, %v828_v3  ;;  %v950_v63 = vmax.f32 %v907_v16, %v938_v29  ;;  %v954_v4 = vmin.f32 %v911_v46, %v938_v29  ;;  %v638_v16 = vadd.f32 %v634_v21, %v2552_v33  ;;  %v2139_v21 = vld [vmem:[%s3186_s0 + $0x10] sm:$0xff] }
 0x10a   :  { %v643_v30 = vmax.f32 %v631_v26, %v639_v24  ;;  %v3202_v24 = vmax.f32 %v2751_v38, %v2754_v39  ;;  %v2140_v38 = vld [vmem:[%s3186_s0 + $0x18] sm:$0xff] }
 0x10b   :  { %v993_v2 = vmax.f32 %v950_v63, %v981_v35  ;;  %v997_v44 = vmin.f32 %v954_v4, %v981_v35  ;;  %v836_v19 = vmax.f32 %v832_v15, 0.0  ;;  %v642_v15 = vmax.f32 %v630_v52, %v638_v16 }
 0x10c   :  { %v863_v32 = vpop.f32.mrf.mxu0  ;;  %v898_v13 = vpop.f32.mrf.mxu1  ;;  %v647_v20 = vmax.f32 %v643_v30, 0.0 }
 0x10d   :  { %v1001_v37 = vmul.f32 %v993_v2, %v2530_v11  ;;  %v1009_v51 = vmul.f32 %v997_v44, %v2530_v11  ;;  %2105 = vmatmul.msk.f32.gmra.mxu2 %vm34_vm1, %v2138_v62  ;;  %1790 = vmatpush.msrb.mxu0 %v836_v19  ;;  %v908_v5 = vmax.f32 %v863_v32, %v898_v13  ;;  %v646_v45 = vmax.f32 %v642_v15, 0.0 }
 0x10e   :  { %2117 = vmatpush.msrb.mxu3 %v836_v19  ;;  %v912_v8 = vmin.f32 %v863_v32, %v898_v13 }
 0x10f   :  { %v2927_v46 = vadd.f32 %v1001_v37, %v2532_v14  ;;  %v2930_v17 = vadd.f32 %v1009_v51, %v2532_v14  ;;  %2112 = vmatmul.msk.f32.gmra.mxu3 %vm34_vm1, %v2138_v62  ;;  %1791 = vmatpush.msrb.mxu0 %v835_v0  ;;  %v645_v37 = vmax.f32 %v3202_v24, 0.0 }
 0x110   :  { %2118 = vmatpush.msrb.mxu3 %v835_v0  ;;  %v941_v49 = vpop.f32.mrf.mxu2  ;;  %2091 = vmatmul.msk.f32.gmra.mxu0 %vm34_vm1, %v2138_v62  ;;  %v984_v50 = vpop.f32.mrf.mxu3  ;;  %v3203_v0 = vmax.f32 %v2728_v9, %v2731_v12 }
 0x111   :  { %3198 = vst [vmem:[#allocation3_spill] sm:$0xff] %v2927_v46  ;;  %v951_v3 = vmax.f32 %v908_v5, %v941_v49  ;;  %v955_v43 = vmin.f32 %v912_v8, %v941_v49  ;;  %2098 = vmatmul.msk.f32.gmra.mxu1 %vm34_vm1, %v2138_v62  ;;  %1792 = vmatpush.msrb.mxu0 %v834_v57 }
 0x112   :  { %3199 = vst [vmem:[#allocation4_spill] sm:$0xff] %v2930_v17  ;;  %2119 = vmatpush.msrb.mxu3 %v834_v57  ;;  %v460_v8 = vmax.f32 %v3203_v0, 0.0  ;;  %v3204_v49 = vmax.f32 %v2687_v34, %v2690_v36 }
 0x113   :  { %v994_v35 = vmax.f32 %v951_v3, %v984_v50  ;;  %v998_v31 = vmin.f32 %v955_v43, %v984_v50  ;;  %1793 = vmatpush.msrb.mxu0 %v833_v54  ;;  %v3206_v3 = vmax.f32 %v2665_v6, %v2668_v7 }
 0x114   :  { %2120 = vmatpush.msrb.mxu3 %v833_v54  ;;  %v866_v63 = vpop.f32.mrf.mxu0  ;;  %v901_v4 = vpop.f32.mrf.mxu1  ;;  %v459_v9 = vmax.f32 %v3204_v49, 0.0 }
 0x115   :  { %v1002_v18 = vmul.f32 %v994_v35, %v2497_v58  ;;  %v1010_v1 = vmul.f32 %v998_v31, %v2497_v58  ;;  %2106 = vmatmul.msk.f32.gmra.mxu2 %vm34_vm1, %v2139_v21  ;;  %1794 = vmatpush.msrb.mxu0 %v648_v23  ;;  %v909_v28 = vmax.f32 %v866_v63, %v901_v4  ;;  %v458_v43 = vmax.f32 %v3206_v3, 0.0 }
 0x116   :  { %2121 = vmatpush.msrb.mxu3 %v648_v23  ;;  %v913_v2 = vmin.f32 %v866_v63, %v901_v4  ;;  %v3207_v31 = vmax.f32 %v2647_v47, %v2650_v48  ;;  %v3208_v63 = vmax.f32 %v2628_v25, %v2631_v27  ;;  %v3210_v27 = vmax.f32 %v2565_v40, %v2568_v41 }
 0x117   :  { %v2944_v44 = vadd.f32 %v1002_v18, %v2552_v33  ;;  %v2947_v19 = vadd.f32 %v1010_v1, %v2552_v33  ;;  %2113 = vmatmul.msk.f32.gmra.mxu3 %vm34_vm1, %v2139_v21  ;;  %1795 = vmatpush.msrb.mxu0 %v647_v20 }
 0x118   :  { %2122 = vmatpush.msrb.mxu3 %v647_v20  ;;  %v944_v32 = vpop.f32.mrf.mxu2  ;;  %2092 = vmatmul.msk.f32.gmra.mxu0 %vm34_vm1, %v2139_v21  ;;  %v457_v23 = vmax.f32 %v3207_v31, 0.0  ;;  %v272_v4 = vmax.f32 %v3208_v63, 0.0 }
 0x119   :  { %3200 = vst [vmem:[#allocation5_spill] sm:$0xff] %v2944_v44  ;;  %v952_v13 = vmax.f32 %v909_v28, %v944_v32  ;;  %v956_v42 = vmin.f32 %v913_v2, %v944_v32  ;;  %2099 = vmatmul.msk.f32.gmra.mxu1 %vm34_vm1, %v2139_v21  ;;  %1796 = vmatpush.msrb.mxu0 %v646_v45  ;;  %v987_v26 = vpop.f32.mrf.mxu3 }
 0x11a   :  { %3201 = vst [vmem:[#allocation6_spill] sm:$0xff] %v2947_v19  ;;  %2123 = vmatpush.msrb.mxu3 %v646_v45  ;;  %v3209_v21 = vmax.f32 %v2587_v60, %v2590_v61  ;;  %v270_v60 = vmax.f32 %v3210_v27, 0.0 }
 0x11b   :  { %v995_v62 = vmax.f32 %v952_v13, %v987_v26  ;;  %v999_v5 = vmin.f32 %v956_v42, %v987_v26  ;;  %1797 = vmatpush.msrb.mxu0 %v645_v37  ;;  %v3211_v26 = vld [vmem:[#allocation2_spill] sm:$0xff] }
 0x11c   :  { %2124 = vmatpush.msrb.mxu3 %v645_v37  ;;  %v869_v52 = vpop.f32.mrf.mxu0  ;;  %v904_v16 = vpop.f32.mrf.mxu1  ;;  %v271_v28 = vmax.f32 %v3209_v21, 0.0  ;;  %v3212_v24 = vmax.f32 %v2545_v22, %v3211_v26 }
 0x11d   :  { %v1003_v57 = vmul.f32 %v995_v62, %v2528_v10  ;;  %v1011_v59 = vmul.f32 %v999_v5, %v2528_v10  ;;  %2107 = vmatmul.msk.f32.gmra.mxu2 %vm34_vm1, %v2140_v38  ;;  %1798 = vmatpush.msrb.mxu0 %v460_v8  ;;  %v910_v39 = vmax.f32 %v869_v52, %v904_v16 }
 0x11e   :  { %2125 = vmatpush.msrb.mxu3 %v460_v8  ;;  %v914_v12 = vmin.f32 %v869_v52, %v904_v16  ;;  %v269_v37 = vmax.f32 %v3212_v24, 0.0 }
 0x11f   :  { %v2970_v50 = vadd.f32 %v1003_v57, %v2492_v56  ;;  %v2973_v30 = vadd.f32 %v1011_v59, %v2492_v56  ;;  %2114 = vmatmul.msk.f32.gmra.mxu3 %vm34_vm1, %v2140_v38  ;;  %1799 = vmatpush.msrb.mxu0 %v459_v9 }
 0x120   :  { %2126 = vmatpush.msrb.mxu3 %v459_v9  ;;  %v947_v54 = vpop.f32.mrf.mxu2  ;;  %2093 = vmatmul.msk.f32.gmra.mxu0 %vm34_vm1, %v2140_v38 }
 0x121   :  { %3205 = vst [vmem:[#allocation7_spill] sm:$0xff] %v2973_v30  ;;  %v953_v34 = vmax.f32 %v910_v39, %v947_v54  ;;  %v957_v36 = vmin.f32 %v914_v12, %v947_v54  ;;  %2100 = vmatmul.msk.f32.gmra.mxu1 %vm34_vm1, %v2140_v38  ;;  %1800 = vmatpush.msrb.mxu0 %v458_v43  ;;  %v990_v35 = vpop.f32.mrf.mxu3 }
 0x122   :  { %2127 = vmatpush.msrb.mxu3 %v458_v43 }
 0x123   :  { %v996_v6 = vmax.f32 %v953_v34, %v990_v35  ;;  %v1000_v7 = vmin.f32 %v957_v36, %v990_v35  ;;  %1801 = vmatpush.msrb.mxu0 %v457_v23 }
 0x124   :  { %2128 = vmatpush.msrb.mxu3 %v457_v23  ;;  %v1048_v18 = vpop.f32.mrf.mxu0  ;;  %v1083_v1 = vpop.f32.mrf.mxu1 }
 0x125   :  { %v1004_v47 = vmul.f32 %v996_v6, %v2490_v55  ;;  %v1012_v48 = vmul.f32 %v1000_v7, %v2490_v55  ;;  %1802 = vmatpush.msrb.mxu0 %v272_v4  ;;  %v1095_v20 = vmax.f32 %v1048_v18, %v1083_v1  ;;  %v1099_v2 = vmin.f32 %v1048_v18, %v1083_v1 }
 0x126   :  { %2129 = vmatpush.msrb.mxu3 %v272_v4 }
 0x127   :  { %v2995_v45 = vadd.f32 %v1004_v47, %v2476_v53  ;;  %v2998_v25 = vadd.f32 %v1012_v48, %v2476_v53  ;;  %1803 = vmatpush.msrb.mxu0 %v271_v28 }
 0x128   :  { %2130 = vmatpush.msrb.mxu3 %v271_v28  ;;  %v1126_v61 = vpop.f32.mrf.mxu2 }
 0x129   :  { %v1138_v32 = vmax.f32 %v1095_v20, %v1126_v61  ;;  %v1142_v13 = vmin.f32 %v1099_v2, %v1126_v61  ;;  %1804 = vmatpush.msrb.mxu0 %v270_v60  ;;  %v1169_v42 = vpop.f32.mrf.mxu3 }
 0x12a   :  { %2131 = vmatpush.msrb.mxu3 %v270_v60 }
 0x12b   :  { %v1181_v5 = vmax.f32 %v1138_v32, %v1169_v42  ;;  %v1185_v0 = vmin.f32 %v1142_v13, %v1169_v42  ;;  %1805 = vmatpush.msrb.mxu0 %v269_v37 }
 0x12c   :  { %2132 = vmatpush.msrb.mxu3 %v269_v37  ;;  %v1051_v40 = vpop.f32.mrf.mxu0  ;;  %v1086_v41 = vpop.f32.mrf.mxu1 }
 0x12d   :  { %v1189_v8 = vmul.f32 %v1181_v5, %v2530_v11  ;;  %v1197_v52 = vmul.f32 %v1185_v0, %v2530_v11  ;;  %v1096_v16 = vmax.f32 %v1051_v40, %v1086_v41  ;;  %v1100_v57 = vmin.f32 %v1051_v40, %v1086_v41 }
 0x12f   :  { %v3011_v59 = vadd.f32 %v1189_v8, %v2532_v14  ;;  %v3014_v22 = vadd.f32 %v1197_v52, %v2532_v14 }
 0x130   :  { %v1129_v38 = vpop.f32.mrf.mxu2 }
 0x131   :  { %v1139_v39 = vmax.f32 %v1096_v16, %v1129_v38  ;;  %v1143_v49 = vmin.f32 %v1100_v57, %v1129_v38  ;;  %v1172_v9 = vpop.f32.mrf.mxu3 }
 0x133   :  { %v1182_v3 = vmax.f32 %v1139_v39, %v1172_v9  ;;  %v1186_v43 = vmin.f32 %v1143_v49, %v1172_v9 }
 0x134   :  { %v1054_v54 = vpop.f32.mrf.mxu0  ;;  %v1089_v34 = vpop.f32.mrf.mxu1 }
 0x135   :  { %v1190_v36 = vmul.f32 %v1182_v3, %v2497_v58  ;;  %v1198_v35 = vmul.f32 %v1186_v43, %v2497_v58  ;;  %v1097_v31 = vmax.f32 %v1054_v54, %v1089_v34  ;;  %v1101_v23 = vmin.f32 %v1054_v54, %v1089_v34 }
 0x137   :  { %v3021_v6 = vadd.f32 %v1190_v36, %v2552_v33  ;;  %v3024_v7 = vadd.f32 %v1198_v35, %v2552_v33 }
 0x138   :  { %v1132_v63 = vpop.f32.mrf.mxu2 }
 0x139   :  { %v1140_v4 = vmax.f32 %v1097_v31, %v1132_v63  ;;  %v1144_v18 = vmin.f32 %v1101_v23, %v1132_v63  ;;  %v1175_v1 = vpop.f32.mrf.mxu3 }
 0x13b   :  { %v1183_v28 = vmax.f32 %v1140_v4, %v1175_v1  ;;  %v1187_v47 = vmin.f32 %v1144_v18, %v1175_v1 }
 0x13c   :  { %v1057_v48 = vpop.f32.mrf.mxu0  ;;  %v1092_v20 = vpop.f32.mrf.mxu1 }
 0x13d   :  { %v1191_v2 = vmul.f32 %v1183_v28, %v2528_v10  ;;  %v1199_v27 = vmul.f32 %v1187_v47, %v2528_v10  ;;  %v1098_v60 = vmax.f32 %v1057_v48, %v1092_v20  ;;  %v1102_v61 = vmin.f32 %v1057_v48, %v1092_v20 }
 0x13f   :  { %v3031_v32 = vadd.f32 %v1191_v2, %v2492_v56  ;;  %v3034_v13 = vadd.f32 %v1199_v27, %v2492_v56 }
 0x140   :  { %v1135_v42 = vpop.f32.mrf.mxu2 }
 0x141   :  { %v1141_v26 = vmax.f32 %v1098_v60, %v1135_v42  ;;  %v1145_v24 = vmin.f32 %v1102_v61, %v1135_v42  ;;  %v1178_v37 = vpop.f32.mrf.mxu3 }
 0x143   :  { %v1184_v0 = vmax.f32 %v1141_v26, %v1178_v37  ;;  %v1188_v40 = vmin.f32 %v1145_v24, %v1178_v37 }
 0x144   :  { %v1236_v41 = vpop.f32.mrf.mxu0  ;;  %v1271_v8 = vpop.f32.mrf.mxu1 }
 0x145   :  { %v1192_v52 = vmul.f32 %v1184_v0, %v2490_v55  ;;  %v1200_v16 = vmul.f32 %v1188_v40, %v2490_v55  ;;  %v1283_v57 = vmax.f32 %v1236_v41, %v1271_v8  ;;  %v1287_v38 = vmin.f32 %v1236_v41, %v1271_v8 }
 0x147   :  { %v3041_v39 = vadd.f32 %v1192_v52, %v2476_v53  ;;  %v3044_v49 = vadd.f32 %v1200_v16, %v2476_v53 }
 0x148   :  { %v1314_v9 = vpop.f32.mrf.mxu2 }
 0x149   :  { %v1326_v3 = vmax.f32 %v1283_v57, %v1314_v9  ;;  %v1330_v43 = vmin.f32 %v1287_v38, %v1314_v9  ;;  %v1357_v54 = vpop.f32.mrf.mxu3 }
 0x14b   :  { %v1369_v36 = vmax.f32 %v1326_v3, %v1357_v54  ;;  %v1373_v35 = vmin.f32 %v1330_v43, %v1357_v54 }
 0x14c   :  { %v3048_v31 = vpop.f32.mrf.mxu0  ;;  %v3050_v23 = vpop.f32.mrf.mxu1 }
 0x14d   :  { %v1377_v63 = vmul.f32 %v1369_v36, %v2530_v11  ;;  %v1385_v4 = vmul.f32 %v1373_v35, %v2530_v11 }
 0x14f   :  { %v3055_v18 = vadd.f32 %v1377_v63, %v2532_v14  ;;  %v3058_v1 = vadd.f32 %v1385_v4, %v2532_v14 }
 0x150   :  { %v1317_v28 = vpop.f32.mrf.mxu2 }
 0x151   :  { %v3060_v47 = vpop.f32.mrf.mxu3 }
 0x154   :  { %v1242_v20 = vpop.f32.mrf.mxu0  ;;  %v1277_v2 = vpop.f32.mrf.mxu1 }
 0x155   :  { %v1285_v34 = vmax.f32 %v1242_v20, %v1277_v2  ;;  %v1289_v48 = vmin.f32 %v1242_v20, %v1277_v2 }
 0x158   :  { %v1320_v27 = vpop.f32.mrf.mxu2 }
 0x159   :  { %v3064_v60 = vpop.f32.mrf.mxu3  ;;  %v1332_v20 = vmin.f32 %v1289_v48, %v1320_v27 }
 0x15c   :  { %v1245_v61 = vpop.f32.mrf.mxu0  ;;  %v1280_v42 = vpop.f32.mrf.mxu1 }
 0x15d   :  { %v1286_v62 = vmax.f32 %v1245_v61, %v1280_v42  ;;  %v1290_v12 = vmin.f32 %v1245_v61, %v1280_v42 }
 0x160   :  { %v1323_v26 = vpop.f32.mrf.mxu2 }
 0x161   :  { %v3066_v24 = vpop.f32.mrf.mxu3  ;;  %v1333_v61 = vmin.f32 %v1290_v12, %v1323_v26 }
 0x164   :  { %v1424_v37 = vpop.f32.mrf.mxu0  ;;  %v1459_v0 = vpop.f32.mrf.mxu1 }
 0x165   :  { %v1471_v35 = vmax.f32 %v1424_v37, %v1459_v0  ;;  %v1475_v63 = vmin.f32 %v1424_v37, %v1459_v0  ;;  %v1284_v37 = vmax.f32 %v3048_v31, %v3050_v23  ;;  %v1288_v0 = vmin.f32 %v3048_v31, %v3050_v23 }
 0x168   :  { %v1502_v40 = vpop.f32.mrf.mxu2 }
 0x169   :  { %v1545_v41 = vpop.f32.mrf.mxu3  ;;  %v1514_v17 = vmax.f32 %v1471_v35, %v1502_v40  ;;  %v1518_v46 = vmin.f32 %v1475_v63, %v1502_v40 }
 0x16b   :  { %v1557_v2 = vmax.f32 %v1514_v17, %v1545_v41  ;;  %v1561_v40 = vmin.f32 %v1518_v46, %v1545_v41 }
 0x16c   :  { %v1427_v8 = vpop.f32.mrf.mxu0  ;;  %v1462_v52 = vpop.f32.mrf.mxu1 }
 0x16d   :  { %v1472_v54 = vmax.f32 %v1427_v8, %v1462_v52  ;;  %v1476_v36 = vmin.f32 %v1427_v8, %v1462_v52  ;;  %v1329_v52 = vmax.f32 %v1286_v62, %v1323_v26  ;;  %v1376_v62 = vmin.f32 %v1333_v61, %v3066_v24 }
 0x16e   :  { %v1573_v23 = vmul.f32 %v1561_v40, %v2530_v11 }
 0x16f   :  { %v1372_v31 = vmax.f32 %v1329_v52, %v3066_v24  ;;  %v1388_v63 = vmul.f32 %v1376_v62, %v2490_v55 }
 0x170   :  { %v1505_v16 = vpop.f32.mrf.mxu2 }
 0x171   :  { %v1548_v57 = vpop.f32.mrf.mxu3  ;;  %v1515_v21 = vmax.f32 %v1472_v54, %v1505_v16  ;;  %v1519_v5 = vmin.f32 %v1476_v36, %v1505_v16  ;;  %v1327_v54 = vmax.f32 %v1284_v37, %v1317_v28  ;;  %v1331_v36 = vmin.f32 %v1288_v0, %v1317_v28 }
 0x172   :  { %v1380_v35 = vmul.f32 %v1372_v31, %v2490_v55 }
 0x173   :  { %v1558_v42 = vmax.f32 %v1515_v21, %v1548_v57  ;;  %v1562_v16 = vmin.f32 %v1519_v5, %v1548_v57  ;;  %v1370_v57 = vmax.f32 %v1327_v54, %v3060_v47 }
 0x174   :  { %v1430_v38 = vpop.f32.mrf.mxu0  ;;  %v1465_v9 = vpop.f32.mrf.mxu1  ;;  %v1384_v40 = vadd.f32 %v1380_v35, %v2476_v53 }
 0x175   :  { %v1473_v3 = vmax.f32 %v1430_v38, %v1465_v9  ;;  %v1477_v43 = vmin.f32 %v1430_v38, %v1465_v9  ;;  %v1566_v12 = vmul.f32 %v1558_v42, %v2497_v58  ;;  %v1574_v21 = vmul.f32 %v1562_v16, %v2497_v58 }
 0x178   :  { %v1508_v4 = vpop.f32.mrf.mxu2 }
 0x179   :  { %v1516_v29 = vmax.f32 %v1473_v3, %v1508_v4  ;;  %v1520_v51 = vmin.f32 %v1477_v43, %v1508_v4  ;;  %v1551_v15 = vpop.f32.mrf.mxu3  ;;  %v1328_v3 = vmax.f32 %v1285_v34, %v1320_v27  ;;  %v1565_v34 = vmul.f32 %v1557_v2, %v2530_v11 }
 0x17a   :  { %v1570_v4 = vadd.f32 %v1566_v12, %v2552_v33 }
 0x17b   :  { %v1559_v30 = vmax.f32 %v1516_v29, %v1551_v15  ;;  %v1563_v38 = vmin.f32 %v1520_v51, %v1551_v15  ;;  %v1371_v5 = vmax.f32 %v1328_v3, %v3064_v60  ;;  %v1569_v61 = vadd.f32 %v1565_v34, %v2532_v14 }
 0x17c   :  { %v1433_v19 = vpop.f32.mrf.mxu0  ;;  %v1468_v44 = vpop.f32.mrf.mxu1 }
 0x17d   :  { %v1474_v9 = vmax.f32 %v1433_v19, %v1468_v44  ;;  %v1478_v8 = vmin.f32 %v1433_v19, %v1468_v44  ;;  %v1567_v29 = vmul.f32 %v1559_v30, %v2528_v10  ;;  %v1575_v51 = vmul.f32 %v1563_v38, %v2528_v10 }
 0x17e   :  { %v1375_v30 = vmin.f32 %v1332_v20, %v3064_v60  ;;  %v1374_v60 = vmin.f32 %v1331_v36, %v3060_v47  ;;  %v1578_v38 = vadd.f32 %v1574_v21, %v2552_v33  ;;  %v1379_v37 = vmul.f32 %v1371_v5, %v2528_v10 }
 0x17f   :  { %v1571_v27 = vadd.f32 %v1567_v29, %v2492_v56  ;;  %v1579_v26 = vadd.f32 %v1575_v51, %v2492_v56  ;;  %v1577_v47 = vadd.f32 %v1573_v23, %v2532_v14  ;;  %v1378_v20 = vmul.f32 %v1370_v57, %v2497_v58 }
 0x180   :  { %v1511_v43 = vpop.f32.mrf.mxu2  ;;  %v1387_v0 = vmul.f32 %v1375_v30, %v2528_v10  ;;  %v1386_v2 = vmul.f32 %v1374_v60, %v2497_v58  ;;  %v1582_v51 = vmax.f32 %v1570_v4, %v1578_v38 }
 0x181   :  { %v1517_v44 = vmax.f32 %v1474_v9, %v1511_v43  ;;  %v1521_v19 = vmin.f32 %v1478_v8, %v1511_v43  ;;  %v1554_v15 = vpop.f32.mrf.mxu3  ;;  %v1583_v3 = vmax.f32 %v1571_v27, %v1579_v26  ;;  %v1392_v43 = vadd.f32 %v1388_v63, %v2476_v53  ;;  %v1777_v26 = vld [vmem:[%s3189_s3] sm:$0xff] }
 0x182   :  { %v1581_v36 = vmax.f32 %v1569_v61, %v1577_v47  ;;  %v1382_v31 = vadd.f32 %v1378_v20, %v2552_v33  ;;  %v1390_v62 = vadd.f32 %v1386_v2, %v2552_v33  ;;  %v1586_v21 = vmax.f32 %v1582_v51, 0.0  ;;  %1806 = vmatmul.f32.vlgmr.msrb.gmra.mxu0 %v1777_v26 }
 0x183   :  { %v1560_v17 = vmax.f32 %v1517_v44, %v1554_v15  ;;  %v1564_v46 = vmin.f32 %v1521_v19, %v1554_v15  ;;  %v1383_v44 = vadd.f32 %v1379_v37, %v2492_v56  ;;  %v1391_v19 = vadd.f32 %v1387_v0, %v2492_v56 }
 0x184   :  { %v3082_v48 = vpop.f32.mrf.mxu0  ;;  %v3084_v28 = vpop.f32.mrf.mxu1  ;;  %v1587_v54 = vmax.f32 %v1583_v3, 0.0  ;;  %v1585_v5 = vmax.f32 %v1581_v36, 0.0  ;;  %v1394_v23 = vmax.f32 %v1382_v31, %v1390_v62 }
 0x185   :  { %v1568_v24 = vmul.f32 %v1560_v17, %v2490_v55  ;;  %v1576_v41 = vmul.f32 %v1564_v46, %v2490_v55  ;;  %v1396_v17 = vmax.f32 %v1384_v40, %v1392_v43  ;;  %v1395_v30 = vmax.f32 %v1383_v44, %v1391_v19 }
 0x186   :  { %v1398_v35 = vmax.f32 %v1394_v23, 0.0  ;;  %v1663_v37 = vmin.f32 %v3082_v48, %v3084_v28  ;;  %v3214_v43 = vmax.f32 %v3041_v39, %v3044_v49 }
 0x187   :  { %v1572_v9 = vadd.f32 %v1568_v24, %v2476_v53  ;;  %v1580_v8 = vadd.f32 %v1576_v41, %v2476_v53  ;;  %v1400_v27 = vmax.f32 %v1396_v17, 0.0  ;;  %v1780_v24 = vld [vmem:[%s3189_s3 + $0x18] sm:$0xf]  ;;  %v1399_v57 = vmax.f32 %v1395_v30, 0.0 }
 0x188   :  { %v1690_v52 = vpop.f32.mrf.mxu2  ;;  %1809 = vmatmul.f32.vlgmr.msrb.gmra.mxu3 %v1780_v24  ;;  %v3217_v17 = vmax.f32 %v3011_v59, %v3014_v22  ;;  %v3218_v30 = vmax.f32 %v2995_v45, %v2998_v25 }
 0x189   :  { %v1584_v42 = vmax.f32 %v1572_v9, %v1580_v8  ;;  %v3102_v16 = vpop.f32.mrf.mxu3  ;;  %v1659_v8 = vmax.f32 %v3082_v48, %v3084_v28  ;;  %v1706_v44 = vmin.f32 %v1663_v37, %v1690_v52 }
 0x18b   :  { %v1588_v29 = vmax.f32 %v1584_v42, 0.0  ;;  %v3213_v42 = vmax.f32 %v3055_v18, %v3058_v1  ;;  %v1702_v51 = vmax.f32 %v1659_v8, %v1690_v52  ;;  %v3216_v1 = vmax.f32 %v3021_v6, %v3024_v7  ;;  %v3224_v8 = vld [vmem:[#allocation3_spill] sm:$0xff] }
 0x18c   :  { %v1749_v52 = vmin.f32 %v1706_v44, %v3102_v16 }
 0x18d   :  { %1813 = vmatpush.msrb.mxu1 %v1588_v29  ;;  %v1615_v15 = vpop.f32.mrf.mxu0  ;;  %v1397_v3 = vmax.f32 %v3213_v42, 0.0  ;;  %v1212_v29 = vmax.f32 %v3214_v43, 0.0  ;;  %v1210_v36 = vmax.f32 %v3216_v1, 0.0  ;;  %v1745_v49 = vmax.f32 %v1702_v51, %v3102_v16  ;;  %v1782_v51 = vld [vmem:[%s3189_s3 + $0x28] sm:$0xf] }
 0x18e   :  { %v1650_v12 = vpop.f32.mrf.mxu1  ;;  %v1761_v22 = vmul.f32 %v1749_v52, %v2530_v11 }
 0x18f   :  { %1814 = vmatpush.msrb.mxu1 %v1587_v54  ;;  %v1660_v63 = vmax.f32 %v1615_v15, %v1650_v12  ;;  %v1664_v4 = vmin.f32 %v1615_v15, %v1650_v12  ;;  %v3215_v15 = vmax.f32 %v3031_v32, %v3034_v13  ;;  %v1209_v32 = vmax.f32 %v3217_v17, 0.0 }
 0x190   :  { %v1693_v46 = vpop.f32.mrf.mxu2  ;;  %v1753_v59 = vmul.f32 %v1745_v49, %v2530_v11 }
 0x191   :  { %1815 = vmatpush.msrb.mxu1 %v1586_v21  ;;  %v1703_v2 = vmax.f32 %v1660_v63, %v1693_v46  ;;  %v1707_v40 = vmin.f32 %v1664_v4, %v1693_v46  ;;  %v1211_v54 = vmax.f32 %v3215_v15, 0.0 }
 0x192   :  { %v1736_v34 = vpop.f32.mrf.mxu3 }
 0x193   :  { %1816 = vmatpush.msrb.mxu1 %v1585_v5  ;;  %v1746_v31 = vmax.f32 %v1703_v2, %v1736_v34  ;;  %v1750_v62 = vmin.f32 %v1707_v40, %v1736_v34  ;;  %v1024_v34 = vmax.f32 %v3218_v30, 0.0 }
 0x195   :  { %1817 = vmatpush.msrb.mxu1 %v1400_v27  ;;  %v1618_v41 = vpop.f32.mrf.mxu0  ;;  %v1754_v23 = vmul.f32 %v1746_v31, %v2497_v58  ;;  %v1762_v16 = vmul.f32 %v1750_v62, %v2497_v58  ;;  %v3221_v58 = vld [vmem:[#allocation5_spill] sm:$0xff] }
 0x196   :  { %v1653_v60 = vpop.f32.mrf.mxu1 }
 0x197   :  { %v1661_v38 = vmax.f32 %v1618_v41, %v1653_v60  ;;  %v1665_v9 = vmin.f32 %v1618_v41, %v1653_v60  ;;  %1818 = vmatpush.msrb.mxu1 %v1399_v57  ;;  %v1766_v11 = vadd.f32 %v1762_v16, %v2552_v33 }
 0x198   :  { %v1696_v0 = vpop.f32.mrf.mxu2 }
 0x199   :  { %v1704_v61 = vmax.f32 %v1661_v38, %v1696_v0  ;;  %v1708_v47 = vmin.f32 %v1665_v9, %v1696_v0  ;;  %1819 = vmatpush.msrb.mxu1 %v1398_v35  ;;  %v3222_v35 = vld [vmem:[#allocation6_spill] sm:$0xff]  ;;  %v1758_v38 = vadd.f32 %v1754_v23, %v2552_v33  ;;  %v1778_v33 = vld [vmem:[%s3189_s3 + $0x8] sm:$0xff] }
 0x19a   :  { %v1739_v20 = vpop.f32.mrf.mxu3  ;;  %v3223_v63 = vmax.f32 %v3221_v58, %v3222_v35 }
 0x19b   :  { %1820 = vmatpush.msrb.mxu1 %v1397_v3  ;;  %v1747_v19 = vmax.f32 %v1704_v61, %v1739_v20  ;;  %v1751_v48 = vmin.f32 %v1708_v47, %v1739_v20  ;;  %v1765_v61 = vadd.f32 %v1761_v22, %v2532_v14  ;;  %v1770_v20 = vmax.f32 %v1758_v38, %v1766_v11 }
 0x19c   :  { %v1022_v4 = vmax.f32 %v3223_v63, 0.0 }
 0x19d   :  { %1821 = vmatpush.msrb.mxu1 %v1212_v29  ;;  %v1621_v28 = vpop.f32.mrf.mxu0  ;;  %v1755_v13 = vmul.f32 %v1747_v19, %v2528_v10  ;;  %v1763_v46 = vmul.f32 %v1751_v48, %v2528_v10  ;;  %v3219_v10 = vld [vmem:[#allocation7_spill] sm:$0xff]  ;;  %v1774_v40 = vmax.f32 %v1770_v20, 0.0  ;;  %v1781_v29 = vld [vmem:[%s3189_s3 + $0x20] sm:$0xf] }
 0x19e   :  { %v1656_v18 = vpop.f32.mrf.mxu1  ;;  %v3220_v24 = vmax.f32 %v2970_v50, %v3219_v10 }
 0x19f   :  { %v1662_v12 = vmax.f32 %v1621_v28, %v1656_v18  ;;  %v1666_v39 = vmin.f32 %v1621_v28, %v1656_v18  ;;  %1822 = vmatpush.msrb.mxu1 %v1211_v54  ;;  %v1759_v57 = vadd.f32 %v1755_v13, %v2492_v56  ;;  %v1767_v45 = vadd.f32 %v1763_v46, %v2492_v56  ;;  %v3225_v56 = vld [vmem:[#allocation4_spill] sm:$0xff] }
 0x1a0   :  { %v1699_v21 = vpop.f32.mrf.mxu2  ;;  %v1023_v41 = vmax.f32 %v3220_v24, 0.0  ;;  %v3226_v37 = vmax.f32 %v3224_v8, %v3225_v56 }
 0x1a1   :  { %v1705_v6 = vmax.f32 %v1662_v12, %v1699_v21  ;;  %v1709_v7 = vmin.f32 %v1666_v39, %v1699_v21  ;;  %1823 = vmatpush.msrb.mxu1 %v1210_v36  ;;  %v1771_v42 = vmax.f32 %v1759_v57, %v1767_v45 }
 0x1a2   :  { %v1742_v5 = vpop.f32.mrf.mxu3  ;;  %v1021_v0 = vmax.f32 %v3226_v37, 0.0 }
 0x1a3   :  { %v1748_v27 = vmax.f32 %v1705_v6, %v1742_v5  ;;  %v1752_v26 = vmin.f32 %v1709_v7, %v1742_v5  ;;  %1824 = vmatpush.msrb.mxu1 %v1209_v32 }
 0x1a5   :  { %v1756_v25 = vmul.f32 %v1748_v27, %v2490_v55  ;;  %v1764_v60 = vmul.f32 %v1752_v26, %v2490_v55  ;;  %1825 = vmatpush.msrb.mxu1 %v1024_v34  ;;  %v1757_v55 = vadd.f32 %v1753_v59, %v2532_v14  ;;  %v1779_v14 = vld [vmem:[%s3189_s3 + $0x10] sm:$0xff] }
 0x1a7   :  { %v1760_v50 = vadd.f32 %v1756_v25, %v2476_v53  ;;  %v1768_v9 = vadd.f32 %v1764_v60, %v2476_v53  ;;  %1826 = vmatpush.msrb.mxu1 %v1023_v41  ;;  %v1775_v53 = vmax.f32 %v1771_v42, 0.0  ;;  %v1769_v2 = vmax.f32 %v1757_v55, %v1765_v61 }
 0x1a9   :  { %v1772_v47 = vmax.f32 %v1760_v50, %v1768_v9  ;;  %1827 = vmatpush.msrb.mxu1 %v1022_v4  ;;  %v1773_v43 = vmax.f32 %v1769_v2, 0.0 }
 0x1ab   :  { %1828 = vmatpush.msrb.mxu1 %v1021_v0  ;;  %v1776_v3 = vmax.f32 %v1772_v47, 0.0 }
 0x1ac   :  { %1829 = vmatmul.f32.vlgmr.msrb.gmra.mxu1 %v1778_v33 }
 0x1ad   :  { %1848 = vmatpush.msrb.mxu2 %v1776_v3 }
 0x1af   :  { %1849 = vmatpush.msrb.mxu2 %v1775_v53 }
 0x1b1   :  { %1850 = vmatpush.msrb.mxu2 %v1774_v40 }
 0x1b3   :  { %1851 = vmatpush.msrb.mxu2 %v1773_v43 }
 0x1b4   :  { %2115 = vmatmul.msk.f32.vlgmr.msrb.gmra.mxu2 %vm1783_vm2, %v1779_v14  ;;  %1832 = vmatmul.f32.gmra.mxu1 %v1781_v29 }
 0x1bc   :  { %2116 = vmatmul.msk.f32.gmra.mxu2 %vm1783_vm2, %v1782_v51 }
 0x1ff   :  { %v1807_v19 = vpop.f32.mrf.mxu0 }
 0x20b   :  { %v1810_v54 = vpop.f32.mrf.mxu3 }
 0x229   :  { %v1830_v44 = vpop.f32.mrf.mxu1 }
 0x22a   :  { %v1831_v48 = vadd.f32 %v1830_v44, %v1807_v19 }
 0x231   :  { %v1833_v18 = vpop.f32.mrf.mxu1 }
 0x232   :  { %v1834_v1 = vadd.f32 %v1833_v18, %v1810_v54 }
 0x237   :  { %v1853_v28 = vpop.f32.mrf.mxu2 }
 0x238   :  { %v1854_v15 = vadd.f32 %v1853_v28, %v1831_v48 }
 0x23a   :  { %1859 = vst [vmem:[%s3190_s5] sm:$0xff] %v1854_v15 }
 0x23f   :  { %v1856_v36 = vpop.f32.mrf.mxu2 }
 0x240   :  { %v1857_v31 = vadd.f32 %v1856_v36, %v1834_v1 }
 0x242   :  { %1860 = vst [vmem:[%s3190_s5 + $0x8] sm:$0xf] %v1857_v31 }

</bundles_post_ra>
